<compile_context>
chip_gen: v7x
topology: tpu7x:2x2x1
jax: 0.10.0
libtpu: 0.0.40
codegen_flags: <defaults>
</compile_context>

<pallas_src>
import functools

import jax
import jax.numpy as jnp
from jax.experimental import pallas as pl
from jax.experimental.pallas import tpu as pltpu


# ----------------------------------------------------------------------------
# Pallas kernels
# ----------------------------------------------------------------------------

def _gemm_kernel(x_ref, w_ref, b_ref, o_ref, *, act, squash_group):
    """Fused (M,K)@(K,N) + bias + activation (+ optional PrimaryCap squash)."""
    acc = jnp.dot(x_ref[...], w_ref[...], preferred_element_type=jnp.float32)
    acc = acc + b_ref[...]                                 # (1, N) broadcasts
    if act == "relu":
        acc = jnp.maximum(acc, 0.0)
    if squash_group is not None:
        # PrimaryCap squash fused into the GEMM epilogue.  With GEMM rows
        # ordered (b, h, w) and columns = output channels, torch's NCHW
        # flatten + view(B, -1, dim_capsule) makes each capsule exactly
        # `squash_group` consecutive rows of one column.
        g = squash_group
        m, n = acc.shape
        a3 = acc.reshape(m // g, g, n)
        sn = jnp.sum(a3 * a3, axis=1, keepdims=True)       # (m//g, 1, n)
        a3 = (sn / (1.0 + sn)) * a3 / jnp.sqrt(sn + 1e-9)  # squash over the group
        acc = a3.reshape(m, n)
    o_ref[...] = acc


def gemm_bias_act(x, w, b, *, act="none", squash_group=None):
    m, k = x.shape
    k2, n = w.shape
    assert k == k2
    return pl.pallas_call(
        functools.partial(_gemm_kernel, act=act, squash_group=squash_group),
        out_shape=jax.ShapeDtypeStruct((m, n), jnp.float32),
        grid=(1,),
        in_specs=[
            pl.BlockSpec((m, k), lambda i: (0, 0)),
            pl.BlockSpec((k, n), lambda i: (0, 0)),
            pl.BlockSpec((1, n), lambda i: (0, 0)),
        ],
        out_specs=pl.BlockSpec((m, n), lambda i: (0, 0)),
        compiler_params=pltpu.CompilerParams(dimension_semantics=("arbitrary",)),
        # TODO(synk): for large batches, tile M with a "parallel" grid axis so
        # v7x's two TensorCores split the rows.
    )(x, w, b.reshape(1, n))


def _routing_kernel(w_ref, u_ref, o_ref, *, routings):
    """Dynamic routing, batched over (batch, out-capsule) in a single grid cell.

    w_ref: (I, J*D, N)  -- W[j, n, d, i] re-laid-out; N (input capsules) on lanes
    u_ref: (I, B, N)    -- squashed primary capsules, N on lanes
    o_ref: (B, J*D)     -- |v| (Distance() over the trailing size-1 axis)

    Faithful to the reference semantics: softmax over the input-capsule axis,
    squash over a trailing size-1 axis (elementwise), per-dimension b update.
    """
    n_i = w_ref.shape[0]
    # u_hat[b, jd, n] = sum_i W[i, jd, n] * u[i, b, n]   (unrolled, VPU on (B,JD,N) tiles)
    u_hat = w_ref[0][None, :, :] * u_ref[0][:, None, :]
    for i in range(1, n_i):
        u_hat = u_hat + w_ref[i][None, :, :] * u_ref[i][:, None, :]

    bb = jnp.zeros_like(u_hat)                             # routing logits (B, JD, N)
    for r in range(routings):
        # softmax over the input-capsule axis (the lane axis)
        mx = jnp.max(bb, axis=-1, keepdims=True)
        e = jnp.exp(bb - mx)
        c = e / jnp.sum(e, axis=-1, keepdims=True)
        if r < routings - 1:
            s = jnp.sum(c * u_hat, axis=-1, keepdims=True)      # (B, JD, 1)
            sq = s * s
            v = (sq / (1.0 + sq)) * s / jnp.sqrt(sq + 1e-9)     # elementwise squash
            bb = bb + u_hat * v                                 # per-dimension agreement
        else:
            s = jnp.sum(c * u_hat, axis=-1)                     # (B, JD)
            sq = s * s
            v = (sq / (1.0 + sq)) * s / jnp.sqrt(sq + 1e-9)
            o_ref[...] = jnp.abs(v)                             # Distance() == |v|


def capsule_routing(u_t, w_t, routings):
    """u_t: (I, B, N); w_t: (I, J*D, N) -> (B, J*D) = |routed capsules|."""
    n_i, b, n = u_t.shape
    jd = w_t.shape[1]
    return pl.pallas_call(
        functools.partial(_routing_kernel, routings=routings),
        out_shape=jax.ShapeDtypeStruct((b, jd), jnp.float32),
        grid=(1,),
        in_specs=[
            pl.BlockSpec((n_i, jd, n), lambda i: (0, 0, 0)),
            pl.BlockSpec((n_i, b, n), lambda i: (0, 0, 0)),
        ],
        out_specs=pl.BlockSpec((b, jd), lambda i: (0, 0)),
        compiler_params=pltpu.CompilerParams(dimension_semantics=("arbitrary",)),
    )(w_t, u_t)


def _decoder_kernel(x_ref, w1_ref, b1_ref, w2_ref, b2_ref, w3_ref, b3_ref, o_ref):
    """Fused decoder MLP: 64 -> 512 -> 1024 -> prod(input_shape), relu/relu/sigmoid."""
    h = jnp.dot(x_ref[...], w1_ref[...], preferred_element_type=jnp.float32) + b1_ref[...]
    h = jnp.maximum(h, 0.0)
    h = jnp.dot(h, w2_ref[...], preferred_element_type=jnp.float32) + b2_ref[...]
    h = jnp.maximum(h, 0.0)
    z = jnp.dot(h, w3_ref[...], preferred_element_type=jnp.float32) + b3_ref[...]
    # sigmoid = 1 / (1 + exp(-z)): exp and reciprocal both land on the EUP slot.
    o_ref[...] = pl.reciprocal(1.0 + jnp.exp(-z), approx=True)


def decoder_mlp(x, w1, b1, w2, b2, w3, b3):
    m = x.shape[0]
    d0, d1 = w1.shape
    d2 = w2.shape[1]
    d3 = w3.shape[1]
    return pl.pallas_call(
        _decoder_kernel,
        out_shape=jax.ShapeDtypeStruct((m, d3), jnp.float32),
        grid=(1,),
        in_specs=[
            pl.BlockSpec((m, d0), lambda i: (0, 0)),
            pl.BlockSpec((d0, d1), lambda i: (0, 0)),
            pl.BlockSpec((1, d1), lambda i: (0, 0)),
            pl.BlockSpec((d1, d2), lambda i: (0, 0)),
            pl.BlockSpec((1, d2), lambda i: (0, 0)),
            pl.BlockSpec((d2, d3), lambda i: (0, 0)),
            pl.BlockSpec((1, d3), lambda i: (0, 0)),
        ],
        out_specs=pl.BlockSpec((m, d3), lambda i: (0, 0)),
        compiler_params=pltpu.CompilerParams(dimension_semantics=("arbitrary",)),
        # All three weight matrices (~3.3 MB f32) are VMEM-resident for the
        # whole call -- well under the scoped-VMEM default on v5e/v6e/v7x.
    )(x, w1, b1.reshape(1, d1), w2, b2.reshape(1, d2), w3, b3.reshape(1, d3))


# ----------------------------------------------------------------------------
# Plain-JAX glue (patch extraction, layout plumbing, mask selection)
# ----------------------------------------------------------------------------

def _im2col_nhwc(x, kh, kw, sh, sw, ph, pw):
    """x: (B, H, W, C) -> cols (B*Ho*Wo, kh*kw*C) with K ordered (kh, kw, C)."""
    B, H, W, C = x.shape
    xp = jnp.pad(x, ((0, 0), (ph, ph), (pw, pw), (0, 0)))
    Ho = (H + 2 * ph - kh) // sh + 1
    Wo = (W + 2 * pw - kw) // sw + 1
    patches = []
    for i in range(kh):
        for j in range(kw):
            patches.append(
                xp[:, i:i + sh * (Ho - 1) + 1:sh, j:j + sw * (Wo - 1) + 1:sw, :])
    cols = jnp.concatenate(patches, axis=-1)               # (B, Ho, Wo, kh*kw*C)
    return cols.reshape(B * Ho * Wo, kh * kw * C), Ho, Wo


def conv2d_bias_act_nhwc(x_nhwc, w, b, stride, padding, *, act="relu",
                         squash_dim=None):
    """NHWC conv (weights in PyTorch OIHW layout) via im2col + fused Pallas GEMM."""
    if isinstance(stride, int):
        stride = (stride, stride)
    if isinstance(padding, int):
        padding = (padding, padding)
    c_out, c_in, kh, kw = w.shape
    cols, ho, wo = _im2col_nhwc(x_nhwc, kh, kw, stride[0], stride[1],
                                padding[0], padding[1])
    w2 = jnp.transpose(w, (2, 3, 1, 0)).reshape(kh * kw * c_in, c_out)
    squash_group = None
    if squash_dim is not None:
        # Fused-squash path requires each capsule to be `squash_dim` consecutive
        # spatial positions of one output channel (true when Ho*Wo % dim == 0).
        assert (ho * wo) % squash_dim == 0
        squash_group = squash_dim
    y = gemm_bias_act(cols, w2, b, act=act, squash_group=squash_group)
    B = x_nhwc.shape[0]
    return y.reshape(B, ho, wo, c_out), ho, wo


def capsnet_forward(params, x_nchw, config, input_shape):
    B = x_nchw.shape[0]
    dim_cap = config["pc_dim_capsule"]

    # Convert to NHWC once; all conv activations stay NHWC (no per-layer transposes).
    x = jnp.transpose(x_nchw, (0, 2, 3, 1))

    h, _, _ = conv2d_bias_act_nhwc(x, params["conv1_w"], params["conv1_b"],
                                   config["cnn1_stride"], config["cnn1_padding"],
                                   act="relu")
    h, _, _ = conv2d_bias_act_nhwc(h, params["conv2_w"], params["conv2_b"],
                                   config["cnn2_stride"], config["cnn2_padding"],
                                   act="relu")
    # PrimaryCap conv; the squash is fused into its GEMM epilogue.
    pc, ho, wo = conv2d_bias_act_nhwc(h, params["pc_w"], params["pc_b"],
                                      config["pc_stride"], config["pc_padding"],
                                      act="none", squash_dim=dim_cap)
    c_pc = pc.shape[-1]
    n_groups = (ho * wo) // dim_cap                      # spatial groups per channel
    n_in_caps = c_pc * n_groups                          # 64 for this config

    # One-time tiny relayouts so the routing kernel sees the input-capsule axis
    # N on lanes and the contraction axis I leading:
    #   u_t[i, b, n] with n = c * n_groups + g  (torch NCHW .view(B,-1,dim) order)
    u_t = (pc.reshape(B, n_groups, dim_cap, c_pc)        # rows were (b, g*dim+i, c)
             .transpose(2, 0, 3, 1)                      # (i, b, c, g)
             .reshape(dim_cap, B, n_in_caps))
    w_dc = params["dc_W"]                                # (J, N_in, D_out, D_in)
    J, n_w, D, I = w_dc.shape
    assert n_w == n_in_caps and I == dim_cap
    w_t = jnp.transpose(w_dc, (3, 0, 2, 1)).reshape(I, J * D, n_in_caps)

    # Single-call routing; output is already |v| == Distance(digitcaps).
    out_caps = capsule_routing(u_t, w_t, config["routings"]).reshape(B, J, D)

    # Mask (no-label branch): keep the longest capsule, zero the rest.
    lengths = jnp.sqrt(jnp.sum(out_caps * out_caps, axis=-1))        # (B, J)
    idx = jnp.argmax(lengths, axis=1)
    mask = jax.nn.one_hot(idx, J, dtype=out_caps.dtype)
    masked = (out_caps * mask[:, :, None]).reshape(B, J * D)

    # Fused decoder MLP (single pallas_call).
    rec = decoder_mlp(masked, params["dec_w1"], params["dec_b1"],
                      params["dec_w2"], params["dec_b2"],
                      params["dec_w3"], params["dec_b3"])
    return out_caps, rec.reshape(B, *input_shape)


# ----------------------------------------------------------------------------
# Deterministic parameter construction + run
# ----------------------------------------------------------------------------

def build_params(key, config, input_shape, n_class):
    ks = jax.random.split(key, 16)
    n = lambda k, shp, s=0.1: (s * jax.random.normal(k, shp)).astype(jnp.float32)
    c1o, c1i = config["cnn1_out_channels"], config["cnn1_in_channels"]
    c2o, c2i = config["cnn2_out_channels"], config["cnn2_in_channels"]
    pco = config["pc_dim_capsule"] * config["pc_n_channels"]
    dec_out = int(input_shape[0] * input_shape[1] * input_shape[2])
    # primary capsule count: 32 channels * 4 * 4 spatial / dim_capsule(8) = 64
    n_in_caps = 64
    return {
        "conv1_w": n(ks[0], (c1o, c1i, *config["cnn1_kernel_size"])),
        "conv1_b": n(ks[1], (c1o,)),
        "conv2_w": n(ks[2], (c2o, c2i, *config["cnn2_kernel_size"])),
        "conv2_b": n(ks[3], (c2o,)),
        "pc_w": n(ks[4], (pco, config["pc_in_channels"],
                          config["pc_kernel_size"], config["pc_kernel_size"])),
        "pc_b": n(ks[5], (pco,)),
        # CapsuleLayer.W ~ torch.randn(1, J, N_in, D_out, D_in); leading 1 dropped
        "dc_W": jax.random.normal(
            ks[6], (n_class, n_in_caps, config["dc_dim_capsule"],
                    config["pc_dim_capsule"])).astype(jnp.float32),
        "dec_w1": n(ks[7], (n_class * 16, 512)),
        "dec_b1": n(ks[8], (512,)),
        "dec_w2": n(ks[9], (512, 1024)),
        "dec_b2": n(ks[10], (1024,)),
        "dec_w3": n(ks[11], (1024, dec_out)),
        "dec_b3": n(ks[12], (dec_out,)),
    }


if __name__ == "__main__":
    config = {
        "n_label": 4,
        "cnn1_in_channels": 1, "cnn1_out_channels": 8,
        "cnn1_kernel_size": (3, 3), "cnn1_stride": (1, 1), "cnn1_padding": (1, 1),
        "cnn2_in_channels": 8, "cnn2_out_channels": 8,
        "cnn2_kernel_size": (3, 3), "cnn2_stride": (2, 2), "cnn2_padding": (1, 1),
        "pc_in_channels": 8, "pc_dim_capsule": 8, "pc_n_channels": 4,
        "pc_kernel_size": 3, "pc_stride": 2, "pc_padding": 1,
        "dc_dim_capsule": 16, "routings": 3,
    }
    input_shape = (1, 16, 16)     # (C, H, W), like the PyTorch module
    n_class = 4

    key = jax.random.PRNGKey(0)
    kx, kp = jax.random.split(key)
    x = jax.random.normal(kx, (2, *input_shape), dtype=jnp.float32)   # NCHW input
    params = build_params(kp, config, input_shape, n_class)

    fwd = jax.jit(lambda p, xx: capsnet_forward(p, xx, config, input_shape))
    out_caps, reconstructions = fwd(params, x)
    jax.block_until_ready((out_caps, reconstructions))

    assert out_caps.shape == (2, n_class, config["dc_dim_capsule"])
    assert reconstructions.shape == (2, *input_shape)
    print("KERNEL_OK")
</pallas_src>

<mosaic_0001>
module attributes {stable_mosaic.version = 11 : i64} {
  func.func @_gemm_kernel(%arg0: i32, %arg1: memref<512x9xf32, #tpu.memory_space<vmem>>, %arg2: memref<9x8xf32, #tpu.memory_space<vmem>>, %arg3: memref<1x8xf32, #tpu.memory_space<vmem>>, %arg4: memref<512x8xf32, #tpu.memory_space<vmem>>) attributes {dimension_semantics = [#tpu.dimension_semantics<arbitrary>], iteration_bounds = array<i64: 1>, scalar_prefetch = 0 : i64, scratch_operands = 0 : i64, tpu.core_type = #tpu.core_type<tc>, window_params = [{pipeline_mode = #tpu.pipeline_mode<synchronous>, transform_indices = @transform_0, window_bounds = array<i64: 512, 9>}, {pipeline_mode = #tpu.pipeline_mode<synchronous>, transform_indices = @transform_1, window_bounds = array<i64: 9, 8>}, {pipeline_mode = #tpu.pipeline_mode<synchronous>, transform_indices = @transform_2, window_bounds = array<i64: 1, 8>}, {pipeline_mode = #tpu.pipeline_mode<synchronous>, transform_indices = @transform_3, window_bounds = array<i64: 512, 8>}]} {
    %c0 = arith.constant 0 : index
    %c0_0 = arith.constant 0 : index
    %0 = vector.load %arg1[%c0, %c0_0] : memref<512x9xf32, #tpu.memory_space<vmem>>, vector<512x9xf32>
    %c0_1 = arith.constant 0 : index
    %c0_2 = arith.constant 0 : index
    %1 = vector.load %arg2[%c0_1, %c0_2] : memref<9x8xf32, #tpu.memory_space<vmem>>, vector<9x8xf32>
    %cst = arith.constant dense<0.000000e+00> : vector<512x8xf32>
    %2 = tpu.matmul %0, %1, %cst {dimension_numbers = #tpu.dot_dimension_numbers<[1], [0], [0], [1], [0, 0, 1, 1], [], []>} : vector<512x9xf32>, vector<9x8xf32>, vector<512x8xf32> -> vector<512x8xf32>
    %c0_3 = arith.constant 0 : index
    %c0_4 = arith.constant 0 : index
    %3 = vector.load %arg3[%c0_3, %c0_4] : memref<1x8xf32, #tpu.memory_space<vmem>>, vector<1x8xf32>
    %4 = vector.broadcast %3 : vector<1x8xf32> to vector<512x8xf32>
    %5 = arith.addf %2, %4 : vector<512x8xf32>
    %cst_5 = arith.constant 0.000000e+00 : f32
    %6 = vector.broadcast %cst_5 : f32 to vector<512x8xf32>
    %7 = arith.maximumf %5, %6 : vector<512x8xf32>
    %c0_6 = arith.constant 0 : index
    %c0_7 = arith.constant 0 : index
    %8 = vector.load %arg4[%c0_6, %c0_7] : memref<512x8xf32, #tpu.memory_space<vmem>>, vector<512x8xf32>
    tpu.vector_store %arg4[%c0_6, %c0_7], %7 {strides = array<i32>} : memref<512x8xf32, #tpu.memory_space<vmem>>, vector<512x8xf32>,
    return
  }
  func.func @transform_0(%arg0: i32) -> (i32, i32) {
    %c0_i32 = arith.constant 0 : i32
    %c0_i32_0 = arith.constant 0 : i32
    %c0_i32_1 = arith.constant 0 : i32
    return %c0_i32, %c0_i32_0 : i32, i32
  }
  func.func @transform_1(%arg0: i32) -> (i32, i32) {
    %c0_i32 = arith.constant 0 : i32
    %c0_i32_0 = arith.constant 0 : i32
    %c0_i32_1 = arith.constant 0 : i32
    return %c0_i32, %c0_i32_0 : i32, i32
  }
  func.func @transform_2(%arg0: i32) -> (i32, i32) {
    %c0_i32 = arith.constant 0 : i32
    %c0_i32_0 = arith.constant 0 : i32
    %c0_i32_1 = arith.constant 0 : i32
    return %c0_i32, %c0_i32_0 : i32, i32
  }
  func.func @transform_3(%arg0: i32) -> (i32, i32) {
    %c0_i32 = arith.constant 0 : i32
    %c0_i32_0 = arith.constant 0 : i32
    %c0_i32_1 = arith.constant 0 : i32
    return %c0_i32, %c0_i32_0 : i32, i32
  }
}

module attributes {stable_mosaic.version = 11 : i64} {
  func.func @_gemm_kernel(%arg0: i32, %arg1: memref<128x72xf32, #tpu.memory_space<vmem>>, %arg2: memref<72x8xf32, #tpu.memory_space<vmem>>, %arg3: memref<1x8xf32, #tpu.memory_space<vmem>>, %arg4: memref<128x8xf32, #tpu.memory_space<vmem>>) attributes {dimension_semantics = [#tpu.dimension_semantics<arbitrary>], iteration_bounds = array<i64: 1>, scalar_prefetch = 0 : i64, scratch_operands = 0 : i64, tpu.core_type = #tpu.core_type<tc>, window_params = [{pipeline_mode = #tpu.pipeline_mode<synchronous>, transform_indices = @transform_0, window_bounds = array<i64: 128, 72>}, {pipeline_mode = #tpu.pipeline_mode<synchronous>, transform_indices = @transform_1, window_bounds = array<i64: 72, 8>}, {pipeline_mode = #tpu.pipeline_mode<synchronous>, transform_indices = @transform_2, window_bounds = array<i64: 1, 8>}, {pipeline_mode = #tpu.pipeline_mode<synchronous>, transform_indices = @transform_3, window_bounds = array<i64: 128, 8>}]} {
    %c0 = arith.constant 0 : index
    %c0_0 = arith.constant 0 : index
    %0 = vector.load %arg1[%c0, %c0_0] : memref<128x72xf32, #tpu.memory_space<vmem>>, vector<128x72xf32>
    %c0_1 = arith.constant 0 : index
    %c0_2 = arith.constant 0 : index
    %1 = vector.load %arg2[%c0_1, %c0_2] : memref<72x8xf32, #tpu.memory_space<vmem>>, vector<72x8xf32>
    %cst = arith.constant dense<0.000000e+00> : vector<128x8xf32>
    %2 = tpu.matmul %0, %1, %cst {dimension_numbers = #tpu.dot_dimension_numbers<[1], [0], [0], [1], [0, 0, 1, 1], [], []>} : vector<128x72xf32>, vector<72x8xf32>, vector<128x8xf32> -> vector<128x8xf32>
    %c0_3 = arith.constant 0 : index
    %c0_4 = arith.constant 0 : index
    %3 = vector.load %arg3[%c0_3, %c0_4] : memref<1x8xf32, #tpu.memory_space<vmem>>, vector<1x8xf32>
    %4 = vector.broadcast %3 : vector<1x8xf32> to vector<128x8xf32>
    %5 = arith.addf %2, %4 : vector<128x8xf32>
    %cst_5 = arith.constant 0.000000e+00 : f32
    %6 = vector.broadcast %cst_5 : f32 to vector<128x8xf32>
    %7 = arith.maximumf %5, %6 : vector<128x8xf32>
    %c0_6 = arith.constant 0 : index
    %c0_7 = arith.constant 0 : index
    %8 = vector.load %arg4[%c0_6, %c0_7] : memref<128x8xf32, #tpu.memory_space<vmem>>, vector<128x8xf32>
    tpu.vector_store %arg4[%c0_6, %c0_7], %7 {strides = array<i32>} : memref<128x8xf32, #tpu.memory_space<vmem>>, vector<128x8xf32>,
    return
  }
  func.func @transform_0(%arg0: i32) -> (i32, i32) {
    %c0_i32 = arith.constant 0 : i32
    %c0_i32_0 = arith.constant 0 : i32
    %c0_i32_1 = arith.constant 0 : i32
    return %c0_i32, %c0_i32_0 : i32, i32
  }
  func.func @transform_1(%arg0: i32) -> (i32, i32) {
    %c0_i32 = arith.constant 0 : i32
    %c0_i32_0 = arith.constant 0 : i32
    %c0_i32_1 = arith.constant 0 : i32
    return %c0_i32, %c0_i32_0 : i32, i32
  }
  func.func @transform_2(%arg0: i32) -> (i32, i32) {
    %c0_i32 = arith.constant 0 : i32
    %c0_i32_0 = arith.constant 0 : i32
    %c0_i32_1 = arith.constant 0 : i32
    return %c0_i32, %c0_i32_0 : i32, i32
  }
  func.func @transform_3(%arg0: i32) -> (i32, i32) {
    %c0_i32 = arith.constant 0 : i32
    %c0_i32_0 = arith.constant 0 : i32
    %c0_i32_1 = arith.constant 0 : i32
    return %c0_i32, %c0_i32_0 : i32, i32
  }
}

module attributes {stable_mosaic.version = 11 : i64} {
  func.func @_routing_kernel(%arg0: i32, %arg1: memref<8x64x64xf32, #tpu.memory_space<vmem>>, %arg2: memref<8x2x64xf32, #tpu.memory_space<vmem>>, %arg3: memref<2x64xf32, #tpu.memory_space<vmem>>) attributes {dimension_semantics = [#tpu.dimension_semantics<arbitrary>], iteration_bounds = array<i64: 1>, scalar_prefetch = 0 : i64, scratch_operands = 0 : i64, tpu.core_type = #tpu.core_type<tc>, window_params = [{pipeline_mode = #tpu.pipeline_mode<synchronous>, transform_indices = @transform_0, window_bounds = array<i64: 8, 64, 64>}, {pipeline_mode = #tpu.pipeline_mode<synchronous>, transform_indices = @transform_1, window_bounds = array<i64: 8, 2, 64>}, {pipeline_mode = #tpu.pipeline_mode<synchronous>, transform_indices = @transform_2, window_bounds = array<i64: 2, 64>}]} {
    %c0 = arith.constant 0 : index
    %c0_0 = arith.constant 0 : index
    %c0_1 = arith.constant 0 : index
    %0 = vector.load %arg1[%c0, %c0_0, %c0_1] : memref<8x64x64xf32, #tpu.memory_space<vmem>>, vector<1x64x64xf32>
    %1 = vector.shape_cast %0 : vector<1x64x64xf32> to vector<64x64xf32>
    %2 = vector.shape_cast %1 : vector<64x64xf32> to vector<1x64x64xf32>
    %c0_2 = arith.constant 0 : index
    %c0_3 = arith.constant 0 : index
    %c0_4 = arith.constant 0 : index
    %3 = vector.load %arg2[%c0_2, %c0_3, %c0_4] : memref<8x2x64xf32, #tpu.memory_space<vmem>>, vector<1x2x64xf32>
    %4 = vector.shape_cast %3 : vector<1x2x64xf32> to vector<2x64xf32>
    %5 = vector.shape_cast %4 : vector<2x64xf32> to vector<2x1x64xf32>
    %6 = vector.broadcast %2 : vector<1x64x64xf32> to vector<2x64x64xf32>
    %7 = vector.broadcast %5 : vector<2x1x64xf32> to vector<2x64x64xf32>
    %8 = arith.mulf %6, %7 : vector<2x64x64xf32>
    %c1 = arith.constant 1 : index
    %c0_5 = arith.constant 0 : index
    %c0_6 = arith.constant 0 : index
    %9 = vector.load %arg1[%c1, %c0_5, %c0_6] : memref<8x64x64xf32, #tpu.memory_space<vmem>>, vector<1x64x64xf32>
    %10 = vector.shape_cast %9 : vector<1x64x64xf32> to vector<64x64xf32>
    %11 = vector.shape_cast %10 : vector<64x64xf32> to vector<1x64x64xf32>
    %c1_7 = arith.constant 1 : index
    %c0_8 = arith.constant 0 : index
    %c0_9 = arith.constant 0 : index
    %12 = vector.load %arg2[%c1_7, %c0_8, %c0_9] : memref<8x2x64xf32, #tpu.memory_space<vmem>>, vector<1x2x64xf32>
    %13 = vector.shape_cast %12 : vector<1x2x64xf32> to vector<2x64xf32>
    %14 = vector.shape_cast %13 : vector<2x64xf32> to vector<2x1x64xf32>
    %15 = vector.broadcast %11 : vector<1x64x64xf32> to vector<2x64x64xf32>
    %16 = vector.broadcast %14 : vector<2x1x64xf32> to vector<2x64x64xf32>
    %17 = arith.mulf %15, %16 : vector<2x64x64xf32>
    %18 = arith.addf %8, %17 : vector<2x64x64xf32>
    %c2 = arith.constant 2 : index
    %c0_10 = arith.constant 0 : index
    %c0_11 = arith.constant 0 : index
    %19 = vector.load %arg1[%c2, %c0_10, %c0_11] : memref<8x64x64xf32, #tpu.memory_space<vmem>>, vector<1x64x64xf32>
    %20 = vector.shape_cast %19 : vector<1x64x64xf32> to vector<64x64xf32>
    %21 = vector.shape_cast %20 : vector<64x64xf32> to vector<1x64x64xf32>
    %c2_12 = arith.constant 2 : index
    %c0_13 = arith.constant 0 : index
    %c0_14 = arith.constant 0 : index
    %22 = vector.load %arg2[%c2_12, %c0_13, %c0_14] : memref<8x2x64xf32, #tpu.memory_space<vmem>>, vector<1x2x64xf32>
    %23 = vector.shape_cast %22 : vector<1x2x64xf32> to vector<2x64xf32>
    %24 = vector.shape_cast %23 : vector<2x64xf32> to vector<2x1x64xf32>
    %25 = vector.broadcast %21 : vector<1x64x64xf32> to vector<2x64x64xf32>
    %26 = vector.broadcast %24 : vector<2x1x64xf32> to vector<2x64x64xf32>
    %27 = arith.mulf %25, %26 : vector<2x64x64xf32>
    %28 = arith.addf %18, %27 : vector<2x64x64xf32>
    %c3 = arith.constant 3 : index
    %c0_15 = arith.constant 0 : index
    %c0_16 = arith.constant 0 : index
    %29 = vector.load %arg1[%c3, %c0_15, %c0_16] : memref<8x64x64xf32, #tpu.memory_space<vmem>>, vector<1x64x64xf32>
    %30 = vector.shape_cast %29 : vector<1x64x64xf32> to vector<64x64xf32>
    %31 = vector.shape_cast %30 : vector<64x64xf32> to vector<1x64x64xf32>
    %c3_17 = arith.constant 3 : index
    %c0_18 = arith.constant 0 : index
    %c0_19 = arith.constant 0 : index
    %32 = vector.load %arg2[%c3_17, %c0_18, %c0_19] : memref<8x2x64xf32, #tpu.memory_space<vmem>>, vector<1x2x64xf32>
    %33 = vector.shape_cast %32 : vector<1x2x64xf32> to vector<2x64xf32>
    %34 = vector.shape_cast %33 : vector<2x64xf32> to vector<2x1x64xf32>
    %35 = vector.broadcast %31 : vector<1x64x64xf32> to vector<2x64x64xf32>
    %36 = vector.broadcast %34 : vector<2x1x64xf32> to vector<2x64x64xf32>
    %37 = arith.mulf %35, %36 : vector<2x64x64xf32>
    %38 = arith.addf %28, %37 : vector<2x64x64xf32>
    %c4 = arith.constant 4 : index
    %c0_20 = arith.constant 0 : index
    %c0_21 = arith.constant 0 : index
    %39 = vector.load %arg1[%c4, %c0_20, %c0_21] : memref<8x64x64xf32, #tpu.memory_space<vmem>>, vector<1x64x64xf32>
    %40 = vector.shape_cast %39 : vector<1x64x64xf32> to vector<64x64xf32>
    %41 = vector.shape_cast %40 : vector<64x64xf32> to vector<1x64x64xf32>
    %c4_22 = arith.constant 4 : index
    %c0_23 = arith.constant 0 : index
    %c0_24 = arith.constant 0 : index
    %42 = vector.load %arg2[%c4_22, %c0_23, %c0_24] : memref<8x2x64xf32, #tpu.memory_space<vmem>>, vector<1x2x64xf32>
    %43 = vector.shape_cast %42 : vector<1x2x64xf32> to vector<2x64xf32>
    %44 = vector.shape_cast %43 : vector<2x64xf32> to vector<2x1x64xf32>
    %45 = vector.broadcast %41 : vector<1x64x64xf32> to vector<2x64x64xf32>
    %46 = vector.broadcast %44 : vector<2x1x64xf32> to vector<2x64x64xf32>
    %47 = arith.mulf %45, %46 : vector<2x64x64xf32>
    %48 = arith.addf %38, %47 : vector<2x64x64xf32>
    %c5 = arith.constant 5 : index
    %c0_25 = arith.constant 0 : index
    %c0_26 = arith.constant 0 : index
    %49 = vector.load %arg1[%c5, %c0_25, %c0_26] : memref<8x64x64xf32, #tpu.memory_space<vmem>>, vector<1x64x64xf32>
    %50 = vector.shape_cast %49 : vector<1x64x64xf32> to vector<64x64xf32>
    %51 = vector.shape_cast %50 : vector<64x64xf32> to vector<1x64x64xf32>
    %c5_27 = arith.constant 5 : index
    %c0_28 = arith.constant 0 : index
    %c0_29 = arith.constant 0 : index
    %52 = vector.load %arg2[%c5_27, %c0_28, %c0_29] : memref<8x2x64xf32, #tpu.memory_space<vmem>>, vector<1x2x64xf32>
    %53 = vector.shape_cast %52 : vector<1x2x64xf32> to vector<2x64xf32>
    %54 = vector.shape_cast %53 : vector<2x64xf32> to vector<2x1x64xf32>
    %55 = vector.broadcast %51 : vector<1x64x64xf32> to vector<2x64x64xf32>
    %56 = vector.broadcast %54 : vector<2x1x64xf32> to vector<2x64x64xf32>
    %57 = arith.mulf %55, %56 : vector<2x64x64xf32>
    %58 = arith.addf %48, %57 : vector<2x64x64xf32>
    %c6 = arith.constant 6 : index
    %c0_30 = arith.constant 0 : index
    %c0_31 = arith.constant 0 : index
    %59 = vector.load %arg1[%c6, %c0_30, %c0_31] : memref<8x64x64xf32, #tpu.memory_space<vmem>>, vector<1x64x64xf32>
    %60 = vector.shape_cast %59 : vector<1x64x64xf32> to vector<64x64xf32>
    %61 = vector.shape_cast %60 : vector<64x64xf32> to vector<1x64x64xf32>
    %c6_32 = arith.constant 6 : index
    %c0_33 = arith.constant 0 : index
    %c0_34 = arith.constant 0 : index
    %62 = vector.load %arg2[%c6_32, %c0_33, %c0_34] : memref<8x2x64xf32, #tpu.memory_space<vmem>>, vector<1x2x64xf32>
    %63 = vector.shape_cast %62 : vector<1x2x64xf32> to vector<2x64xf32>
    %64 = vector.shape_cast %63 : vector<2x64xf32> to vector<2x1x64xf32>
    %65 = vector.broadcast %61 : vector<1x64x64xf32> to vector<2x64x64xf32>
    %66 = vector.broadcast %64 : vector<2x1x64xf32> to vector<2x64x64xf32>
    %67 = arith.mulf %65, %66 : vector<2x64x64xf32>
    %68 = arith.addf %58, %67 : vector<2x64x64xf32>
    %c7 = arith.constant 7 : index
    %c0_35 = arith.constant 0 : index
    %c0_36 = arith.constant 0 : index
    %69 = vector.load %arg1[%c7, %c0_35, %c0_36] : memref<8x64x64xf32, #tpu.memory_space<vmem>>, vector<1x64x64xf32>
    %70 = vector.shape_cast %69 : vector<1x64x64xf32> to vector<64x64xf32>
    %71 = vector.shape_cast %70 : vector<64x64xf32> to vector<1x64x64xf32>
    %c7_37 = arith.constant 7 : index
    %c0_38 = arith.constant 0 : index
    %c0_39 = arith.constant 0 : index
    %72 = vector.load %arg2[%c7_37, %c0_38, %c0_39] : memref<8x2x64xf32, #tpu.memory_space<vmem>>, vector<1x2x64xf32>
    %73 = vector.shape_cast %72 : vector<1x2x64xf32> to vector<2x64xf32>
    %74 = vector.shape_cast %73 : vector<2x64xf32> to vector<2x1x64xf32>
    %75 = vector.broadcast %71 : vector<1x64x64xf32> to vector<2x64x64xf32>
    %76 = vector.broadcast %74 : vector<2x1x64xf32> to vector<2x64x64xf32>
    %77 = arith.mulf %75, %76 : vector<2x64x64xf32>
    %78 = arith.addf %68, %77 : vector<2x64x64xf32>
    %cst = arith.constant 0.000000e+00 : f32
    %79 = vector.broadcast %cst : f32 to vector<2x64x64xf32>
    %cst_40 = arith.constant dense<0xFF800000> : vector<2x64xf32>
    %80 = vector.multi_reduction <maximumf>, %79, %cst_40 [2] : vector<2x64x64xf32> to vector<2x64xf32>
    %81 = vector.shape_cast %80 : vector<2x64xf32> to vector<2x64x1xf32>
    %82 = vector.broadcast %81 : vector<2x64x1xf32> to vector<2x64x64xf32>
    %83 = arith.subf %79, %82 : vector<2x64x64xf32>
    %84 = math.exp %83 : vector<2x64x64xf32>
    %cst_41 = arith.constant dense<0.000000e+00> : vector<2x64xf32>
    %85 = vector.multi_reduction <add>, %84, %cst_41 [2] : vector<2x64x64xf32> to vector<2x64xf32>
    %86 = vector.shape_cast %85 : vector<2x64xf32> to vector<2x64x1xf32>
    %87 = vector.broadcast %86 : vector<2x64x1xf32> to vector<2x64x64xf32>
    %88 = arith.divf %84, %87 : vector<2x64x64xf32>
    %89 = arith.mulf %88, %78 : vector<2x64x64xf32>
    %cst_42 = arith.constant dense<0.000000e+00> : vector<2x64xf32>
    %90 = vector.multi_reduction <add>, %89, %cst_42 [2] : vector<2x64x64xf32> to vector<2x64xf32>
    %91 = vector.shape_cast %90 : vector<2x64xf32> to vector<2x64x1xf32>
    %92 = arith.mulf %91, %91 : vector<2x64x1xf32>
    %cst_43 = arith.constant 1.000000e+00 : f32
    %93 = vector.broadcast %cst_43 : f32 to vector<2x64x1xf32>
    %94 = arith.addf %93, %92 : vector<2x64x1xf32>
    %95 = arith.divf %92, %94 : vector<2x64x1xf32>
    %96 = arith.mulf %95, %91 : vector<2x64x1xf32>
    %cst_44 = arith.constant 9.99999971E-10 : f32
    %97 = vector.broadcast %cst_44 : f32 to vector<2x64x1xf32>
    %98 = arith.addf %92, %97 : vector<2x64x1xf32>
    %99 = math.sqrt %98 : vector<2x64x1xf32>
    %100 = arith.divf %96, %99 : vector<2x64x1xf32>
    %101 = vector.broadcast %100 : vector<2x64x1xf32> to vector<2x64x64xf32>
    %102 = arith.mulf %78, %101 : vector<2x64x64xf32>
    %103 = arith.addf %79, %102 : vector<2x64x64xf32>
    %cst_45 = arith.constant dense<0xFF800000> : vector<2x64xf32>
    %104 = vector.multi_reduction <maximumf>, %103, %cst_45 [2] : vector<2x64x64xf32> to vector<2x64xf32>
    %105 = vector.shape_cast %104 : vector<2x64xf32> to vector<2x64x1xf32>
    %106 = vector.broadcast %105 : vector<2x64x1xf32> to vector<2x64x64xf32>
    %107 = arith.subf %103, %106 : vector<2x64x64xf32>
    %108 = math.exp %107 : vector<2x64x64xf32>
    %cst_46 = arith.constant dense<0.000000e+00> : vector<2x64xf32>
    %109 = vector.multi_reduction <add>, %108, %cst_46 [2] : vector<2x64x64xf32> to vector<2x64xf32>
    %110 = vector.shape_cast %109 : vector<2x64xf32> to vector<2x64x1xf32>
    %111 = vector.broadcast %110 : vector<2x64x1xf32> to vector<2x64x64xf32>
    %112 = arith.divf %108, %111 : vector<2x64x64xf32>
    %113 = arith.mulf %112, %78 : vector<2x64x64xf32>
    %cst_47 = arith.constant dense<0.000000e+00> : vector<2x64xf32>
    %114 = vector.multi_reduction <add>, %113, %cst_47 [2] : vector<2x64x64xf32> to vector<2x64xf32>
    %115 = vector.shape_cast %114 : vector<2x64xf32> to vector<2x64x1xf32>
    %116 = arith.mulf %115, %115 : vector<2x64x1xf32>
    %cst_48 = arith.constant 1.000000e+00 : f32
    %117 = vector.broadcast %cst_48 : f32 to vector<2x64x1xf32>
    %118 = arith.addf %117, %116 : vector<2x64x1xf32>
    %119 = arith.divf %116, %118 : vector<2x64x1xf32>
    %120 = arith.mulf %119, %115 : vector<2x64x1xf32>
    %cst_49 = arith.constant 9.99999971E-10 : f32
    %121 = vector.broadcast %cst_49 : f32 to vector<2x64x1xf32>
    %122 = arith.addf %116, %121 : vector<2x64x1xf32>
    %123 = math.sqrt %122 : vector<2x64x1xf32>
    %124 = arith.divf %120, %123 : vector<2x64x1xf32>
    %125 = vector.broadcast %124 : vector<2x64x1xf32> to vector<2x64x64xf32>
    %126 = arith.mulf %78, %125 : vector<2x64x64xf32>
    %127 = arith.addf %103, %126 : vector<2x64x64xf32>
    %cst_50 = arith.constant dense<0xFF800000> : vector<2x64xf32>
    %128 = vector.multi_reduction <maximumf>, %127, %cst_50 [2] : vector<2x64x64xf32> to vector<2x64xf32>
    %129 = vector.shape_cast %128 : vector<2x64xf32> to vector<2x64x1xf32>
    %130 = vector.broadcast %129 : vector<2x64x1xf32> to vector<2x64x64xf32>
    %131 = arith.subf %127, %130 : vector<2x64x64xf32>
    %132 = math.exp %131 : vector<2x64x64xf32>
    %cst_51 = arith.constant dense<0.000000e+00> : vector<2x64xf32>
    %133 = vector.multi_reduction <add>, %132, %cst_51 [2] : vector<2x64x64xf32> to vector<2x64xf32>
    %134 = vector.shape_cast %133 : vector<2x64xf32> to vector<2x64x1xf32>
    %135 = vector.broadcast %134 : vector<2x64x1xf32> to vector<2x64x64xf32>
    %136 = arith.divf %132, %135 : vector<2x64x64xf32>
    %137 = arith.mulf %136, %78 : vector<2x64x64xf32>
    %cst_52 = arith.constant dense<0.000000e+00> : vector<2x64xf32>
    %138 = vector.multi_reduction <add>, %137, %cst_52 [2] : vector<2x64x64xf32> to vector<2x64xf32>
    %139 = arith.mulf %138, %138 : vector<2x64xf32>
    %cst_53 = arith.constant 1.000000e+00 : f32
    %140 = vector.broadcast %cst_53 : f32 to vector<2x64xf32>
    %141 = arith.addf %140, %139 : vector<2x64xf32>
    %142 = arith.divf %139, %141 : vector<2x64xf32>
    %143 = arith.mulf %142, %138 : vector<2x64xf32>
    %cst_54 = arith.constant 9.99999971E-10 : f32
    %144 = vector.broadcast %cst_54 : f32 to vector<2x64xf32>
    %145 = arith.addf %139, %144 : vector<2x64xf32>
    %146 = math.sqrt %145 : vector<2x64xf32>
    %147 = arith.divf %143, %146 : vector<2x64xf32>
    %148 = math.absf %147 : vector<2x64xf32>
    %c0_55 = arith.constant 0 : index
    %c0_56 = arith.constant 0 : index
    %149 = vector.load %arg3[%c0_55, %c0_56] : memref<2x64xf32, #tpu.memory_space<vmem>>, vector<2x64xf32>
    tpu.vector_store %arg3[%c0_55, %c0_56], %148 {strides = array<i32>} : memref<2x64xf32, #tpu.memory_space<vmem>>, vector<2x64xf32>,
    return
  }
  func.func @transform_0(%arg0: i32) -> (i32, i32, i32) {
    %c0_i32 = arith.constant 0 : i32
    %c0_i32_0 = arith.constant 0 : i32
    %c0_i32_1 = arith.constant 0 : i32
    %c0_i32_2 = arith.constant 0 : i32
    return %c0_i32, %c0_i32_0, %c0_i32_1 : i32, i32, i32
  }
  func.func @transform_1(%arg0: i32) -> (i32, i32, i32) {
    %c0_i32 = arith.constant 0 : i32
    %c0_i32_0 = arith.constant 0 : i32
    %c0_i32_1 = arith.constant 0 : i32
    %c0_i32_2 = arith.constant 0 : i32
    return %c0_i32, %c0_i32_0, %c0_i32_1 : i32, i32, i32
  }
  func.func @transform_2(%arg0: i32) -> (i32, i32) {
    %c0_i32 = arith.constant 0 : i32
    %c0_i32_0 = arith.constant 0 : i32
    %c0_i32_1 = arith.constant 0 : i32
    return %c0_i32, %c0_i32_0 : i32, i32
  }
}

module attributes {stable_mosaic.version = 11 : i64} {
  func.func @_gemm_kernel(%arg0: i32, %arg1: memref<32x72xf32, #tpu.memory_space<vmem>>, %arg2: memref<72x32xf32, #tpu.memory_space<vmem>>, %arg3: memref<1x32xf32, #tpu.memory_space<vmem>>, %arg4: memref<32x32xf32, #tpu.memory_space<vmem>>) attributes {dimension_semantics = [#tpu.dimension_semantics<arbitrary>], iteration_bounds = array<i64: 1>, scalar_prefetch = 0 : i64, scratch_operands = 0 : i64, tpu.core_type = #tpu.core_type<tc>, window_params = [{pipeline_mode = #tpu.pipeline_mode<synchronous>, transform_indices = @transform_0, window_bounds = array<i64: 32, 72>}, {pipeline_mode = #tpu.pipeline_mode<synchronous>, transform_indices = @transform_1, window_bounds = array<i64: 72, 32>}, {pipeline_mode = #tpu.pipeline_mode<synchronous>, transform_indices = @transform_2, window_bounds = array<i64: 1, 32>}, {pipeline_mode = #tpu.pipeline_mode<synchronous>, transform_indices = @transform_3, window_bounds = array<i64: 32, 32>}]} {
    %c0 = arith.constant 0 : index
    %c0_0 = arith.constant 0 : index
    %0 = vector.load %arg1[%c0, %c0_0] : memref<32x72xf32, #tpu.memory_space<vmem>>, vector<32x72xf32>
    %c0_1 = arith.constant 0 : index
    %c0_2 = arith.constant 0 : index
    %1 = vector.load %arg2[%c0_1, %c0_2] : memref<72x32xf32, #tpu.memory_space<vmem>>, vector<72x32xf32>
    %cst = arith.constant dense<0.000000e+00> : vector<32x32xf32>
    %2 = tpu.matmul %0, %1, %cst {dimension_numbers = #tpu.dot_dimension_numbers<[1], [0], [0], [1], [0, 0, 1, 1], [], []>} : vector<32x72xf32>, vector<72x32xf32>, vector<32x32xf32> -> vector<32x32xf32>
    %c0_3 = arith.constant 0 : index
    %c0_4 = arith.constant 0 : index
    %3 = vector.load %arg3[%c0_3, %c0_4] : memref<1x32xf32, #tpu.memory_space<vmem>>, vector<1x32xf32>
    %4 = vector.broadcast %3 : vector<1x32xf32> to vector<32x32xf32>
    %5 = arith.addf %2, %4 : vector<32x32xf32>
    %6 = vector.shape_cast %5 : vector<32x32xf32> to vector<4x8x32xf32>
    %7 = arith.mulf %6, %6 : vector<4x8x32xf32>
    %cst_5 = arith.constant dense<0.000000e+00> : vector<4x32xf32>
    %8 = vector.multi_reduction <add>, %7, %cst_5 [1] : vector<4x8x32xf32> to vector<4x32xf32>
    %9 = vector.shape_cast %8 : vector<4x32xf32> to vector<4x1x32xf32>
    %cst_6 = arith.constant 1.000000e+00 : f32
    %10 = vector.broadcast %cst_6 : f32 to vector<4x1x32xf32>
    %11 = arith.addf %10, %9 : vector<4x1x32xf32>
    %12 = arith.divf %9, %11 : vector<4x1x32xf32>
    %13 = vector.broadcast %12 : vector<4x1x32xf32> to vector<4x8x32xf32>
    %14 = arith.mulf %13, %6 : vector<4x8x32xf32>
    %cst_7 = arith.constant 9.99999971E-10 : f32
    %15 = vector.broadcast %cst_7 : f32 to vector<4x1x32xf32>
    %16 = arith.addf %9, %15 : vector<4x1x32xf32>
    %17 = math.sqrt %16 : vector<4x1x32xf32>
    %18 = vector.broadcast %17 : vector<4x1x32xf32> to vector<4x8x32xf32>
    %19 = arith.divf %14, %18 : vector<4x8x32xf32>
    %20 = vector.shape_cast %19 : vector<4x8x32xf32> to vector<32x32xf32>
    %c0_8 = arith.constant 0 : index
    %c0_9 = arith.constant 0 : index
    %21 = vector.load %arg4[%c0_8, %c0_9] : memref<32x32xf32, #tpu.memory_space<vmem>>, vector<32x32xf32>
    tpu.vector_store %arg4[%c0_8, %c0_9], %20 {strides = array<i32>} : memref<32x32xf32, #tpu.memory_space<vmem>>, vector<32x32xf32>,
    return
  }
  func.func @transform_0(%arg0: i32) -> (i32, i32) {
    %c0_i32 = arith.constant 0 : i32
    %c0_i32_0 = arith.constant 0 : i32
    %c0_i32_1 = arith.constant 0 : i32
    return %c0_i32, %c0_i32_0 : i32, i32
  }
  func.func @transform_1(%arg0: i32) -> (i32, i32) {
    %c0_i32 = arith.constant 0 : i32
    %c0_i32_0 = arith.constant 0 : i32
    %c0_i32_1 = arith.constant 0 : i32
    return %c0_i32, %c0_i32_0 : i32, i32
  }
  func.func @transform_2(%arg0: i32) -> (i32, i32) {
    %c0_i32 = arith.constant 0 : i32
    %c0_i32_0 = arith.constant 0 : i32
    %c0_i32_1 = arith.constant 0 : i32
    return %c0_i32, %c0_i32_0 : i32, i32
  }
  func.func @transform_3(%arg0: i32) -> (i32, i32) {
    %c0_i32 = arith.constant 0 : i32
    %c0_i32_0 = arith.constant 0 : i32
    %c0_i32_1 = arith.constant 0 : i32
    return %c0_i32, %c0_i32_0 : i32, i32
  }
}

module attributes {stable_mosaic.version = 11 : i64} {
  func.func @_decoder_kernel(%arg0: i32, %arg1: memref<2x64xf32, #tpu.memory_space<vmem>>, %arg2: memref<64x512xf32, #tpu.memory_space<vmem>>, %arg3: memref<1x512xf32, #tpu.memory_space<vmem>>, %arg4: memref<512x1024xf32, #tpu.memory_space<vmem>>, %arg5: memref<1x1024xf32, #tpu.memory_space<vmem>>, %arg6: memref<1024x256xf32, #tpu.memory_space<vmem>>, %arg7: memref<1x256xf32, #tpu.memory_space<vmem>>, %arg8: memref<2x256xf32, #tpu.memory_space<vmem>>) attributes {dimension_semantics = [#tpu.dimension_semantics<arbitrary>], iteration_bounds = array<i64: 1>, scalar_prefetch = 0 : i64, scratch_operands = 0 : i64, tpu.core_type = #tpu.core_type<tc>, window_params = [{pipeline_mode = #tpu.pipeline_mode<synchronous>, transform_indices = @transform_0, window_bounds = array<i64: 2, 64>}, {pipeline_mode = #tpu.pipeline_mode<synchronous>, transform_indices = @transform_1, window_bounds = array<i64: 64, 512>}, {pipeline_mode = #tpu.pipeline_mode<synchronous>, transform_indices = @transform_2, window_bounds = array<i64: 1, 512>}, {pipeline_mode = #tpu.pipeline_mode<synchronous>, transform_indices = @transform_3, window_bounds = array<i64: 512, 1024>}, {pipeline_mode = #tpu.pipeline_mode<synchronous>, transform_indices = @transform_4, window_bounds = array<i64: 1, 1024>}, {pipeline_mode = #tpu.pipeline_mode<synchronous>, transform_indices = @transform_5, window_bounds = array<i64: 1024, 256>}, {pipeline_mode = #tpu.pipeline_mode<synchronous>, transform_indices = @transform_6, window_bounds = array<i64: 1, 256>}, {pipeline_mode = #tpu.pipeline_mode<synchronous>, transform_indices = @transform_7, window_bounds = array<i64: 2, 256>}]} {
    %c0 = arith.constant 0 : index
    %c0_0 = arith.constant 0 : index
    %0 = vector.load %arg1[%c0, %c0_0] : memref<2x64xf32, #tpu.memory_space<vmem>>, vector<2x64xf32>
    %c0_1 = arith.constant 0 : index
    %c0_2 = arith.constant 0 : index
    %1 = vector.load %arg2[%c0_1, %c0_2] : memref<64x512xf32, #tpu.memory_space<vmem>>, vector<64x512xf32>
    %cst = arith.constant dense<0.000000e+00> : vector<2x512xf32>
    %2 = tpu.matmul %0, %1, %cst {dimension_numbers = #tpu.dot_dimension_numbers<[1], [0], [0], [1], [0, 0, 1, 1], [], []>} : vector<2x64xf32>, vector<64x512xf32>, vector<2x512xf32> -> vector<2x512xf32>
    %c0_3 = arith.constant 0 : index
    %c0_4 = arith.constant 0 : index
    %3 = vector.load %arg3[%c0_3, %c0_4] : memref<1x512xf32, #tpu.memory_space<vmem>>, vector<1x512xf32>
    %4 = vector.broadcast %3 : vector<1x512xf32> to vector<2x512xf32>
    %5 = arith.addf %2, %4 : vector<2x512xf32>
    %cst_5 = arith.constant 0.000000e+00 : f32
    %6 = vector.broadcast %cst_5 : f32 to vector<2x512xf32>
    %7 = arith.maximumf %5, %6 : vector<2x512xf32>
    %c0_6 = arith.constant 0 : index
    %c0_7 = arith.constant 0 : index
    %8 = vector.load %arg4[%c0_6, %c0_7] : memref<512x1024xf32, #tpu.memory_space<vmem>>, vector<512x1024xf32>
    %cst_8 = arith.constant dense<0.000000e+00> : vector<2x1024xf32>
    %9 = tpu.matmul %7, %8, %cst_8 {dimension_numbers = #tpu.dot_dimension_numbers<[1], [0], [0], [1], [0, 0, 1, 1], [], []>} : vector<2x512xf32>, vector<512x1024xf32>, vector<2x1024xf32> -> vector<2x1024xf32>
    %c0_9 = arith.constant 0 : index
    %c0_10 = arith.constant 0 : index
    %10 = vector.load %arg5[%c0_9, %c0_10] : memref<1x1024xf32, #tpu.memory_space<vmem>>, vector<1x1024xf32>
    %11 = vector.broadcast %10 : vector<1x1024xf32> to vector<2x1024xf32>
    %12 = arith.addf %9, %11 : vector<2x1024xf32>
    %cst_11 = arith.constant 0.000000e+00 : f32
    %13 = vector.broadcast %cst_11 : f32 to vector<2x1024xf32>
    %14 = arith.maximumf %12, %13 : vector<2x1024xf32>
    %c0_12 = arith.constant 0 : index
    %c0_13 = arith.constant 0 : index
    %15 = vector.load %arg6[%c0_12, %c0_13] : memref<1024x256xf32, #tpu.memory_space<vmem>>, vector<1024x256xf32>
    %cst_14 = arith.constant dense<0.000000e+00> : vector<2x256xf32>
    %16 = tpu.matmul %14, %15, %cst_14 {dimension_numbers = #tpu.dot_dimension_numbers<[1], [0], [0], [1], [0, 0, 1, 1], [], []>} : vector<2x1024xf32>, vector<1024x256xf32>, vector<2x256xf32> -> vector<2x256xf32>
    %c0_15 = arith.constant 0 : index
    %c0_16 = arith.constant 0 : index
    %17 = vector.load %arg7[%c0_15, %c0_16] : memref<1x256xf32, #tpu.memory_space<vmem>>, vector<1x256xf32>
    %18 = vector.broadcast %17 : vector<1x256xf32> to vector<2x256xf32>
    %19 = arith.addf %16, %18 : vector<2x256xf32>
    %cst_17 = arith.constant 0.000000e+00 : f32
    %20 = vector.broadcast %cst_17 : f32 to vector<2x256xf32>
    %21 = arith.subf %20, %19 : vector<2x256xf32>
    %22 = math.exp %21 : vector<2x256xf32>
    %cst_18 = arith.constant 1.000000e+00 : f32
    %23 = vector.broadcast %cst_18 : f32 to vector<2x256xf32>
    %24 = arith.addf %23, %22 : vector<2x256xf32>
    %25 = tpu.reciprocal %24 {approx = true} : vector<2x256xf32> -> vector<2x256xf32>
    %c0_19 = arith.constant 0 : index
    %c0_20 = arith.constant 0 : index
    %26 = vector.load %arg8[%c0_19, %c0_20] : memref<2x256xf32, #tpu.memory_space<vmem>>, vector<2x256xf32>
    tpu.vector_store %arg8[%c0_19, %c0_20], %25 {strides = array<i32>} : memref<2x256xf32, #tpu.memory_space<vmem>>, vector<2x256xf32>,
    return
  }
  func.func @transform_0(%arg0: i32) -> (i32, i32) {
    %c0_i32 = arith.constant 0 : i32
    %c0_i32_0 = arith.constant 0 : i32
    %c0_i32_1 = arith.constant 0 : i32
    return %c0_i32, %c0_i32_0 : i32, i32
  }
  func.func @transform_1(%arg0: i32) -> (i32, i32) {
    %c0_i32 = arith.constant 0 : i32
    %c0_i32_0 = arith.constant 0 : i32
    %c0_i32_1 = arith.constant 0 : i32
    return %c0_i32, %c0_i32_0 : i32, i32
  }
  func.func @transform_2(%arg0: i32) -> (i32, i32) {
    %c0_i32 = arith.constant 0 : i32
    %c0_i32_0 = arith.constant 0 : i32
    %c0_i32_1 = arith.constant 0 : i32
    return %c0_i32, %c0_i32_0 : i32, i32
  }
  func.func @transform_3(%arg0: i32) -> (i32, i32) {
    %c0_i32 = arith.constant 0 : i32
    %c0_i32_0 = arith.constant 0 : i32
    %c0_i32_1 = arith.constant 0 : i32
    return %c0_i32, %c0_i32_0 : i32, i32
  }
  func.func @transform_4(%arg0: i32) -> (i32, i32) {
    %c0_i32 = arith.constant 0 : i32
    %c0_i32_0 = arith.constant 0 : i32
    %c0_i32_1 = arith.constant 0 : i32
    return %c0_i32, %c0_i32_0 : i32, i32
  }
  func.func @transform_5(%arg0: i32) -> (i32, i32) {
    %c0_i32 = arith.constant 0 : i32
    %c0_i32_0 = arith.constant 0 : i32
    %c0_i32_1 = arith.constant 0 : i32
    return %c0_i32, %c0_i32_0 : i32, i32
  }
  func.func @transform_6(%arg0: i32) -> (i32, i32) {
    %c0_i32 = arith.constant 0 : i32
    %c0_i32_0 = arith.constant 0 : i32
    %c0_i32_1 = arith.constant 0 : i32
    return %c0_i32, %c0_i32_0 : i32, i32
  }
  func.func @transform_7(%arg0: i32) -> (i32, i32) {
    %c0_i32 = arith.constant 0 : i32
    %c0_i32_0 = arith.constant 0 : i32
    %c0_i32_1 = arith.constant 0 : i32
    return %c0_i32, %c0_i32_0 : i32, i32
  }
}

</mosaic_0001>

<bundles_post_ra>
// kernel: _lambda_.5
= control target key start
LH: loop header
LB: loop body
LE: loop exit
PB: predicated region body
PF: predicated region fallthrough
CT: control target
= control target key end

     0   :  { %8 = vsyncpa [#allocation3], 0  ;;  %s1081_s12 = smov [#allocation2]   ;;  %s1699_s0 = inlined_call_operand.vmem [shape: f32[512,9], index: 0, kind: input, shape index: {}]   ;;  %s1700_s1 = inlined_call_operand.vmem [shape: f32[9,8], index: 1, kind: input, shape index: {}]   ;;  %s1701_s2 = inlined_call_operand.hbm [shape: f32[1,8], index: 2, kind: input, shape index: {}]   ;;  %s1702_s3 = inlined_call_operand.vmem [shape: f32[512,8], index: 3, kind: output, shape index: {}]  }
   0x1   :  { %s19_s13 = sshll.u32 %s1081_s12, 4  ;;  %s1057_s16 = scalar_lea.hbm %s1701_s2, 16  ;;  %s20_s13 = int_to_ptr.vmem [resolvable:$true] %s19_s13 }
   0x2   :  { %p1058_p0 = scmp.ne.s32.totalorder %s1701_s2, %s1057_s16  ;;  %p1061_p1 = scmp.lt.u32.totalorder %s1057_s16, %s1701_s2 }
   0x4   :  { %p1063_p2 = pnand %p1061_p1, %p1058_p0 }
   0x6   :  { %1066 = shalt.err (!%p1063_p2)
}
   0x7   :  { %s1067_s21 = scalar_lea.vmem %s20_s13, 16  ;;  %s1071_s22 = scalar_lea.vmem %s20_s13, 32 }
   0x8   :  { %p1068_p3 = scmp.ne.s32.totalorder %s20_s13, %s1067_s21  ;;  %p1072_p4 = scmp.lt.s32.totalorder %s20_s13, %s20_s13 }
   0x9   :  { %p1073_p5 = scmp.lt.s32.totalorder %s1071_s22, %s1067_s21 }
   0xb   :  { %p1074_p6 = por %p1073_p5, %p1072_p4 }
   0xd   :  { %p1075_p7 = pnand %p1074_p6, %p1068_p3 }
   0xf   :  { %1078 = shalt.err (!%p1075_p7)
}
  0x10   :  { %22 = dma.hbm_to_vmem [thread:$0]  %s1701_s2, 16, %s20_s13, [#allocation3]  }
  0x11   :  { %1079 = dma.done.wait [#allocation3], 16  }
  0x12   :  { %1080 = vsyncadd [#allocation3], 4294967280  ;;  %vm292_vm0 = vcmask 1040384   ;;  %vm99_vm1 = vcmask 72704   ;;  %vm1082_vm2 = vmmov 1   ;;  %v90_v0 = vld [vmem:[%s1700_s1] sm:$0xff] }
  0x13   :  { %vm1048_vm3 = vmpackc.low %vm292_vm0, %vm1082_vm2  ;;  %v91_v1 = vld [vmem:[%s1700_s1 + $0x8] sm:$0x1]  ;;  %v26_v2 = vld [vmem:[%s1699_s0] sm:$0xff]  ;;  %vm745_vm4 = vcmask 64512  }
  0x14   :  { %v1047_v3 = vpack.c.bf16 %v91_v1, %v90_v0  ;;  %951 = vmatprep.mubr.msk.f32.mxu0 %vm99_vm1, %v26_v2  ;;  %v58_v4 = vld [vmem:[%s1699_s0 + $0x100] sm:$0xff]  ;;  %v27_v5 = vld [vmem:[%s1699_s0 + $0x8] sm:$0xff]  ;;  %v28_v7 = vld [vmem:[%s1699_s0 + $0x10] sm:$0xff] }
  0x15   :  { %999 = vmatprep.mubr.msk.f32.mxu1 %vm99_vm1, %v58_v4  ;;  %v59_v6 = vld [vmem:[%s1699_s0 + $0x108] sm:$0xff]  ;;  %v60_v8 = vld [vmem:[%s1699_s0 + $0x110] sm:$0xff]  ;;  %v29_v9 = vld [vmem:[%s1699_s0 + $0x18] sm:$0xff] }
  0x16   :  { %1049 = vmatprep.subr.msk.bf16.mxu0 %vm1048_vm3, %v1047_v3  ;;  %1053 = vmatprep.subr.msk.bf16.mxu1 %vm1048_vm3, %v1047_v3  ;;  %v61_v10 = vld [vmem:[%s1699_s0 + $0x118] sm:$0xff]  ;;  %v30_v11 = vld [vmem:[%s1699_s0 + $0x20] sm:$0xff]  ;;  %v31_v13 = vld [vmem:[%s1699_s0 + $0x28] sm:$0xff] }
  0x17   :  { %1052 = vmatpush3.bf16.msk.msra.mxu0 %vm1048_vm3, %v1047_v3  ;;  %1054 = vmatpush3.bf16.msk.msra.mxu1 %vm1048_vm3, %v1047_v3  ;;  %v62_v12 = vld [vmem:[%s1699_s0 + $0x120] sm:$0xff]  ;;  %v63_v14 = vld [vmem:[%s1699_s0 + $0x128] sm:$0xff]  ;;  %v32_v15 = vld [vmem:[%s1699_s0 + $0x30] sm:$0xff] }
  0x18   :  { %v64_v16 = vld [vmem:[%s1699_s0 + $0x130] sm:$0xff]  ;;  %v33_v17 = vld [vmem:[%s1699_s0 + $0x38] sm:$0xff]  ;;  %v34_v19 = vld [vmem:[%s1699_s0 + $0x40] sm:$0xff] }
  0x19   :  { %v65_v18 = vld [vmem:[%s1699_s0 + $0x138] sm:$0xff]  ;;  %v66_v20 = vld [vmem:[%s1699_s0 + $0x140] sm:$0xff]  ;;  %v35_v21 = vld [vmem:[%s1699_s0 + $0x48] sm:$0xff] }
  0x1a   :  { %952 = vmatmul.mubr.msk.f32.vlgmr.msra.gmra.mrb[0].mxu0 %vm99_vm1, %v27_v5  ;;  %1000 = vmatmul.mubr.msk.f32.vlgmr.msra.gmra.mrb[0].mxu1 %vm99_vm1, %v59_v6  ;;  %v67_v22 = vld [vmem:[%s1699_s0 + $0x148] sm:$0xff]  ;;  %v36_v23 = vld [vmem:[%s1699_s0 + $0x50] sm:$0xff]  ;;  %v37_v25 = vld [vmem:[%s1699_s0 + $0x58] sm:$0xff] }
  0x1b   :  { %954 = vmatprep.mubr.msk.f32.mxu0 %vm99_vm1, %v28_v7  ;;  %1002 = vmatprep.mubr.msk.f32.mxu1 %vm99_vm1, %v60_v8  ;;  %v68_v24 = vld [vmem:[%s1699_s0 + $0x150] sm:$0xff]  ;;  %v69_v26 = vld [vmem:[%s1699_s0 + $0x158] sm:$0xff]  ;;  %v38_v27 = vld [vmem:[%s1699_s0 + $0x60] sm:$0xff] }
  0x1c   :  { %v70_v28 = vld [vmem:[%s1699_s0 + $0x160] sm:$0xff]  ;;  %v39_v29 = vld [vmem:[%s1699_s0 + $0x68] sm:$0xff]  ;;  %v40_v31 = vld [vmem:[%s1699_s0 + $0x70] sm:$0xff] }
  0x1d   :  { %v71_v30 = vld [vmem:[%s1699_s0 + $0x168] sm:$0xff]  ;;  %v72_v32 = vld [vmem:[%s1699_s0 + $0x170] sm:$0xff]  ;;  %v41_v33 = vld [vmem:[%s1699_s0 + $0x78] sm:$0xff] }
  0x1e   :  { %955 = vmatmul.mubr.msk.f32.gmra.mrb[2].mxu0 %vm99_vm1, %v29_v9  ;;  %1003 = vmatmul.mubr.msk.f32.gmra.mrb[2].mxu1 %vm99_vm1, %v61_v10  ;;  %v73_v34 = vld [vmem:[%s1699_s0 + $0x178] sm:$0xff]  ;;  %v42_v35 = vld [vmem:[%s1699_s0 + $0x80] sm:$0xff]  ;;  %v43_v37 = vld [vmem:[%s1699_s0 + $0x88] sm:$0xff] }
  0x1f   :  { %957 = vmatprep.mubr.msk.f32.mxu0 %vm99_vm1, %v30_v11  ;;  %1005 = vmatprep.mubr.msk.f32.mxu1 %vm99_vm1, %v62_v12  ;;  %v74_v36 = vld [vmem:[%s1699_s0 + $0x180] sm:$0xff]  ;;  %v75_v38 = vld [vmem:[%s1699_s0 + $0x188] sm:$0xff]  ;;  %v44_v39 = vld [vmem:[%s1699_s0 + $0x90] sm:$0xff] }
  0x20   :  { %v76_v40 = vld [vmem:[%s1699_s0 + $0x190] sm:$0xff]  ;;  %v45_v41 = vld [vmem:[%s1699_s0 + $0x98] sm:$0xff]  ;;  %v46_v43 = vld [vmem:[%s1699_s0 + $0xa0] sm:$0xff] }
  0x21   :  { %v77_v42 = vld [vmem:[%s1699_s0 + $0x198] sm:$0xff]  ;;  %v78_v44 = vld [vmem:[%s1699_s0 + $0x1a0] sm:$0xff]  ;;  %v47_v45 = vld [vmem:[%s1699_s0 + $0xa8] sm:$0xff] }
  0x22   :  { %958 = vmatmul.mubr.msk.f32.gmra.mrb[4].mxu0 %vm99_vm1, %v31_v13  ;;  %1006 = vmatmul.mubr.msk.f32.gmra.mrb[4].mxu1 %vm99_vm1, %v63_v14  ;;  %v79_v46 = vld [vmem:[%s1699_s0 + $0x1a8] sm:$0xff]  ;;  %v48_v47 = vld [vmem:[%s1699_s0 + $0xb0] sm:$0xff]  ;;  %v49_v49 = vld [vmem:[%s1699_s0 + $0xb8] sm:$0xff] }
  0x23   :  { %960 = vmatprep.mubr.msk.f32.mxu0 %vm99_vm1, %v32_v15  ;;  %1008 = vmatprep.mubr.msk.f32.mxu1 %vm99_vm1, %v64_v16  ;;  %v80_v48 = vld [vmem:[%s1699_s0 + $0x1b0] sm:$0xff]  ;;  %v81_v50 = vld [vmem:[%s1699_s0 + $0x1b8] sm:$0xff]  ;;  %v50_v51 = vld [vmem:[%s1699_s0 + $0xc0] sm:$0xff] }
  0x24   :  { %v82_v52 = vld [vmem:[%s1699_s0 + $0x1c0] sm:$0xff]  ;;  %v51_v53 = vld [vmem:[%s1699_s0 + $0xc8] sm:$0xff]  ;;  %v52_v55 = vld [vmem:[%s1699_s0 + $0xd0] sm:$0xff] }
  0x25   :  { %v83_v54 = vld [vmem:[%s1699_s0 + $0x1c8] sm:$0xff]  ;;  %v84_v56 = vld [vmem:[%s1699_s0 + $0x1d0] sm:$0xff]  ;;  %v53_v57 = vld [vmem:[%s1699_s0 + $0xd8] sm:$0xff] }
  0x26   :  { %961 = vmatmul.mubr.msk.f32.gmra.mrb[6].mxu0 %vm99_vm1, %v33_v17  ;;  %1009 = vmatmul.mubr.msk.f32.gmra.mrb[6].mxu1 %vm99_vm1, %v65_v18  ;;  %v85_v58 = vld [vmem:[%s1699_s0 + $0x1d8] sm:$0xff]  ;;  %v54_v59 = vld [vmem:[%s1699_s0 + $0xe0] sm:$0xff]  ;;  %v55_v61 = vld [vmem:[%s1699_s0 + $0xe8] sm:$0xff] }
  0x27   :  { %963 = vmatprep.mubr.msk.f32.mxu0 %vm99_vm1, %v34_v19  ;;  %1011 = vmatprep.mubr.msk.f32.mxu1 %vm99_vm1, %v66_v20  ;;  %v86_v60 = vld [vmem:[%s1699_s0 + $0x1e0] sm:$0xff]  ;;  %v87_v62 = vld [vmem:[%s1699_s0 + $0x1e8] sm:$0xff]  ;;  %v56_v63 = vld [vmem:[%s1699_s0 + $0xf0] sm:$0xff] }
  0x28   :  { %v88_v0 = vld [vmem:[%s1699_s0 + $0x1f0] sm:$0xff]  ;;  %v57_v1 = vld [vmem:[%s1699_s0 + $0xf8] sm:$0xff]  ;;  %v1377_v3 = vld [vmem:[#allocation2] ss:$0 sm:$0xff] }
  0x29   :  { %v89_v2 = vld [vmem:[%s1699_s0 + $0x1f8] sm:$0xff] }
  0x2a   :  { %964 = vmatmul.mubr.msk.f32.gmra.mrb[8].mxu0 %vm99_vm1, %v35_v21  ;;  %1012 = vmatmul.mubr.msk.f32.gmra.mrb[8].mxu1 %vm99_vm1, %v67_v22 }
  0x2b   :  { %966 = vmatprep.mubr.msk.f32.mxu0 %vm99_vm1, %v36_v23  ;;  %1014 = vmatprep.mubr.msk.f32.mxu1 %vm99_vm1, %v68_v24 }
  0x2e   :  { %967 = vmatmul.mubr.msk.f32.gmra.mrb[10].mxu0 %vm99_vm1, %v37_v25  ;;  %1015 = vmatmul.mubr.msk.f32.gmra.mrb[10].mxu1 %vm99_vm1, %v69_v26 }
  0x2f   :  { %969 = vmatprep.mubr.msk.f32.mxu0 %vm99_vm1, %v38_v27  ;;  %1017 = vmatprep.mubr.msk.f32.mxu1 %vm99_vm1, %v70_v28 }
  0x32   :  { %970 = vmatmul.mubr.msk.f32.gmra.mrb[12].mxu0 %vm99_vm1, %v39_v29  ;;  %1018 = vmatmul.mubr.msk.f32.gmra.mrb[12].mxu1 %vm99_vm1, %v71_v30 }
  0x33   :  { %972 = vmatprep.mubr.msk.f32.mxu0 %vm99_vm1, %v40_v31  ;;  %1020 = vmatprep.mubr.msk.f32.mxu1 %vm99_vm1, %v72_v32 }
  0x36   :  { %973 = vmatmul.mubr.msk.f32.gmra.mrb[14].mxu0 %vm99_vm1, %v41_v33  ;;  %1021 = vmatmul.mubr.msk.f32.gmra.mrb[14].mxu1 %vm99_vm1, %v73_v34 }
  0x37   :  { %975 = vmatprep.mubr.msk.f32.mxu0 %vm99_vm1, %v42_v35  ;;  %1023 = vmatprep.mubr.msk.f32.mxu1 %vm99_vm1, %v74_v36 }
  0x3a   :  { %976 = vmatmul.mubr.msk.f32.gmra.mrb[16].mxu0 %vm99_vm1, %v43_v37  ;;  %1024 = vmatmul.mubr.msk.f32.gmra.mrb[16].mxu1 %vm99_vm1, %v75_v38 }
  0x3b   :  { %978 = vmatprep.mubr.msk.f32.mxu0 %vm99_vm1, %v44_v39  ;;  %1026 = vmatprep.mubr.msk.f32.mxu1 %vm99_vm1, %v76_v40 }
  0x3e   :  { %979 = vmatmul.mubr.msk.f32.gmra.mrb[18].mxu0 %vm99_vm1, %v45_v41  ;;  %1027 = vmatmul.mubr.msk.f32.gmra.mrb[18].mxu1 %vm99_vm1, %v77_v42 }
  0x3f   :  { %981 = vmatprep.mubr.msk.f32.mxu0 %vm99_vm1, %v46_v43  ;;  %1029 = vmatprep.mubr.msk.f32.mxu1 %vm99_vm1, %v78_v44 }
  0x42   :  { %982 = vmatmul.mubr.msk.f32.gmra.mrb[20].mxu0 %vm99_vm1, %v47_v45  ;;  %1030 = vmatmul.mubr.msk.f32.gmra.mrb[20].mxu1 %vm99_vm1, %v79_v46 }
  0x43   :  { %984 = vmatprep.mubr.msk.f32.mxu0 %vm99_vm1, %v48_v47  ;;  %1032 = vmatprep.mubr.msk.f32.mxu1 %vm99_vm1, %v80_v48 }
  0x46   :  { %985 = vmatmul.mubr.msk.f32.gmra.mrb[22].mxu0 %vm99_vm1, %v49_v49  ;;  %1033 = vmatmul.mubr.msk.f32.gmra.mrb[22].mxu1 %vm99_vm1, %v81_v50 }
  0x47   :  { %987 = vmatprep.mubr.msk.f32.mxu0 %vm99_vm1, %v50_v51  ;;  %1035 = vmatprep.mubr.msk.f32.mxu1 %vm99_vm1, %v82_v52 }
  0x4a   :  { %988 = vmatmul.mubr.msk.f32.gmra.mrb[24].mxu0 %vm99_vm1, %v51_v53  ;;  %1036 = vmatmul.mubr.msk.f32.gmra.mrb[24].mxu1 %vm99_vm1, %v83_v54 }
  0x4b   :  { %990 = vmatprep.mubr.msk.f32.mxu0 %vm99_vm1, %v52_v55  ;;  %1038 = vmatprep.mubr.msk.f32.mxu1 %vm99_vm1, %v84_v56 }
  0x4e   :  { %991 = vmatmul.mubr.msk.f32.gmra.mrb[26].mxu0 %vm99_vm1, %v53_v57  ;;  %1039 = vmatmul.mubr.msk.f32.gmra.mrb[26].mxu1 %vm99_vm1, %v85_v58 }
  0x4f   :  { %993 = vmatprep.mubr.msk.f32.mxu0 %vm99_vm1, %v54_v59  ;;  %1041 = vmatprep.mubr.msk.f32.mxu1 %vm99_vm1, %v86_v60 }
  0x52   :  { %994 = vmatmul.mubr.msk.f32.gmra.mrb[28].mxu0 %vm99_vm1, %v55_v61  ;;  %1042 = vmatmul.mubr.msk.f32.gmra.mrb[28].mxu1 %vm99_vm1, %v87_v62 }
  0x53   :  { %996 = vmatprep.mubr.msk.f32.mxu0 %vm99_vm1, %v56_v63  ;;  %1044 = vmatprep.mubr.msk.f32.mxu1 %vm99_vm1, %v88_v0 }
  0x56   :  { %997 = vmatmul.mubr.msk.f32.gmra.mrb[30].mxu0 %vm99_vm1, %v57_v1  ;;  %1045 = vmatmul.mubr.msk.f32.gmra.mrb[30].mxu1 %vm99_vm1, %v89_v2 }
  0xed   :  { %v953_v4 = vpop.f32.mrb[0].mxu0  ;;  %v1001_v5 = vpop.f32.mrb[0].mxu1 }
  0xee   :  { %v368_v6 = vadd.f32 %v953_v4, %v1377_v3  ;;  %v528_v7 = vadd.f32 %v1001_v5, %v1377_v3  ;;  %v362_v8 = vpop.f32.mrb[1].mxu0  ;;  %v522_v9 = vpop.f32.mrb[1].mxu1 }
  0xef   :  { %v363_v10 = vadd.f32 %v1377_v3, %v362_v8  ;;  %v523_v11 = vadd.f32 %v1377_v3, %v522_v9 }
  0xf0   :  { %v682_v12 = vmax.f32 %v368_v6, 0.0  ;;  %v714_v13 = vmax.f32 %v528_v7, 0.0 }
  0xf1   :  { %v681_v14 = vmax.f32 %v363_v10, 0.0  ;;  %v713_v15 = vmax.f32 %v523_v11, 0.0  ;;  %v956_v16 = vpop.f32.mrb[2].mxu0  ;;  %v1004_v17 = vpop.f32.mrb[2].mxu1 }
  0xf2   :  { %747 = vst.msk [vmem:[%s1702_s3 + $0x8] sm:$0xff] %vm745_vm4, %v682_v12  ;;  %779 = vst.msk [vmem:[%s1702_s3 + $0x108] sm:$0xff] %vm745_vm4, %v714_v13  ;;  %v378_v18 = vadd.f32 %v956_v16, %v1377_v3  ;;  %v538_v19 = vadd.f32 %v1004_v17, %v1377_v3  ;;  %v372_v20 = vpop.f32.mrb[3].mxu0  ;;  %v532_v21 = vpop.f32.mrb[3].mxu1 }
  0xf3   :  { %746 = vst.msk [vmem:[%s1702_s3] sm:$0xff] %vm745_vm4, %v681_v14  ;;  %778 = vst.msk [vmem:[%s1702_s3 + $0x100] sm:$0xff] %vm745_vm4, %v713_v15  ;;  %v373_v22 = vadd.f32 %v1377_v3, %v372_v20  ;;  %v533_v23 = vadd.f32 %v1377_v3, %v532_v21 }
  0xf4   :  { %v684_v24 = vmax.f32 %v378_v18, 0.0  ;;  %v716_v25 = vmax.f32 %v538_v19, 0.0 }
  0xf5   :  { %v683_v26 = vmax.f32 %v373_v22, 0.0  ;;  %v715_v27 = vmax.f32 %v533_v23, 0.0  ;;  %v959_v28 = vpop.f32.mrb[4].mxu0  ;;  %v1007_v29 = vpop.f32.mrb[4].mxu1 }
  0xf6   :  { %749 = vst.msk [vmem:[%s1702_s3 + $0x18] sm:$0xff] %vm745_vm4, %v684_v24  ;;  %781 = vst.msk [vmem:[%s1702_s3 + $0x118] sm:$0xff] %vm745_vm4, %v716_v25  ;;  %v388_v30 = vadd.f32 %v959_v28, %v1377_v3  ;;  %v548_v31 = vadd.f32 %v1007_v29, %v1377_v3  ;;  %v382_v32 = vpop.f32.mrb[5].mxu0  ;;  %v542_v33 = vpop.f32.mrb[5].mxu1 }
  0xf7   :  { %748 = vst.msk [vmem:[%s1702_s3 + $0x10] sm:$0xff] %vm745_vm4, %v683_v26  ;;  %780 = vst.msk [vmem:[%s1702_s3 + $0x110] sm:$0xff] %vm745_vm4, %v715_v27  ;;  %v383_v34 = vadd.f32 %v1377_v3, %v382_v32  ;;  %v543_v35 = vadd.f32 %v1377_v3, %v542_v33 }
  0xf8   :  { %v686_v36 = vmax.f32 %v388_v30, 0.0  ;;  %v718_v37 = vmax.f32 %v548_v31, 0.0 }
  0xf9   :  { %v685_v38 = vmax.f32 %v383_v34, 0.0  ;;  %v717_v39 = vmax.f32 %v543_v35, 0.0  ;;  %v962_v40 = vpop.f32.mrb[6].mxu0  ;;  %v1010_v41 = vpop.f32.mrb[6].mxu1 }
  0xfa   :  { %751 = vst.msk [vmem:[%s1702_s3 + $0x28] sm:$0xff] %vm745_vm4, %v686_v36  ;;  %783 = vst.msk [vmem:[%s1702_s3 + $0x128] sm:$0xff] %vm745_vm4, %v718_v37  ;;  %v398_v42 = vadd.f32 %v962_v40, %v1377_v3  ;;  %v558_v43 = vadd.f32 %v1010_v41, %v1377_v3  ;;  %v392_v44 = vpop.f32.mrb[7].mxu0  ;;  %v552_v45 = vpop.f32.mrb[7].mxu1 }
  0xfb   :  { %750 = vst.msk [vmem:[%s1702_s3 + $0x20] sm:$0xff] %vm745_vm4, %v685_v38  ;;  %782 = vst.msk [vmem:[%s1702_s3 + $0x120] sm:$0xff] %vm745_vm4, %v717_v39  ;;  %v393_v46 = vadd.f32 %v1377_v3, %v392_v44  ;;  %v553_v47 = vadd.f32 %v1377_v3, %v552_v45 }
  0xfc   :  { %v688_v48 = vmax.f32 %v398_v42, 0.0  ;;  %v720_v49 = vmax.f32 %v558_v43, 0.0 }
  0xfd   :  { %v687_v50 = vmax.f32 %v393_v46, 0.0  ;;  %v719_v51 = vmax.f32 %v553_v47, 0.0  ;;  %v965_v52 = vpop.f32.mrb[8].mxu0  ;;  %v1013_v53 = vpop.f32.mrb[8].mxu1 }
  0xfe   :  { %753 = vst.msk [vmem:[%s1702_s3 + $0x38] sm:$0xff] %vm745_vm4, %v688_v48  ;;  %785 = vst.msk [vmem:[%s1702_s3 + $0x138] sm:$0xff] %vm745_vm4, %v720_v49  ;;  %v408_v54 = vadd.f32 %v965_v52, %v1377_v3  ;;  %v568_v55 = vadd.f32 %v1013_v53, %v1377_v3  ;;  %v402_v56 = vpop.f32.mrb[9].mxu0  ;;  %v562_v57 = vpop.f32.mrb[9].mxu1 }
  0xff   :  { %752 = vst.msk [vmem:[%s1702_s3 + $0x30] sm:$0xff] %vm745_vm4, %v687_v50  ;;  %784 = vst.msk [vmem:[%s1702_s3 + $0x130] sm:$0xff] %vm745_vm4, %v719_v51  ;;  %v403_v58 = vadd.f32 %v1377_v3, %v402_v56  ;;  %v563_v59 = vadd.f32 %v1377_v3, %v562_v57 }
 0x100   :  { %v690_v60 = vmax.f32 %v408_v54, 0.0  ;;  %v722_v61 = vmax.f32 %v568_v55, 0.0 }
 0x101   :  { %v689_v62 = vmax.f32 %v403_v58, 0.0  ;;  %v721_v63 = vmax.f32 %v563_v59, 0.0  ;;  %v968_v0 = vpop.f32.mrb[10].mxu0  ;;  %v1016_v1 = vpop.f32.mrb[10].mxu1 }
 0x102   :  { %755 = vst.msk [vmem:[%s1702_s3 + $0x48] sm:$0xff] %vm745_vm4, %v690_v60  ;;  %787 = vst.msk [vmem:[%s1702_s3 + $0x148] sm:$0xff] %vm745_vm4, %v722_v61  ;;  %v418_v2 = vadd.f32 %v968_v0, %v1377_v3  ;;  %v578_v4 = vadd.f32 %v1016_v1, %v1377_v3  ;;  %v412_v5 = vpop.f32.mrb[11].mxu0  ;;  %v572_v6 = vpop.f32.mrb[11].mxu1 }
 0x103   :  { %754 = vst.msk [vmem:[%s1702_s3 + $0x40] sm:$0xff] %vm745_vm4, %v689_v62  ;;  %786 = vst.msk [vmem:[%s1702_s3 + $0x140] sm:$0xff] %vm745_vm4, %v721_v63  ;;  %v413_v7 = vadd.f32 %v1377_v3, %v412_v5  ;;  %v573_v8 = vadd.f32 %v1377_v3, %v572_v6 }
 0x104   :  { %v692_v9 = vmax.f32 %v418_v2, 0.0  ;;  %v724_v10 = vmax.f32 %v578_v4, 0.0 }
 0x105   :  { %v691_v11 = vmax.f32 %v413_v7, 0.0  ;;  %v723_v12 = vmax.f32 %v573_v8, 0.0  ;;  %v971_v13 = vpop.f32.mrb[12].mxu0  ;;  %v1019_v14 = vpop.f32.mrb[12].mxu1 }
 0x106   :  { %757 = vst.msk [vmem:[%s1702_s3 + $0x58] sm:$0xff] %vm745_vm4, %v692_v9  ;;  %789 = vst.msk [vmem:[%s1702_s3 + $0x158] sm:$0xff] %vm745_vm4, %v724_v10  ;;  %v428_v15 = vadd.f32 %v971_v13, %v1377_v3  ;;  %v588_v16 = vadd.f32 %v1019_v14, %v1377_v3  ;;  %v422_v17 = vpop.f32.mrb[13].mxu0  ;;  %v582_v18 = vpop.f32.mrb[13].mxu1 }
 0x107   :  { %756 = vst.msk [vmem:[%s1702_s3 + $0x50] sm:$0xff] %vm745_vm4, %v691_v11  ;;  %788 = vst.msk [vmem:[%s1702_s3 + $0x150] sm:$0xff] %vm745_vm4, %v723_v12  ;;  %v423_v19 = vadd.f32 %v1377_v3, %v422_v17  ;;  %v583_v20 = vadd.f32 %v1377_v3, %v582_v18 }
 0x108   :  { %v694_v21 = vmax.f32 %v428_v15, 0.0  ;;  %v726_v22 = vmax.f32 %v588_v16, 0.0 }
 0x109   :  { %v693_v23 = vmax.f32 %v423_v19, 0.0  ;;  %v725_v24 = vmax.f32 %v583_v20, 0.0  ;;  %v974_v25 = vpop.f32.mrb[14].mxu0  ;;  %v1022_v26 = vpop.f32.mrb[14].mxu1 }
 0x10a   :  { %759 = vst.msk [vmem:[%s1702_s3 + $0x68] sm:$0xff] %vm745_vm4, %v694_v21  ;;  %791 = vst.msk [vmem:[%s1702_s3 + $0x168] sm:$0xff] %vm745_vm4, %v726_v22  ;;  %v438_v27 = vadd.f32 %v974_v25, %v1377_v3  ;;  %v598_v28 = vadd.f32 %v1022_v26, %v1377_v3  ;;  %v432_v29 = vpop.f32.mrb[15].mxu0  ;;  %v592_v30 = vpop.f32.mrb[15].mxu1 }
 0x10b   :  { %758 = vst.msk [vmem:[%s1702_s3 + $0x60] sm:$0xff] %vm745_vm4, %v693_v23  ;;  %790 = vst.msk [vmem:[%s1702_s3 + $0x160] sm:$0xff] %vm745_vm4, %v725_v24  ;;  %v433_v31 = vadd.f32 %v1377_v3, %v432_v29  ;;  %v593_v32 = vadd.f32 %v1377_v3, %v592_v30 }
 0x10c   :  { %v696_v33 = vmax.f32 %v438_v27, 0.0  ;;  %v728_v34 = vmax.f32 %v598_v28, 0.0 }
 0x10d   :  { %v695_v35 = vmax.f32 %v433_v31, 0.0  ;;  %v727_v36 = vmax.f32 %v593_v32, 0.0  ;;  %v977_v37 = vpop.f32.mrb[16].mxu0  ;;  %v1025_v38 = vpop.f32.mrb[16].mxu1 }
 0x10e   :  { %761 = vst.msk [vmem:[%s1702_s3 + $0x78] sm:$0xff] %vm745_vm4, %v696_v33  ;;  %793 = vst.msk [vmem:[%s1702_s3 + $0x178] sm:$0xff] %vm745_vm4, %v728_v34  ;;  %v448_v39 = vadd.f32 %v977_v37, %v1377_v3  ;;  %v608_v40 = vadd.f32 %v1025_v38, %v1377_v3  ;;  %v442_v41 = vpop.f32.mrb[17].mxu0  ;;  %v602_v42 = vpop.f32.mrb[17].mxu1 }
 0x10f   :  { %760 = vst.msk [vmem:[%s1702_s3 + $0x70] sm:$0xff] %vm745_vm4, %v695_v35  ;;  %792 = vst.msk [vmem:[%s1702_s3 + $0x170] sm:$0xff] %vm745_vm4, %v727_v36  ;;  %v443_v43 = vadd.f32 %v1377_v3, %v442_v41  ;;  %v603_v44 = vadd.f32 %v1377_v3, %v602_v42 }
 0x110   :  { %v698_v45 = vmax.f32 %v448_v39, 0.0  ;;  %v730_v46 = vmax.f32 %v608_v40, 0.0 }
 0x111   :  { %v697_v47 = vmax.f32 %v443_v43, 0.0  ;;  %v729_v48 = vmax.f32 %v603_v44, 0.0  ;;  %v980_v49 = vpop.f32.mrb[18].mxu0  ;;  %v1028_v50 = vpop.f32.mrb[18].mxu1 }
 0x112   :  { %763 = vst.msk [vmem:[%s1702_s3 + $0x88] sm:$0xff] %vm745_vm4, %v698_v45  ;;  %795 = vst.msk [vmem:[%s1702_s3 + $0x188] sm:$0xff] %vm745_vm4, %v730_v46  ;;  %v458_v51 = vadd.f32 %v980_v49, %v1377_v3  ;;  %v618_v52 = vadd.f32 %v1028_v50, %v1377_v3  ;;  %v452_v53 = vpop.f32.mrb[19].mxu0  ;;  %v612_v54 = vpop.f32.mrb[19].mxu1 }
 0x113   :  { %762 = vst.msk [vmem:[%s1702_s3 + $0x80] sm:$0xff] %vm745_vm4, %v697_v47  ;;  %794 = vst.msk [vmem:[%s1702_s3 + $0x180] sm:$0xff] %vm745_vm4, %v729_v48  ;;  %v453_v55 = vadd.f32 %v1377_v3, %v452_v53  ;;  %v613_v56 = vadd.f32 %v1377_v3, %v612_v54 }
 0x114   :  { %v700_v57 = vmax.f32 %v458_v51, 0.0  ;;  %v732_v58 = vmax.f32 %v618_v52, 0.0 }
 0x115   :  { %v699_v59 = vmax.f32 %v453_v55, 0.0  ;;  %v731_v60 = vmax.f32 %v613_v56, 0.0  ;;  %v983_v61 = vpop.f32.mrb[20].mxu0  ;;  %v1031_v62 = vpop.f32.mrb[20].mxu1 }
 0x116   :  { %765 = vst.msk [vmem:[%s1702_s3 + $0x98] sm:$0xff] %vm745_vm4, %v700_v57  ;;  %797 = vst.msk [vmem:[%s1702_s3 + $0x198] sm:$0xff] %vm745_vm4, %v732_v58  ;;  %v468_v63 = vadd.f32 %v983_v61, %v1377_v3  ;;  %v628_v0 = vadd.f32 %v1031_v62, %v1377_v3  ;;  %v462_v1 = vpop.f32.mrb[21].mxu0  ;;  %v622_v2 = vpop.f32.mrb[21].mxu1 }
 0x117   :  { %764 = vst.msk [vmem:[%s1702_s3 + $0x90] sm:$0xff] %vm745_vm4, %v699_v59  ;;  %796 = vst.msk [vmem:[%s1702_s3 + $0x190] sm:$0xff] %vm745_vm4, %v731_v60  ;;  %v463_v4 = vadd.f32 %v1377_v3, %v462_v1  ;;  %v623_v5 = vadd.f32 %v1377_v3, %v622_v2 }
 0x118   :  { %v702_v6 = vmax.f32 %v468_v63, 0.0  ;;  %v734_v7 = vmax.f32 %v628_v0, 0.0 }
 0x119   :  { %v701_v8 = vmax.f32 %v463_v4, 0.0  ;;  %v733_v9 = vmax.f32 %v623_v5, 0.0  ;;  %v986_v10 = vpop.f32.mrb[22].mxu0  ;;  %v1034_v11 = vpop.f32.mrb[22].mxu1 }
 0x11a   :  { %767 = vst.msk [vmem:[%s1702_s3 + $0xa8] sm:$0xff] %vm745_vm4, %v702_v6  ;;  %799 = vst.msk [vmem:[%s1702_s3 + $0x1a8] sm:$0xff] %vm745_vm4, %v734_v7  ;;  %v478_v12 = vadd.f32 %v986_v10, %v1377_v3  ;;  %v638_v13 = vadd.f32 %v1034_v11, %v1377_v3  ;;  %v472_v14 = vpop.f32.mrb[23].mxu0  ;;  %v632_v15 = vpop.f32.mrb[23].mxu1 }
 0x11b   :  { %766 = vst.msk [vmem:[%s1702_s3 + $0xa0] sm:$0xff] %vm745_vm4, %v701_v8  ;;  %798 = vst.msk [vmem:[%s1702_s3 + $0x1a0] sm:$0xff] %vm745_vm4, %v733_v9  ;;  %v473_v16 = vadd.f32 %v1377_v3, %v472_v14  ;;  %v633_v17 = vadd.f32 %v1377_v3, %v632_v15 }
 0x11c   :  { %v704_v18 = vmax.f32 %v478_v12, 0.0  ;;  %v736_v19 = vmax.f32 %v638_v13, 0.0 }
 0x11d   :  { %v703_v20 = vmax.f32 %v473_v16, 0.0  ;;  %v735_v21 = vmax.f32 %v633_v17, 0.0  ;;  %v989_v22 = vpop.f32.mrb[24].mxu0  ;;  %v1037_v23 = vpop.f32.mrb[24].mxu1 }
 0x11e   :  { %769 = vst.msk [vmem:[%s1702_s3 + $0xb8] sm:$0xff] %vm745_vm4, %v704_v18  ;;  %801 = vst.msk [vmem:[%s1702_s3 + $0x1b8] sm:$0xff] %vm745_vm4, %v736_v19  ;;  %v488_v24 = vadd.f32 %v989_v22, %v1377_v3  ;;  %v648_v25 = vadd.f32 %v1037_v23, %v1377_v3  ;;  %v482_v26 = vpop.f32.mrb[25].mxu0  ;;  %v642_v27 = vpop.f32.mrb[25].mxu1 }
 0x11f   :  { %768 = vst.msk [vmem:[%s1702_s3 + $0xb0] sm:$0xff] %vm745_vm4, %v703_v20  ;;  %800 = vst.msk [vmem:[%s1702_s3 + $0x1b0] sm:$0xff] %vm745_vm4, %v735_v21  ;;  %v483_v28 = vadd.f32 %v1377_v3, %v482_v26  ;;  %v643_v29 = vadd.f32 %v1377_v3, %v642_v27 }
 0x120   :  { %v706_v30 = vmax.f32 %v488_v24, 0.0  ;;  %v738_v31 = vmax.f32 %v648_v25, 0.0 }
 0x121   :  { %v705_v32 = vmax.f32 %v483_v28, 0.0  ;;  %v737_v33 = vmax.f32 %v643_v29, 0.0  ;;  %v992_v34 = vpop.f32.mrb[26].mxu0  ;;  %v1040_v35 = vpop.f32.mrb[26].mxu1 }
 0x122   :  { %771 = vst.msk [vmem:[%s1702_s3 + $0xc8] sm:$0xff] %vm745_vm4, %v706_v30  ;;  %803 = vst.msk [vmem:[%s1702_s3 + $0x1c8] sm:$0xff] %vm745_vm4, %v738_v31  ;;  %v498_v36 = vadd.f32 %v992_v34, %v1377_v3  ;;  %v658_v37 = vadd.f32 %v1040_v35, %v1377_v3  ;;  %v492_v38 = vpop.f32.mrb[27].mxu0  ;;  %v652_v39 = vpop.f32.mrb[27].mxu1 }
 0x123   :  { %770 = vst.msk [vmem:[%s1702_s3 + $0xc0] sm:$0xff] %vm745_vm4, %v705_v32  ;;  %802 = vst.msk [vmem:[%s1702_s3 + $0x1c0] sm:$0xff] %vm745_vm4, %v737_v33  ;;  %v493_v40 = vadd.f32 %v1377_v3, %v492_v38  ;;  %v653_v41 = vadd.f32 %v1377_v3, %v652_v39 }
 0x124   :  { %v708_v42 = vmax.f32 %v498_v36, 0.0  ;;  %v740_v43 = vmax.f32 %v658_v37, 0.0 }
 0x125   :  { %v707_v44 = vmax.f32 %v493_v40, 0.0  ;;  %v739_v45 = vmax.f32 %v653_v41, 0.0  ;;  %v995_v46 = vpop.f32.mrb[28].mxu0  ;;  %v1043_v47 = vpop.f32.mrb[28].mxu1 }
 0x126   :  { %773 = vst.msk [vmem:[%s1702_s3 + $0xd8] sm:$0xff] %vm745_vm4, %v708_v42  ;;  %805 = vst.msk [vmem:[%s1702_s3 + $0x1d8] sm:$0xff] %vm745_vm4, %v740_v43  ;;  %v508_v48 = vadd.f32 %v995_v46, %v1377_v3  ;;  %v668_v49 = vadd.f32 %v1043_v47, %v1377_v3  ;;  %v502_v50 = vpop.f32.mrb[29].mxu0  ;;  %v662_v51 = vpop.f32.mrb[29].mxu1 }
 0x127   :  { %772 = vst.msk [vmem:[%s1702_s3 + $0xd0] sm:$0xff] %vm745_vm4, %v707_v44  ;;  %804 = vst.msk [vmem:[%s1702_s3 + $0x1d0] sm:$0xff] %vm745_vm4, %v739_v45  ;;  %v503_v52 = vadd.f32 %v1377_v3, %v502_v50  ;;  %v663_v53 = vadd.f32 %v1377_v3, %v662_v51 }
 0x128   :  { %v710_v54 = vmax.f32 %v508_v48, 0.0  ;;  %v742_v55 = vmax.f32 %v668_v49, 0.0 }
 0x129   :  { %v709_v56 = vmax.f32 %v503_v52, 0.0  ;;  %v741_v57 = vmax.f32 %v663_v53, 0.0  ;;  %v998_v58 = vpop.f32.mrb[30].mxu0  ;;  %v1046_v59 = vpop.f32.mrb[30].mxu1 }
 0x12a   :  { %775 = vst.msk [vmem:[%s1702_s3 + $0xe8] sm:$0xff] %vm745_vm4, %v710_v54  ;;  %807 = vst.msk [vmem:[%s1702_s3 + $0x1e8] sm:$0xff] %vm745_vm4, %v742_v55  ;;  %v518_v60 = vadd.f32 %v998_v58, %v1377_v3  ;;  %v678_v61 = vadd.f32 %v1046_v59, %v1377_v3  ;;  %v512_v62 = vpop.f32.mrb[31].mxu0  ;;  %v672_v63 = vpop.f32.mrb[31].mxu1 }
 0x12b   :  { %774 = vst.msk [vmem:[%s1702_s3 + $0xe0] sm:$0xff] %vm745_vm4, %v709_v56  ;;  %806 = vst.msk [vmem:[%s1702_s3 + $0x1e0] sm:$0xff] %vm745_vm4, %v741_v57  ;;  %v513_v0 = vadd.f32 %v1377_v3, %v512_v62  ;;  %v673_v1 = vadd.f32 %v1377_v3, %v672_v63 }
 0x12c   :  { %v712_v2 = vmax.f32 %v518_v60, 0.0  ;;  %v744_v4 = vmax.f32 %v678_v61, 0.0 }
 0x12d   :  { %v711_v5 = vmax.f32 %v513_v0, 0.0  ;;  %v743_v6 = vmax.f32 %v673_v1, 0.0 }
 0x12e   :  { %777 = vst.msk [vmem:[%s1702_s3 + $0xf8] sm:$0xff] %vm745_vm4, %v712_v2  ;;  %809 = vst.msk [vmem:[%s1702_s3 + $0x1f8] sm:$0xff] %vm745_vm4, %v744_v4 }
 0x12f   :  { %776 = vst.msk [vmem:[%s1702_s3 + $0xf0] sm:$0xff] %vm745_vm4, %v711_v5  ;;  %808 = vst.msk [vmem:[%s1702_s3 + $0x1f0] sm:$0xff] %vm745_vm4, %v743_v6 }
 0x130   :  { %814 = vsyncpa [#allocation3], 1 }

// kernel: _lambda_.6
= control target key start
LH: loop header
LB: loop body
LE: loop exit
PB: predicated region body
PF: predicated region fallthrough
CT: control target
= control target key end

     0   :  { %vm46_vm0 = vcmask 588800   ;;  %vm256_vm1 = vcmask 64512   ;;  %s565_s1 = inlined_call_operand.vmem [shape: f32[72,8], index: 1, kind: input, shape index: {}]   ;;  %s566_s0 = inlined_call_operand.vmem [shape: f32[128,72], index: 0, kind: input, shape index: {}]   ;;  %s567_s2 = inlined_call_operand.vmem [shape: f32[1,8], index: 2, kind: input, shape index: {}]   ;;  %s568_s3 = inlined_call_operand.vmem [shape: f32[128,8], index: 3, kind: output, shape index: {}]  }
   0x1   :  { %v30_v0 = vld [vmem:[%s565_s1] sm:$0xff]  ;;  %v31_v1 = vld [vmem:[%s565_s1 + $0x8] sm:$0xff]  ;;  %v32_v2 = vld [vmem:[%s565_s1 + $0x10] sm:$0xff] }
   0x2   :  { %v361_v3 = vpack.c.bf16 %v31_v1, %v30_v0  ;;  %v33_v4 = vld [vmem:[%s565_s1 + $0x18] sm:$0xff]  ;;  %v34_v6 = vld [vmem:[%s565_s1 + $0x20] sm:$0xff]  ;;  %v35_v7 = vld [vmem:[%s565_s1 + $0x28] sm:$0xff] }
   0x3   :  { %v365_v5 = vpack.c.bf16 %v33_v4, %v32_v2  ;;  %v14_v8 = vld [vmem:[%s566_s0] sm:$0xff]  ;;  %v369_v10 = vpack.c.bf16 %v35_v7, %v34_v6  ;;  %v36_v11 = vld [vmem:[%s565_s1 + $0x30] sm:$0xff]  ;;  %v37_v12 = vld [vmem:[%s565_s1 + $0x38] sm:$0xff] }
   0x4   :  { %362 = vmatprep.subr.bf16.mxu0 %v361_v3  ;;  %377 = vmatprep.subr.bf16.mxu1 %v361_v3  ;;  %v22_v9 = vld [vmem:[%s566_s0 + $0x40] sm:$0xff]  ;;  %v373_v13 = vpack.c.bf16 %v37_v12, %v36_v11  ;;  %v15_v15 = vld [vmem:[%s566_s0 + $0x8] sm:$0xff]  ;;  %v16_v17 = vld [vmem:[%s566_s0 + $0x10] sm:$0xff] }
   0x5   :  { %364 = vmatpush3.bf16.msra.mxu0 %v361_v3  ;;  %382 = vmatpush3.bf16.msra.mxu1 %v361_v3  ;;  %v38_v14 = vld [vmem:[%s565_s1 + $0x40] sm:$0xff]  ;;  %v23_v16 = vld [vmem:[%s566_s0 + $0x48] sm:$0xff]  ;;  %v24_v18 = vld [vmem:[%s566_s0 + $0x50] sm:$0xff] }
   0x6   :  { %366 = vmatprep.subr.bf16.mxu0 %v365_v5  ;;  %378 = vmatprep.subr.bf16.mxu1 %v365_v5  ;;  %v17_v19 = vld [vmem:[%s566_s0 + $0x18] sm:$0xff]  ;;  %v18_v21 = vld [vmem:[%s566_s0 + $0x20] sm:$0xff]  ;;  %v19_v23 = vld [vmem:[%s566_s0 + $0x28] sm:$0xff] }
   0x7   :  { %337 = vmatprep.mubr.msk.f32.mxu0 %vm46_vm0, %v14_v8  ;;  %349 = vmatprep.mubr.msk.f32.mxu1 %vm46_vm0, %v22_v9  ;;  %v25_v20 = vld [vmem:[%s566_s0 + $0x58] sm:$0xff]  ;;  %v26_v22 = vld [vmem:[%s566_s0 + $0x60] sm:$0xff]  ;;  %v27_v24 = vld [vmem:[%s566_s0 + $0x68] sm:$0xff] }
   0x8   :  { %v20_v25 = vld [vmem:[%s566_s0 + $0x30] sm:$0xff]  ;;  %v21_v27 = vld [vmem:[%s566_s0 + $0x38] sm:$0xff]  ;;  %v277_v29 = vld [vmem:[%s567_s2] ss:$0 sm:$0xff] }
   0x9   :  { %368 = vmatpush3.bf16.msra.mxu0 %v365_v5  ;;  %383 = vmatpush3.bf16.msra.mxu1 %v365_v5  ;;  %v28_v26 = vld [vmem:[%s566_s0 + $0x70] sm:$0xff]  ;;  %v29_v28 = vld [vmem:[%s566_s0 + $0x78] sm:$0xff] }
   0xa   :  { %370 = vmatprep.subr.bf16.mxu0 %v369_v10  ;;  %379 = vmatprep.subr.bf16.mxu1 %v369_v10 }
   0xd   :  { %372 = vmatpush3.bf16.msra.mxu0 %v369_v10  ;;  %384 = vmatpush3.bf16.msra.mxu1 %v369_v10 }
   0xe   :  { %374 = vmatprep.subr.bf16.mxu0 %v373_v13  ;;  %380 = vmatprep.subr.bf16.mxu1 %v373_v13 }
  0x11   :  { %376 = vmatpush3.bf16.msra.mxu0 %v373_v13  ;;  %385 = vmatpush3.bf16.msra.mxu1 %v373_v13 }
  0x12   :  { %335 = vmatprep.subr.mxu0 %v38_v14  ;;  %381 = vmatprep.subr.mxu1 %v38_v14 }
  0x15   :  { %336 = vmatpush3.msra.mxu0 %v38_v14  ;;  %386 = vmatpush3.msra.mxu1 %v38_v14 }
  0x16   :  { %338 = vmatmul.mubr.msk.f32.vlgmr.msra.gmra.mrb[0].mxu0 %vm46_vm0, %v15_v15  ;;  %350 = vmatmul.mubr.msk.f32.vlgmr.msra.gmra.mrb[0].mxu1 %vm46_vm0, %v23_v16 }
  0x17   :  { %340 = vmatprep.mubr.msk.f32.mxu0 %vm46_vm0, %v16_v17  ;;  %352 = vmatprep.mubr.msk.f32.mxu1 %vm46_vm0, %v24_v18 }
  0x1a   :  { %341 = vmatmul.mubr.msk.f32.gmra.mrb[2].mxu0 %vm46_vm0, %v17_v19  ;;  %353 = vmatmul.mubr.msk.f32.gmra.mrb[2].mxu1 %vm46_vm0, %v25_v20 }
  0x1b   :  { %343 = vmatprep.mubr.msk.f32.mxu0 %vm46_vm0, %v18_v21  ;;  %355 = vmatprep.mubr.msk.f32.mxu1 %vm46_vm0, %v26_v22 }
  0x1e   :  { %344 = vmatmul.mubr.msk.f32.gmra.mrb[4].mxu0 %vm46_vm0, %v19_v23  ;;  %356 = vmatmul.mubr.msk.f32.gmra.mrb[4].mxu1 %vm46_vm0, %v27_v24 }
  0x1f   :  { %346 = vmatprep.mubr.msk.f32.mxu0 %vm46_vm0, %v20_v25  ;;  %358 = vmatprep.mubr.msk.f32.mxu1 %vm46_vm0, %v28_v26 }
  0x22   :  { %347 = vmatmul.mubr.msk.f32.gmra.mrb[6].mxu0 %vm46_vm0, %v21_v27  ;;  %359 = vmatmul.mubr.msk.f32.gmra.mrb[6].mxu1 %vm46_vm0, %v29_v28 }
  0xe9   :  { %v339_v30 = vpop.f32.mrb[0].mxu0  ;;  %v351_v31 = vpop.f32.mrb[0].mxu1 }
  0xea   :  { %v167_v32 = vadd.f32 %v339_v30, %v277_v29  ;;  %v207_v33 = vadd.f32 %v351_v31, %v277_v29  ;;  %v161_v34 = vpop.f32.mrb[1].mxu0  ;;  %v201_v35 = vpop.f32.mrb[1].mxu1 }
  0xeb   :  { %v162_v36 = vadd.f32 %v277_v29, %v161_v34  ;;  %v202_v37 = vadd.f32 %v277_v29, %v201_v35 }
  0xec   :  { %v241_v38 = vmax.f32 %v167_v32, 0.0  ;;  %v249_v39 = vmax.f32 %v207_v33, 0.0 }
  0xed   :  { %v240_v40 = vmax.f32 %v162_v36, 0.0  ;;  %v248_v41 = vmax.f32 %v202_v37, 0.0  ;;  %v342_v42 = vpop.f32.mrb[2].mxu0  ;;  %v354_v43 = vpop.f32.mrb[2].mxu1 }
  0xee   :  { %258 = vst.msk [vmem:[%s568_s3 + $0x8] sm:$0xff] %vm256_vm1, %v241_v38  ;;  %266 = vst.msk [vmem:[%s568_s3 + $0x48] sm:$0xff] %vm256_vm1, %v249_v39  ;;  %v177_v44 = vadd.f32 %v342_v42, %v277_v29  ;;  %v217_v45 = vadd.f32 %v354_v43, %v277_v29  ;;  %v171_v46 = vpop.f32.mrb[3].mxu0  ;;  %v211_v47 = vpop.f32.mrb[3].mxu1 }
  0xef   :  { %257 = vst.msk [vmem:[%s568_s3] sm:$0xff] %vm256_vm1, %v240_v40  ;;  %265 = vst.msk [vmem:[%s568_s3 + $0x40] sm:$0xff] %vm256_vm1, %v248_v41  ;;  %v172_v48 = vadd.f32 %v277_v29, %v171_v46  ;;  %v212_v49 = vadd.f32 %v277_v29, %v211_v47 }
  0xf0   :  { %v243_v50 = vmax.f32 %v177_v44, 0.0  ;;  %v251_v51 = vmax.f32 %v217_v45, 0.0 }
  0xf1   :  { %v242_v52 = vmax.f32 %v172_v48, 0.0  ;;  %v250_v53 = vmax.f32 %v212_v49, 0.0  ;;  %v345_v54 = vpop.f32.mrb[4].mxu0  ;;  %v357_v55 = vpop.f32.mrb[4].mxu1 }
  0xf2   :  { %260 = vst.msk [vmem:[%s568_s3 + $0x18] sm:$0xff] %vm256_vm1, %v243_v50  ;;  %268 = vst.msk [vmem:[%s568_s3 + $0x58] sm:$0xff] %vm256_vm1, %v251_v51  ;;  %v187_v56 = vadd.f32 %v345_v54, %v277_v29  ;;  %v227_v57 = vadd.f32 %v357_v55, %v277_v29  ;;  %v181_v58 = vpop.f32.mrb[5].mxu0  ;;  %v221_v59 = vpop.f32.mrb[5].mxu1 }
  0xf3   :  { %259 = vst.msk [vmem:[%s568_s3 + $0x10] sm:$0xff] %vm256_vm1, %v242_v52  ;;  %267 = vst.msk [vmem:[%s568_s3 + $0x50] sm:$0xff] %vm256_vm1, %v250_v53  ;;  %v182_v60 = vadd.f32 %v277_v29, %v181_v58  ;;  %v222_v61 = vadd.f32 %v277_v29, %v221_v59 }
  0xf4   :  { %v245_v62 = vmax.f32 %v187_v56, 0.0  ;;  %v253_v63 = vmax.f32 %v227_v57, 0.0 }
  0xf5   :  { %v244_v0 = vmax.f32 %v182_v60, 0.0  ;;  %v252_v1 = vmax.f32 %v222_v61, 0.0  ;;  %v348_v2 = vpop.f32.mrb[6].mxu0  ;;  %v360_v3 = vpop.f32.mrb[6].mxu1 }
  0xf6   :  { %262 = vst.msk [vmem:[%s568_s3 + $0x28] sm:$0xff] %vm256_vm1, %v245_v62  ;;  %270 = vst.msk [vmem:[%s568_s3 + $0x68] sm:$0xff] %vm256_vm1, %v253_v63  ;;  %v197_v4 = vadd.f32 %v348_v2, %v277_v29  ;;  %v237_v5 = vadd.f32 %v360_v3, %v277_v29  ;;  %v191_v6 = vpop.f32.mrb[7].mxu0  ;;  %v231_v7 = vpop.f32.mrb[7].mxu1 }
  0xf7   :  { %261 = vst.msk [vmem:[%s568_s3 + $0x20] sm:$0xff] %vm256_vm1, %v244_v0  ;;  %269 = vst.msk [vmem:[%s568_s3 + $0x60] sm:$0xff] %vm256_vm1, %v252_v1  ;;  %v192_v8 = vadd.f32 %v277_v29, %v191_v6  ;;  %v232_v9 = vadd.f32 %v277_v29, %v231_v7 }
  0xf8   :  { %v247_v10 = vmax.f32 %v197_v4, 0.0  ;;  %v255_v11 = vmax.f32 %v237_v5, 0.0 }
  0xf9   :  { %v246_v12 = vmax.f32 %v192_v8, 0.0  ;;  %v254_v13 = vmax.f32 %v232_v9, 0.0 }
  0xfa   :  { %264 = vst.msk [vmem:[%s568_s3 + $0x38] sm:$0xff] %vm256_vm1, %v247_v10  ;;  %272 = vst.msk [vmem:[%s568_s3 + $0x78] sm:$0xff] %vm256_vm1, %v255_v11 }
  0xfb   :  { %263 = vst.msk [vmem:[%s568_s3 + $0x30] sm:$0xff] %vm256_vm1, %v246_v12  ;;  %271 = vst.msk [vmem:[%s568_s3 + $0x70] sm:$0xff] %vm256_vm1, %v254_v13 }

// kernel: mul.0
= control target key start
LH: loop header
LB: loop body
LE: loop exit
PB: predicated region body
PF: predicated region fallthrough
CT: control target
= control target key end

     0   :  { %s34_s0 = inlined_call_operand.vmem [shape: f32[2,64], index: 0, kind: input, shape index: {}]   ;;  %s35_s1 = inlined_call_operand.vmem [shape: f32[2,64], index: 1, kind: input, shape index: {}]   ;;  %s36_s2 = inlined_call_operand.vmem [shape: f32[2,64], index: 2, kind: output, shape index: {}]  }
   0x1   :  { %v3_v0 = vld [vmem:[%s34_s0] sm:$0x3] }
   0x2   :  { %v4_v1 = vld [vmem:[%s35_s1] sm:$0x3] }
   0x3   :  { %v7_v2 = vmul.f32 %v4_v1, %v3_v0 }
   0x5   :  { %9 = vst [vmem:[%s36_s2] sm:$0x3] %v7_v2 }

// kernel: _lambda_.7
= control target key start
LH: loop header
LB: loop body
LE: loop exit
PB: predicated region body
PF: predicated region fallthrough
CT: control target
= control target key end

     0   :  { %vm34_vm0 = vcmask 588800   ;;  %vm136_vm1 = vcmask 261120   ;;  %s427_s1 = inlined_call_operand.vmem [shape: f32[72,32], index: 1, kind: input, shape index: {}]   ;;  %s428_s0 = inlined_call_operand.vmem [shape: f32[32,72], index: 0, kind: input, shape index: {}]   ;;  %s429_s2 = inlined_call_operand.vmem [shape: f32[1,32], index: 2, kind: input, shape index: {}]   ;;  %s430_s3 = inlined_call_operand.vmem [shape: f32[32,32], index: 3, kind: output, shape index: {}]  }
   0x1   :  { %v18_v0 = vld [vmem:[%s427_s1] sm:$0xff]  ;;  %v19_v1 = vld [vmem:[%s427_s1 + $0x8] sm:$0xff]  ;;  %v20_v2 = vld [vmem:[%s427_s1 + $0x10] sm:$0xff] }
   0x2   :  { %v271_v3 = vpack.c.bf16 %v19_v1, %v18_v0  ;;  %v21_v4 = vld [vmem:[%s427_s1 + $0x18] sm:$0xff]  ;;  %v22_v6 = vld [vmem:[%s427_s1 + $0x20] sm:$0xff]  ;;  %v23_v7 = vld [vmem:[%s427_s1 + $0x28] sm:$0xff] }
   0x3   :  { %v275_v5 = vpack.c.bf16 %v21_v4, %v20_v2  ;;  %v14_v8 = vld [vmem:[%s428_s0] sm:$0xff]  ;;  %v16_v9 = vld [vmem:[%s428_s0 + $0x10] sm:$0xff]  ;;  %v279_v10 = vpack.c.bf16 %v23_v7, %v22_v6  ;;  %v25_v12 = vld [vmem:[%s427_s1 + $0x38] sm:$0xff] }
   0x4   :  { %272 = vmatprep.subr.bf16.mxu0 %v271_v3  ;;  %287 = vmatprep.subr.bf16.mxu1 %v271_v3  ;;  %v24_v11 = vld [vmem:[%s427_s1 + $0x30] sm:$0xff]  ;;  %v26_v14 = vld [vmem:[%s427_s1 + $0x40] sm:$0xff]  ;;  %v15_v15 = vld [vmem:[%s428_s0 + $0x8] sm:$0xff] }
   0x5   :  { %274 = vmatpush3.bf16.msra.mxu0 %v271_v3  ;;  %292 = vmatpush3.bf16.msra.mxu1 %v271_v3  ;;  %v283_v13 = vpack.c.bf16 %v25_v12, %v24_v11  ;;  %v17_v16 = vld [vmem:[%s428_s0 + $0x18] sm:$0xff]  ;;  %v229_v17 = vld [vmem:[%s429_s2] ss:$0 sm:$0xff] }
   0x6   :  { %276 = vmatprep.subr.bf16.mxu0 %v275_v5  ;;  %288 = vmatprep.subr.bf16.mxu1 %v275_v5 }
   0x7   :  { %265 = vmatprep.mubr.msk.f32.mxu0 %vm34_vm0, %v14_v8  ;;  %268 = vmatprep.mubr.msk.f32.mxu1 %vm34_vm0, %v16_v9 }
   0x9   :  { %278 = vmatpush3.bf16.msra.mxu0 %v275_v5  ;;  %293 = vmatpush3.bf16.msra.mxu1 %v275_v5 }
   0xa   :  { %280 = vmatprep.subr.bf16.mxu0 %v279_v10  ;;  %289 = vmatprep.subr.bf16.mxu1 %v279_v10 }
   0xd   :  { %282 = vmatpush3.bf16.msra.mxu0 %v279_v10  ;;  %294 = vmatpush3.bf16.msra.mxu1 %v279_v10 }
   0xe   :  { %284 = vmatprep.subr.bf16.mxu0 %v283_v13  ;;  %290 = vmatprep.subr.bf16.mxu1 %v283_v13 }
  0x11   :  { %286 = vmatpush3.bf16.msra.mxu0 %v283_v13  ;;  %295 = vmatpush3.bf16.msra.mxu1 %v283_v13 }
  0x12   :  { %263 = vmatprep.subr.mxu0 %v26_v14  ;;  %291 = vmatprep.subr.mxu1 %v26_v14 }
  0x15   :  { %264 = vmatpush3.msra.mxu0 %v26_v14  ;;  %296 = vmatpush3.msra.mxu1 %v26_v14 }
  0x16   :  { %266 = vmatmul.mubr.msk.f32.vlgmr.msra.gmra.mrb[0].mxu0 %vm34_vm0, %v15_v15  ;;  %269 = vmatmul.mubr.msk.f32.vlgmr.msra.gmra.mrb[0].mxu1 %vm34_vm0, %v17_v16 }
  0xe9   :  { %v267_v18 = vpop.f32.mrb[0].mxu0  ;;  %v270_v19 = vpop.f32.mrb[0].mxu1 }
  0xea   :  { %v387_v20 = vadd.f32 %v267_v18, %v229_v17  ;;  %v389_v21 = vadd.f32 %v270_v19, %v229_v17  ;;  %v113_v22 = vpop.f32.mrb[1].mxu0  ;;  %v123_v23 = vpop.f32.mrb[1].mxu1 }
  0xeb   :  { %v391_v24 = vadd.f32 %v229_v17, %v113_v22  ;;  %v393_v25 = vadd.f32 %v229_v17, %v123_v23 }
  0xec   :  { %v133_v26 = vmul.f32 %v387_v20, %v387_v20  ;;  %v135_v27 = vmul.f32 %v389_v21, %v389_v21 }
  0xed   :  { %v132_v28 = vmul.f32 %v391_v24, %v391_v24  ;;  %v134_v29 = vmul.f32 %v393_v25, %v393_v25 }
  0xee   :  { %v144_v30 = vsel %vm136_vm1, %v133_v26, 0.0  ;;  %v158_v31 = vsel %vm136_vm1, %v135_v27, 0.0 }
  0xef   :  { %v145_v32 = vrot.slane %v144_v30, 4  ;;  %v159_v33 = vrot.slane %v158_v31, 4  ;;  %v137_v34 = vsel %vm136_vm1, %v132_v28, 0.0  ;;  %v151_v35 = vsel %vm136_vm1, %v134_v29, 0.0 }
  0xf0   :  { %v138_v36 = vrot.slane %v137_v34, 4  ;;  %v152_v37 = vrot.slane %v151_v35, 4 }
  0xf1   :  { %v146_v38 = vadd.f32 %v145_v32, %v144_v30  ;;  %v160_v39 = vadd.f32 %v159_v33, %v158_v31 }
  0xf2   :  { %v139_v40 = vadd.f32 %v138_v36, %v137_v34  ;;  %v153_v41 = vadd.f32 %v152_v37, %v151_v35 }
  0xf3   :  { %v147_v42 = vrot.slane %v146_v38, 2  ;;  %v161_v43 = vrot.slane %v160_v39, 2 }
  0xf4   :  { %v140_v44 = vrot.slane %v139_v40, 2  ;;  %v154_v45 = vrot.slane %v153_v41, 2 }
  0xf5   :  { %v148_v46 = vadd.f32 %v147_v42, %v146_v38  ;;  %v162_v47 = vadd.f32 %v161_v43, %v160_v39 }
  0xf6   :  { %v141_v48 = vadd.f32 %v140_v44, %v139_v40  ;;  %v155_v49 = vadd.f32 %v154_v45, %v153_v41 }
  0xf7   :  { %v149_v50 = vrot.slane %v148_v46, 1  ;;  %v163_v51 = vrot.slane %v162_v47, 1 }
  0xf8   :  { %v142_v52 = vrot.slane %v141_v48, 1  ;;  %v156_v53 = vrot.slane %v155_v49, 1 }
  0xf9   :  { %v150_v54 = vadd.f32 %v149_v50, %v148_v46  ;;  %v164_v55 = vadd.f32 %v163_v51, %v162_v47 }
  0xfa   :  { %v143_v56 = vadd.f32 %v142_v52, %v141_v48  ;;  %v157_v59 = vadd.f32 %v156_v53, %v155_v49 }
  0xfb   :  { %v182_v57 = vadd.f32 1e-09, %v150_v54  ;;  %v184_v58 = vadd.f32 1e-09, %v164_v55  ;;  %v166_v62 = vadd.f32 1.0, %v150_v54  ;;  %v168_v63 = vadd.f32 1.0, %v164_v55 }
  0xfc   :  { %v181_v60 = vadd.f32 1e-09, %v143_v56  ;;  %v183_v61 = vadd.f32 1e-09, %v157_v59  ;;  %v165_v0 = vadd.f32 1.0, %v143_v56  ;;  %v167_v1 = vadd.f32 1.0, %v157_v59 }
  0xfd   :  { %297 = vrsqrt.f32 %v182_v57  ;;  %vm194_vm2 = vcmp.eq.f32.partialorder %v182_v57, inf  ;;  %v197_v5 = vand.u32 2147483648, %v182_v57  ;;  %vm196_vm3 = vcmp.eq.f32.partialorder %v182_v57, 0.0 }
  0xfe   :  { %299 = vrsqrt.f32 %v184_v58  ;;  %vm208_vm4 = vcmp.eq.f32.partialorder %v184_v58, inf  ;;  %v211_v10 = vand.u32 2147483648, %v184_v58  ;;  %vm210_vm5 = vcmp.eq.f32.partialorder %v184_v58, 0.0 }
  0xff   :  { %301 = vrsqrt.f32 %v181_v60  ;;  %vm187_vm6 = vcmp.eq.f32.partialorder %v181_v60, inf  ;;  %v190_v15 = vand.u32 2147483648, %v181_v60  ;;  %vm189_vm7 = vcmp.eq.f32.partialorder %v181_v60, 0.0 }
 0x100   :  { %303 = vrsqrt.f32 %v183_v61  ;;  %vm201_vm8 = vcmp.eq.f32.partialorder %v183_v61, inf  ;;  %v204_v22 = vand.u32 2147483648, %v183_v61  ;;  %vm203_vm9 = vcmp.eq.f32.partialorder %v183_v61, 0.0 }
 0x101   :  { %305 = vrcp.f32 %v166_v62 }
 0x102   :  { %307 = vrcp.f32 %v168_v63 }
 0x103   :  { %309 = vrcp.f32 %v165_v0 }
 0x104   :  { %311 = vrcp.f32 %v167_v1 }
 0x107   :  { %v298_v2 = vpop.eup %297 }
 0x108   :  { %v193_v3 = vmul.f32 %v298_v2, %v182_v57  ;;  %v300_v4 = vpop.eup %299 }
 0x109   :  { %v207_v7 = vmul.f32 %v300_v4, %v184_v58  ;;  %v302_v8 = vpop.eup %301 }
 0x10a   :  { %v195_v6 = vsel %vm194_vm2, %v182_v57, %v193_v3  ;;  %v186_v12 = vmul.f32 %v302_v8, %v181_v60  ;;  %v304_v13 = vpop.eup %303 }
 0x10b   :  { %v198_v9 = vsel %vm196_vm3, %v197_v5, %v195_v6  ;;  %v209_v11 = vsel %vm208_vm4, %v184_v58, %v207_v7  ;;  %v306_v16 = vpop.eup %305  ;;  %v200_v18 = vmul.f32 %v304_v13, %v183_v61 }
 0x10c   :  { %313 = vrcp.f32 %v198_v9  ;;  %v212_v14 = vsel %vm210_vm5, %v211_v10, %v209_v11  ;;  %v188_v17 = vsel %vm187_vm6, %v181_v60, %v186_v12  ;;  %v308_v23 = vpop.eup %307  ;;  %v172_v27 = vmul.f32 %v306_v16, %v150_v54 }
 0x10d   :  { %315 = vrcp.f32 %v212_v14  ;;  %v191_v19 = vsel %vm189_vm7, %v190_v15, %v188_v17  ;;  %v202_v26 = vsel %vm201_vm8, %v183_v61, %v200_v18  ;;  %v310_v29 = vpop.eup %309  ;;  %v176_v30 = vmul.f32 %v308_v23, %v164_v55 }
 0x10e   :  { %317 = vrcp.f32 %v191_v19  ;;  %v205_v28 = vsel %vm203_vm9, %v204_v22, %v202_v26  ;;  %v312_v31 = vpop.eup %311  ;;  %v178_v32 = vmul.f32 %v172_v27, %v387_v20  ;;  %v170_v33 = vmul.f32 %v310_v29, %v143_v56 }
 0x10f   :  { %319 = vrcp.f32 %v205_v28  ;;  %v180_v36 = vmul.f32 %v176_v30, %v389_v21  ;;  %v174_v37 = vmul.f32 %v312_v31, %v157_v59 }
 0x110   :  { %v177_v40 = vmul.f32 %v170_v33, %v391_v24 }
 0x111   :  { %v179_v42 = vmul.f32 %v174_v37, %v393_v25 }
 0x116   :  { %v314_v34 = vpop.eup %313 }
 0x117   :  { %v216_v35 = vmul.f32 %v314_v34, %v178_v32  ;;  %v316_v38 = vpop.eup %315 }
 0x118   :  { %v220_v39 = vmul.f32 %v316_v38, %v180_v36  ;;  %v318_v41 = vpop.eup %317 }
 0x119   :  { %222 = vst.msk [vmem:[%s430_s3 + $0x8] sm:$0xff] %vm136_vm1, %v216_v35  ;;  %v214_v20 = vmul.f32 %v318_v41, %v177_v40  ;;  %v320_v21 = vpop.eup %319 }
 0x11a   :  { %224 = vst.msk [vmem:[%s430_s3 + $0x18] sm:$0xff] %vm136_vm1, %v220_v39  ;;  %v218_v43 = vmul.f32 %v320_v21, %v179_v42 }
 0x11b   :  { %221 = vst.msk [vmem:[%s430_s3] sm:$0xff] %vm136_vm1, %v214_v20 }
 0x11c   :  { %223 = vst.msk [vmem:[%s430_s3 + $0x10] sm:$0xff] %vm136_vm1, %v218_v43 }

// kernel: _lambda_.8
= control target key start
LH: loop header
LB: loop body
LE: loop exit
PB: predicated region body
PF: predicated region fallthrough
CT: control target
= control target key end

     0   :  { %vm601_vm0 = vcmask 523264   ;;  %v2561_v0 = vmov 0.0   ;;  %v2562_v2 = vmov 1966171168   ;;  %v4728_v4 = vlaneseq  ;;  %s4725_s1 = inlined_call_operand.vmem [shape: f32[8,2,64], index: 1, kind: input, shape index: {}]   ;;  %s4726_s0 = inlined_call_operand.vmem [shape: f32[8,64,64], index: 0, kind: input, shape index: {}]   ;;  %s4727_s2 = inlined_call_operand.vmem [shape: f32[2,64], index: 2, kind: output, shape index: {}]  }
   0x1   :  { %v602_v1 = vsel %vm601_vm0, 1.0, %v2561_v0  ;;  %v30_v3 = vunpack.c.l.s4 %v2562_v2  ;;  %v2070_v8 = vld.sshfl [vmem:[%s4725_s1] sm:$0x11 pattern:$0x75316420]  ;;  %v12_v17 = vld [vmem:[%s4726_s0 + $0x8] sm:$0xff] }
   0x2   :  { %603 = vadd.xlane.f32.xlu0 %v602_v1  ;;  %v2580_v6 = vshrl.u32 %v4728_v4, 7  ;;  %v2080_v9 = vld.sshfl [vmem:[%s4725_s1 + $0x2] sm:$0x11 pattern:$0x75316420]  ;;  %v28_v18 = vcombine.high %v2070_v8, %v2070_v8  ;;  %v2072_v19 = vld [vmem:[%s4726_s0 + $0x48] sm:$0xff] }
   0x3   :  { %v31_v5 = vunpack.c.0.s8 %v30_v3  ;;  %v2090_v13 = vld.sshfl [vmem:[%s4725_s1 + $0x4] sm:$0x11 pattern:$0x75316420]  ;;  %v88_v20 = vcombine.high %v2080_v9, %v2080_v9  ;;  %v2082_v28 = vld [vmem:[%s4726_s0 + $0x88] sm:$0xff]  ;;  %v13_v1 = vld [vmem:[%s4726_s0 + $0x10] sm:$0xff] }
   0x4   :  { %4752 = vst [vmem:[#allocation2_spill] sm:$0xff] %v2580_v6  ;;  %v2593_v11 = vsub.s32 0, %v2580_v6  ;;  %v2100_v21 = vld.sshfl [vmem:[%s4725_s1 + $0x6] sm:$0x11 pattern:$0x75316420]  ;;  %v164_v31 = vcombine.high %v2090_v13, %v2090_v13 }
   0x5   :  { %v2583_v7 = vsub.s32 %v31_v5, %v2580_v6  ;;  %v11_v26 = vld [vmem:[%s4726_s0] sm:$0xff]  ;;  %v2110_v32 = vld.sshfl [vmem:[%s4725_s1 + $0x8] sm:$0x11 pattern:$0x75316420]  ;;  %v240_v43 = vcombine.high %v2100_v21, %v2100_v21  ;;  %v2073_v2 = vld [vmem:[%s4726_s0 + $0x50] sm:$0xff] }
   0x6   :  { %v2071_v27 = vld [vmem:[%s4726_s0 + $0x40] sm:$0xff]  ;;  %v2648_v40 = vld [vmem:[%s4726_s0 + $0xc8] sm:$0xff]  ;;  %v316_v50 = vcombine.high %v2110_v32, %v2110_v32 }
   0x7   :  { %v35_v10 = vrot.slane %v2070_v8, %v2583_v7  ;;  %v95_v12 = vrot.slane %v2080_v9, %v2583_v7  ;;  %v171_v16 = vrot.slane %v2090_v13, %v2583_v7  ;;  %v247_v25 = vrot.slane %v2100_v21, %v2583_v7  ;;  %v2081_v39 = vld [vmem:[%s4726_s0 + $0x80] sm:$0xff]  ;;  %v2120_v45 = vld.sshfl [vmem:[%s4725_s1 + $0xa] sm:$0x11 pattern:$0x75316420] }
   0x8   :  { %v42_v29 = vrot.slane %v28_v18, %v2583_v7  ;;  %v102_v30 = vrot.slane %v88_v20, %v2583_v7  ;;  %v323_v38 = vrot.slane %v2110_v32, %v2583_v7  ;;  %v178_v44 = vrot.slane %v164_v31, %v2583_v7  ;;  %v2669_v52 = vld.sshfl [vmem:[%s4725_s1 + $0xc] sm:$0x11 pattern:$0x75316420]  ;;  %v2091_v53 = vld [vmem:[%s4726_s0 + $0xc0] sm:$0xff] }
   0x9   :  { %v2600_v14 = vrot.slane %v35_v10, %v2593_v11  ;;  %v2603_v15 = vrot.slane %v95_v12, %v2593_v11  ;;  %v2618_v24 = vrot.slane %v171_v16, %v2593_v11  ;;  %v2639_v37 = vrot.slane %v247_v25, %v2593_v11  ;;  %v2677_v54 = vld [vmem:[%s4726_s0 + $0x108] sm:$0xff]  ;;  %v2111_v32 = vld [vmem:[%s4726_s0 + $0x140] sm:$0xff] }
   0xa   :  { %v2651_v41 = vrot.slane %v42_v29, %v2593_v11  ;;  %v2654_v42 = vrot.slane %v102_v30, %v2593_v11  ;;  %v2664_v51 = vrot.slane %v323_v38, %v2593_v11  ;;  %v399_v55 = vrot.slane %v2120_v45, %v2583_v7  ;;  %v2140_v8 = vld.sshfl [vmem:[%s4725_s1 + $0xe] sm:$0x11 pattern:$0x75316420]  ;;  %v2083_v30 = vld [vmem:[%s4726_s0 + $0x90] sm:$0xff] }
   0xb   :  { %v54_v22 = vmul.f32 %v2600_v14, %v12_v17  ;;  %v114_v23 = vmul.f32 %v2072_v19, %v2603_v15  ;;  %v53_v33 = vmul.f32 %v2600_v14, %v11_v26  ;;  %v113_v34 = vmul.f32 %v2071_v27, %v2603_v15  ;;  %v2714_v20 = vld [vmem:[%s4726_s0 + $0x148] sm:$0xff] }
   0xc   :  { %v190_v36 = vmul.f32 %v2082_v28, %v2618_v24  ;;  %v189_v47 = vmul.f32 %v2081_v39, %v2618_v24  ;;  %v266_v49 = vmul.f32 %v2648_v40, %v2639_v37  ;;  %v475_v56 = vrot.slane %v2669_v52, %v2583_v7  ;;  %v2733_v31 = vld [vmem:[%s4726_s0 + $0x188] sm:$0xff] }
   0xd   :  { %v130_v35 = vadd.f32 %v114_v23, %v54_v22  ;;  %v129_v46 = vadd.f32 %v113_v34, %v53_v33  ;;  %v61_v57 = vmul.f32 %v2651_v41, %v11_v26  ;;  %v121_v58 = vmul.f32 %v2071_v27, %v2654_v42 }
   0xe   :  { %v2685_v59 = vrot.slane %v178_v44, %v2593_v11  ;;  %v254_v60 = vrot.slane %v240_v43, %v2583_v7  ;;  %v392_v61 = vcombine.high %v2120_v45, %v2120_v45  ;;  %v468_v62 = vcombine.high %v2669_v52, %v2669_v52 }
   0xf   :  { %v206_v48 = vadd.f32 %v190_v36, %v130_v35  ;;  %v205_v63 = vadd.f32 %v189_v47, %v129_v46  ;;  %v265_v0 = vmul.f32 %v2091_v53, %v2639_v37  ;;  %v342_v5 = vmul.f32 %v2677_v54, %v2664_v51 }
  0x10   :  { %v62_v9 = vmul.f32 %v2651_v41, %v12_v17  ;;  %v122_v10 = vmul.f32 %v2072_v19, %v2654_v42  ;;  %v2705_v12 = vrot.slane %v399_v55, %v2593_v11  ;;  %v2708_v13 = vrot.slane %v475_v56, %v2593_v11  ;;  %v2101_v17 = vld [vmem:[%s4726_s0 + $0x100] sm:$0xff]  ;;  %v2093_v56 = vld [vmem:[%s4726_s0 + $0xd0] sm:$0xff] }
  0x11   :  { %v282_v3 = vadd.f32 %v266_v49, %v206_v48  ;;  %v137_v16 = vadd.f32 %v121_v58, %v61_v57  ;;  %v330_v18 = vrot.slane %v316_v50, %v2583_v7  ;;  %v197_v19 = vmul.f32 %v2081_v39, %v2685_v59  ;;  %v2074_v49 = vld [vmem:[%s4726_s0 + $0x58] sm:$0xff]  ;;  %v2121_v57 = vld [vmem:[%s4726_s0 + $0x180] sm:$0xff] }
  0x12   :  { %v2721_v21 = vrot.slane %v254_v60, %v2593_v11  ;;  %v55_v22 = vmul.f32 %v2600_v14, %v13_v1  ;;  %v115_v23 = vmul.f32 %v2073_v2, %v2603_v15  ;;  %v544_v25 = vcombine.high %v2140_v8, %v2140_v8 }
  0x13   :  { %v551_v26 = vrot.slane %v2140_v8, %v2583_v7  ;;  %v281_v27 = vadd.f32 %v265_v0, %v205_v63  ;;  %v406_v29 = vrot.slane %v392_v61, %v2583_v7  ;;  %v138_v33 = vadd.f32 %v122_v10, %v62_v9 }
  0x14   :  { %v198_v34 = vmul.f32 %v2082_v28, %v2685_v59  ;;  %v63_v35 = vmul.f32 %v2651_v41, %v13_v1  ;;  %v123_v36 = vmul.f32 %v2073_v2, %v2654_v42  ;;  %v358_v38 = vadd.f32 %v342_v5, %v282_v3  ;;  %v14_v28 = vld [vmem:[%s4726_s0 + $0x18] sm:$0xff] }
  0x15   :  { %v418_v39 = vmul.f32 %v2714_v20, %v2705_v12  ;;  %v341_v43 = vmul.f32 %v2101_v17, %v2664_v51  ;;  %v2745_v44 = vrot.slane %v330_v18, %v2593_v11  ;;  %v213_v45 = vadd.f32 %v197_v19, %v137_v16 }
  0x16   :  { %v273_v46 = vmul.f32 %v2091_v53, %v2721_v21  ;;  %v131_v47 = vadd.f32 %v115_v23, %v55_v22  ;;  %v191_v48 = vmul.f32 %v2083_v30, %v2618_v24  ;;  %v494_v50 = vmul.f32 %v2733_v31, %v2708_v13  ;;  %v2103_v22 = vld [vmem:[%s4726_s0 + $0x110] sm:$0xff] }
  0x17   :  { %v2758_v52 = vrot.slane %v551_v26, %v2593_v11  ;;  %v417_v55 = vmul.f32 %v2111_v32, %v2705_v12  ;;  %v2762_v53 = vrot.slane %v406_v29, %v2593_v11  ;;  %v214_v58 = vadd.f32 %v198_v34, %v138_v33 }
  0x18   :  { %v274_v60 = vmul.f32 %v2648_v40, %v2721_v21  ;;  %v139_v61 = vadd.f32 %v123_v36, %v63_v35  ;;  %v199_v63 = vmul.f32 %v2083_v30, %v2685_v59  ;;  %v434_v0 = vadd.f32 %v418_v39, %v358_v38  ;;  %v2084_v40 = vld [vmem:[%s4726_s0 + $0x98] sm:$0xff] }
  0x19   :  { %v482_v1 = vrot.slane %v468_v62, %v2583_v7  ;;  %v56_v2 = vmul.f32 %v2600_v14, %v14_v28  ;;  %v116_v3 = vmul.f32 %v2074_v49, %v2603_v15  ;;  %v289_v5 = vadd.f32 %v273_v46, %v213_v45  ;;  %v2113_v46 = vld [vmem:[%s4726_s0 + $0x150] sm:$0xff] }
  0x1a   :  { %v349_v8 = vmul.f32 %v2101_v17, %v2745_v44  ;;  %v207_v9 = vadd.f32 %v191_v48, %v131_v47  ;;  %v267_v10 = vmul.f32 %v2093_v56, %v2639_v37  ;;  %v357_v16 = vadd.f32 %v341_v43, %v281_v27  ;;  %v2132_v17 = vld [vmem:[%s4726_s0 + $0x1c8] sm:$0xff]  ;;  %v2131_v47 = vld [vmem:[%s4726_s0 + $0x1c0] sm:$0xff] }
  0x1b   :  { %v493_v18 = vmul.f32 %v2121_v57, %v2708_v13  ;;  %v425_v19 = vmul.f32 %v2111_v32, %v2762_v53  ;;  %v558_v62 = vrot.slane %v544_v25, %v2583_v7  ;;  %v290_v23 = vadd.f32 %v274_v60, %v214_v58  ;;  %v2094_v7 = vld [vmem:[%s4726_s0 + $0xd8] sm:$0xff] }
  0x1c   :  { %v350_v26 = vmul.f32 %v2677_v54, %v2745_v44  ;;  %v215_v29 = vadd.f32 %v199_v63, %v139_v61  ;;  %v275_v27 = vmul.f32 %v2093_v56, %v2721_v21  ;;  %v132_v30 = vadd.f32 %v116_v3, %v56_v2  ;;  %v2104_v60 = vld [vmem:[%s4726_s0 + $0x118] sm:$0xff] }
  0x1d   :  { %v192_v32 = vmul.f32 %v2084_v40, %v2618_v24  ;;  %v64_v25 = vmul.f32 %v2651_v41, %v14_v28  ;;  %v124_v33 = vmul.f32 %v2074_v49, %v2654_v42  ;;  %v365_v34 = vadd.f32 %v349_v8, %v289_v5  ;;  %v2123_v8 = vld [vmem:[%s4726_s0 + $0x190] sm:$0xff] }
  0x1e   :  { %v2800_v35 = vrot.slane %v482_v1, %v2593_v11  ;;  %v283_v36 = vadd.f32 %v267_v10, %v207_v9  ;;  %v343_v54 = vmul.f32 %v2103_v22, %v2664_v51  ;;  %v510_v38 = vadd.f32 %v494_v50, %v434_v0 }
  0x1f   :  { %v570_v39 = vmul.f32 %v2132_v17, %v2758_v52  ;;  %v433_v43 = vadd.f32 %v417_v55, %v357_v16  ;;  %v2805_v45 = vrot.slane %v558_v62, %v2593_v11  ;;  %v366_v48 = vadd.f32 %v350_v26, %v290_v23  ;;  %v15_v11 = vld [vmem:[%s4726_s0 + $0x20] sm:$0xff]  ;;  %v2114_v23 = vld [vmem:[%s4726_s0 + $0x158] sm:$0xff] }
  0x20   :  { %v426_v28 = vmul.f32 %v2714_v20, %v2762_v53  ;;  %v351_v49 = vmul.f32 %v2103_v22, %v2745_v44  ;;  %v268_v50 = vmul.f32 %v2094_v7, %v2639_v37  ;;  %v2075_v55 = vld [vmem:[%s4726_s0 + $0x60] sm:$0xff]  ;;  %v291_v56 = vadd.f32 %v275_v27, %v215_v29 }
  0x21   :  { %v208_v58 = vadd.f32 %v192_v32, %v132_v30  ;;  %v140_v61 = vadd.f32 %v124_v33, %v64_v25  ;;  %v200_v20 = vmul.f32 %v2084_v40, %v2685_v59  ;;  %v441_v63 = vadd.f32 %v425_v19, %v365_v34  ;;  %v2133_v33 = vld [vmem:[%s4726_s0 + $0x1d0] sm:$0xff] }
  0x22   :  { %v501_v0 = vmul.f32 %v2121_v57, %v2800_v35  ;;  %v359_v1 = vadd.f32 %v343_v54, %v283_v36  ;;  %v419_v2 = vmul.f32 %v2113_v46, %v2705_v12  ;;  %v509_v3 = vadd.f32 %v493_v18, %v433_v43  ;;  %v2085_v18 = vld [vmem:[%s4726_s0 + $0xa0] sm:$0xff] }
  0x23   :  { %v569_v5 = vmul.f32 %v2131_v47, %v2758_v52  ;;  %v57_v9 = vmul.f32 %v2600_v14, %v15_v11  ;;  %v117_v10 = vmul.f32 %v2075_v55, %v2603_v15  ;;  %v442_v16 = vadd.f32 %v426_v28, %v366_v48  ;;  %v2124_v48 = vld [vmem:[%s4726_s0 + $0x198] sm:$0xff] }
  0x24   :  { %v502_v40 = vmul.f32 %v2733_v31, %v2800_v35  ;;  %v427_v57 = vmul.f32 %v2113_v46, %v2762_v53  ;;  %v344_v19 = vmul.f32 %v2104_v60, %v2664_v51  ;;  %v367_v62 = vadd.f32 %v351_v49, %v291_v56  ;;  %v2134_v28 = vld [vmem:[%s4726_s0 + $0x1d8] sm:$0xff] }
  0x25   :  { %v284_v22 = vadd.f32 %v268_v50, %v208_v58  ;;  %v216_v26 = vadd.f32 %v200_v20, %v140_v61  ;;  %v276_v29 = vmul.f32 %v2094_v7, %v2721_v21  ;;  %v517_v27 = vadd.f32 %v501_v0, %v441_v63  ;;  %v2105_v0 = vld [vmem:[%s4726_s0 + $0x120] sm:$0xff] }
  0x26   :  { %v577_v31 = vmul.f32 %v2131_v47, %v2805_v45  ;;  %v435_v30 = vadd.f32 %v419_v2, %v359_v1  ;;  %v495_v32 = vmul.f32 %v2123_v8, %v2708_v13  ;;  %v2848_v25 = vadd.f32 %v570_v39, %v510_v38  ;;  %v2095_v47 = vld [vmem:[%s4726_s0 + $0xe0] sm:$0xff] }
  0x27   :  { %v133_v34 = vadd.f32 %v117_v10, %v57_v9  ;;  %v193_v36 = vmul.f32 %v2085_v18, %v2618_v24  ;;  %v518_v54 = vadd.f32 %v502_v40, %v442_v16  ;;  %v578_v43 = vmul.f32 %v2132_v17, %v2805_v45  ;;  %v16_v9 = vld [vmem:[%s4726_s0 + $0x28] sm:$0xff] }
  0x28   :  { %v503_v7 = vmul.f32 %v2123_v8, %v2800_v35  ;;  %v420_v46 = vmul.f32 %v2114_v23, %v2705_v12  ;;  %v443_v38 = vadd.f32 %v427_v57, %v367_v62  ;;  %v360_v39 = vadd.f32 %v344_v19, %v284_v22  ;;  %v2076_v10 = vld [vmem:[%s4726_s0 + $0x68] sm:$0xff]  ;;  %v2115_v57 = vld [vmem:[%s4726_s0 + $0x160] sm:$0xff] }
  0x29   :  { %v292_v49 = vadd.f32 %v276_v29, %v216_v26  ;;  %v352_v17 = vmul.f32 %v2104_v60, %v2745_v44  ;;  %v2867_v50 = vadd.f32 %v569_v5, %v509_v3  ;;  %v2869_v56 = vadd.f32 %v577_v31, %v517_v27  ;;  %v2125_v26 = vld [vmem:[%s4726_s0 + $0x1a0] sm:$0xff] }
  0x2a   :  { %v511_v58 = vadd.f32 %v495_v32, %v435_v30  ;;  %v571_v61 = vmul.f32 %v2133_v33, %v2758_v52  ;;  %v209_v20 = vadd.f32 %v193_v36, %v133_v34  ;;  %v269_v63 = vmul.f32 %v2095_v47, %v2639_v37  ;;  %v2086_v36 = vld [vmem:[%s4726_s0 + $0xa8] sm:$0xff] }
  0x2b   :  { %v65_v1 = vmul.f32 %v2651_v41, %v15_v11  ;;  %v125_v2 = vmul.f32 %v2075_v55, %v2654_v42  ;;  %v2878_v8 = vadd.f32 %v578_v43, %v518_v54  ;;  %v579_v60 = vmul.f32 %v2133_v33, %v2805_v45 }
  0x2c   :  { %v496_v3 = vmul.f32 %v2124_v48, %v2708_v13  ;;  %v572_v5 = vmul.f32 %v2134_v28, %v2758_v52  ;;  %v519_v16 = vadd.f32 %v503_v7, %v443_v38  ;;  %v436_v11 = vadd.f32 %v420_v46, %v360_v39  ;;  %v17_v39 = vld [vmem:[%s4726_s0 + $0x30] sm:$0xff] }
  0x2d   :  { %v368_v40 = vadd.f32 %v352_v17, %v292_v49  ;;  %v428_v55 = vmul.f32 %v2114_v23, %v2762_v53  ;;  %v2893_v19 = vadd.f32 %v571_v61, %v511_v58  ;;  %v504_v62 = vmul.f32 %v2124_v48, %v2800_v35  ;;  %v2135_v23 = vld [vmem:[%s4726_s0 + $0x1e0] sm:$0xff]  ;;  %v2077_v48 = vld [vmem:[%s4726_s0 + $0x70] sm:$0xff] }
  0x2e   :  { %v345_v22 = vmul.f32 %v2105_v0, %v2664_v51  ;;  %v201_v29 = vmul.f32 %v2085_v18, %v2685_v59  ;;  %v285_v27 = vadd.f32 %v269_v63, %v209_v20  ;;  %v141_v31 = vadd.f32 %v125_v2, %v65_v1  ;;  %v2096_v2 = vld [vmem:[%s4726_s0 + $0xe8] sm:$0xff] }
  0x2f   :  { %v58_v30 = vmul.f32 %v2600_v14, %v16_v9  ;;  %v118_v32 = vmul.f32 %v2076_v10, %v2603_v15  ;;  %v580_v33 = vmul.f32 %v2134_v28, %v2805_v45  ;;  %v421_v34 = vmul.f32 %v2115_v57, %v2705_v12 }
  0x30   :  { %v66_v18 = vmul.f32 %v2651_v41, %v16_v9  ;;  %v126_v54 = vmul.f32 %v2076_v10, %v2654_v42  ;;  %v2913_v43 = vadd.f32 %v579_v60, %v519_v16  ;;  %v512_v7 = vadd.f32 %v496_v3, %v436_v11  ;;  %v2106_v60 = vld [vmem:[%s4726_s0 + $0x128] sm:$0xff] }
  0x31   :  { %v444_v46 = vadd.f32 %v428_v55, %v368_v40  ;;  %v497_v38 = vmul.f32 %v2125_v26, %v2708_v13  ;;  %v2923_v28 = vmul.f32 %v2135_v23, %v2758_v52  ;;  %v277_v49 = vmul.f32 %v2095_v47, %v2721_v21  ;;  %v2087_v40 = vld [vmem:[%s4726_s0 + $0xb0] sm:$0xff] }
  0x32   :  { %v353_v17 = vmul.f32 %v2105_v0, %v2745_v44  ;;  %v2928_v58 = vmul.f32 %v2115_v57, %v2762_v53  ;;  %v361_v61 = vadd.f32 %v345_v22, %v285_v27  ;;  %v217_v20 = vadd.f32 %v201_v29, %v141_v31 }
  0x33   :  { %v134_v63 = vadd.f32 %v118_v32, %v58_v30  ;;  %v194_v1 = vmul.f32 %v2086_v36, %v2618_v24  ;;  %v142_v3 = vadd.f32 %v126_v54, %v66_v18  ;;  %v202_v47 = vmul.f32 %v2086_v36, %v2685_v59  ;;  %v18_v36 = vld [vmem:[%s4726_s0 + $0x38] sm:$0xff] }
  0x34   :  { %v59_v0 = vmul.f32 %v2600_v14, %v17_v39  ;;  %v119_v9 = vmul.f32 %v2077_v48, %v2603_v15  ;;  %v2940_v16 = vadd.f32 %v572_v5, %v512_v7  ;;  %v520_v11 = vadd.f32 %v504_v62, %v444_v46  ;;  %v2116_v5 = vld [vmem:[%s4726_s0 + $0x168] sm:$0xff] }
  0x35   :  { %v67_v55 = vmul.f32 %v2651_v41, %v17_v39  ;;  %v127_v57 = vmul.f32 %v2077_v48, %v2654_v42  ;;  %v2948_v22 = vmul.f32 %v2125_v26, %v2800_v35  ;;  %v2951_v29 = vmul.f32 %v2135_v23, %v2805_v45  ;;  %v2078_v26 = vld [vmem:[%s4726_s0 + $0x78] sm:$0xff]  ;;  %v2126_v23 = vld [vmem:[%s4726_s0 + $0x1a8] sm:$0xff]  ;;  %v2097_v48 = vld [vmem:[%s4726_s0 + $0xf0] sm:$0xff] }
  0x36   :  { %v270_v27 = vmul.f32 %v2096_v2, %v2639_v37  ;;  %v437_v62 = vadd.f32 %v421_v34, %v361_v61  ;;  %v293_v31 = vadd.f32 %v277_v49, %v217_v20  ;;  %v210_v30 = vadd.f32 %v194_v1, %v134_v63  ;;  %v2136_v20 = vld [vmem:[%s4726_s0 + $0x1e8] sm:$0xff] }
  0x37   :  { %v346_v32 = vmul.f32 %v2106_v60, %v2664_v51  ;;  %v218_v18 = vadd.f32 %v202_v47, %v142_v3  ;;  %v278_v54 = vmul.f32 %v2096_v2, %v2721_v21  ;;  %v135_v34 = vadd.f32 %v119_v9, %v59_v0 }
  0x38   :  { %v195_v7 = vmul.f32 %v2087_v40, %v2618_v24  ;;  %v2969_v46 = vadd.f32 %v580_v33, %v520_v11  ;;  %v422_v39 = vmul.f32 %v2116_v5, %v2705_v12  ;;  %v143_v49 = vadd.f32 %v127_v57, %v67_v55 }
  0x39   :  { %v203_v61 = vmul.f32 %v2087_v40, %v2685_v59  ;;  %v60_v63 = vmul.f32 %v2600_v14, %v18_v36  ;;  %v120_v1 = vmul.f32 %v2078_v26, %v2603_v15  ;;  %v68_v33 = vmul.f32 %v2651_v41, %v18_v36 }
  0x3a   :  { %v128_v2 = vmul.f32 %v2078_v26, %v2654_v42  ;;  %v513_v3 = vadd.f32 %v497_v38, %v437_v62  ;;  %v369_v47 = vadd.f32 %v353_v17, %v293_v31  ;;  %v498_v0 = vmul.f32 %v2126_v23, %v2708_v13  ;;  %v2107_v42 = vld [vmem:[%s4726_s0 + $0x130] sm:$0xff] }
  0x3b   :  { %v354_v9 = vmul.f32 %v2106_v60, %v2745_v44  ;;  %v286_v11 = vadd.f32 %v270_v27, %v210_v30  ;;  %v294_v40 = vadd.f32 %v278_v54, %v218_v18  ;;  %v211_v55 = vadd.f32 %v195_v7, %v135_v34  ;;  %v2098_v27 = vld [vmem:[%s4726_s0 + $0xf8] sm:$0xff] }
  0x3c   :  { %v271_v14 = vmul.f32 %v2097_v48, %v2639_v37  ;;  %v2990_v15 = vmul.f32 %v2136_v20, %v2758_v52  ;;  %v430_v41 = vmul.f32 %v2116_v5, %v2762_v53  ;;  %v219_v38 = vadd.f32 %v203_v61, %v143_v49  ;;  %v2108_v61 = vld [vmem:[%s4726_s0 + $0x138] sm:$0xff] }
  0x3d   :  { %v279_v17 = vmul.f32 %v2097_v48, %v2721_v21  ;;  %v136_v60 = vadd.f32 %v120_v1, %v60_v63  ;;  %v144_v62 = vadd.f32 %v128_v2, %v68_v33  ;;  %v3003_v30 = vadd.f32 %v2923_v28, %v513_v3  ;;  %v2117_v28 = vld [vmem:[%s4726_s0 + $0x170] sm:$0xff] }
  0x3e   :  { %v445_v5 = vadd.f32 %v2928_v58, %v369_v47  ;;  %v506_v36 = vmul.f32 %v2126_v23, %v2800_v35  ;;  %v582_v26 = vmul.f32 %v2136_v20, %v2805_v45  ;;  %v362_v54 = vadd.f32 %v346_v32, %v286_v11 }
  0x3f   :  { %v287_v34 = vadd.f32 %v271_v14, %v211_v55  ;;  %v347_v7 = vmul.f32 %v2107_v42, %v2664_v51  ;;  %v355_v58 = vmul.f32 %v2107_v42, %v2745_v44  ;;  %v272_v23 = vmul.f32 %v2098_v27, %v2639_v37 }
  0x40   :  { %v295_v49 = vadd.f32 %v279_v17, %v219_v38  ;;  %v280_v63 = vmul.f32 %v2098_v27, %v2721_v21  ;;  %v521_v37 = vadd.f32 %v2948_v22, %v445_v5  ;;  %v438_v47 = vadd.f32 %v422_v39, %v362_v54  ;;  %v2127_v21 = vld [vmem:[%s4726_s0 + $0x1b0] sm:$0xff]  ;;  %v2118_v38 = vld [vmem:[%s4726_s0 + $0x178] sm:$0xff] }
  0x41   :  { %v363_v11 = vadd.f32 %v347_v7, %v287_v34  ;;  %v348_v55 = vmul.f32 %v2108_v61, %v2664_v51  ;;  %v356_v39 = vmul.f32 %v2108_v61, %v2745_v44  ;;  %v2137_v5 = vld [vmem:[%s4726_s0 + $0x1f0] sm:$0xff]  ;;  %v507_v54 = vmul.f32 %v2127_v21, %v2800_v35 }
  0x42   :  { %v371_v14 = vadd.f32 %v355_v58, %v295_v49  ;;  %v3048_v51 = vadd.f32 %v2951_v29, %v521_v37  ;;  %v514_v27 = vadd.f32 %v498_v0, %v438_v47  ;;  %v2128_v29 = vld [vmem:[%s4726_s0 + $0x1b8] sm:$0xff]  ;;  %v432_v0 = vmul.f32 %v2118_v38, %v2762_v53 }
  0x43   :  { %v500_v61 = vmul.f32 %v2128_v29, %v2708_v13 }
  0x8f   :  { %v604_v10 = vpop.xlane.xlu0 %603 }
  0x90   :  { %2143 = vrcp.f32 %v604_v10  ;;  %v2088_v10 = vld [vmem:[%s4726_s0 + $0xb8] sm:$0xff] }
  0x91   :  { %v196_v57 = vmul.f32 %v2088_v10, %v2618_v24  ;;  %v204_v31 = vmul.f32 %v2088_v10, %v2685_v59  ;;  %v370_v24 = vadd.f32 %v354_v9, %v294_v40  ;;  %v423_v9 = vmul.f32 %v2117_v28, %v2705_v12 }
  0x92   :  { %v431_v40 = vmul.f32 %v2117_v28, %v2762_v53 }
  0x93   :  { %v212_v32 = vadd.f32 %v196_v57, %v136_v60  ;;  %v220_v20 = vadd.f32 %v204_v31, %v144_v62  ;;  %v446_v10 = vadd.f32 %v430_v41, %v370_v24  ;;  %v499_v62 = vmul.f32 %v2127_v21, %v2708_v13 }
  0x94   :  { %v439_v44 = vadd.f32 %v423_v9, %v363_v11  ;;  %v424_v24 = vmul.f32 %v2118_v38, %v2705_v12  ;;  %v447_v34 = vadd.f32 %v431_v40, %v371_v14  ;;  %v3067_v12 = vadd.f32 %v2990_v15, %v514_v27 }
  0x95   :  { %v288_v42 = vadd.f32 %v272_v23, %v212_v32  ;;  %v296_v22 = vadd.f32 %v280_v63, %v220_v20  ;;  %v522_v31 = vadd.f32 %v506_v36, %v446_v10  ;;  %v575_v23 = vmul.f32 %v2137_v5, %v2758_v52 }
  0x96   :  { %v515_v53 = vadd.f32 %v499_v62, %v439_v44  ;;  %v583_v32 = vmul.f32 %v2137_v5, %v2805_v45  ;;  %v523_v20 = vadd.f32 %v507_v54, %v447_v34 }
  0x97   :  { %v364_v7 = vadd.f32 %v348_v55, %v288_v42  ;;  %v3070_v49 = vadd.f32 %v582_v26, %v522_v31 }
  0x98   :  { %v3084_v13 = vadd.f32 %v575_v23, %v515_v53  ;;  %v3087_v9 = vadd.f32 %v583_v32, %v523_v20 }
  0x99   :  { %4753 = vst [vmem:[#allocation3_spill] sm:$0xff] %v3070_v49  ;;  %v440_v63 = vadd.f32 %v424_v24, %v364_v7 }
  0x9a   :  { %v3008_v18 = vpop.eup %2143  ;;  %4754 = vst [vmem:[#allocation4_spill] sm:$0xff] %v3084_v13  ;;  %4755 = vst [vmem:[#allocation5_spill] sm:$0xff] %v3087_v9 }
  0x9b   :  { %v608_v48 = vmul.f32 %v3008_v18, %v2848_v25  ;;  %v607_v59 = vmul.f32 %v3008_v18, %v2867_v50  ;;  %v615_v2 = vmul.f32 %v3008_v18, %v2869_v56  ;;  %v616_v3 = vmul.f32 %v3008_v18, %v2878_v8 }
  0x9c   :  { %v609_v60 = vmul.f32 %v3008_v18, %v2893_v19  ;;  %v617_v57 = vmul.f32 %v3008_v18, %v2913_v43  ;;  %v610_v28 = vmul.f32 %v3008_v18, %v2940_v16  ;;  %v618_v58 = vmul.f32 %v3008_v18, %v2969_v46 }
  0x9d   :  { %v626_v1 = vsel %vm601_vm0, %v608_v48, 0.0  ;;  %v623_v33 = vsel %vm601_vm0, %v607_v59, 0.0  ;;  %v647_v41 = vsel %vm601_vm0, %v615_v2, 0.0  ;;  %v650_v17 = vsel %vm601_vm0, %v616_v3, 0.0 }
  0x9e   :  { %627 = vadd.xlane.f32.xlu1 %v626_v1  ;;  %624 = vadd.xlane.f32.xlu0 %v623_v33  ;;  %v372_v48 = vadd.f32 %v356_v39, %v296_v22  ;;  %v629_v36 = vsel %vm601_vm0, %v609_v60, 0.0  ;;  %v653_v59 = vsel %vm601_vm0, %v617_v57, 0.0  ;;  %v2138_v1 = vld [vmem:[%s4726_s0 + $0x1f8] sm:$0xff]  ;;  %v508_v2 = vmul.f32 %v2128_v29, %v2800_v35 }
  0x9f   :  { %v632_v15 = vsel %vm601_vm0, %v610_v28, 0.0  ;;  %v656_v3 = vsel %vm601_vm0, %v618_v58, 0.0  ;;  %v611_v26 = vmul.f32 %v3008_v18, %v3003_v30  ;;  %v619_v37 = vmul.f32 %v3008_v18, %v3048_v51 }
  0xa0   :  { %v448_v33 = vadd.f32 %v432_v0, %v372_v48  ;;  %v576_v47 = vmul.f32 %v2138_v1, %v2758_v52  ;;  %v516_v10 = vadd.f32 %v500_v61, %v440_v63  ;;  %v584_v11 = vmul.f32 %v2138_v1, %v2805_v45 }
  0xa1   :  { %v635_v21 = vsel %vm601_vm0, %v611_v26, 0.0  ;;  %v659_v40 = vsel %vm601_vm0, %v619_v37, 0.0  ;;  %v612_v55 = vmul.f32 %v3008_v18, %v3067_v12  ;;  %v620_v14 = vmul.f32 %v3008_v18, %v3070_v49 }
  0xa2   :  { %648 = vadd.xlane.f32.xlu1 %v647_v41  ;;  %651 = vadd.xlane.f32.xlu0 %v650_v17  ;;  %v524_v35 = vadd.f32 %v508_v2, %v448_v33  ;;  %v3096_v42 = vadd.f32 %v576_v47, %v516_v10  ;;  %v613_v22 = vmul.f32 %v3008_v18, %v3084_v13 }
  0xa3   :  { %v638_v38 = vsel %vm601_vm0, %v612_v55, 0.0  ;;  %v662_v45 = vsel %vm601_vm0, %v620_v14, 0.0  ;;  %v621_v39 = vmul.f32 %v3008_v18, %v3087_v9 }
  0xa4   :  { %4756 = vst [vmem:[#allocation6_spill] sm:$0xff] %v3096_v42  ;;  %v3098_v52 = vadd.f32 %v584_v11, %v524_v35  ;;  %v641_v41 = vsel %vm601_vm0, %v613_v22, 0.0  ;;  %v614_v60 = vmul.f32 %v3008_v18, %v3096_v42 }
  0xa5   :  { %v665_v17 = vsel %vm601_vm0, %v621_v39, 0.0 }
  0xa6   :  { %630 = vadd.xlane.f32.xlu1 %v629_v36  ;;  %654 = vadd.xlane.f32.xlu0 %v653_v59  ;;  %4757 = vst [vmem:[#allocation7_spill] sm:$0xff] %v3098_v52  ;;  %v622_v57 = vmul.f32 %v3008_v18, %v3098_v52  ;;  %v644_v27 = vsel %vm601_vm0, %v614_v60, 0.0 }
  0xa8   :  { %v668_v62 = vsel %vm601_vm0, %v622_v57, 0.0 }
  0xaa   :  { %633 = vadd.xlane.f32.xlu1 %v632_v15  ;;  %657 = vadd.xlane.f32.xlu0 %v656_v3 }
  0xae   :  { %636 = vadd.xlane.f32.xlu1 %v635_v21  ;;  %660 = vadd.xlane.f32.xlu0 %v659_v40 }
  0xb2   :  { %639 = vadd.xlane.f32.xlu1 %v638_v38  ;;  %663 = vadd.xlane.f32.xlu0 %v662_v45 }
  0xb6   :  { %642 = vadd.xlane.f32.xlu1 %v641_v41  ;;  %666 = vadd.xlane.f32.xlu0 %v665_v17 }
  0xba   :  { %645 = vadd.xlane.f32.xlu1 %v644_v27  ;;  %669 = vadd.xlane.f32.xlu0 %v668_v62 }
 0x12b   :  { %v3114_v31 = vpop.xlane.xlu1 %627  ;;  %v3116_v44 = vpop.xlane.xlu0 %624 }
 0x12c   :  { %v672_v5 = vmul.f32 %v3114_v31, %v3114_v31  ;;  %v3122_v54 = vmul.f32 %v3116_v44, %v3116_v44 }
 0x12e   :  { %v688_v18 = vadd.f32 1.0, %v672_v5  ;;  %v3124_v24 = vadd.f32 1e-09, %v672_v5  ;;  %v3127_v34 = vadd.f32 1e-09, %v3122_v54  ;;  %v687_v48 = vadd.f32 1.0, %v3122_v54 }
 0x12f   :  { %v3129_v7 = vpop.xlane.xlu1 %648  ;;  %v3131_v29 = vpop.xlane.xlu0 %651 }
 0x130   :  { %2145 = vrsqrt.f32 %v3124_v24  ;;  %v3137_v0 = vmul.f32 %v3129_v7, %v3129_v7  ;;  %v3141_v36 = vmul.f32 %v3131_v29, %v3131_v29  ;;  %vm776_vm1 = vcmp.eq.f32.partialorder %v3124_v24, inf }
 0x131   :  { %2147 = vrcp.f32 %v688_v18  ;;  %vm778_vm2 = vcmp.eq.f32.partialorder %v3124_v24, 0.0  ;;  %v779_v3 = vand.u32 2147483648, %v3124_v24  ;;  %vm769_vm3 = vcmp.eq.f32.partialorder %v3127_v34, inf }
 0x132   :  { %2149 = vrsqrt.f32 %v3127_v34  ;;  %v695_v58 = vadd.f32 1.0, %v3137_v0  ;;  %v3150_v23 = vadd.f32 1e-09, %v3137_v0  ;;  %v3153_v53 = vadd.f32 1e-09, %v3141_v36 }
 0x133   :  { %v3144_v59 = vpop.xlane.xlu1 %630  ;;  %v3146_v28 = vpop.xlane.xlu0 %654  ;;  %2151 = vrcp.f32 %v687_v48  ;;  %v696_v1 = vadd.f32 1.0, %v3141_v36  ;;  %vm771_vm4 = vcmp.eq.f32.partialorder %v3127_v34, 0.0  ;;  %v772_v10 = vand.u32 2147483648, %v3127_v34 }
 0x134   :  { %v3157_v32 = vmul.f32 %v3144_v59, %v3144_v59  ;;  %v3161_v61 = vmul.f32 %v3146_v28, %v3146_v28  ;;  %2153 = vrsqrt.f32 %v3150_v23  ;;  %vm825_vm5 = vcmp.eq.f32.partialorder %v3150_v23, inf }
 0x135   :  { %2155 = vrcp.f32 %v695_v58  ;;  %v828_v55 = vand.u32 2147483648, %v3150_v23  ;;  %vm827_vm6 = vcmp.eq.f32.partialorder %v3150_v23, 0.0  ;;  %vm832_vm7 = vcmp.eq.f32.partialorder %v3153_v53, inf }
 0x136   :  { %v3170_v33 = vadd.f32 1e-09, %v3157_v32  ;;  %2157 = vrsqrt.f32 %v3153_v53  ;;  %v3175_v2 = vadd.f32 1e-09, %v3161_v61  ;;  %v689_v26 = vadd.f32 1.0, %v3157_v32 }
 0x137   :  { %v3164_v20 = vpop.xlane.xlu1 %633  ;;  %v3166_v63 = vpop.xlane.xlu0 %657  ;;  %v697_v21 = vadd.f32 1.0, %v3161_v61  ;;  %vm834_vm8 = vcmp.eq.f32.partialorder %v3153_v53, 0.0  ;;  %v835_v17 = vand.u32 2147483648, %v3153_v53 }
 0x138   :  { %v3179_v15 = vmul.f32 %v3164_v20, %v3164_v20  ;;  %v3186_v37 = vmul.f32 %v3166_v63, %v3166_v63  ;;  %2159 = vrsqrt.f32 %v3170_v33  ;;  %vm783_vm9 = vcmp.eq.f32.partialorder %v3170_v33, inf }
 0x139   :  { %2161 = vrcp.f32 %v696_v1  ;;  %vm785_vm10 = vcmp.eq.f32.partialorder %v3170_v33, 0.0  ;;  %vm839_vm11 = vcmp.eq.f32.partialorder %v3175_v2, inf  ;;  %vm841_vm12 = vcmp.eq.f32.partialorder %v3175_v2, 0.0 }
 0x13a   :  { %v2146_v47 = vpop.eup %2145  ;;  %2163 = vrsqrt.f32 %v3175_v2  ;;  %v690_v14 = vadd.f32 1.0, %v3179_v15  ;;  %v3199_v38 = vadd.f32 1e-09, %v3179_v15  ;;  %v698_v39 = vadd.f32 1.0, %v3186_v37 }
 0x13b   :  { %v2148_v35 = vpop.eup %2147  ;;  %v775_v11 = vmul.f32 %v2146_v47, %v3124_v24  ;;  %2165 = vrcp.f32 %v689_v26  ;;  %v3211_v60 = vpop.xlane.xlu1 %636  ;;  %v3220_v48 = vadd.f32 1e-09, %v3186_v37  ;;  %v786_v47 = vand.u32 2147483648, %v3170_v33 }
 0x13c   :  { %v2150_v40 = vpop.eup %2149  ;;  %2167 = vrsqrt.f32 %v3199_v38  ;;  %v706_v57 = vmul.f32 %v2148_v35, %v672_v5  ;;  %v3227_v26 = vmul.f32 %v3211_v60, %v3211_v60  ;;  %vm790_vm13 = vcmp.eq.f32.partialorder %v3199_v38, inf }
 0x13d   :  { %v2152_v45 = vpop.eup %2151  ;;  %v768_v22 = vmul.f32 %v2150_v40, %v3127_v34  ;;  %v777_v41 = vsel %vm776_vm1, %v3124_v24, %v775_v11  ;;  %2169 = vrcp.f32 %v697_v21  ;;  %v842_v11 = vand.u32 2147483648, %v3175_v2 }
 0x13e   :  { %v2154_v27 = vpop.eup %2153  ;;  %v704_v62 = vmul.f32 %v2152_v45, %v3122_v54  ;;  %2171 = vrcp.f32 %v690_v14  ;;  %v780_v5 = vsel %vm778_vm2, %v779_v3, %v777_v41  ;;  %v3241_v40 = vmul.f32 %v706_v57, %v3114_v31 }
 0x13f   :  { %v770_v18 = vsel %vm769_vm3, %v3127_v34, %v768_v22  ;;  %v2156_v58 = vpop.eup %2155  ;;  %v824_v1 = vmul.f32 %v2154_v27, %v3150_v23  ;;  %2173 = vrcp.f32 %v698_v39  ;;  %v691_v45 = vadd.f32 1.0, %v3227_v26  ;;  %v3247_v34 = vpop.xlane.xlu0 %660 }
 0x140   :  { %v2158_v54 = vpop.eup %2157  ;;  %2175 = vrsqrt.f32 %v3220_v48  ;;  %v773_v24 = vsel %vm771_vm4, %v772_v10, %v770_v18  ;;  %v3244_v14 = vmul.f32 %v704_v62, %v3116_v44  ;;  %v720_v22 = vmul.f32 %v2156_v58, %v3137_v0 }
 0x141   :  { %v826_v3 = vsel %vm825_vm5, %v3150_v23, %v824_v1  ;;  %v831_v35 = vmul.f32 %v2158_v54, %v3153_v53  ;;  %2177 = vrcp.f32 %v780_v5  ;;  %v3255_v31 = vadd.f32 1e-09, %v3227_v26 }
 0x142   :  { %v2160_v21 = vpop.eup %2159  ;;  %2179 = vrcp.f32 %v773_v24  ;;  %v829_v44 = vsel %vm827_vm6, %v828_v55, %v826_v3  ;;  %vm792_vm14 = vcmp.eq.f32.partialorder %v3199_v38, 0.0  ;;  %v793_v55 = vand.u32 2147483648, %v3199_v38 }
 0x143   :  { %v2162_v10 = vpop.eup %2161  ;;  %v833_v39 = vsel %vm832_vm7, %v3153_v53, %v831_v35  ;;  %v782_v41 = vmul.f32 %v2160_v21, %v3170_v33  ;;  %2181 = vrcp.f32 %v691_v45  ;;  %v3273_v5 = vmul.f32 %v3247_v34, %v3247_v34  ;;  %v3275_v53 = vpop.xlane.xlu1 %639 }
 0x144   :  { %v2164_v57 = vpop.eup %2163  ;;  %v836_v0 = vsel %vm834_vm8, %v835_v17, %v833_v39  ;;  %2183 = vrsqrt.f32 %v3255_v31  ;;  %v3278_v1 = vmul.f32 %v720_v22, %v3129_v7  ;;  %v722_v24 = vmul.f32 %v2162_v10, %v3141_v36  ;;  %v3288_v35 = vpop.xlane.xlu0 %663 }
 0x145   :  { %v2166_v27 = vpop.eup %2165  ;;  %v784_v62 = vsel %vm783_vm9, %v3170_v33, %v782_v41  ;;  %v838_v18 = vmul.f32 %v2164_v57, %v3175_v2  ;;  %2185 = vrcp.f32 %v829_v44  ;;  %vm846_vm15 = vcmp.eq.f32.partialorder %v3220_v48, inf }
 0x146   :  { %v2168_v58 = vpop.eup %2167  ;;  %v787_v23 = vsel %vm785_vm10, %v786_v47, %v784_v62  ;;  %2187 = vrcp.f32 %v836_v0  ;;  %v708_v21 = vmul.f32 %v2166_v27, %v3157_v32  ;;  %vm848_vm1 = vcmp.eq.f32.partialorder %v3220_v48, 0.0 }
 0x147   :  { %v2170_v17 = vpop.eup %2169  ;;  %v840_v33 = vsel %vm839_vm11, %v3175_v2, %v838_v18  ;;  %v789_v54 = vmul.f32 %v2168_v58, %v3199_v38  ;;  %2189 = vrcp.f32 %v787_v23  ;;  %v699_v2 = vadd.f32 1.0, %v3273_v5  ;;  %v3314_v0 = vpop.xlane.xlu1 %642 }
 0x148   :  { %v2172_v47 = vpop.eup %2171  ;;  %v843_v3 = vsel %vm841_vm12, %v842_v11, %v840_v33  ;;  %v3299_v11 = vadd.f32 1e-09, %v3273_v5  ;;  %v3303_v10 = vmul.f32 %v3275_v53, %v3275_v53  ;;  %v724_v32 = vmul.f32 %v2170_v17, %v3161_v61 }
 0x149   :  { %v2174_v7 = vpop.eup %2173  ;;  %v791_v45 = vsel %vm790_vm13, %v3199_v38, %v789_v54  ;;  %2191 = vrcp.f32 %v843_v3  ;;  %v3309_v41 = vmul.f32 %v3288_v35, %v3288_v35  ;;  %v744_v57 = vmul.f32 %v722_v24, %v3131_v29 }
 0x14a   :  { %v2176_v22 = vpop.eup %2175  ;;  %v794_v36 = vsel %vm792_vm14, %v793_v55, %v791_v45  ;;  %v710_v44 = vmul.f32 %v2172_v47, %v3179_v15  ;;  %v849_v27 = vand.u32 2147483648, %v3220_v48  ;;  %v726_v62 = vmul.f32 %v2174_v7, %v3186_v37  ;;  %v3337_v47 = vpop.xlane.xlu0 %666 }
 0x14b   :  { %v845_v39 = vmul.f32 %v2176_v22, %v3220_v48  ;;  %v2178_v38 = vpop.eup %2177  ;;  %2193 = vrcp.f32 %v794_v36  ;;  %v3322_v18 = vadd.f32 1e-09, %v3303_v10  ;;  %v737_v29 = vmul.f32 %v708_v21, %v3144_v59  ;;  %v3353_v45 = vpop.xlane.xlu1 %645 }
 0x14c   :  { %2195 = vrsqrt.f32 %v3299_v11  ;;  %v2180_v58 = vpop.eup %2179  ;;  %v692_v23 = vadd.f32 1.0, %v3303_v10  ;;  %v745_v37 = vmul.f32 %v724_v32, %v3146_v28  ;;  %vm797_vm2 = vcmp.eq.f32.partialorder %v3255_v31, inf }
 0x14d   :  { %v847_v61 = vsel %vm846_vm15, %v3220_v48, %v845_v39  ;;  %2197 = vrcp.f32 %v699_v2  ;;  %v2182_v55 = vpop.eup %2181  ;;  %vm799_vm3 = vcmp.eq.f32.partialorder %v3255_v31, 0.0  ;;  %v3332_v17 = vadd.f32 1e-09, %v3309_v41 }
 0x14e   :  { %v850_v15 = vsel %vm848_vm1, %v849_v27, %v847_v61  ;;  %v2184_v33 = vpop.eup %2183  ;;  %v882_v54 = vmul.f32 %v2178_v38, %v3241_v40  ;;  %v738_v59 = vmul.f32 %v710_v44, %v3164_v20  ;;  %v800_v48 = vand.u32 2147483648, %v3255_v31 }
 0x14f   :  { %2199 = vrcp.f32 %v850_v15  ;;  %v2186_v24 = vpop.eup %2185  ;;  %v3340_v28 = vmul.f32 %v2180_v58, %v3244_v14  ;;  %v3343_v3 = vmul.f32 %v726_v62, %v3166_v63  ;;  %v796_v7 = vmul.f32 %v2184_v33, %v3255_v31  ;;  %v3387_v58 = vpop.xlane.xlu0 %669 }
 0x150   :  { %2201 = vrsqrt.f32 %v3322_v18  ;;  %v2188_v21 = vpop.eup %2187  ;;  %vm853_vm4 = vcmp.eq.f32.partialorder %v3299_v11, inf  ;;  %v700_v20 = vadd.f32 1.0, %v3309_v41  ;;  %v3351_v40 = vmul.f32 %v3314_v0, %v3314_v0 }
 0x151   :  { %2203 = vrcp.f32 %v692_v23  ;;  %v2190_v14 = vpop.eup %2189  ;;  %v712_v63 = vmul.f32 %v2182_v55, %v3227_v26  ;;  %v798_v22 = vsel %vm797_vm2, %v3255_v31, %v796_v7  ;;  %v3362_v36 = vmul.f32 %v3337_v47, %v3337_v47 }
 0x152   :  { %2205 = vrsqrt.f32 %v3332_v17  ;;  %v3365_v2 = vmul.f32 %v2186_v24, %v3278_v1  ;;  %vm855_vm5 = vcmp.eq.f32.partialorder %v3299_v11, 0.0  ;;  %v856_v32 = vand.u32 2147483648, %v3299_v11 }
 0x153   :  { %v3370_v39 = vadd.f32 1e-09, %v3351_v40  ;;  %v2192_v26 = vpop.eup %2191  ;;  %v801_v38 = vsel %vm799_vm3, %v800_v48, %v798_v22  ;;  %vm804_vm6 = vcmp.eq.f32.partialorder %v3322_v18, inf  ;;  %v3376_v44 = vadd.f32 1e-09, %v3362_v36 }
 0x154   :  { %v3380_v1 = vmul.f32 %v3353_v45, %v3353_v45  ;;  %v3382_v62 = vmul.f32 %v2188_v21, %v744_v57  ;;  %vm806_vm7 = vcmp.eq.f32.partialorder %v3322_v18, 0.0  ;;  %v807_v61 = vand.u32 2147483648, %v3322_v18 }
 0x155   :  { %v2194_v27 = vpop.eup %2193  ;;  %2207 = vrcp.f32 %v700_v20  ;;  %v693_v31 = vadd.f32 1.0, %v3351_v40  ;;  %v3389_v23 = vmul.f32 %v2190_v14, %v737_v29  ;;  %v3392_v55 = vmul.f32 %v712_v63, %v3211_v60 }
 0x156   :  { %v2196_v15 = vpop.eup %2195  ;;  %vm860_vm8 = vcmp.eq.f32.partialorder %v3332_v17, inf  ;;  %2209 = vrsqrt.f32 %v3370_v39  ;;  %v3396_v33 = vmul.f32 %v2192_v26, %v745_v37  ;;  %vm862_vm9 = vcmp.eq.f32.partialorder %v3332_v17, 0.0 }
 0x157   :  { %v2198_v57 = vpop.eup %2197  ;;  %2211 = vrcp.f32 %v801_v38  ;;  %v852_v48 = vmul.f32 %v2196_v15, %v3299_v11  ;;  %v863_v24 = vand.u32 2147483648, %v3332_v17  ;;  %v701_v29 = vadd.f32 1.0, %v3362_v36 }
 0x158   :  { %2213 = vrsqrt.f32 %v3376_v44  ;;  %v3404_v60 = vadd.f32 1e-09, %v3380_v1  ;;  %v3408_v7 = vmul.f32 %v3387_v58, %v3387_v58  ;;  %v694_v20 = vadd.f32 1.0, %v3380_v1 }
 0x159   :  { %v2200_v37 = vpop.eup %2199  ;;  %v854_v21 = vsel %vm853_vm4, %v3299_v11, %v852_v48  ;;  %2215 = vrcp.f32 %v693_v31  ;;  %v3415_v14 = vmul.f32 %v882_v54, %v2848_v25  ;;  %v3417_v22 = vmul.f32 %v2194_v27, %v738_v59 }
 0x15a   :  { %v2202_v63 = vpop.eup %2201  ;;  %v728_v26 = vmul.f32 %v2198_v57, %v3273_v5  ;;  %v857_v38 = vsel %vm855_vm5, %v856_v32, %v854_v21  ;;  %2217 = vrsqrt.f32 %v3404_v60  ;;  %vm811_vm10 = vcmp.eq.f32.partialorder %v3370_v39, inf }
 0x15b   :  { %v2204_v15 = vpop.eup %2203  ;;  %2219 = vrcp.f32 %v857_v38  ;;  %v803_v48 = vmul.f32 %v2202_v63, %v3322_v18  ;;  %vm813_vm11 = vcmp.eq.f32.partialorder %v3370_v39, 0.0  ;;  %v814_v31 = vand.u32 2147483648, %v3370_v39 }
 0x15c   :  { %v2206_v54 = vpop.eup %2205  ;;  %2221 = vrcp.f32 %v701_v29  ;;  %vm867_vm12 = vcmp.eq.f32.partialorder %v3376_v44, inf  ;;  %v3429_v5 = vadd.f32 1e-09, %v3408_v7  ;;  %vm869_vm13 = vcmp.eq.f32.partialorder %v3376_v44, 0.0 }
 0x15d   :  { %v805_v11 = vsel %vm804_vm6, %v3322_v18, %v803_v48  ;;  %v859_v59 = vmul.f32 %v2206_v54, %v3332_v17  ;;  %v946_v32 = vsel %vm601_vm0, %v3415_v14, -inf  ;;  %v3440_v27 = vmul.f32 %v3340_v28, %v2867_v50 }
 0x15e   :  { %v747_v57 = vmul.f32 %v728_v26, %v3247_v34  ;;  %v808_v29 = vsel %vm806_vm7, %v807_v61, %v805_v11  ;;  %v870_v21 = vand.u32 2147483648, %v3376_v44  ;;  %2223 = vrcp.f32 %v694_v20  ;;  %947 = vmax.xlane.f32.xlu0 %v946_v32 }
 0x15f   :  { %v2208_v63 = vpop.eup %2207  ;;  %v902_v38 = vmul.f32 %v2200_v37, %v3343_v3  ;;  %v714_v48 = vmul.f32 %v2204_v15, %v3303_v10  ;;  %2225 = vrcp.f32 %v808_v29  ;;  %v861_v28 = vsel %vm860_vm8, %v3332_v17, %v859_v59 }
 0x160   :  { %v2210_v54 = vpop.eup %2209  ;;  %v864_v34 = vsel %vm862_vm9, %v863_v24, %v861_v28  ;;  %vm818_vm14 = vcmp.eq.f32.partialorder %v3404_v60, inf  ;;  %v702_v18 = vadd.f32 1.0, %v3408_v7  ;;  %2227 = vrsqrt.f32 %v3429_v5 }
 0x161   :  { %v2212_v61 = vpop.eup %2211  ;;  %2229 = vrcp.f32 %v864_v34  ;;  %v810_v3 = vmul.f32 %v2210_v54, %v3370_v39  ;;  %v943_v10 = vsel %vm601_vm0, %v3440_v27, -inf  ;;  %v3461_v37 = vmul.f32 %v3365_v2, %v2869_v56 }
 0x162   :  { %v2214_v20 = vpop.eup %2213  ;;  %vm820_vm15 = vcmp.eq.f32.partialorder %v3404_v60, 0.0  ;;  %v821_v17 = vand.u32 2147483648, %v3404_v60  ;;  %944 = vmax.xlane.f32.xlu1 %v943_v10  ;;  %v3467_v24 = vmul.f32 %v3382_v62, %v2878_v8  ;;  %v3471_v26 = vmul.f32 %v3389_v23, %v2893_v19 }
 0x163   :  { %v2216_v15 = vpop.eup %2215  ;;  %v812_v2 = vsel %vm811_vm10, %v3370_v39, %v810_v3  ;;  %v866_v11 = vmul.f32 %v2214_v20, %v3376_v44  ;;  %v967_v59 = vsel %vm601_vm0, %v3461_v37, -inf  ;;  %v3481_v32 = vmul.f32 %v3396_v33, %v2913_v43 }
 0x164   :  { %v2218_v62 = vpop.eup %2217  ;;  %v730_v29 = vmul.f32 %v2208_v63, %v3309_v41  ;;  %v815_v23 = vsel %vm813_vm11, %v814_v31, %v812_v2  ;;  %2231 = vrcp.f32 %v702_v18  ;;  %v970_v28 = vsel %vm601_vm0, %v3467_v24, -inf }
 0x165   :  { %v2220_v54 = vpop.eup %2219  ;;  %v888_v34 = vmul.f32 %v2212_v61, %v3392_v55  ;;  %2233 = vrcp.f32 %v815_v23  ;;  %v868_v3 = vsel %vm867_vm12, %v3376_v44, %v866_v11  ;;  %v817_v33 = vmul.f32 %v2218_v62, %v3404_v60  ;;  %971 = vmax.xlane.f32.xlu0 %v970_v28 }
 0x166   :  { %v2222_v10 = vpop.eup %2221  ;;  %v904_v41 = vmul.f32 %v2220_v54, %v747_v57  ;;  %v871_v39 = vsel %vm869_vm13, %v870_v21, %v868_v3  ;;  %968 = vmax.xlane.f32.xlu1 %v967_v59  ;;  %v949_v31 = vsel %vm601_vm0, %v3471_v26, -inf  ;;  %v973_v55 = vsel %vm601_vm0, %v3481_v32, -inf }
 0x167   :  { %2235 = vrcp.f32 %v871_v39  ;;  %v819_v63 = vsel %vm818_vm14, %v3404_v60, %v817_v33  ;;  %v3504_v18 = vmul.f32 %v3417_v22, %v2940_v16  ;;  %v3507_v57 = vmul.f32 %v902_v38, %v2969_v46 }
 0x168   :  { %v2224_v44 = vpop.eup %2223  ;;  %v822_v21 = vsel %vm820_vm15, %v821_v17, %v819_v63  ;;  %v740_v20 = vmul.f32 %v714_v48, %v3275_v53  ;;  %v716_v2 = vmul.f32 %v2216_v15, %v3351_v40  ;;  %v748_v59 = vmul.f32 %v730_v29, %v3288_v35 }
 0x169   :  { %v2226_v61 = vpop.eup %2225  ;;  %2237 = vrcp.f32 %v822_v21  ;;  %974 = vmax.xlane.f32.xlu0 %v973_v55  ;;  %v976_v22 = vsel %vm601_vm0, %v3507_v57, -inf  ;;  %v3517_v38 = vmul.f32 %v904_v41, %v3048_v51  ;;  %v952_v53 = vsel %vm601_vm0, %v3504_v18, -inf }
 0x16a   :  { %v2228_v11 = vpop.eup %2227  ;;  %950 = vmax.xlane.f32.xlu1 %v949_v31  ;;  %v890_v60 = vmul.f32 %v2226_v61, %v740_v20  ;;  %v3523_v40 = vmul.f32 %v888_v34, %v3003_v30  ;;  %v732_v35 = vmul.f32 %v2222_v10, %v3362_v36  ;;  %vm874_vm1 = vcmp.eq.f32.partialorder %v3429_v5, inf }
 0x16b   :  { %v2230_v62 = vpop.eup %2229  ;;  %v873_v17 = vmul.f32 %v2228_v11, %v3429_v5  ;;  %v877_v15 = vand.u32 2147483648, %v3429_v5  ;;  %v741_v29 = vmul.f32 %v716_v2, %v3314_v0  ;;  %vm876_vm2 = vcmp.eq.f32.partialorder %v3429_v5, 0.0 }
 0x16c   :  { %v906_v48 = vmul.f32 %v2230_v62, %v748_v59  ;;  %v718_v54 = vmul.f32 %v2224_v44, %v3380_v1  ;;  %v979_v34 = vsel %vm601_vm0, %v3517_v38, -inf  ;;  %v955_v0 = vsel %vm601_vm0, %v3523_v40, -inf }
 0x16d   :  { %v875_v23 = vsel %vm874_vm1, %v3429_v5, %v873_v17  ;;  %977 = vmax.xlane.f32.xlu0 %v976_v22  ;;  %v3540_v10 = vmul.f32 %v890_v60, %v3067_v12  ;;  %v749_v41 = vmul.f32 %v732_v35, %v3337_v47 }
 0x16e   :  { %v2232_v28 = vpop.eup %2231  ;;  %v878_v3 = vsel %vm876_vm2, %v877_v15, %v875_v23  ;;  %953 = vmax.xlane.f32.xlu1 %v952_v53  ;;  %v3535_v36 = vmul.f32 %v906_v48, %v3070_v49  ;;  %v742_v31 = vmul.f32 %v718_v54, %v3353_v45 }
 0x16f   :  { %v2234_v33 = vpop.eup %2233  ;;  %2239 = vrcp.f32 %v878_v3  ;;  %4759 = vst [vmem:[#allocation9_spill] sm:$0xff] %v3540_v10  ;;  %v958_v44 = vsel %vm601_vm0, %v3540_v10, -inf  ;;  %v734_v20 = vmul.f32 %v2232_v28, %v3408_v7 }
 0x170   :  { %4758 = vst [vmem:[#allocation8_spill] sm:$0xff] %v3535_v36  ;;  %v892_v5 = vmul.f32 %v2234_v33, %v741_v29  ;;  %v982_v55 = vsel %vm601_vm0, %v3535_v36, -inf }
 0x171   :  { %v2236_v1 = vpop.eup %2235  ;;  %980 = vmax.xlane.f32.xlu0 %v979_v34  ;;  %v750_v59 = vmul.f32 %v734_v20, %v3387_v58 }
 0x172   :  { %v908_v39 = vmul.f32 %v2236_v1, %v749_v41  ;;  %956 = vmax.xlane.f32.xlu1 %v955_v0  ;;  %v3549_v21 = vmul.f32 %v892_v5, %v3084_v13 }
 0x173   :  { %v2238_v63 = vpop.eup %2237 }
 0x174   :  { %4760 = vst [vmem:[#allocation10_spill] sm:$0xff] %v3549_v21  ;;  %v894_v61 = vmul.f32 %v2238_v63, %v742_v31  ;;  %v3553_v47 = vmul.f32 %v908_v39, %v3087_v9  ;;  %v961_v2 = vsel %vm601_vm0, %v3549_v21, -inf }
 0x175   :  { %983 = vmax.xlane.f32.xlu0 %v982_v55 }
 0x176   :  { %4761 = vst [vmem:[#allocation11_spill] sm:$0xff] %v3553_v47  ;;  %959 = vmax.xlane.f32.xlu1 %v958_v44  ;;  %v985_v45 = vsel %vm601_vm0, %v3553_v47, -inf  ;;  %v3560_v11 = vmul.f32 %v894_v61, %v3096_v42 }
 0x178   :  { %4762 = vst [vmem:[#allocation12_spill] sm:$0xff] %v3560_v11  ;;  %v964_v7 = vsel %vm601_vm0, %v3560_v11, -inf }
 0x179   :  { %v2240_v22 = vpop.eup %2239  ;;  %986 = vmax.xlane.f32.xlu0 %v985_v45 }
 0x17a   :  { %v910_v62 = vmul.f32 %v2240_v22, %v750_v59  ;;  %962 = vmax.xlane.f32.xlu1 %v961_v2 }
 0x17c   :  { %v3566_v60 = vmul.f32 %v910_v62, %v3098_v52 }
 0x17e   :  { %4763 = vst [vmem:[#allocation13_spill] sm:$0xff] %v3566_v60  ;;  %965 = vmax.xlane.f32.xlu1 %v964_v7  ;;  %v988_v17 = vsel %vm601_vm0, %v3566_v60, -inf }
 0x17f   :  { %989 = vmax.xlane.f32.xlu0 %v988_v17 }
 0x1eb   :  { %v948_v53 = vpop.xlane.xlu0 %947 }
 0x1ec   :  { %v992_v48 = vsub.f32 %v3415_v14, %v948_v53 }
 0x1ee   :  { %v1009_v35 = vmul.f32 1.442695, %v992_v48 }
 0x1ef   :  { %v945_v58 = vpop.xlane.xlu1 %944 }
 0x1f0   :  { %v991_v15 = vsub.f32 %v3440_v27, %v945_v58  ;;  %2241 = vpow2.f32 %v1009_v35 }
 0x1f2   :  { %v1007_v29 = vmul.f32 1.442695, %v991_v15  ;;  %v972_v23 = vpop.xlane.xlu0 %971 }
 0x1f3   :  { %v969_v28 = vpop.xlane.xlu1 %968  ;;  %v1000_v54 = vsub.f32 %v3467_v24, %v972_v23 }
 0x1f4   :  { %2243 = vpow2.f32 %v1007_v29  ;;  %v999_v3 = vsub.f32 %v3461_v37, %v969_v28 }
 0x1f5   :  { %v1025_v34 = vmul.f32 1.442695, %v1000_v54 }
 0x1f6   :  { %v1023_v33 = vmul.f32 1.442695, %v999_v3  ;;  %v975_v0 = vpop.xlane.xlu0 %974 }
 0x1f7   :  { %2245 = vpow2.f32 %v1025_v34  ;;  %v951_v5 = vpop.xlane.xlu1 %950  ;;  %v1001_v41 = vsub.f32 %v3481_v32, %v975_v0 }
 0x1f8   :  { %2247 = vpow2.f32 %v1023_v33  ;;  %v993_v1 = vsub.f32 %v3471_v26, %v951_v5 }
 0x1f9   :  { %v1027_v39 = vmul.f32 1.442695, %v1001_v41 }
 0x1fa   :  { %v3576_v31 = vpop.eup %2241  ;;  %v1011_v55 = vmul.f32 1.442695, %v993_v1  ;;  %v978_v63 = vpop.xlane.xlu0 %977 }
 0x1fb   :  { %2249 = vpow2.f32 %v1027_v39  ;;  %v954_v44 = vpop.xlane.xlu1 %953  ;;  %v1002_v61 = vsub.f32 %v3507_v57, %v978_v63  ;;  %v1042_v20 = vsel %vm601_vm0, %v3576_v31, 0.0 }
 0x1fc   :  { %2251 = vpow2.f32 %v1011_v55  ;;  %v994_v45 = vsub.f32 %v3504_v18, %v954_v44  ;;  %1043 = vadd.xlane.f32.xlu0 %v1042_v20 }
 0x1fd   :  { %v1029_v2 = vmul.f32 1.442695, %v1002_v61 }
 0x1fe   :  { %v3582_v59 = vpop.eup %2243  ;;  %v1013_v22 = vmul.f32 1.442695, %v994_v45  ;;  %v981_v62 = vpop.xlane.xlu0 %980 }
 0x1ff   :  { %2253 = vpow2.f32 %v1029_v2  ;;  %v957_v7 = vpop.xlane.xlu1 %956  ;;  %v1003_v17 = vsub.f32 %v3517_v38, %v981_v62  ;;  %v1039_v53 = vsel %vm601_vm0, %v3582_v59, 0.0 }
 0x200   :  { %2255 = vpow2.f32 %v1013_v22  ;;  %v995_v48 = vsub.f32 %v3523_v40, %v957_v7  ;;  %1040 = vadd.xlane.f32.xlu1 %v1039_v53 }
 0x201   :  { %v3588_v35 = vpop.eup %2245  ;;  %v1031_v58 = vmul.f32 1.442695, %v1003_v17 }
 0x202   :  { %v3590_v15 = vpop.eup %2247  ;;  %v1015_v29 = vmul.f32 1.442695, %v995_v48  ;;  %v984_v23 = vpop.xlane.xlu0 %983  ;;  %v1066_v28 = vsel %vm601_vm0, %v3588_v35, 0.0 }
 0x203   :  { %2257 = vpow2.f32 %v1031_v58  ;;  %v960_v54 = vpop.xlane.xlu1 %959  ;;  %v1004_v3 = vsub.f32 %v3535_v36, %v984_v23  ;;  %v1063_v34 = vsel %vm601_vm0, %v3590_v15, 0.0  ;;  %1067 = vadd.xlane.f32.xlu0 %v1066_v28 }
 0x204   :  { %2259 = vpow2.f32 %v1015_v29  ;;  %v996_v33 = vsub.f32 %v3540_v10, %v960_v54  ;;  %1064 = vadd.xlane.f32.xlu1 %v1063_v34 }
 0x205   :  { %v3598_v0 = vpop.eup %2249  ;;  %v1033_v5 = vmul.f32 1.442695, %v1004_v3 }
 0x206   :  { %v3600_v41 = vpop.eup %2251  ;;  %v1017_v1 = vmul.f32 1.442695, %v996_v33  ;;  %v987_v39 = vpop.xlane.xlu0 %986  ;;  %v1069_v55 = vsel %vm601_vm0, %v3598_v0, 0.0 }
 0x207   :  { %2261 = vpow2.f32 %v1033_v5  ;;  %v963_v63 = vpop.xlane.xlu1 %962  ;;  %v1005_v44 = vsub.f32 %v3553_v47, %v987_v39  ;;  %v1045_v61 = vsel %vm601_vm0, %v3600_v41, 0.0  ;;  %1070 = vadd.xlane.f32.xlu0 %v1069_v55 }
 0x208   :  { %2263 = vpow2.f32 %v1017_v1  ;;  %v997_v20 = vsub.f32 %v3549_v21, %v963_v63  ;;  %1046 = vadd.xlane.f32.xlu1 %v1045_v61 }
 0x209   :  { %v3608_v45 = vpop.eup %2253  ;;  %v1035_v2 = vmul.f32 1.442695, %v1005_v44 }
 0x20a   :  { %v3610_v22 = vpop.eup %2255  ;;  %v1019_v62 = vmul.f32 1.442695, %v997_v20  ;;  %v1072_v7 = vsel %vm601_vm0, %v3608_v45, 0.0 }
 0x20b   :  { %2265 = vpow2.f32 %v1035_v2  ;;  %v966_v17 = vpop.xlane.xlu1 %965  ;;  %v1048_v53 = vsel %vm601_vm0, %v3610_v22, 0.0  ;;  %1073 = vadd.xlane.f32.xlu0 %v1072_v7 }
 0x20c   :  { %2267 = vpow2.f32 %v1019_v62  ;;  %v998_v48 = vsub.f32 %v3560_v11, %v966_v17  ;;  %v990_v58 = vpop.xlane.xlu0 %989  ;;  %1049 = vadd.xlane.f32.xlu1 %v1048_v53 }
 0x20d   :  { %v3617_v29 = vpop.eup %2257  ;;  %v1006_v23 = vsub.f32 %v3566_v60, %v990_v58 }
 0x20e   :  { %v3620_v28 = vpop.eup %2259  ;;  %v1021_v54 = vmul.f32 1.442695, %v998_v48  ;;  %v1075_v3 = vsel %vm601_vm0, %v3617_v29, 0.0 }
 0x20f   :  { %v1037_v34 = vmul.f32 1.442695, %v1006_v23  ;;  %v1051_v33 = vsel %vm601_vm0, %v3620_v28, 0.0  ;;  %1076 = vadd.xlane.f32.xlu0 %v1075_v3 }
 0x210   :  { %2269 = vpow2.f32 %v1021_v54  ;;  %1052 = vadd.xlane.f32.xlu1 %v1051_v33 }
 0x211   :  { %v3626_v5 = vpop.eup %2261  ;;  %2271 = vpow2.f32 %v1037_v34 }
 0x212   :  { %v3628_v1 = vpop.eup %2263  ;;  %v1078_v39 = vsel %vm601_vm0, %v3626_v5, 0.0 }
 0x213   :  { %v1054_v55 = vsel %vm601_vm0, %v3628_v1, 0.0  ;;  %1079 = vadd.xlane.f32.xlu0 %v1078_v39 }
 0x214   :  { %1055 = vadd.xlane.f32.xlu1 %v1054_v55 }
 0x215   :  { %v3634_v63 = vpop.eup %2265 }
 0x216   :  { %v3636_v44 = vpop.eup %2267  ;;  %v1081_v61 = vsel %vm601_vm0, %v3634_v63, 0.0 }
 0x217   :  { %v1057_v20 = vsel %vm601_vm0, %v3636_v44, 0.0  ;;  %1082 = vadd.xlane.f32.xlu0 %v1081_v61 }
 0x218   :  { %1058 = vadd.xlane.f32.xlu1 %v1057_v20 }
 0x21a   :  { %v3642_v2 = vpop.eup %2269 }
 0x21b   :  { %v3644_v62 = vpop.eup %2271  ;;  %v1060_v7 = vsel %vm601_vm0, %v3642_v2, 0.0 }
 0x21c   :  { %1061 = vadd.xlane.f32.xlu1 %v1060_v7  ;;  %v1084_v17 = vsel %vm601_vm0, %v3644_v62, 0.0 }
 0x21d   :  { %1085 = vadd.xlane.f32.xlu0 %v1084_v17 }
 0x289   :  { %v1044_v53 = vpop.xlane.xlu0 %1043 }
 0x28a   :  { %2273 = vrcp.f32 %v1044_v53 }
 0x28d   :  { %v1041_v48 = vpop.xlane.xlu1 %1040 }
 0x28e   :  { %2275 = vrcp.f32 %v1041_v48 }
 0x290   :  { %v1068_v58 = vpop.xlane.xlu0 %1067 }
 0x291   :  { %v1065_v23 = vpop.xlane.xlu1 %1064  ;;  %2277 = vrcp.f32 %v1068_v58 }
 0x292   :  { %2279 = vrcp.f32 %v1065_v23 }
 0x294   :  { %v2274_v54 = vpop.eup %2273  ;;  %v1071_v3 = vpop.xlane.xlu0 %1070 }
 0x295   :  { %v1047_v34 = vpop.xlane.xlu1 %1046  ;;  %2281 = vrcp.f32 %v1071_v3  ;;  %v1090_v33 = vmul.f32 %v2274_v54, %v3576_v31 }
 0x296   :  { %2283 = vrcp.f32 %v1047_v34 }
 0x297   :  { %v1120_v39 = vmul.f32 %v1090_v33, %v2848_v25 }
 0x298   :  { %v2276_v55 = vpop.eup %2275  ;;  %v1074_v61 = vpop.xlane.xlu0 %1073 }
 0x299   :  { %v1050_v20 = vpop.xlane.xlu1 %1049  ;;  %2285 = vrcp.f32 %v1074_v61  ;;  %v1088_v7 = vmul.f32 %v2276_v55, %v3582_v59  ;;  %v1138_v17 = vsel %vm601_vm0, %v1120_v39, 0.0 }
 0x29a   :  { %2287 = vrcp.f32 %v1050_v20  ;;  %1139 = vadd.xlane.f32.xlu0 %v1138_v17 }
 0x29b   :  { %v2278_v53 = vpop.eup %2277  ;;  %v1119_v48 = vmul.f32 %v1088_v7, %v2867_v50 }
 0x29c   :  { %v2280_v58 = vpop.eup %2279  ;;  %v1077_v23 = vpop.xlane.xlu0 %1076  ;;  %v1106_v31 = vmul.f32 %v2278_v53, %v3588_v35 }
 0x29d   :  { %v1053_v54 = vpop.xlane.xlu1 %1052  ;;  %2289 = vrcp.f32 %v1077_v23  ;;  %v1135_v3 = vsel %vm601_vm0, %v1119_v48, 0.0  ;;  %v1104_v34 = vmul.f32 %v2280_v58, %v3590_v15 }
 0x29e   :  { %2291 = vrcp.f32 %v1053_v54  ;;  %1136 = vadd.xlane.f32.xlu1 %v1135_v3  ;;  %v1128_v59 = vmul.f32 %v1106_v31, %v2878_v8 }
 0x29f   :  { %v2282_v33 = vpop.eup %2281  ;;  %v1127_v39 = vmul.f32 %v1104_v34, %v2869_v56 }
 0x2a0   :  { %v2284_v55 = vpop.eup %2283  ;;  %v1080_v61 = vpop.xlane.xlu0 %1079  ;;  %v1162_v20 = vsel %vm601_vm0, %v1128_v59, 0.0  ;;  %v1108_v7 = vmul.f32 %v2282_v33, %v3598_v0 }
 0x2a1   :  { %v1056_v35 = vpop.xlane.xlu1 %1055  ;;  %2293 = vrcp.f32 %v1080_v61  ;;  %v1159_v17 = vsel %vm601_vm0, %v1127_v39, 0.0  ;;  %1163 = vadd.xlane.f32.xlu0 %v1162_v20  ;;  %v1092_v15 = vmul.f32 %v2284_v55, %v3600_v41 }
 0x2a2   :  { %2295 = vrcp.f32 %v1056_v35  ;;  %1160 = vadd.xlane.f32.xlu1 %v1159_v17  ;;  %v1129_v53 = vmul.f32 %v1108_v7, %v2913_v43 }
 0x2a3   :  { %v2286_v48 = vpop.eup %2285  ;;  %v1121_v58 = vmul.f32 %v1092_v15, %v2893_v19 }
 0x2a4   :  { %v2288_v23 = vpop.eup %2287  ;;  %v1083_v31 = vpop.xlane.xlu0 %1082  ;;  %v1165_v54 = vsel %vm601_vm0, %v1129_v53, 0.0  ;;  %v1110_v0 = vmul.f32 %v2286_v48, %v3608_v45 }
 0x2a5   :  { %v1059_v3 = vpop.xlane.xlu1 %1058  ;;  %2297 = vrcp.f32 %v1083_v31  ;;  %v1141_v34 = vsel %vm601_vm0, %v1121_v58, 0.0  ;;  %1166 = vadd.xlane.f32.xlu0 %v1165_v54  ;;  %v1094_v41 = vmul.f32 %v2288_v23, %v3610_v22 }
 0x2a6   :  { %2299 = vrcp.f32 %v1059_v3  ;;  %1142 = vadd.xlane.f32.xlu1 %v1141_v34  ;;  %v1130_v59 = vmul.f32 %v1110_v0, %v2969_v46 }
 0x2a7   :  { %v2290_v33 = vpop.eup %2289  ;;  %v1122_v39 = vmul.f32 %v1094_v41, %v2940_v16 }
 0x2a8   :  { %v2292_v55 = vpop.eup %2291  ;;  %v1168_v61 = vsel %vm601_vm0, %v1130_v59, 0.0  ;;  %v1112_v20 = vmul.f32 %v2290_v33, %v3617_v29 }
 0x2a9   :  { %v1062_v45 = vpop.xlane.xlu1 %1061  ;;  %v1144_v7 = vsel %vm601_vm0, %v1122_v39, 0.0  ;;  %1169 = vadd.xlane.f32.xlu0 %v1168_v61  ;;  %v1096_v35 = vmul.f32 %v2292_v55, %v3620_v28 }
 0x2aa   :  { %2301 = vrcp.f32 %v1062_v45  ;;  %v1086_v22 = vpop.xlane.xlu0 %1085  ;;  %1145 = vadd.xlane.f32.xlu1 %v1144_v7  ;;  %v1131_v17 = vmul.f32 %v1112_v20, %v3048_v51 }
 0x2ab   :  { %v2294_v15 = vpop.eup %2293  ;;  %2303 = vrcp.f32 %v1086_v22  ;;  %v1123_v53 = vmul.f32 %v1096_v35, %v3003_v30 }
 0x2ac   :  { %v2296_v48 = vpop.eup %2295  ;;  %v1171_v58 = vsel %vm601_vm0, %v1131_v17, 0.0  ;;  %v1114_v29 = vmul.f32 %v2294_v15, %v3626_v5 }
 0x2ad   :  { %v1147_v23 = vsel %vm601_vm0, %v1123_v53, 0.0  ;;  %1172 = vadd.xlane.f32.xlu0 %v1171_v58  ;;  %v1098_v31 = vmul.f32 %v2296_v48, %v3628_v1 }
 0x2ae   :  { %1148 = vadd.xlane.f32.xlu1 %v1147_v23  ;;  %v1132_v28 = vmul.f32 %v1114_v29, %v3070_v49 }
 0x2af   :  { %v2298_v54 = vpop.eup %2297  ;;  %v1124_v0 = vmul.f32 %v1098_v31, %v3067_v12 }
 0x2b0   :  { %v2300_v3 = vpop.eup %2299  ;;  %v1174_v34 = vsel %vm601_vm0, %v1132_v28, 0.0  ;;  %v1116_v41 = vmul.f32 %v2298_v54, %v3634_v63 }
 0x2b1   :  { %v1150_v59 = vsel %vm601_vm0, %v1124_v0, 0.0  ;;  %1175 = vadd.xlane.f32.xlu0 %v1174_v34  ;;  %v1100_v5 = vmul.f32 %v2300_v3, %v3636_v44 }
 0x2b2   :  { %1151 = vadd.xlane.f32.xlu1 %v1150_v59  ;;  %v1133_v33 = vmul.f32 %v1116_v41, %v3087_v9 }
 0x2b3   :  { %v1125_v1 = vmul.f32 %v1100_v5, %v3084_v13 }
 0x2b4   :  { %v2302_v39 = vpop.eup %2301  ;;  %v1177_v55 = vsel %vm601_vm0, %v1133_v33, 0.0 }
 0x2b5   :  { %v2304_v61 = vpop.eup %2303  ;;  %v1153_v20 = vsel %vm601_vm0, %v1125_v1, 0.0  ;;  %1178 = vadd.xlane.f32.xlu0 %v1177_v55  ;;  %v1102_v45 = vmul.f32 %v2302_v39, %v3642_v2 }
 0x2b6   :  { %1154 = vadd.xlane.f32.xlu1 %v1153_v20  ;;  %v1118_v63 = vmul.f32 %v2304_v61, %v3644_v62 }
 0x2b7   :  { %v1126_v7 = vmul.f32 %v1102_v45, %v3096_v42 }
 0x2b8   :  { %v1134_v44 = vmul.f32 %v1118_v63, %v3098_v52 }
 0x2b9   :  { %v1156_v35 = vsel %vm601_vm0, %v1126_v7, 0.0 }
 0x2ba   :  { %1157 = vadd.xlane.f32.xlu1 %v1156_v35  ;;  %v1180_v22 = vsel %vm601_vm0, %v1134_v44, 0.0 }
 0x2bb   :  { %1181 = vadd.xlane.f32.xlu0 %v1180_v22 }
 0x327   :  { %v3698_v17 = vpop.xlane.xlu0 %1139 }
 0x328   :  { %v1184_v15 = vmul.f32 %v3698_v17, %v3698_v17 }
 0x32a   :  { %v1264_v53 = vadd.f32 1e-09, %v1184_v15  ;;  %v1200_v48 = vadd.f32 1.0, %v1184_v15 }
 0x32b   :  { %v3702_v2 = vpop.xlane.xlu1 %1136 }
 0x32c   :  { %v3706_v62 = vmul.f32 %v3702_v2, %v3702_v2  ;;  %2305 = vrsqrt.f32 %v1264_v53  ;;  %vm1288_vm3 = vcmp.eq.f32.partialorder %v1264_v53, inf  ;;  %vm1290_vm4 = vcmp.eq.f32.partialorder %v1264_v53, 0.0 }
 0x32d   :  { %2307 = vrcp.f32 %v1200_v48  ;;  %v1291_v35 = vand.u32 2147483648, %v1264_v53 }
 0x32e   :  { %v3709_v58 = vadd.f32 1e-09, %v3706_v62  ;;  %v3711_v29 = vpop.xlane.xlu0 %1163  ;;  %v1199_v23 = vadd.f32 1.0, %v3706_v62 }
 0x32f   :  { %v3714_v31 = vpop.xlane.xlu1 %1160  ;;  %v3718_v28 = vmul.f32 %v3711_v29, %v3711_v29 }
 0x330   :  { %2309 = vrsqrt.f32 %v3709_v58  ;;  %v3723_v54 = vmul.f32 %v3714_v31, %v3714_v31  ;;  %vm1281_vm5 = vcmp.eq.f32.partialorder %v3709_v58, inf  ;;  %vm1283_vm6 = vcmp.eq.f32.partialorder %v3709_v58, 0.0 }
 0x331   :  { %v1208_v0 = vadd.f32 1.0, %v3718_v28  ;;  %v3727_v3 = vadd.f32 1e-09, %v3718_v28  ;;  %2311 = vrcp.f32 %v1199_v23 }
 0x332   :  { %v3729_v34 = vpop.xlane.xlu0 %1166  ;;  %v1207_v41 = vadd.f32 1.0, %v3723_v54  ;;  %v3733_v59 = vadd.f32 1e-09, %v3723_v54 }
 0x333   :  { %v3735_v5 = vpop.xlane.xlu1 %1142  ;;  %2313 = vrsqrt.f32 %v3727_v3  ;;  %v3749_v55 = vmul.f32 %v3729_v34, %v3729_v34  ;;  %vm1344_vm7 = vcmp.eq.f32.partialorder %v3727_v3, inf  ;;  %vm1346_vm8 = vcmp.eq.f32.partialorder %v3727_v3, 0.0 }
 0x334   :  { %v3740_v33 = vmul.f32 %v3735_v5, %v3735_v5  ;;  %2315 = vrcp.f32 %v1208_v0  ;;  %vm1337_vm9 = vcmp.eq.f32.partialorder %v3733_v59, inf  ;;  %vm1339_vm10 = vcmp.eq.f32.partialorder %v3733_v59, 0.0 }
 0x335   :  { %2317 = vrsqrt.f32 %v3733_v59  ;;  %v1209_v48 = vadd.f32 1.0, %v3749_v55  ;;  %v3764_v23 = vadd.f32 1e-09, %v3749_v55  ;;  %v1340_v11 = vand.u32 2147483648, %v3733_v59 }
 0x336   :  { %v1201_v1 = vadd.f32 1.0, %v3740_v33  ;;  %v3745_v39 = vadd.f32 1e-09, %v3740_v33  ;;  %v3751_v61 = vpop.xlane.xlu0 %1169  ;;  %v2306_v20 = vpop.eup %2305  ;;  %2319 = vrcp.f32 %v1207_v41 }
 0x337   :  { %v3753_v45 = vpop.xlane.xlu1 %1145  ;;  %v1287_v63 = vmul.f32 %v2306_v20, %v1264_v53  ;;  %v3757_v7 = vmul.f32 %v3751_v61, %v3751_v61  ;;  %v2308_v44 = vpop.eup %2307  ;;  %v1347_v20 = vand.u32 2147483648, %v3727_v3  ;;  %vm1351_vm13 = vcmp.eq.f32.partialorder %v3764_v23, inf }
 0x338   :  { %2321 = vrcp.f32 %v1201_v1  ;;  %v3768_v0 = vmul.f32 %v3753_v45, %v3753_v45  ;;  %v1284_v1 = vand.u32 2147483648, %v3709_v58  ;;  %v1218_v4 = vmul.f32 %v2308_v44, %v1184_v15 }
 0x339   :  { %2323 = vrsqrt.f32 %v3745_v39  ;;  %v1289_v22 = vsel %vm1288_vm3, %v1264_v53, %v1287_v63  ;;  %v1210_v60 = vadd.f32 1.0, %v3757_v7  ;;  %vm1295_vm11 = vcmp.eq.f32.partialorder %v3745_v39, inf }
 0x33a   :  { %v2310_v41 = vpop.eup %2309  ;;  %v1292_v6 = vsel %vm1290_vm4, %v1291_v35, %v1289_v22  ;;  %2325 = vrsqrt.f32 %v3764_v23  ;;  %v3786_v15 = vadd.f32 1e-09, %v3757_v7  ;;  %v1202_v22 = vadd.f32 1.0, %v3768_v0 }
 0x33b   :  { %v1280_v63 = vmul.f32 %v2310_v41, %v3709_v58  ;;  %v2312_v52 = vpop.eup %2311  ;;  %2327 = vrcp.f32 %v1209_v48  ;;  %v3783_v41 = vadd.f32 1e-09, %v3768_v0  ;;  %v1248_v48 = vmul.f32 %v1218_v4, %v3698_v17  ;;  %v3796_v21 = vpop.xlane.xlu1 %1148 }
 0x33c   :  { %2329 = vrcp.f32 %v1292_v6  ;;  %v1216_v9 = vmul.f32 %v2312_v52, %v3706_v62  ;;  %vm1297_vm12 = vcmp.eq.f32.partialorder %v3745_v39, 0.0  ;;  %vm1353_vm14 = vcmp.eq.f32.partialorder %v3764_v23, 0.0  ;;  %v3809_v52 = vpop.xlane.xlu0 %1172 }
 0x33d   :  { %v2314_v42 = vpop.eup %2313  ;;  %v1282_v44 = vsel %vm1281_vm5, %v3709_v58, %v1280_v63  ;;  %2331 = vrcp.f32 %v1210_v60  ;;  %vm1358_vm15 = vcmp.eq.f32.partialorder %v3786_v15, inf  ;;  %vm1302_vm1 = vcmp.eq.f32.partialorder %v3783_v41, inf }
 0x33e   :  { %v2316_v53 = vpop.eup %2315  ;;  %v1343_v35 = vmul.f32 %v2314_v42, %v3727_v3  ;;  %v1298_v42 = vand.u32 2147483648, %v3745_v39  ;;  %2333 = vrsqrt.f32 %v3783_v41  ;;  %v1285_v4 = vsel %vm1283_vm6, %v1284_v1, %v1282_v44 }
 0x33f   :  { %v2318_v47 = vpop.eup %2317  ;;  %2335 = vrsqrt.f32 %v3786_v15  ;;  %v1234_v17 = vmul.f32 %v2316_v53, %v3718_v28  ;;  %v3818_v58 = vmul.f32 %v1216_v9, %v3702_v2  ;;  %v1354_v28 = vand.u32 2147483648, %v3764_v23 }
 0x340   :  { %v2320_v36 = vpop.eup %2319  ;;  %v1336_v13 = vmul.f32 %v2318_v47, %v3733_v59  ;;  %v1345_v6 = vsel %vm1344_vm7, %v3727_v3, %v1343_v35  ;;  %2337 = vrcp.f32 %v1202_v22  ;;  %v3825_v35 = vmul.f32 %v3796_v21, %v3796_v21 }
 0x341   :  { %v1348_v62 = vsel %vm1346_vm8, %v1347_v20, %v1345_v6  ;;  %2339 = vrcp.f32 %v1285_v4  ;;  %v3831_v3 = vmul.f32 %v3809_v52, %v3809_v52  ;;  %vm1304_vm2 = vcmp.eq.f32.partialorder %v3783_v41, 0.0 }
 0x342   :  { %v2322_v63 = vpop.eup %2321  ;;  %v1338_v60 = vsel %vm1337_vm9, %v3733_v59, %v1336_v13  ;;  %v1232_v13 = vmul.f32 %v2320_v36, %v3723_v54  ;;  %2341 = vrcp.f32 %v1348_v62  ;;  %v3839_v2 = vadd.f32 1e-09, %v3825_v35  ;;  %v3841_v59 = vpop.xlane.xlu1 %1151 }
 0x343   :  { %v2324_v47 = vpop.eup %2323  ;;  %v1341_v1 = vsel %vm1339_vm10, %v1340_v11, %v1338_v60  ;;  %v1203_v11 = vadd.f32 1.0, %v3825_v35  ;;  %v3844_v54 = vmul.f32 %v1234_v17, %v3711_v29  ;;  %v1220_v20 = vmul.f32 %v2322_v63, %v3740_v33 }
 0x344   :  { %v1294_v44 = vmul.f32 %v2324_v47, %v3745_v39  ;;  %v2326_v36 = vpop.eup %2325  ;;  %2343 = vrcp.f32 %v1341_v1  ;;  %v1211_v4 = vadd.f32 1.0, %v3831_v3  ;;  %v3854_v29 = vadd.f32 1e-09, %v3831_v3 }
 0x345   :  { %v2328_v22 = vpop.eup %2327  ;;  %v1350_v6 = vmul.f32 %v2326_v36, %v3764_v23  ;;  %v3858_v33 = vmul.f32 %v3841_v59, %v3841_v59  ;;  %v1305_v60 = vand.u32 2147483648, %v3783_v41  ;;  %v1249_v62 = vmul.f32 %v1220_v20, %v3735_v5 }
 0x346   :  { %v1296_v9 = vsel %vm1295_vm11, %v3745_v39, %v1294_v44  ;;  %v2330_v47 = vpop.eup %2329  ;;  %vm1360_vm3 = vcmp.eq.f32.partialorder %v3786_v15, 0.0  ;;  %v1361_v44 = vand.u32 2147483648, %v3786_v15  ;;  %vm1309_vm4 = vcmp.eq.f32.partialorder %v3839_v2, inf }
 0x347   :  { %v1299_v53 = vsel %vm1297_vm12, %v1298_v42, %v1296_v9  ;;  %v2332_v39 = vpop.eup %2331  ;;  %v1255_v42 = vmul.f32 %v1232_v13, %v3714_v31  ;;  %v1352_v63 = vsel %vm1351_vm13, %v3764_v23, %v1350_v6  ;;  %v3871_v9 = vpop.xlane.xlu0 %1175  ;;  %v3873_v13 = vmul.f32 %v2330_v47, %v1248_v48 }
 0x348   :  { %2345 = vrcp.f32 %v1299_v53  ;;  %v2334_v17 = vpop.eup %2333  ;;  %v1355_v1 = vsel %vm1353_vm14, %v1354_v28, %v1352_v63  ;;  %v3877_v53 = vpop.xlane.xlu1 %1154  ;;  %v1238_v23 = vmul.f32 %v2332_v39, %v3757_v7  ;;  %v1204_v20 = vadd.f32 1.0, %v3858_v33 }
 0x349   :  { %2347 = vrcp.f32 %v1203_v11  ;;  %v2336_v31 = vpop.eup %2335  ;;  %v1236_v11 = vmul.f32 %v2328_v22, %v3749_v55  ;;  %v1301_v36 = vmul.f32 %v2334_v17, %v3783_v41  ;;  %v3887_v55 = vadd.f32 1e-09, %v3858_v33 }
 0x34a   :  { %2349 = vrsqrt.f32 %v3839_v2  ;;  %v2338_v5 = vpop.eup %2337  ;;  %v1357_v28 = vmul.f32 %v2336_v31, %v3786_v15  ;;  %v3891_v22 = vmul.f32 %v3871_v9, %v3871_v9  ;;  %v3900_v47 = vmul.f32 %v3877_v53, %v3877_v53 }
 0x34b   :  { %2351 = vrcp.f32 %v1211_v4  ;;  %v1303_v48 = vsel %vm1302_vm1, %v3783_v41, %v1301_v36  ;;  %v2340_v6 = vpop.eup %2339  ;;  %v3903_v63 = vmul.f32 %v1236_v11, %v3729_v34  ;;  %v1222_v17 = vmul.f32 %v2338_v5, %v3768_v0  ;;  %v3911_v31 = vpop.xlane.xlu0 %1178 }
 0x34c   :  { %2353 = vrsqrt.f32 %v3854_v29  ;;  %v1306_v7 = vsel %vm1304_vm2, %v1305_v60, %v1303_v48  ;;  %v1359_v4 = vsel %vm1358_vm15, %v3786_v15, %v1357_v28  ;;  %v2342_v39 = vpop.eup %2341  ;;  %vm1311_vm5 = vcmp.eq.f32.partialorder %v3839_v2, 0.0  ;;  %4764 = vst [vmem:[#allocation14_spill] sm:$0xff] %v3911_v31  ;;  %v3926_v28 = vpop.xlane.xlu1 %1157 }
 0x34d   :  { %2355 = vrcp.f32 %v1355_v1  ;;  %v1362_v41 = vsel %vm1360_vm3, %v1361_v44, %v1359_v4  ;;  %v1212_v1 = vadd.f32 1.0, %v3891_v22  ;;  %v1312_v34 = vand.u32 2147483648, %v3839_v2  ;;  %4765 = vst [vmem:[#allocation15_spill] sm:$0xff] %v3926_v28 }
 0x34e   :  { %2357 = vrcp.f32 %v1204_v20  ;;  %v2344_v60 = vpop.eup %2343  ;;  %v3916_v0 = vadd.f32 1e-09, %v3891_v22  ;;  %v3919_v15 = vadd.f32 1e-09, %v3900_v47  ;;  %v3922_v11 = vmul.f32 %v2340_v6, %v3818_v58 }
 0x34f   :  { %2359 = vrcp.f32 %v1306_v7  ;;  %v1258_v5 = vmul.f32 %v1238_v23, %v3751_v61  ;;  %vm1365_vm6 = vcmp.eq.f32.partialorder %v3854_v29, inf  ;;  %v1250_v48 = vmul.f32 %v1222_v17, %v3753_v45 }
 0x350   :  { %2361 = vrcp.f32 %v1362_v41  ;;  %v1205_v7 = vadd.f32 1.0, %v3900_v47  ;;  %v3933_v4 = vmul.f32 %v3911_v31, %v3911_v31  ;;  %v3936_v58 = vmul.f32 %v2342_v39, %v3844_v54 }
 0x351   :  { %2363 = vrsqrt.f32 %v3887_v55  ;;  %vm1367_vm7 = vcmp.eq.f32.partialorder %v3854_v29, 0.0  ;;  %v1368_v23 = vand.u32 2147483648, %v3854_v29  ;;  %v3941_v41 = vmul.f32 %v2344_v60, %v1255_v42 }
 0x352   :  { %v2346_v36 = vpop.eup %2345  ;;  %2365 = vrcp.f32 %v1212_v1  ;;  %vm1316_vm8 = vcmp.eq.f32.partialorder %v3887_v55, inf  ;;  %v3947_v45 = vmul.f32 %v3926_v28, %v3926_v28  ;;  %vm1318_vm9 = vcmp.eq.f32.partialorder %v3887_v55, 0.0 }
 0x353   :  { %v2348_v44 = vpop.eup %2347  ;;  %2367 = vrsqrt.f32 %v3916_v0  ;;  %v3949_v54 = vmul.f32 %v2346_v36, %v1249_v62  ;;  %v1319_v42 = vand.u32 2147483648, %v3887_v55  ;;  %v3961_v62 = vadd.f32 1e-09, %v3933_v4  ;;  %v3963_v36 = vpop.xlane.xlu0 %1181 }
 0x354   :  { %v2350_v20 = vpop.eup %2349  ;;  %2369 = vrsqrt.f32 %v3919_v15  ;;  %v1224_v39 = vmul.f32 %v2348_v44, %v3825_v35  ;;  %4766 = vst [vmem:[#allocation16_spill] sm:$0xff] %v3963_v36  ;;  %vm1372_vm10 = vcmp.eq.f32.partialorder %v3916_v0, inf  ;;  %vm1374_vm11 = vcmp.eq.f32.partialorder %v3916_v0, 0.0 }
 0x355   :  { %v1308_v61 = vmul.f32 %v2350_v20, %v3839_v2  ;;  %v2352_v6 = vpop.eup %2351  ;;  %2371 = vrcp.f32 %v1205_v7  ;;  %v1375_v44 = vand.u32 2147483648, %v3916_v0  ;;  %vm1323_vm12 = vcmp.eq.f32.partialorder %v3919_v15, inf }
 0x356   :  { %v2354_v17 = vpop.eup %2353  ;;  %v3975_v7 = vadd.f32 1e-09, %v3947_v45  ;;  %vm1325_vm13 = vcmp.eq.f32.partialorder %v3919_v15, 0.0  ;;  %vm1379_vm14 = vcmp.eq.f32.partialorder %v3961_v62, inf  ;;  %vm1381_vm15 = vcmp.eq.f32.partialorder %v3961_v62, 0.0 }
 0x357   :  { %v1310_v1 = vsel %vm1309_vm4, %v3839_v2, %v1308_v61  ;;  %v2356_v60 = vpop.eup %2355  ;;  %v1364_v28 = vmul.f32 %v2354_v17, %v3854_v29  ;;  %v1213_v61 = vadd.f32 1.0, %v3933_v4  ;;  %v1240_v2 = vmul.f32 %v2352_v6, %v3831_v3 }
 0x358   :  { %v1313_v20 = vsel %vm1311_vm5, %v1312_v34, %v1310_v1  ;;  %v2358_v35 = vpop.eup %2357  ;;  %v3978_v1 = vmul.f32 %v1224_v39, %v3796_v21  ;;  %v3985_v3 = vmul.f32 %v3963_v36, %v3963_v36  ;;  %v1412_v21 = vmul.f32 %v2356_v60, %v3903_v63 }
 0x359   :  { %v2360_v10 = vpop.eup %2359  ;;  %2373 = vrcp.f32 %v1313_v20  ;;  %v1366_v34 = vsel %vm1365_vm6, %v3854_v29, %v1364_v28  ;;  %v1226_v28 = vmul.f32 %v2358_v35, %v3858_v33  ;;  %v1206_v20 = vadd.f32 1.0, %v3947_v45 }
 0x35a   :  { %v2362_v17 = vpop.eup %2361  ;;  %v1369_v31 = vsel %vm1367_vm7, %v1368_v23, %v1366_v34  ;;  %2375 = vrsqrt.f32 %v3961_v62  ;;  %v1326_v23 = vand.u32 2147483648, %v3919_v15  ;;  %v3993_v34 = vmul.f32 %v2360_v10, %v1250_v48 }
 0x35b   :  { %v2364_v6 = vpop.eup %2363  ;;  %2377 = vrcp.f32 %v1369_v31  ;;  %v3995_v36 = vmul.f32 %v2362_v17, %v1258_v5  ;;  %v1259_v31 = vmul.f32 %v1240_v2, %v3809_v52  ;;  %v4005_v60 = vadd.f32 1e-09, %v3985_v3 }
 0x35c   :  { %v2366_v49 = vpop.eup %2365  ;;  %v1315_v29 = vmul.f32 %v2364_v6, %v3887_v55  ;;  %2379 = vrcp.f32 %v1213_v61  ;;  %v1423_v10 = vmul.f32 %v3922_v11, %v2867_v50  ;;  %v1252_v48 = vmul.f32 %v1226_v28, %v3841_v59 }
 0x35d   :  { %v2368_v39 = vpop.eup %2367  ;;  %2381 = vrsqrt.f32 %v3975_v7  ;;  %v1242_v35 = vmul.f32 %v2366_v49, %v3891_v22  ;;  %v1382_v11 = vand.u32 2147483648, %v3961_v62  ;;  %vm1330_vm1 = vcmp.eq.f32.partialorder %v3975_v7, inf }
 0x35e   :  { %v1317_v33 = vsel %vm1316_vm8, %v3887_v55, %v1315_v29  ;;  %v1371_v63 = vmul.f32 %v2368_v39, %v3916_v0  ;;  %v2370_v5 = vpop.eup %2369  ;;  %2383 = vrcp.f32 %v1206_v20  ;;  %v1333_v49 = vand.u32 2147483648, %v3975_v7 }
 0x35f   :  { %v1320_v52 = vsel %vm1318_vm9, %v1319_v42, %v1317_v33  ;;  %v1322_v2 = vmul.f32 %v2370_v5, %v3919_v15  ;;  %v2372_v17 = vpop.eup %2371  ;;  %vm1332_vm2 = vcmp.eq.f32.partialorder %v3975_v7, 0.0  ;;  %v1214_v22 = vadd.f32 1.0, %v3985_v3 }
 0x360   :  { %2385 = vrcp.f32 %v1320_v52  ;;  %v1373_v61 = vsel %vm1372_vm10, %v3916_v0, %v1371_v63  ;;  %v4030_v42 = vadd.f32 %v1423_v10, %v3440_v27  ;;  %v1424_v28 = vmul.f32 %v3873_v13, %v2848_v25 }
 0x361   :  { %v1376_v59 = vsel %vm1374_vm11, %v1375_v44, %v1373_v61  ;;  %2387 = vrsqrt.f32 %v4005_v60  ;;  %v1324_v55 = vsel %vm1323_vm12, %v3919_v15, %v1322_v2  ;;  %v1260_v44 = vmul.f32 %v1242_v35, %v3871_v9 }
 0x362   :  { %2389 = vrcp.f32 %v1376_v59  ;;  %v1327_v6 = vsel %vm1325_vm13, %v1326_v23, %v1324_v55  ;;  %v1431_v20 = vmul.f32 %v3941_v41, %v2869_v56  ;;  %v1228_v39 = vmul.f32 %v2372_v17, %v3900_v47 }
 0x363   :  { %v2374_v0 = vpop.eup %2373  ;;  %2391 = vrcp.f32 %v1327_v6  ;;  %v1455_v27 = vsel %vm601_vm0, %v4030_v42, -inf  ;;  %v1432_v33 = vmul.f32 %v3936_v58, %v2878_v8  ;;  %v4046_v23 = vadd.f32 %v1424_v28, %v3415_v14 }
 0x364   :  { %v2376_v29 = vpop.eup %2375  ;;  %1456 = vmax.xlane.f32.xlu1 %v1455_v27  ;;  %v4049_v13 = vadd.f32 %v1431_v20, %v3461_v37  ;;  %v1425_v47 = vmul.f32 %v3949_v54, %v2893_v19  ;;  %2393 = vrcp.f32 %v1214_v22  ;;  %vm1386_vm3 = vcmp.eq.f32.partialorder %v4005_v60, inf }
 0x365   :  { %v2378_v9 = vpop.eup %2377  ;;  %v1378_v15 = vmul.f32 %v2376_v29, %v3961_v62  ;;  %v4055_v63 = vadd.f32 %v1432_v33, %v3467_v24  ;;  %v1433_v58 = vmul.f32 %v1412_v21, %v2913_v43  ;;  %v1400_v5 = vmul.f32 %v2374_v0, %v3978_v1 }
 0x366   :  { %v2380_v41 = vpop.eup %2379  ;;  %v1458_v37 = vsel %vm601_vm0, %v4046_v23, -inf  ;;  %v1479_v54 = vsel %vm601_vm0, %v4049_v13, -inf  ;;  %v1416_v52 = vmul.f32 %v2378_v9, %v1259_v31  ;;  %v4070_v21 = vadd.f32 %v1425_v47, %v3471_v26 }
 0x367   :  { %v2382_v10 = vpop.eup %2381  ;;  %v1380_v14 = vsel %vm1379_vm14, %v3961_v62, %v1378_v15  ;;  %1459 = vmax.xlane.f32.xlu0 %v1458_v37  ;;  %v1482_v61 = vsel %vm601_vm0, %v4055_v63, -inf  ;;  %v4075_v2 = vadd.f32 %v1433_v58, %v3481_v32  ;;  %v1426_v31 = vmul.f32 %v3993_v34, %v2940_v16  ;;  %v4770_v37 = vld [vmem:[#allocation4_spill] sm:$0xff] }
 0x368   :  { %v1383_v24 = vsel %vm1381_vm15, %v1382_v11, %v1380_v14  ;;  %v1329_v35 = vmul.f32 %v2382_v10, %v3975_v7  ;;  %v2384_v1 = vpop.eup %2383  ;;  %1480 = vmax.xlane.f32.xlu1 %v1479_v54  ;;  %v1253_v11 = vmul.f32 %v1228_v39, %v3877_v53  ;;  %v1461_v17 = vsel %vm601_vm0, %v4070_v21, -inf  ;;  %v4768_v10 = vld [vmem:[#allocation14_spill] sm:$0xff] }
 0x369   :  { %2395 = vrcp.f32 %v1383_v24  ;;  %v1434_v59 = vmul.f32 %v3995_v36, %v2969_v46  ;;  %vm1388_vm4 = vcmp.eq.f32.partialorder %v4005_v60, 0.0  ;;  %v4091_v34 = vadd.f32 %v1426_v31, %v3504_v18  ;;  %v4771_v24 = vld [vmem:[#allocation15_spill] sm:$0xff] }
 0x36a   :  { %v2386_v62 = vpop.eup %2385  ;;  %v1331_v26 = vsel %vm1330_vm1, %v3975_v7, %v1329_v35  ;;  %v1389_v6 = vand.u32 2147483648, %v4005_v60  ;;  %v1485_v36 = vsel %vm601_vm0, %v4075_v2, -inf  ;;  %v1435_v18 = vmul.f32 %v1416_v52, %v3048_v51 }
 0x36b   :  { %v2388_v55 = vpop.eup %2387  ;;  %v1402_v22 = vmul.f32 %v2386_v62, %v1252_v48  ;;  %v1334_v32 = vsel %vm1332_vm2, %v1333_v49, %v1331_v26  ;;  %1483 = vmax.xlane.f32.xlu0 %v1482_v61  ;;  %v4098_v7 = vadd.f32 %v1434_v59, %v3507_v57  ;;  %v1427_v48 = vmul.f32 %v1400_v5, %v3003_v30  ;;  %v4769_v5 = vld [vmem:[#allocation9_spill] sm:$0xff]  ;;  %v4772_v61 = vld [vmem:[#allocation8_spill] sm:$0xff]  ;;  %v4773_v26 = vld [vmem:[#allocation10_spill] sm:$0xff] }
 0x36c   :  { %v2390_v53 = vpop.eup %2389  ;;  %2397 = vrcp.f32 %v1334_v32  ;;  %v1385_v0 = vmul.f32 %v2388_v55, %v4005_v60  ;;  %1462 = vmax.xlane.f32.xlu1 %v1461_v17  ;;  %v1244_v20 = vmul.f32 %v2380_v41, %v3933_v4  ;;  %v1464_v39 = vsel %vm601_vm0, %v4091_v34, -inf  ;;  %v4767_v41 = vld [vmem:[#allocation3_spill] sm:$0xff]  ;;  %v4774_v59 = vld [vmem:[#allocation5_spill] sm:$0xff]  ;;  %v4775_v32 = vld [vmem:[#allocation16_spill] sm:$0xff] }
 0x36d   :  { %v1418_v28 = vmul.f32 %v2390_v53, %v1260_v44  ;;  %v2392_v49 = vpop.eup %2391  ;;  %v1428_v44 = vmul.f32 %v1402_v22, %v3067_v12  ;;  %v4112_v33 = vadd.f32 %v1427_v48, %v3523_v40  ;;  %v1230_v4 = vmul.f32 %v2384_v1, %v3947_v45 }
 0x36e   :  { %v1387_v29 = vsel %vm1386_vm3, %v4005_v60, %v1385_v0  ;;  %v1404_v27 = vmul.f32 %v2392_v49, %v1253_v11  ;;  %v2394_v9 = vpop.eup %2393  ;;  %v1488_v15 = vsel %vm601_vm0, %v4098_v7, -inf  ;;  %v4118_v47 = vadd.f32 %v1435_v18, %v3517_v38  ;;  %v4776_v0 = vld [vmem:[#allocation11_spill] sm:$0xff] }
 0x36f   :  { %v1390_v57 = vsel %vm1388_vm4, %v1389_v6, %v1387_v29  ;;  %1486 = vmax.xlane.f32.xlu0 %v1485_v36  ;;  %v1436_v58 = vmul.f32 %v1418_v28, %v4767_v41  ;;  %v1261_v60 = vmul.f32 %v1244_v20, %v4768_v10  ;;  %v1467_v40 = vsel %vm601_vm0, %v4112_v33, -inf  ;;  %v4777_v36 = vld [vmem:[#allocation6_spill] sm:$0xff]  ;;  %v4778_v20 = vld [vmem:[#allocation12_spill] sm:$0xff] }
 0x370   :  { %2399 = vrcp.f32 %v1390_v57  ;;  %1465 = vmax.xlane.f32.xlu1 %v1464_v39  ;;  %v4125_v14 = vadd.f32 %v1428_v44, %v4769_v5  ;;  %v1429_v54 = vmul.f32 %v1404_v27, %v4770_v37  ;;  %v1254_v35 = vmul.f32 %v1230_v4, %v4771_v24  ;;  %v4779_v44 = vld [vmem:[#allocation7_spill] sm:$0xff] }
 0x371   :  { %v1246_v38 = vmul.f32 %v2394_v9, %v3985_v3  ;;  %v1491_v1 = vsel %vm601_vm0, %v4118_v47, -inf  ;;  %v4133_v31 = vadd.f32 %v1436_v58, %v4772_v61  ;;  %v4780_v9 = vld [vmem:[#allocation13_spill] sm:$0xff] }
 0x372   :  { %v1470_v11 = vsel %vm601_vm0, %v4125_v14, -inf  ;;  %v4138_v17 = vadd.f32 %v1429_v54, %v4773_v26 }
 0x373   :  { %v2396_v45 = vpop.eup %2395  ;;  %1489 = vmax.xlane.f32.xlu0 %v1488_v15  ;;  %v1262_v3 = vmul.f32 %v1246_v38, %v4775_v32  ;;  %v1494_v53 = vsel %vm601_vm0, %v4133_v31, -inf }
 0x374   :  { %v1420_v52 = vmul.f32 %v2396_v45, %v1261_v60  ;;  %1468 = vmax.xlane.f32.xlu1 %v1467_v40  ;;  %v1473_v18 = vsel %vm601_vm0, %v4138_v17, -inf }
 0x376   :  { %v2398_v62 = vpop.eup %2397  ;;  %v1437_v55 = vmul.f32 %v1420_v52, %v4774_v59 }
 0x377   :  { %v1406_v22 = vmul.f32 %v2398_v62, %v1254_v35  ;;  %1492 = vmax.xlane.f32.xlu0 %v1491_v1 }
 0x378   :  { %1471 = vmax.xlane.f32.xlu1 %v1470_v11  ;;  %v4145_v6 = vadd.f32 %v1437_v55, %v4776_v0 }
 0x379   :  { %v1430_v28 = vmul.f32 %v1406_v22, %v4777_v36 }
 0x37a   :  { %v2400_v48 = vpop.eup %2399  ;;  %v1497_v39 = vsel %vm601_vm0, %v4145_v6, -inf }
 0x37b   :  { %v1422_v49 = vmul.f32 %v2400_v48, %v1262_v3  ;;  %v4151_v29 = vadd.f32 %v1430_v28, %v4778_v20  ;;  %1495 = vmax.xlane.f32.xlu0 %v1494_v53 }
 0x37c   :  { %1474 = vmax.xlane.f32.xlu1 %v1473_v18 }
 0x37d   :  { %v1438_v27 = vmul.f32 %v1422_v49, %v4779_v44  ;;  %v1476_v57 = vsel %vm601_vm0, %v4151_v29, -inf }
 0x37f   :  { %v4159_v4 = vadd.f32 %v1438_v27, %v4780_v9  ;;  %1498 = vmax.xlane.f32.xlu0 %v1497_v39 }
 0x380   :  { %1477 = vmax.xlane.f32.xlu1 %v1476_v57 }
 0x381   :  { %v1500_v15 = vsel %vm601_vm0, %v4159_v4, -inf }
 0x383   :  { %1501 = vmax.xlane.f32.xlu0 %v1500_v15 }
 0x3f1   :  { %v1457_v58 = vpop.xlane.xlu1 %1456 }
 0x3f2   :  { %v1503_v10 = vsub.f32 %v4030_v42, %v1457_v58 }
 0x3f4   :  { %v1519_v60 = vmul.f32 1.442695, %v1503_v10  ;;  %v1460_v40 = vpop.xlane.xlu0 %1459 }
 0x3f5   :  { %v1504_v5 = vsub.f32 %v4046_v23, %v1460_v40  ;;  %v1481_v54 = vpop.xlane.xlu1 %1480 }
 0x3f6   :  { %2401 = vpow2.f32 %v1519_v60  ;;  %v1511_v45 = vsub.f32 %v4049_v13, %v1481_v54 }
 0x3f7   :  { %v1521_v52 = vmul.f32 1.442695, %v1504_v5 }
 0x3f8   :  { %v1535_v24 = vmul.f32 1.442695, %v1511_v45  ;;  %v1484_v35 = vpop.xlane.xlu0 %1483 }
 0x3f9   :  { %2403 = vpow2.f32 %v1521_v52  ;;  %v1512_v38 = vsub.f32 %v4055_v63, %v1484_v35  ;;  %v1463_v1 = vpop.xlane.xlu1 %1462 }
 0x3fa   :  { %2405 = vpow2.f32 %v1535_v24  ;;  %v1505_v61 = vsub.f32 %v4070_v21, %v1463_v1 }
 0x3fb   :  { %v1537_v62 = vmul.f32 1.442695, %v1512_v38 }
 0x3fc   :  { %v1523_v42 = vmul.f32 1.442695, %v1505_v61  ;;  %v1487_v11 = vpop.xlane.xlu0 %1486 }
 0x3fd   :  { %2407 = vpow2.f32 %v1537_v62  ;;  %v1513_v23 = vsub.f32 %v4075_v2, %v1487_v11  ;;  %v1466_v26 = vpop.xlane.xlu1 %1465 }
 0x3fe   :  { %2409 = vpow2.f32 %v1523_v42  ;;  %v1506_v13 = vsub.f32 %v4091_v34, %v1466_v26 }
 0x3ff   :  { %v1539_v55 = vmul.f32 1.442695, %v1513_v23 }
 0x400   :  { %v4170_v22 = vpop.eup %2401  ;;  %v1525_v32 = vmul.f32 1.442695, %v1506_v13  ;;  %v1490_v3 = vpop.xlane.xlu0 %1489 }
 0x401   :  { %2411 = vpow2.f32 %v1539_v55  ;;  %v1514_v63 = vsub.f32 %v4098_v7, %v1490_v3  ;;  %v1469_v53 = vpop.xlane.xlu1 %1468  ;;  %v1551_v21 = vsel %vm601_vm0, %v4170_v22, 0.0 }
 0x402   :  { %2413 = vpow2.f32 %v1525_v32  ;;  %v1507_v0 = vsub.f32 %v4112_v33, %v1469_v53  ;;  %1552 = vadd.xlane.f32.xlu1 %v1551_v21 }
 0x403   :  { %v4176_v2 = vpop.eup %2403  ;;  %v1541_v28 = vmul.f32 1.442695, %v1514_v63 }
 0x404   :  { %v4178_v34 = vpop.eup %2405  ;;  %v1527_v48 = vmul.f32 1.442695, %v1507_v0  ;;  %v1493_v18 = vpop.xlane.xlu0 %1492  ;;  %v1554_v49 = vsel %vm601_vm0, %v4176_v2, 0.0 }
 0x405   :  { %2415 = vpow2.f32 %v1541_v28  ;;  %v1515_v7 = vsub.f32 %v4118_v47, %v1493_v18  ;;  %1555 = vadd.xlane.f32.xlu0 %v1554_v49  ;;  %v1472_v20 = vpop.xlane.xlu1 %1471  ;;  %v1575_v39 = vsel %vm601_vm0, %v4178_v34, 0.0 }
 0x406   :  { %2417 = vpow2.f32 %v1527_v48  ;;  %v1508_v33 = vsub.f32 %v4125_v14, %v1472_v20  ;;  %1576 = vadd.xlane.f32.xlu1 %v1575_v39 }
 0x407   :  { %v4186_v27 = vpop.eup %2407  ;;  %v1543_v57 = vmul.f32 1.442695, %v1515_v7 }
 0x408   :  { %v4188_v9 = vpop.eup %2409  ;;  %v1529_v15 = vmul.f32 1.442695, %v1508_v33  ;;  %v1496_v58 = vpop.xlane.xlu0 %1495  ;;  %v1578_v10 = vsel %vm601_vm0, %v4186_v27, 0.0 }
 0x409   :  { %2419 = vpow2.f32 %v1543_v57  ;;  %v1516_v47 = vsub.f32 %v4133_v31, %v1496_v58  ;;  %1579 = vadd.xlane.f32.xlu0 %v1578_v10  ;;  %v1475_v60 = vpop.xlane.xlu1 %1474  ;;  %v1557_v40 = vsel %vm601_vm0, %v4188_v9, 0.0 }
 0x40a   :  { %2421 = vpow2.f32 %v1529_v15  ;;  %v1509_v14 = vsub.f32 %v4138_v17, %v1475_v60  ;;  %1558 = vadd.xlane.f32.xlu1 %v1557_v40 }
 0x40b   :  { %v4196_v5 = vpop.eup %2411  ;;  %v1545_v54 = vmul.f32 1.442695, %v1516_v47 }
 0x40c   :  { %v4198_v45 = vpop.eup %2413  ;;  %v1531_v52 = vmul.f32 1.442695, %v1509_v14  ;;  %v1499_v24 = vpop.xlane.xlu0 %1498  ;;  %v1581_v35 = vsel %vm601_vm0, %v4196_v5, 0.0 }
 0x40d   :  { %2423 = vpow2.f32 %v1545_v54  ;;  %v1517_v31 = vsub.f32 %v4145_v6, %v1499_v24  ;;  %1582 = vadd.xlane.f32.xlu0 %v1581_v35  ;;  %v1478_v38 = vpop.xlane.xlu1 %1477  ;;  %v1560_v1 = vsel %vm601_vm0, %v4198_v45, 0.0 }
 0x40e   :  { %2425 = vpow2.f32 %v1531_v52  ;;  %v1510_v17 = vsub.f32 %v4151_v29, %v1478_v38  ;;  %1561 = vadd.xlane.f32.xlu1 %v1560_v1 }
 0x40f   :  { %v4206_v61 = vpop.eup %2415  ;;  %v1547_v62 = vmul.f32 1.442695, %v1517_v31 }
 0x410   :  { %v4208_v42 = vpop.eup %2417  ;;  %v1533_v11 = vmul.f32 1.442695, %v1510_v17  ;;  %v1502_v23 = vpop.xlane.xlu0 %1501  ;;  %v1584_v26 = vsel %vm601_vm0, %v4206_v61, 0.0 }
 0x411   :  { %2427 = vpow2.f32 %v1547_v62  ;;  %v1518_v6 = vsub.f32 %v4159_v4, %v1502_v23  ;;  %1585 = vadd.xlane.f32.xlu0 %v1584_v26  ;;  %v1563_v13 = vsel %vm601_vm0, %v4208_v42, 0.0 }
 0x412   :  { %2429 = vpow2.f32 %v1533_v11  ;;  %1564 = vadd.xlane.f32.xlu1 %v1563_v13 }
 0x413   :  { %v4215_v29 = vpop.eup %2419  ;;  %v1549_v55 = vmul.f32 1.442695, %v1518_v6 }
 0x414   :  { %v4217_v32 = vpop.eup %2421  ;;  %v1587_v3 = vsel %vm601_vm0, %v4215_v29, 0.0 }
 0x415   :  { %2431 = vpow2.f32 %v1549_v55  ;;  %1588 = vadd.xlane.f32.xlu0 %v1587_v3  ;;  %v1566_v63 = vsel %vm601_vm0, %v4217_v32, 0.0 }
 0x416   :  { %1567 = vadd.xlane.f32.xlu1 %v1566_v63 }
 0x417   :  { %v4223_v4 = vpop.eup %2423 }
 0x418   :  { %v4225_v53 = vpop.eup %2425  ;;  %v1590_v21 = vsel %vm601_vm0, %v4223_v4, 0.0 }
 0x419   :  { %1591 = vadd.xlane.f32.xlu0 %v1590_v21  ;;  %v1569_v0 = vsel %vm601_vm0, %v4225_v53, 0.0 }
 0x41a   :  { %1570 = vadd.xlane.f32.xlu1 %v1569_v0 }
 0x41b   :  { %v4231_v28 = vpop.eup %2427 }
 0x41c   :  { %v4233_v48 = vpop.eup %2429  ;;  %v1593_v18 = vsel %vm601_vm0, %v4231_v28, 0.0 }
 0x41d   :  { %1594 = vadd.xlane.f32.xlu0 %v1593_v18  ;;  %v1572_v49 = vsel %vm601_vm0, %v4233_v48, 0.0 }
 0x41e   :  { %1573 = vadd.xlane.f32.xlu1 %v1572_v49 }
 0x41f   :  { %v4239_v7 = vpop.eup %2431 }
 0x420   :  { %v1596_v20 = vsel %vm601_vm0, %v4239_v7, 0.0 }
 0x421   :  { %1597 = vadd.xlane.f32.xlu0 %v1596_v20 }
 0x48f   :  { %v1553_v39 = vpop.xlane.xlu1 %1552 }
 0x490   :  { %2433 = vrcp.f32 %v1553_v39 }
 0x492   :  { %v1556_v33 = vpop.xlane.xlu0 %1555 }
 0x493   :  { %2435 = vrcp.f32 %v1556_v33  ;;  %v1577_v57 = vpop.xlane.xlu1 %1576 }
 0x494   :  { %2437 = vrcp.f32 %v1577_v57 }
 0x496   :  { %v1580_v15 = vpop.xlane.xlu0 %1579 }
 0x497   :  { %2439 = vrcp.f32 %v1580_v15  ;;  %v1559_v58 = vpop.xlane.xlu1 %1558 }
 0x498   :  { %2441 = vrcp.f32 %v1559_v58 }
 0x49a   :  { %v2434_v10 = vpop.eup %2433  ;;  %v1583_v47 = vpop.xlane.xlu0 %1582 }
 0x49b   :  { %2443 = vrcp.f32 %v1583_v47  ;;  %v1562_v60 = vpop.xlane.xlu1 %1561  ;;  %v1600_v40 = vmul.f32 %v2434_v10, %v4170_v22 }
 0x49c   :  { %2445 = vrcp.f32 %v1562_v60 }
 0x49d   :  { %v2436_v14 = vpop.eup %2435  ;;  %v1631_v54 = vmul.f32 %v1600_v40, %v2867_v50 }
 0x49e   :  { %v2438_v52 = vpop.eup %2437  ;;  %v1586_v24 = vpop.xlane.xlu0 %1585  ;;  %v1602_v35 = vmul.f32 %v2436_v14, %v4176_v2 }
 0x49f   :  { %2447 = vrcp.f32 %v1586_v24  ;;  %v1565_v31 = vpop.xlane.xlu1 %1564  ;;  %v1647_v38 = vsel %vm601_vm0, %v1631_v54, 0.0  ;;  %v1616_v1 = vmul.f32 %v2438_v52, %v4178_v34 }
 0x4a0   :  { %2449 = vrcp.f32 %v1565_v31  ;;  %1648 = vadd.xlane.f32.xlu1 %v1647_v38  ;;  %v1632_v17 = vmul.f32 %v1602_v35, %v2848_v25 }
 0x4a1   :  { %v2440_v62 = vpop.eup %2439  ;;  %v1639_v22 = vmul.f32 %v1616_v1, %v2869_v56 }
 0x4a2   :  { %v2442_v11 = vpop.eup %2441  ;;  %v1589_v23 = vpop.xlane.xlu0 %1588  ;;  %v1650_v50 = vsel %vm601_vm0, %v1632_v17, 0.0  ;;  %v1618_v26 = vmul.f32 %v2440_v62, %v4186_v27 }
 0x4a3   :  { %2451 = vrcp.f32 %v1589_v23  ;;  %1651 = vadd.xlane.f32.xlu0 %v1650_v50  ;;  %v1568_v2 = vpop.xlane.xlu1 %1567  ;;  %v1671_v6 = vsel %vm601_vm0, %v1639_v22, 0.0  ;;  %v1604_v34 = vmul.f32 %v2442_v11, %v4188_v9 }
 0x4a4   :  { %2453 = vrcp.f32 %v1568_v2  ;;  %1672 = vadd.xlane.f32.xlu1 %v1671_v6  ;;  %v1640_v25 = vmul.f32 %v1618_v26, %v2878_v8 }
 0x4a5   :  { %v2444_v13 = vpop.eup %2443  ;;  %v1633_v56 = vmul.f32 %v1604_v34, %v2893_v19 }
 0x4a6   :  { %v2446_v55 = vpop.eup %2445  ;;  %v1592_v3 = vpop.xlane.xlu0 %1591  ;;  %v1674_v63 = vsel %vm601_vm0, %v1640_v25, 0.0  ;;  %v1620_v27 = vmul.f32 %v2444_v13, %v4196_v5  ;;  %v4781_v25 = vlaneseq }
 0x4a7   :  { %2455 = vrcp.f32 %v1592_v3  ;;  %1675 = vadd.xlane.f32.xlu0 %v1674_v63  ;;  %v1571_v21 = vpop.xlane.xlu1 %1570  ;;  %v1653_v0 = vsel %vm601_vm0, %v1633_v56, 0.0  ;;  %v1606_v9 = vmul.f32 %v2446_v55, %v4198_v45 }
 0x4a8   :  { %2457 = vrcp.f32 %v1571_v21  ;;  %1654 = vadd.xlane.f32.xlu1 %v1653_v0  ;;  %v1641_v8 = vmul.f32 %v1620_v27, %v2913_v43  ;;  %v1968_v13 = vand.u32 127, %v4781_v25 }
 0x4a9   :  { %v2448_v18 = vpop.eup %2447  ;;  %v1634_v19 = vmul.f32 %v1606_v9, %v2940_v16 }
 0x4aa   :  { %v2450_v49 = vpop.eup %2449  ;;  %v1595_v20 = vpop.xlane.xlu0 %1594  ;;  %v1677_v39 = vsel %vm601_vm0, %v1641_v8, 0.0  ;;  %v1622_v5 = vmul.f32 %v2448_v18, %v4206_v61  ;;  %v1973_v0 = vadd.s32 4294967288, %v1968_v13  ;;  %v1980_v18 = vadd.s32 4294967280, %v1968_v13 }
 0x4ab   :  { %2459 = vrcp.f32 %v1595_v20  ;;  %1678 = vadd.xlane.f32.xlu0 %v1677_v39  ;;  %v1574_v33 = vpop.xlane.xlu1 %1573  ;;  %v1656_v57 = vsel %vm601_vm0, %v1634_v19, 0.0  ;;  %v1608_v45 = vmul.f32 %v2450_v49, %v4208_v42  ;;  %v1987_v39 = vadd.s32 4294967272, %v1968_v13 }
 0x4ac   :  { %2461 = vrcp.f32 %v1574_v33  ;;  %1657 = vadd.xlane.f32.xlu1 %v1656_v57  ;;  %v1642_v43 = vmul.f32 %v1622_v5, %v2969_v46  ;;  %v1994_v5 = vadd.s32 4294967264, %v1968_v13 }
 0x4ad   :  { %v2452_v15 = vpop.eup %2451  ;;  %v1635_v16 = vmul.f32 %v1608_v45, %v3003_v30  ;;  %v2001_v45 = vadd.s32 4294967256, %v1968_v13 }
 0x4ae   :  { %v2454_v58 = vpop.eup %2453  ;;  %v1598_v10 = vpop.xlane.xlu0 %1597  ;;  %v1680_v47 = vsel %vm601_vm0, %v1642_v43, 0.0  ;;  %v1624_v61 = vmul.f32 %v2452_v15, %v4215_v29  ;;  %v4782_v43 = vld [vmem:[#allocation2_spill] sm:$0xff] }
 0x4af   :  { %2463 = vrcp.f32 %v1598_v10  ;;  %1681 = vadd.xlane.f32.xlu0 %v1680_v47  ;;  %v1659_v60 = vsel %vm601_vm0, %v1635_v16, 0.0  ;;  %v1610_v40 = vmul.f32 %v2454_v58, %v4217_v32  ;;  %v4364_v15 = vsub.s32 %v1968_v13, %v4782_v43 }
 0x4b0   :  { %1660 = vadd.xlane.f32.xlu1 %v1659_v60  ;;  %v1643_v42 = vmul.f32 %v1624_v61, %v3048_v51  ;;  %v2008_v58 = vadd.s32 4294967248, %v1968_v13  ;;  %v2015_v10 = vadd.s32 4294967240, %v1968_v13  ;;  %v4370_v61 = vsub.s32 %v1973_v0, %v4782_v43 }
 0x4b1   :  { %v2456_v14 = vpop.eup %2455  ;;  %v1636_v46 = vmul.f32 %v1610_v40, %v3067_v12  ;;  %v4373_v60 = vsub.s32 %v1980_v18, %v4782_v43 }
 0x4b2   :  { %v2458_v54 = vpop.eup %2457  ;;  %v1683_v30 = vsel %vm601_vm0, %v1643_v42, 0.0  ;;  %v1626_v52 = vmul.f32 %v2456_v14, %v4223_v4  ;;  %v4382_v14 = vsub.s32 %v1987_v39, %v4782_v43 }
 0x4b3   :  { %1684 = vadd.xlane.f32.xlu0 %v1683_v30  ;;  %v1662_v29 = vsel %vm601_vm0, %v1636_v46, 0.0  ;;  %v1612_v24 = vmul.f32 %v2458_v54, %v4225_v53  ;;  %v4385_v46 = vsub.s32 %v1994_v5, %v4782_v43 }
 0x4b4   :  { %1663 = vadd.xlane.f32.xlu1 %v1662_v29  ;;  %v1644_v35 = vmul.f32 %v1626_v52, %v4767_v41  ;;  %v4395_v52 = vsub.s32 %v2001_v45, %v4782_v43 }
 0x4b5   :  { %v2460_v32 = vpop.eup %2459  ;;  %v1637_v31 = vmul.f32 %v1612_v24, %v4770_v37  ;;  %v4400_v24 = vsub.s32 %v2008_v58, %v4782_v43 }
 0x4b6   :  { %v2462_v51 = vpop.eup %2461  ;;  %v1686_v38 = vsel %vm601_vm0, %v1644_v35, 0.0  ;;  %v1628_v12 = vmul.f32 %v2460_v32, %v4231_v28  ;;  %v4403_v35 = vsub.s32 %v2015_v10, %v4782_v43 }
 0x4b7   :  { %1687 = vadd.xlane.f32.xlu0 %v1686_v38  ;;  %v1665_v1 = vsel %vm601_vm0, %v1637_v31, 0.0  ;;  %v1614_v4 = vmul.f32 %v2462_v51, %v4233_v48  ;;  %4783 = vst [vmem:[#allocation3_spill] sm:$0xff] %v4400_v24 }
 0x4b8   :  { %1666 = vadd.xlane.f32.xlu1 %v1665_v1  ;;  %v1645_v17 = vmul.f32 %v1628_v12, %v4774_v59  ;;  %4784 = vst [vmem:[#allocation14_spill] sm:$0xff] %v4403_v35 }
 0x4b9   :  { %v2464_v53 = vpop.eup %2463  ;;  %v1638_v62 = vmul.f32 %v1614_v4, %v4777_v36 }
 0x4ba   :  { %v1689_v41 = vsel %vm601_vm0, %v1645_v17, 0.0  ;;  %v1630_v37 = vmul.f32 %v2464_v53, %v4239_v7 }
 0x4bb   :  { %1690 = vadd.xlane.f32.xlu0 %v1689_v41  ;;  %v1668_v22 = vsel %vm601_vm0, %v1638_v62, 0.0 }
 0x4bc   :  { %1669 = vadd.xlane.f32.xlu1 %v1668_v22  ;;  %v1646_v28 = vmul.f32 %v1630_v37, %v4779_v44 }
 0x4be   :  { %v1692_v11 = vsel %vm601_vm0, %v1646_v28, 0.0 }
 0x4bf   :  { %1693 = vadd.xlane.f32.xlu0 %v1692_v11 }
 0x52d   :  { %v4291_v48 = vpop.xlane.xlu1 %1648 }
 0x52e   :  { %v4299_v36 = vmul.f32 %v4291_v48, %v4291_v48 }
 0x530   :  { %v4293_v23 = vpop.xlane.xlu0 %1651  ;;  %v4304_v50 = vadd.f32 1e-09, %v4299_v36  ;;  %v1711_v56 = vadd.f32 1.0, %v4299_v36 }
 0x531   :  { %v4295_v59 = vpop.xlane.xlu1 %1672  ;;  %v4308_v44 = vmul.f32 %v4293_v23, %v4293_v23 }
 0x532   :  { %v4314_v2 = vmul.f32 %v4295_v59, %v4295_v59  ;;  %2465 = vrsqrt.f32 %v4304_v50  ;;  %vm1793_vm0 = vcmp.eq.f32.partialorder %v4304_v50, inf  ;;  %vm1795_vm5 = vcmp.eq.f32.partialorder %v4304_v50, 0.0 }
 0x533   :  { %v4320_v34 = vadd.f32 1e-09, %v4308_v44  ;;  %v1712_v33 = vadd.f32 1.0, %v4308_v44  ;;  %v1796_v31 = vand.u32 2147483648, %v4304_v50 }
 0x534   :  { %v4301_v7 = vpop.xlane.xlu0 %1675  ;;  %v4329_v3 = vadd.f32 1e-09, %v4314_v2  ;;  %v1719_v42 = vadd.f32 1.0, %v4314_v2 }
 0x535   :  { %v4310_v26 = vpop.xlane.xlu1 %1654  ;;  %v4326_v55 = vmul.f32 %v4301_v7, %v4301_v7  ;;  %2467 = vrsqrt.f32 %v4320_v34  ;;  %vm1800_vm6 = vcmp.eq.f32.partialorder %v4320_v34, inf  ;;  %vm1802_vm7 = vcmp.eq.f32.partialorder %v4320_v34, 0.0 }
 0x536   :  { %v4333_v63 = vmul.f32 %v4310_v26, %v4310_v26  ;;  %2469 = vrcp.f32 %v1711_v56  ;;  %v1803_v53 = vand.u32 2147483648, %v4320_v34  ;;  %vm1849_vm8 = vcmp.eq.f32.partialorder %v4329_v3, inf }
 0x537   :  { %v4343_v9 = vadd.f32 1e-09, %v4326_v55  ;;  %2471 = vrsqrt.f32 %v4329_v3  ;;  %v1720_v51 = vadd.f32 1.0, %v4326_v55  ;;  %vm1851_vm9 = vcmp.eq.f32.partialorder %v4329_v3, 0.0 }
 0x538   :  { %v4316_v6 = vpop.xlane.xlu0 %1678  ;;  %v4349_v19 = vadd.f32 1e-09, %v4333_v63  ;;  %v1713_v1 = vadd.f32 1.0, %v4333_v63  ;;  %v1852_v11 = vand.u32 2147483648, %v4329_v3 }
 0x539   :  { %v4337_v27 = vmul.f32 %v4316_v6, %v4316_v6  ;;  %v4339_v21 = vpop.xlane.xlu1 %1657  ;;  %2473 = vrsqrt.f32 %v4343_v9  ;;  %vm1856_vm10 = vcmp.eq.f32.partialorder %v4343_v9, inf  ;;  %vm1858_vm11 = vcmp.eq.f32.partialorder %v4343_v9, 0.0 }
 0x53a   :  { %v4353_v49 = vmul.f32 %v4339_v21, %v4339_v21  ;;  %2475 = vrsqrt.f32 %v4349_v19  ;;  %vm1807_vm12 = vcmp.eq.f32.partialorder %v4349_v19, inf  ;;  %vm1809_vm13 = vcmp.eq.f32.partialorder %v4349_v19, 0.0 }
 0x53b   :  { %v4356_v20 = vadd.f32 1e-09, %v4337_v27  ;;  %v1721_v22 = vadd.f32 1.0, %v4337_v27 }
 0x53c   :  { %v4345_v8 = vpop.xlane.xlu0 %1681  ;;  %v2466_v47 = vpop.eup %2465  ;;  %v4377_v40 = vadd.f32 1e-09, %v4353_v49  ;;  %v1714_v25 = vadd.f32 1.0, %v4353_v49 }
 0x53d   :  { %v4361_v57 = vmul.f32 %v4345_v8, %v4345_v8  ;;  %v4367_v16 = vpop.xlane.xlu1 %1660  ;;  %2477 = vrsqrt.f32 %v4356_v20  ;;  %v1792_v29 = vmul.f32 %v2466_v47, %v4304_v50  ;;  %v1810_v47 = vand.u32 2147483648, %v4349_v19 }
 0x53e   :  { %2479 = vrcp.f32 %v1712_v33  ;;  %v4392_v30 = vmul.f32 %v4367_v16, %v4367_v16  ;;  %v1859_v33 = vand.u32 2147483648, %v4343_v9  ;;  %vm1863_vm14 = vcmp.eq.f32.partialorder %v4356_v20, inf }
 0x53f   :  { %v4388_v54 = vadd.f32 1e-09, %v4361_v57  ;;  %v2468_v32 = vpop.eup %2467  ;;  %2481 = vrsqrt.f32 %v4377_v40  ;;  %v1794_v41 = vsel %vm1793_vm0, %v4304_v50, %v1792_v29  ;;  %vm1865_vm15 = vcmp.eq.f32.partialorder %v4356_v20, 0.0 }
 0x540   :  { %v4409_v38 = vpop.xlane.xlu0 %1684  ;;  %v2470_v12 = vpop.eup %2469  ;;  %2483 = vrcp.f32 %v1719_v42  ;;  %v4420_v62 = vadd.f32 1e-09, %v4392_v30  ;;  %v1799_v37 = vmul.f32 %v2468_v32, %v4320_v34  ;;  %v1797_v5 = vsel %vm1795_vm5, %v1796_v31, %v1794_v41 }
 0x541   :  { %v4414_v4 = vpop.xlane.xlu1 %1663  ;;  %v2472_v17 = vpop.eup %2471  ;;  %2485 = vrsqrt.f32 %v4388_v54  ;;  %v4430_v28 = vmul.f32 %v4409_v38, %v4409_v38  ;;  %v1728_v0 = vmul.f32 %v2470_v12, %v4299_v36  ;;  %vm1814_vm1 = vcmp.eq.f32.partialorder %v4377_v40, inf }
 0x542   :  { %2487 = vrcp.f32 %v1720_v51  ;;  %v4436_v13 = vmul.f32 %v4414_v4, %v4414_v4  ;;  %v1848_v18 = vmul.f32 %v2472_v17, %v4329_v3  ;;  %v1801_v36 = vsel %vm1800_vm6, %v4320_v34, %v1799_v37 }
 0x543   :  { %v2474_v56 = vpop.eup %2473  ;;  %2489 = vrcp.f32 %v1713_v1  ;;  %v4452_v43 = vadd.f32 1e-09, %v4430_v28  ;;  %v4462_v29 = vmul.f32 %v1728_v0, %v4291_v48  ;;  %v1804_v12 = vsel %vm1802_vm7, %v1803_v53, %v1801_v36 }
 0x544   :  { %v2476_v39 = vpop.eup %2475  ;;  %2491 = vrsqrt.f32 %v4420_v62  ;;  %v4454_v50 = vpop.xlane.xlu0 %1687  ;;  %v1855_v10 = vmul.f32 %v2474_v56, %v4343_v9  ;;  %v4459_v42 = vadd.f32 1e-09, %v4436_v13  ;;  %v1850_v32 = vsel %vm1849_vm8, %v4329_v3, %v1848_v18 }
 0x545   :  { %2493 = vrcp.f32 %v1721_v22  ;;  %v1806_v31 = vmul.f32 %v2476_v39, %v4349_v19  ;;  %v1722_v17 = vadd.f32 1.0, %v4361_v57  ;;  %v4474_v41 = vmul.f32 %v4454_v50, %v4454_v50  ;;  %v4480_v22 = vpop.xlane.xlu1 %1666 }
 0x546   :  { %2495 = vrcp.f32 %v1714_v25  ;;  %v1853_v53 = vsel %vm1851_vm9, %v1852_v11, %v1850_v32  ;;  %v1857_v25 = vsel %vm1856_vm10, %v4343_v9, %v1855_v10  ;;  %v1866_v56 = vand.u32 2147483648, %v4356_v20 }
 0x547   :  { %v2478_v45 = vpop.eup %2477  ;;  %2497 = vrcp.f32 %v1797_v5  ;;  %v1715_v18 = vadd.f32 1.0, %v4392_v30  ;;  %v4496_v11 = vadd.f32 1e-09, %v4474_v41  ;;  %v4500_v5 = vmul.f32 %v4480_v22, %v4480_v22 }
 0x548   :  { %v2480_v58 = vpop.eup %2479  ;;  %v1862_v1 = vmul.f32 %v2478_v45, %v4356_v20  ;;  %2499 = vrsqrt.f32 %v4452_v43  ;;  %v1860_v36 = vsel %vm1858_vm11, %v1859_v33, %v1857_v25  ;;  %vm1816_vm2 = vcmp.eq.f32.partialorder %v4377_v40, 0.0 }
 0x549   :  { %v2482_v51 = vpop.eup %2481  ;;  %v1730_v37 = vmul.f32 %v2480_v58, %v4308_v44  ;;  %2501 = vrsqrt.f32 %v4459_v42  ;;  %v1808_v44 = vsel %vm1807_vm12, %v4349_v19, %v1806_v31  ;;  %vm1870_vm3 = vcmp.eq.f32.partialorder %v4388_v54, inf }
 0x54a   :  { %v2484_v48 = vpop.eup %2483  ;;  %2503 = vrcp.f32 %v1804_v12  ;;  %v1813_v0 = vmul.f32 %v2482_v51, %v4377_v40  ;;  %v1864_v3 = vsel %vm1863_vm14, %v4356_v20, %v1862_v1  ;;  %v1811_v31 = vsel %vm1809_vm13, %v1810_v47, %v1808_v44  ;;  %v4511_v51 = vpop.xlane.xlu0 %1690 }
 0x54b   :  { %v2486_v34 = vpop.eup %2485  ;;  %2505 = vrcp.f32 %v1722_v17  ;;  %v1744_v32 = vmul.f32 %v2484_v48, %v4314_v2  ;;  %v1867_v9 = vsel %vm1865_vm15, %v1866_v56, %v1864_v3  ;;  %v1723_v1 = vadd.f32 1.0, %v4430_v28  ;;  %v4541_v3 = vpop.xlane.xlu1 %1669 }
 0x54c   :  { %v2488_v39 = vpop.eup %2487  ;;  %2507 = vrcp.f32 %v1853_v53  ;;  %v1869_v58 = vmul.f32 %v2486_v34, %v4388_v54  ;;  %v1815_v33 = vsel %vm1814_vm1, %v4377_v40, %v1813_v0  ;;  %v1817_v2 = vand.u32 2147483648, %v4377_v40 }
 0x54d   :  { %v2490_v45 = vpop.eup %2489  ;;  %2509 = vrsqrt.f32 %v4496_v11  ;;  %v4520_v19 = vadd.f32 1e-09, %v4500_v5  ;;  %v1873_v48 = vand.u32 2147483648, %v4388_v54  ;;  %v1716_v25 = vadd.f32 1.0, %v4436_v13 }
 0x54e   :  { %v2492_v10 = vpop.eup %2491  ;;  %2511 = vrcp.f32 %v1715_v18  ;;  %v1871_v20 = vsel %vm1870_vm3, %v4388_v54, %v1869_v58  ;;  %v1818_v53 = vsel %vm1816_vm2, %v1817_v2, %v1815_v33  ;;  %v4532_v56 = vmul.f32 %v4511_v51, %v4511_v51 }
 0x54f   :  { %v2494_v12 = vpop.eup %2493  ;;  %2513 = vrcp.f32 %v1860_v36  ;;  %v1820_v34 = vmul.f32 %v2492_v10, %v4420_v62  ;;  %v4535_v0 = vmul.f32 %v1730_v37, %v4293_v23  ;;  %v4538_v18 = vmul.f32 %v1744_v32, %v4295_v59  ;;  %v4548_v10 = vpop.xlane.xlu0 %1693 }
 0x550   :  { %v2496_v17 = vpop.eup %2495  ;;  %2515 = vrcp.f32 %v1811_v31  ;;  %vm1872_vm4 = vcmp.eq.f32.partialorder %v4388_v54, 0.0  ;;  %v4544_v36 = vmul.f32 %v2488_v39, %v4326_v55  ;;  %vm1821_vm0 = vcmp.eq.f32.partialorder %v4420_v62, inf }
 0x551   :  { %v4522_v47 = vpop.eup %2497  ;;  %2517 = vrcp.f32 %v1867_v9  ;;  %v1874_v58 = vsel %vm1872_vm4, %v1873_v48, %v1871_v20  ;;  %v1822_v59 = vsel %vm1821_vm0, %v4420_v62, %v1820_v34  ;;  %v1824_v54 = vand.u32 2147483648, %v4420_v62 }
 0x552   :  { %v2500_v44 = vpop.eup %2499  ;;  %2519 = vrcp.f32 %v1723_v1  ;;  %v1724_v37 = vadd.f32 1.0, %v4474_v41  ;;  %v4559_v39 = vadd.f32 1e-09, %v4532_v56  ;;  %v4563_v31 = vmul.f32 %v4541_v3, %v4541_v3 }
 0x553   :  { %v2502_v40 = vpop.eup %2501  ;;  %2521 = vrsqrt.f32 %v4520_v19  ;;  %v1876_v55 = vmul.f32 %v2500_v44, %v4452_v43  ;;  %vm1823_vm5 = vcmp.eq.f32.partialorder %v4420_v62, 0.0  ;;  %v4571_v1 = vmul.f32 %v4548_v10, %v4548_v10 }
 0x554   :  { %v4550_v23 = vpop.eup %2503  ;;  %2523 = vrcp.f32 %v1818_v53  ;;  %v1827_v33 = vmul.f32 %v2502_v40, %v4459_v42  ;;  %v1732_v20 = vmul.f32 %v2490_v45, %v4333_v63  ;;  %v4575_v48 = vmul.f32 %v2494_v12, %v4337_v27 }
 0x555   :  { %v4555_v32 = vpop.eup %2505  ;;  %2525 = vrcp.f32 %v1716_v25  ;;  %v1825_v34 = vsel %vm1823_vm5, %v1824_v54, %v1822_v59  ;;  %vm1877_vm6 = vcmp.eq.f32.partialorder %v4452_v43, inf  ;;  %vm1828_vm7 = vcmp.eq.f32.partialorder %v4459_v42, inf }
 0x556   :  { %v4565_v9 = vpop.eup %2507  ;;  %2527 = vrcp.f32 %v1874_v58  ;;  %v1717_v62 = vadd.f32 1.0, %v4500_v5  ;;  %v1878_v44 = vsel %vm1877_vm6, %v4452_v43, %v1876_v55  ;;  %v1725_v27 = vadd.f32 1.0, %v4532_v56 }
 0x557   :  { %v2510_v2 = vpop.eup %2509  ;;  %2529 = vrsqrt.f32 %v4559_v39  ;;  %v4589_v45 = vadd.f32 1e-09, %v4563_v31  ;;  %v1880_v40 = vand.u32 2147483648, %v4452_v43  ;;  %v1829_v58 = vsel %vm1828_vm7, %v4459_v42, %v1827_v33 }
 0x558   :  { %v4578_v53 = vpop.eup %2511  ;;  %2531 = vrcp.f32 %v1724_v37  ;;  %v1883_v63 = vmul.f32 %v2510_v2, %v4496_v11  ;;  %v4596_v59 = vadd.f32 1e-09, %v4571_v1  ;;  %v1734_v37 = vmul.f32 %v2496_v17, %v4353_v49 }
 0x559   :  { %v4583_v25 = vpop.eup %2513  ;;  %2533 = vrcp.f32 %v1825_v34  ;;  %vm1879_vm8 = vcmp.eq.f32.partialorder %v4452_v43, 0.0  ;;  %v1831_v55 = vand.u32 2147483648, %v4459_v42  ;;  %vm1830_vm9 = vcmp.eq.f32.partialorder %v4459_v42, 0.0 }
 0x55a   :  { %v4591_v12 = vpop.eup %2515  ;;  %2535 = vrsqrt.f32 %v4589_v45  ;;  %v1881_v34 = vsel %vm1879_vm8, %v1880_v40, %v1878_v44  ;;  %vm1884_vm10 = vcmp.eq.f32.partialorder %v4496_v11, inf  ;;  %v1718_v49 = vadd.f32 1.0, %v4563_v31 }
 0x55b   :  { %v4598_v54 = vpop.eup %2517  ;;  %2537 = vrcp.f32 %v1717_v62  ;;  %v1832_v35 = vsel %vm1830_vm9, %v1831_v55, %v1829_v58  ;;  %v1885_v24 = vsel %vm1884_vm10, %v4496_v11, %v1883_v63  ;;  %v4614_v17 = vmul.f32 %v4522_v47, %v4462_v29 }
 0x55c   :  { %v4604_v2 = vpop.eup %2519  ;;  %2539 = vrcp.f32 %v1725_v27  ;;  %v1887_v44 = vand.u32 2147483648, %v4496_v11  ;;  %vm1886_vm11 = vcmp.eq.f32.partialorder %v4496_v11, 0.0  ;;  %vm1835_vm12 = vcmp.eq.f32.partialorder %v4520_v19, inf }
 0x55d   :  { %v2522_v33 = vpop.eup %2521  ;;  %2541 = vrsqrt.f32 %v4596_v59  ;;  %v1838_v63 = vand.u32 2147483648, %v4520_v19  ;;  %vm1837_vm13 = vcmp.eq.f32.partialorder %v4520_v19, 0.0  ;;  %v4628_v58 = vmul.f32 %v4550_v23, %v4535_v0 }
 0x55e   :  { %v4610_v43 = vpop.eup %2523  ;;  %v1834_v42 = vmul.f32 %v2522_v33, %v4520_v19  ;;  %2543 = vrcp.f32 %v1881_v34  ;;  %v1888_v40 = vsel %vm1886_vm11, %v1887_v44, %v1885_v24  ;;  %v1726_v11 = vadd.f32 1.0, %v4571_v1 }
 0x55f   :  { %v2526_v62 = vpop.eup %2525  ;;  %2545 = vrcp.f32 %v1832_v35  ;;  %v1768_v33 = vmul.f32 %v4544_v36, %v4301_v7  ;;  %v1750_v24 = vmul.f32 %v4555_v32, %v4361_v57  ;;  %vm1891_vm14 = vcmp.eq.f32.partialorder %v4559_v39, inf }
 0x560   :  { %v4622_v27 = vpop.eup %2527  ;;  %v1836_v29 = vsel %vm1835_vm12, %v4520_v19, %v1834_v42  ;;  %2547 = vrcp.f32 %v1718_v49  ;;  %v1761_v19 = vmul.f32 %v1732_v20, %v4310_v26  ;;  %v1894_v0 = vand.u32 2147483648, %v4559_v39 }
 0x561   :  { %v2530_v47 = vpop.eup %2529  ;;  %v1839_v55 = vsel %vm1837_vm13, %v1838_v63, %v1836_v29  ;;  %v1769_v49 = vmul.f32 %v4575_v48, %v4316_v6  ;;  %v1762_v44 = vmul.f32 %v1734_v37, %v4339_v21  ;;  %vm1893_vm15 = vcmp.eq.f32.partialorder %v4559_v39, 0.0 }
 0x562   :  { %v2532_v34 = vpop.eup %2531  ;;  %2549 = vrcp.f32 %v1839_v55  ;;  %v1890_v35 = vmul.f32 %v2530_v47, %v4559_v39  ;;  %v1935_v36 = vand.u32 2147483647, %v4614_v17  ;;  %v1936_v26 = vand.u32 2147483647, %v4628_v58 }
 0x563   :  { %2551 = vrcp.f32 %v1888_v40  ;;  %v2534_v23 = vpop.eup %2533  ;;  %v4648_v42 = vmul.f32 %v4565_v9, %v4538_v18  ;;  %v1770_v6 = vmul.f32 %v1750_v24, %v4345_v8  ;;  %v1736_v37 = vmul.f32 %v4578_v53, %v4392_v30 }
 0x564   :  { %v1892_v7 = vsel %vm1891_vm14, %v4559_v39, %v1890_v35  ;;  %v2536_v57 = vpop.eup %2535  ;;  %2553 = vrcp.f32 %v1726_v11  ;;  %v4653_v39 = vmul.f32 %v4583_v25, %v1768_v33  ;;  %vm1842_vm1 = vcmp.eq.f32.partialorder %v4589_v45, inf }
 0x565   :  { %v1895_v32 = vsel %vm1893_vm15, %v1894_v0, %v1892_v7  ;;  %v2538_v20 = vpop.eup %2537  ;;  %v1841_v21 = vmul.f32 %v2536_v57, %v4589_v45  ;;  %v1845_v63 = vand.u32 2147483648, %v4589_v45  ;;  %v1908_v18 = vmul.f32 %v4591_v12, %v1761_v19 }
 0x566   :  { %2555 = vrcp.f32 %v1895_v32  ;;  %v2540_v48 = vpop.eup %2539  ;;  %v1738_v9 = vmul.f32 %v2526_v62, %v4436_v13  ;;  %vm1844_vm2 = vcmp.eq.f32.partialorder %v4589_v45, 0.0  ;;  %v1752_v25 = vmul.f32 %v4604_v2, %v4430_v28 }
 0x567   :  { %v2542_v40 = vpop.eup %2541  ;;  %v1843_v8 = vsel %vm1842_vm1, %v4589_v45, %v1841_v21  ;;  %v1740_v47 = vmul.f32 %v2538_v20, %v4500_v5  ;;  %v1754_v11 = vmul.f32 %v2532_v34, %v4474_v41  ;;  %vm1898_vm3 = vcmp.eq.f32.partialorder %v4596_v59, inf }
 0x568   :  { %v2544_v29 = vpop.eup %2543  ;;  %v1846_v30 = vsel %vm1844_vm2, %v1845_v63, %v1843_v8  ;;  %v1897_v53 = vmul.f32 %v2542_v40, %v4596_v59  ;;  %v1901_v13 = vand.u32 2147483648, %v4596_v59  ;;  %vm1978_vm4 = vcmask 130112  }
 0x569   :  { %v2546_v55 = vpop.eup %2545  ;;  %2557 = vrcp.f32 %v1846_v30  ;;  %v1763_v45 = vmul.f32 %v1736_v37, %v4367_v16  ;;  %v1756_v62 = vmul.f32 %v2540_v48, %v4532_v56  ;;  %vm1900_vm0 = vcmp.eq.f32.partialorder %v4596_v59, 0.0 }
 0x56a   :  { %v2548_v12 = vpop.eup %2547  ;;  %v1899_v28 = vsel %vm1898_vm3, %v4596_v59, %v1897_v53  ;;  %vm1985_vm5 = vcmask 195712   ;;  %v1924_v2 = vmul.f32 %v4598_v54, %v1769_v49  ;;  %v1910_v41 = vmul.f32 %v4610_v43, %v1762_v44  ;;  %v4785_v53 = vld [vmem:[#allocation3_spill] sm:$0xff] }
 0x56b   :  { %v1764_v34 = vmul.f32 %v1738_v9, %v4414_v4  ;;  %v1902_v33 = vsel %vm1900_vm0, %v1901_v13, %v1899_v28  ;;  %vm1992_vm6 = vcmask 261312   ;;  %v1912_v35 = vmul.f32 %v2534_v23, %v1763_v45  ;;  %v4786_v28 = vld [vmem:[#allocation14_spill] sm:$0xff] }
 0x56c   :  { %v2550_v5 = vpop.eup %2549  ;;  %v1771_v16 = vmul.f32 %v1752_v25, %v4409_v38  ;;  %v1765_v56 = vmul.f32 %v1740_v47, %v4480_v22  ;;  %2559 = vrcp.f32 %v1902_v33  ;;  %v1937_v19 = vand.u32 2147483647, %v1908_v18 }
 0x56d   :  { %v2552_v24 = vpop.eup %2551  ;;  %v1926_v59 = vmul.f32 %v4622_v27, %v1770_v6  ;;  %vm1999_vm7 = vcmask 326912   ;;  %v1914_v0 = vmul.f32 %v2546_v55, %v1764_v34  ;;  %v1772_v54 = vmul.f32 %v1754_v11, %v4454_v50 }
 0x56e   :  { %v2554_v49 = vpop.eup %2553  ;;  %v1928_v43 = vmul.f32 %v2544_v29, %v1771_v16  ;;  %vm2006_vm8 = vcmask 392512   ;;  %v1916_v4 = vmul.f32 %v2550_v5, %v1765_v56  ;;  %v1773_v44 = vmul.f32 %v1756_v62, %v4511_v51 }
 0x56f   :  { %v1742_v23 = vmul.f32 %v2548_v12, %v4563_v31  ;;  %v1943_v38 = vand.u32 2147483647, %v4648_v42  ;;  %v1944_v22 = vand.u32 2147483647, %v4653_v39  ;;  %v1938_v57 = vand.u32 2147483647, %v1910_v41 }
 0x570   :  { %v2556_v7 = vpop.eup %2555  ;;  %v1930_v32 = vmul.f32 %v2552_v24, %v1772_v54  ;;  %vm2013_vm9 = vcmask 458112   ;;  %v1972_v50 = vrot.slane %v1935_v36, %v4364_v15  ;;  %v1945_v27 = vand.u32 2147483647, %v1924_v2 }
 0x571   :  { %v1939_v20 = vand.u32 2147483647, %v1912_v35  ;;  %v1932_v6 = vmul.f32 %v2556_v7, %v1773_v44  ;;  %vm2020_vm10 = vcmask 523712   ;;  %v1977_v51 = vrot.slane %v1936_v26, %v4370_v61 }
 0x572   :  { %v1946_v31 = vand.u32 2147483647, %v1926_v59  ;;  %v1940_v21 = vand.u32 2147483647, %v1914_v0  ;;  %v1758_v42 = vmul.f32 %v2554_v49, %v4571_v1  ;;  %v1984_v48 = vrot.slane %v1937_v19, %v4373_v60 }
 0x573   :  { %v1947_v39 = vand.u32 2147483647, %v1928_v43  ;;  %v1941_v37 = vand.u32 2147483647, %v1916_v4  ;;  %v1766_v63 = vmul.f32 %v1742_v23, %v4541_v3  ;;  %v2558_v17 = vpop.eup %2557  ;;  %v2025_v36 = vrot.slane %v1943_v38, %v4364_v15 }
 0x574   :  { %v2029_v40 = vrot.slane %v1944_v22, %v4370_v61  ;;  %v1991_v18 = vrot.slane %v1938_v57, %v4382_v14  ;;  %v1948_v9 = vand.u32 2147483647, %v1930_v32  ;;  %v2034_v58 = vrot.slane %v1945_v27, %v4373_v60 }
 0x575   :  { %v1998_v26 = vrot.slane %v1939_v20, %v4385_v46  ;;  %v1949_v8 = vand.u32 2147483647, %v1932_v6  ;;  %v1918_v1 = vmul.f32 %v2558_v17, %v1766_v63  ;;  %v1979_v29 = vsel %vm1978_vm4, %v1977_v51, %v1972_v50 }
 0x576   :  { %v2039_v25 = vrot.slane %v1946_v31, %v4382_v14  ;;  %v2005_v3 = vrot.slane %v1940_v21, %v4395_v52  ;;  %v1774_v47 = vmul.f32 %v1758_v42, %v4548_v10  ;;  %v2560_v15 = vpop.eup %2559  ;;  %v1986_v61 = vsel %vm1985_vm5, %v1984_v48, %v1979_v29 }
 0x577   :  { %v2044_v30 = vrot.slane %v1947_v39, %v4385_v46  ;;  %v2012_v55 = vrot.slane %v1941_v37, %v4785_v53  ;;  %v1942_v60 = vand.u32 2147483647, %v1918_v1  ;;  %v2030_v11 = vsel %vm1978_vm4, %v2029_v40, %v2025_v36 }
 0x578   :  { %v1993_v13 = vsel %vm1992_vm6, %v1991_v18, %v1986_v61  ;;  %v2049_v12 = vrot.slane %v1948_v9, %v4395_v52  ;;  %v1934_v45 = vmul.f32 %v2560_v15, %v1774_v47  ;;  %v2035_v14 = vsel %vm1985_vm5, %v2034_v58, %v2030_v11 }
 0x579   :  { %v2000_v62 = vsel %vm1999_vm7, %v1998_v26, %v1993_v13  ;;  %v2054_v10 = vrot.slane %v1949_v8, %v4785_v53  ;;  %v2019_v5 = vrot.slane %v1942_v60, %v4786_v28  ;;  %v2040_v46 = vsel %vm1992_vm6, %v2039_v25, %v2035_v14 }
 0x57a   :  { %v2007_v2 = vsel %vm2006_vm8, %v2005_v3, %v2000_v62  ;;  %v1950_v41 = vand.u32 2147483647, %v1934_v45  ;;  %v2045_v34 = vsel %vm1999_vm7, %v2044_v30, %v2040_v46  ;;  %vm2061_vm11 = vcmask 1041409  }
 0x57b   :  { %v2014_v33 = vsel %vm2013_vm9, %v2012_v55, %v2007_v2  ;;  %v2050_v52 = vsel %vm2006_vm8, %v2049_v12, %v2045_v34  ;;  %vm2064_vm12 = vcmask 517120  }
 0x57c   :  { %v2021_v24 = vsel %vm2020_vm10, %v2019_v5, %v2014_v33  ;;  %v2059_v35 = vrot.slane %v1950_v41, %v4786_v28  ;;  %v2055_v16 = vsel %vm2013_vm9, %v2054_v10, %v2050_v52 }
 0x57e   :  { %v2060_v56 = vsel %vm2020_vm10, %v2059_v35, %v2055_v16 }
 0x57f   :  { %v2062_v19 = vsel %vm2061_vm11, %v2060_v56, %v2021_v24 }
 0x580   :  { %2065 = vst.msk [vmem:[%s4727_s2] sm:$0x3] %vm2064_vm12, %v2062_v19 }

// kernel: _lambda_.9
= control target key start
LH: loop header
LB: loop body
LE: loop exit
PB: predicated region body
PF: predicated region fallthrough
CT: control target
= control target key end

     0   :  { %v2775_v3 = vmov 0.0   ;;  %vm81_vm0 = vcmask 523264   ;;  %s5310_s1 = inlined_call_operand.vmem [shape: f32[64,512], index: 1, kind: input, shape index: {}]   ;;  %s5311_s3 = inlined_call_operand.vmem [shape: f32[512,1024], index: 3, kind: input, shape index: {}]   ;;  %s5312_s0 = inlined_call_operand.vmem [shape: f32[2,64], index: 0, kind: input, shape index: {}]   ;;  %s5313_s2 = inlined_call_operand.vmem [shape: f32[1,512], index: 2, kind: input, shape index: {}]   ;;  %s5314_s5 = inlined_call_operand.vmem [shape: f32[1024,256], index: 5, kind: input, shape index: {}]   ;;  %s5315_s4 = inlined_call_operand.vmem [shape: f32[1,1024], index: 4, kind: input, shape index: {}]   ;;  %s5316_s6 = inlined_call_operand.vmem [shape: f32[1,256], index: 6, kind: input, shape index: {}]   ;;  %s5317_s7 = inlined_call_operand.vmem [shape: f32[2,256], index: 7, kind: output, shape index: {}]  }
   0x1   :  { %v28_v0 = vld [vmem:[%s5310_s1 + $0x8] sm:$0xff]  ;;  %v27_v2 = vld [vmem:[%s5310_s1] sm:$0xff]  ;;  %149 = vmatprep.mubr.f32.mxu0 %v2775_v3  ;;  %220 = vmatprep.mubr.f32.mxu1 %v2775_v3  ;;  %v30_v20 = vld [vmem:[%s5310_s1 + $0x18] sm:$0xff] }
   0x2   :  { %v32_v1 = vld [vmem:[%s5310_s1 + $0x28] sm:$0xff]  ;;  %v31_v5 = vld [vmem:[%s5310_s1 + $0x20] sm:$0xff]  ;;  %v34_v21 = vld [vmem:[%s5310_s1 + $0x38] sm:$0xff] }
   0x3   :  { %v1942_v4 = vpack.c.bf16 %v32_v1, %v28_v0  ;;  %v36_v6 = vld [vmem:[%s5310_s1 + $0x48] sm:$0xff]  ;;  %v1944_v8 = vpack.c.bf16 %v31_v5, %v27_v2  ;;  %v35_v10 = vld [vmem:[%s5310_s1 + $0x40] sm:$0xff]  ;;  %v29_v22 = vld [vmem:[%s5310_s1 + $0x10] sm:$0xff]  ;;  %v1958_v24 = vpack.c.bf16 %v34_v21, %v30_v20 }
   0x4   :  { %v40_v7 = vld [vmem:[%s5310_s1 + $0x68] sm:$0xff]  ;;  %v39_v11 = vld [vmem:[%s5310_s1 + $0x60] sm:$0xff]  ;;  %v33_v23 = vld [vmem:[%s5310_s1 + $0x30] sm:$0xff] }
   0x5   :  { %v1946_v9 = vpack.c.bf16 %v40_v7, %v36_v6  ;;  %v44_v12 = vld [vmem:[%s5310_s1 + $0x88] sm:$0xff]  ;;  %1943 = vmatprep.subr.bf16.mxu0 %v1942_v4  ;;  %v1948_v14 = vpack.c.bf16 %v39_v11, %v35_v10  ;;  %v43_v15 = vld [vmem:[%s5310_s1 + $0x80] sm:$0xff]  ;;  %v1960_v25 = vpack.c.bf16 %v33_v23, %v29_v22  ;;  %v38_v26 = vld [vmem:[%s5310_s1 + $0x58] sm:$0xff]  ;;  %1959 = vmatprep.subr.bf16.mxu1 %v1958_v24 }
   0x6   :  { %v48_v13 = vld [vmem:[%s5310_s1 + $0xa8] sm:$0xff]  ;;  %1945 = vmatpush1.bf16.msra.mxu0 %v1944_v8  ;;  %v47_v16 = vld [vmem:[%s5310_s1 + $0xa0] sm:$0xff]  ;;  %v42_v27 = vld [vmem:[%s5310_s1 + $0x78] sm:$0xff] }
   0x7   :  { %1947 = vmatprep.subr.bf16.mxu0 %v1946_v9  ;;  %v1950_v17 = vpack.c.bf16 %v48_v13, %v44_v12  ;;  %v52_v18 = vld [vmem:[%s5310_s1 + $0xc8] sm:$0xff]  ;;  %v37_v28 = vld [vmem:[%s5310_s1 + $0x50] sm:$0xff]  ;;  %v1952_v29 = vpack.c.bf16 %v47_v16, %v43_v15  ;;  %v1962_v30 = vpack.c.bf16 %v42_v27, %v38_v26  ;;  %v46_v32 = vld [vmem:[%s5310_s1 + $0x98] sm:$0xff]  ;;  %1961 = vmatpush1.bf16.msra.mxu1 %v1960_v25 }
   0x8   :  { %v56_v19 = vld [vmem:[%s5310_s1 + $0xe8] sm:$0xff]  ;;  %v41_v31 = vld [vmem:[%s5310_s1 + $0x70] sm:$0xff]  ;;  %v50_v33 = vld [vmem:[%s5310_s1 + $0xb8] sm:$0xff] }
   0x9   :  { %v1954_v34 = vpack.c.bf16 %v56_v19, %v52_v18  ;;  %v51_v35 = vld [vmem:[%s5310_s1 + $0xc0] sm:$0xff]  ;;  %v1964_v37 = vpack.c.bf16 %v41_v31, %v37_v28  ;;  %1963 = vmatprep.subr.bf16.mxu1 %v1962_v30  ;;  %v1966_v38 = vpack.c.bf16 %v50_v33, %v46_v32  ;;  %v45_v39 = vld [vmem:[%s5310_s1 + $0x90] sm:$0xff]  ;;  %v236_v41 = vld [vmem:[%s5311_s3 + $0x28] sm:$0xff] }
   0xa   :  { %1949 = vmatpush1.bf16.msra.mxu0 %v1948_v14  ;;  %v55_v36 = vld [vmem:[%s5310_s1 + $0xe0] sm:$0xff]  ;;  %v49_v40 = vld [vmem:[%s5310_s1 + $0xb0] sm:$0xff]  ;;  %v54_v43 = vld [vmem:[%s5310_s1 + $0xd8] sm:$0xff] }
   0xb   :  { %1951 = vmatprep.subr.bf16.mxu0 %v1950_v17  ;;  %v1956_v42 = vpack.c.bf16 %v55_v36, %v51_v35  ;;  %v58_v44 = vld [vmem:[%s5310_s1 + $0xf8] sm:$0xff]  ;;  %v244_v45 = vld [vmem:[%s5311_s3 + $0x68] sm:$0xff]  ;;  %v235_v47 = vld [vmem:[%s5311_s3 + $0x20] sm:$0xff]  ;;  %1965 = vmatpush1.bf16.msra.mxu1 %v1964_v37  ;;  %v1968_v49 = vpack.c.bf16 %v49_v40, %v45_v39 }
   0xc   :  { %v2230_v46 = vpack.c.bf16 %v244_v45, %v236_v41  ;;  %v243_v48 = vld [vmem:[%s5311_s3 + $0x60] sm:$0xff]  ;;  %v252_v50 = vld [vmem:[%s5311_s3 + $0xa8] sm:$0xff]  ;;  %1967 = vmatprep.subr.bf16.mxu1 %v1966_v38  ;;  %v1970_v52 = vpack.c.bf16 %v58_v44, %v54_v43  ;;  %v53_v53 = vld [vmem:[%s5310_s1 + $0xd0] sm:$0xff] }
   0xd   :  { %v260_v51 = vld [vmem:[%s5311_s3 + $0xe8] sm:$0xff]  ;;  %v57_v54 = vld [vmem:[%s5310_s1 + $0xf0] sm:$0xff]  ;;  %v26_v55 = vld [vmem:[%s5312_s0] sm:$0x3]  ;;  %v2232_v58 = vpack.c.bf16 %v243_v48, %v235_v47 }
   0xe   :  { %1953 = vmatpush1.bf16.msra.mxu0 %v1952_v29  ;;  %v232_v56 = vld [vmem:[%s5311_s3 + $0x8] sm:$0xff]  ;;  %v2234_v59 = vpack.c.bf16 %v260_v51, %v252_v50  ;;  %v251_v60 = vld [vmem:[%s5311_s3 + $0xa0] sm:$0xff]  ;;  %v1972_v62 = vpack.c.bf16 %v57_v54, %v53_v53 }
   0xf   :  { %1955 = vmatprep.subr.bf16.mxu0 %v1954_v34  ;;  %v240_v57 = vld [vmem:[%s5311_s3 + $0x48] sm:$0xff]  ;;  %v259_v61 = vld [vmem:[%s5311_s3 + $0xe0] sm:$0xff]  ;;  %1969 = vmatpush1.bf16.msra.mxu1 %v1968_v49 }
  0x10   :  { %v268_v63 = vld [vmem:[%s5311_s3 + $0x128] sm:$0xff]  ;;  %1971 = vmatprep.subr.bf16.mxu1 %v1970_v52  ;;  %v1974_v1 = vpack.c.bf16 %v240_v57, %v232_v56  ;;  %v231_v2 = vld [vmem:[%s5311_s3] sm:$0xff]  ;;  %v2236_v6 = vpack.c.bf16 %v259_v61, %v251_v60 }
  0x11   :  { %v276_v0 = vld [vmem:[%s5311_s3 + $0x168] sm:$0xff]  ;;  %v239_v3 = vld [vmem:[%s5311_s3 + $0x40] sm:$0xff] }
  0x12   :  { %1957 = vmatpush1.bf16.msra.mxu0 %v1956_v42  ;;  %v248_v4 = vld [vmem:[%s5311_s3 + $0x88] sm:$0xff]  ;;  %v2238_v7 = vpack.c.bf16 %v276_v0, %v268_v63  ;;  %v267_v8 = vld [vmem:[%s5311_s3 + $0x120] sm:$0xff]  ;;  %v1976_v10 = vpack.c.bf16 %v239_v3, %v231_v2 }
  0x13   :  { %2231 = vmatprep.subr.bf16.mxu0 %v2230_v46  ;;  %v256_v5 = vld [vmem:[%s5311_s3 + $0xc8] sm:$0xff]  ;;  %v275_v9 = vld [vmem:[%s5311_s3 + $0x160] sm:$0xff]  ;;  %1973 = vmatpush1.bf16.msra.mxu1 %v1972_v62 }
  0x14   :  { %v284_v11 = vld [vmem:[%s5311_s3 + $0x1a8] sm:$0xff]  ;;  %1975 = vmatprep.subr.bf16.mxu1 %v1974_v1  ;;  %v1978_v13 = vpack.c.bf16 %v256_v5, %v248_v4  ;;  %v247_v14 = vld [vmem:[%s5311_s3 + $0x80] sm:$0xff]  ;;  %v2240_v18 = vpack.c.bf16 %v275_v9, %v267_v8 }
  0x15   :  { %1939 = vmatmul.mubr.msk.f32.vlgmr.msra.gmra.mrb[0].mxu0 %vm81_vm0, %v26_v55  ;;  %v292_v12 = vld [vmem:[%s5311_s3 + $0x1e8] sm:$0xff]  ;;  %v255_v15 = vld [vmem:[%s5311_s3 + $0xc0] sm:$0xff] }
  0x16   :  { %2233 = vmatpush1.bf16.msra.mxu0 %v2232_v58  ;;  %v264_v16 = vld [vmem:[%s5311_s3 + $0x108] sm:$0xff]  ;;  %1940 = vmatmul.mubr.msk.f32.vlgmr.msra.gmra.mrb[0].mxu1 %vm81_vm0, %v26_v55  ;;  %v2242_v19 = vpack.c.bf16 %v292_v12, %v284_v11  ;;  %v283_v20 = vld [vmem:[%s5311_s3 + $0x1a0] sm:$0xff]  ;;  %v1980_v22 = vpack.c.bf16 %v255_v15, %v247_v14 }
  0x17   :  { %2235 = vmatprep.subr.bf16.mxu0 %v2234_v59  ;;  %v272_v17 = vld [vmem:[%s5311_s3 + $0x148] sm:$0xff]  ;;  %v291_v21 = vld [vmem:[%s5311_s3 + $0x1e0] sm:$0xff]  ;;  %1977 = vmatpush1.bf16.msra.mxu1 %v1976_v10 }
  0x18   :  { %v300_v23 = vld [vmem:[%s5311_s3 + $0x228] sm:$0xff]  ;;  %1979 = vmatprep.subr.bf16.mxu1 %v1978_v13  ;;  %v1982_v25 = vpack.c.bf16 %v272_v17, %v264_v16  ;;  %v263_v26 = vld [vmem:[%s5311_s3 + $0x100] sm:$0xff]  ;;  %v2244_v30 = vpack.c.bf16 %v291_v21, %v283_v20 }
  0x19   :  { %v308_v24 = vld [vmem:[%s5311_s3 + $0x268] sm:$0xff]  ;;  %v271_v27 = vld [vmem:[%s5311_s3 + $0x140] sm:$0xff] }
  0x1a   :  { %2237 = vmatpush1.bf16.msra.mxu0 %v2236_v6  ;;  %v280_v28 = vld [vmem:[%s5311_s3 + $0x188] sm:$0xff]  ;;  %v2246_v31 = vpack.c.bf16 %v308_v24, %v300_v23  ;;  %v299_v32 = vld [vmem:[%s5311_s3 + $0x220] sm:$0xff]  ;;  %v1984_v34 = vpack.c.bf16 %v271_v27, %v263_v26 }
  0x1b   :  { %2239 = vmatprep.subr.bf16.mxu0 %v2238_v7  ;;  %v288_v29 = vld [vmem:[%s5311_s3 + $0x1c8] sm:$0xff]  ;;  %v307_v33 = vld [vmem:[%s5311_s3 + $0x260] sm:$0xff]  ;;  %1981 = vmatpush1.bf16.msra.mxu1 %v1980_v22 }
  0x1c   :  { %v316_v35 = vld [vmem:[%s5311_s3 + $0x2a8] sm:$0xff]  ;;  %1983 = vmatprep.subr.bf16.mxu1 %v1982_v25  ;;  %v1986_v37 = vpack.c.bf16 %v288_v29, %v280_v28  ;;  %v279_v38 = vld [vmem:[%s5311_s3 + $0x180] sm:$0xff]  ;;  %v2248_v42 = vpack.c.bf16 %v307_v33, %v299_v32 }
  0x1d   :  { %v324_v36 = vld [vmem:[%s5311_s3 + $0x2e8] sm:$0xff]  ;;  %v287_v39 = vld [vmem:[%s5311_s3 + $0x1c0] sm:$0xff] }
  0x1e   :  { %2241 = vmatpush1.bf16.msra.mxu0 %v2240_v18  ;;  %v296_v40 = vld [vmem:[%s5311_s3 + $0x208] sm:$0xff]  ;;  %v2250_v43 = vpack.c.bf16 %v324_v36, %v316_v35  ;;  %v315_v44 = vld [vmem:[%s5311_s3 + $0x2a0] sm:$0xff]  ;;  %v1988_v46 = vpack.c.bf16 %v287_v39, %v279_v38 }
  0x1f   :  { %2243 = vmatprep.subr.bf16.mxu0 %v2242_v19  ;;  %v304_v41 = vld [vmem:[%s5311_s3 + $0x248] sm:$0xff]  ;;  %v323_v45 = vld [vmem:[%s5311_s3 + $0x2e0] sm:$0xff]  ;;  %1985 = vmatpush1.bf16.msra.mxu1 %v1984_v34 }
  0x20   :  { %v332_v47 = vld [vmem:[%s5311_s3 + $0x328] sm:$0xff]  ;;  %1987 = vmatprep.subr.bf16.mxu1 %v1986_v37  ;;  %v1990_v49 = vpack.c.bf16 %v304_v41, %v296_v40  ;;  %v295_v50 = vld [vmem:[%s5311_s3 + $0x200] sm:$0xff]  ;;  %v2252_v54 = vpack.c.bf16 %v323_v45, %v315_v44 }
  0x21   :  { %v340_v48 = vld [vmem:[%s5311_s3 + $0x368] sm:$0xff]  ;;  %v303_v51 = vld [vmem:[%s5311_s3 + $0x240] sm:$0xff] }
  0x22   :  { %2245 = vmatpush1.bf16.msra.mxu0 %v2244_v30  ;;  %v312_v52 = vld [vmem:[%s5311_s3 + $0x288] sm:$0xff]  ;;  %v2254_v55 = vpack.c.bf16 %v340_v48, %v332_v47  ;;  %v331_v56 = vld [vmem:[%s5311_s3 + $0x320] sm:$0xff]  ;;  %v1992_v58 = vpack.c.bf16 %v303_v51, %v295_v50 }
  0x23   :  { %2247 = vmatprep.subr.bf16.mxu0 %v2246_v31  ;;  %v320_v53 = vld [vmem:[%s5311_s3 + $0x2c8] sm:$0xff]  ;;  %v339_v57 = vld [vmem:[%s5311_s3 + $0x360] sm:$0xff]  ;;  %1989 = vmatpush1.bf16.msra.mxu1 %v1988_v46 }
  0x24   :  { %v348_v59 = vld [vmem:[%s5311_s3 + $0x3a8] sm:$0xff]  ;;  %1991 = vmatprep.subr.bf16.mxu1 %v1990_v49  ;;  %v1994_v61 = vpack.c.bf16 %v320_v53, %v312_v52  ;;  %v311_v62 = vld [vmem:[%s5311_s3 + $0x280] sm:$0xff]  ;;  %v2256_v2 = vpack.c.bf16 %v339_v57, %v331_v56 }
  0x25   :  { %v356_v60 = vld [vmem:[%s5311_s3 + $0x3e8] sm:$0xff]  ;;  %v319_v63 = vld [vmem:[%s5311_s3 + $0x2c0] sm:$0xff] }
  0x26   :  { %2249 = vmatpush1.bf16.msra.mxu0 %v2248_v42  ;;  %v328_v0 = vld [vmem:[%s5311_s3 + $0x308] sm:$0xff]  ;;  %v2258_v3 = vpack.c.bf16 %v356_v60, %v348_v59  ;;  %v347_v4 = vld [vmem:[%s5311_s3 + $0x3a0] sm:$0xff]  ;;  %v1996_v6 = vpack.c.bf16 %v319_v63, %v311_v62 }
  0x27   :  { %2251 = vmatprep.subr.bf16.mxu0 %v2250_v43  ;;  %v336_v1 = vld [vmem:[%s5311_s3 + $0x348] sm:$0xff]  ;;  %v355_v5 = vld [vmem:[%s5311_s3 + $0x3e0] sm:$0xff]  ;;  %1993 = vmatpush1.bf16.msra.mxu1 %v1992_v58 }
  0x28   :  { %v364_v7 = vld [vmem:[%s5311_s3 + $0x428] sm:$0xff]  ;;  %1995 = vmatprep.subr.bf16.mxu1 %v1994_v61  ;;  %v1998_v9 = vpack.c.bf16 %v336_v1, %v328_v0  ;;  %v327_v10 = vld [vmem:[%s5311_s3 + $0x300] sm:$0xff]  ;;  %v2260_v14 = vpack.c.bf16 %v355_v5, %v347_v4 }
  0x29   :  { %v372_v8 = vld [vmem:[%s5311_s3 + $0x468] sm:$0xff]  ;;  %v335_v11 = vld [vmem:[%s5311_s3 + $0x340] sm:$0xff] }
  0x2a   :  { %2253 = vmatpush1.bf16.msra.mxu0 %v2252_v54  ;;  %v344_v12 = vld [vmem:[%s5311_s3 + $0x388] sm:$0xff]  ;;  %v2262_v15 = vpack.c.bf16 %v372_v8, %v364_v7  ;;  %v363_v16 = vld [vmem:[%s5311_s3 + $0x420] sm:$0xff]  ;;  %v2000_v18 = vpack.c.bf16 %v335_v11, %v327_v10 }
  0x2b   :  { %2255 = vmatprep.subr.bf16.mxu0 %v2254_v55  ;;  %v352_v13 = vld [vmem:[%s5311_s3 + $0x3c8] sm:$0xff]  ;;  %v371_v17 = vld [vmem:[%s5311_s3 + $0x460] sm:$0xff]  ;;  %1997 = vmatpush1.bf16.msra.mxu1 %v1996_v6 }
  0x2c   :  { %v380_v19 = vld [vmem:[%s5311_s3 + $0x4a8] sm:$0xff]  ;;  %1999 = vmatprep.subr.bf16.mxu1 %v1998_v9  ;;  %v2002_v21 = vpack.c.bf16 %v352_v13, %v344_v12  ;;  %v343_v22 = vld [vmem:[%s5311_s3 + $0x380] sm:$0xff]  ;;  %v2264_v26 = vpack.c.bf16 %v371_v17, %v363_v16 }
  0x2d   :  { %v388_v20 = vld [vmem:[%s5311_s3 + $0x4e8] sm:$0xff]  ;;  %v351_v23 = vld [vmem:[%s5311_s3 + $0x3c0] sm:$0xff] }
  0x2e   :  { %2257 = vmatpush1.bf16.msra.mxu0 %v2256_v2  ;;  %v360_v24 = vld [vmem:[%s5311_s3 + $0x408] sm:$0xff]  ;;  %v2266_v27 = vpack.c.bf16 %v388_v20, %v380_v19  ;;  %v379_v28 = vld [vmem:[%s5311_s3 + $0x4a0] sm:$0xff]  ;;  %v2004_v30 = vpack.c.bf16 %v351_v23, %v343_v22 }
  0x2f   :  { %2259 = vmatprep.subr.bf16.mxu0 %v2258_v3  ;;  %v368_v25 = vld [vmem:[%s5311_s3 + $0x448] sm:$0xff]  ;;  %v387_v29 = vld [vmem:[%s5311_s3 + $0x4e0] sm:$0xff]  ;;  %2001 = vmatpush1.bf16.msra.mxu1 %v2000_v18 }
  0x30   :  { %v396_v31 = vld [vmem:[%s5311_s3 + $0x528] sm:$0xff]  ;;  %2003 = vmatprep.subr.bf16.mxu1 %v2002_v21  ;;  %v2006_v33 = vpack.c.bf16 %v368_v25, %v360_v24  ;;  %v359_v34 = vld [vmem:[%s5311_s3 + $0x400] sm:$0xff]  ;;  %v2268_v38 = vpack.c.bf16 %v387_v29, %v379_v28 }
  0x31   :  { %v404_v32 = vld [vmem:[%s5311_s3 + $0x568] sm:$0xff]  ;;  %v367_v35 = vld [vmem:[%s5311_s3 + $0x440] sm:$0xff] }
  0x32   :  { %2261 = vmatpush1.bf16.msra.mxu0 %v2260_v14  ;;  %v376_v36 = vld [vmem:[%s5311_s3 + $0x488] sm:$0xff]  ;;  %v2270_v39 = vpack.c.bf16 %v404_v32, %v396_v31  ;;  %v395_v40 = vld [vmem:[%s5311_s3 + $0x520] sm:$0xff]  ;;  %v2008_v42 = vpack.c.bf16 %v367_v35, %v359_v34 }
  0x33   :  { %2263 = vmatprep.subr.bf16.mxu0 %v2262_v15  ;;  %v384_v37 = vld [vmem:[%s5311_s3 + $0x4c8] sm:$0xff]  ;;  %v403_v41 = vld [vmem:[%s5311_s3 + $0x560] sm:$0xff]  ;;  %2005 = vmatpush1.bf16.msra.mxu1 %v2004_v30 }
  0x34   :  { %v412_v43 = vld [vmem:[%s5311_s3 + $0x5a8] sm:$0xff]  ;;  %2007 = vmatprep.subr.bf16.mxu1 %v2006_v33  ;;  %v2010_v45 = vpack.c.bf16 %v384_v37, %v376_v36  ;;  %v375_v46 = vld [vmem:[%s5311_s3 + $0x480] sm:$0xff]  ;;  %v2272_v50 = vpack.c.bf16 %v403_v41, %v395_v40 }
  0x35   :  { %v420_v44 = vld [vmem:[%s5311_s3 + $0x5e8] sm:$0xff]  ;;  %v383_v47 = vld [vmem:[%s5311_s3 + $0x4c0] sm:$0xff] }
  0x36   :  { %2265 = vmatpush1.bf16.msra.mxu0 %v2264_v26  ;;  %v392_v48 = vld [vmem:[%s5311_s3 + $0x508] sm:$0xff]  ;;  %v2274_v51 = vpack.c.bf16 %v420_v44, %v412_v43  ;;  %v411_v52 = vld [vmem:[%s5311_s3 + $0x5a0] sm:$0xff]  ;;  %v2012_v54 = vpack.c.bf16 %v383_v47, %v375_v46 }
  0x37   :  { %2267 = vmatprep.subr.bf16.mxu0 %v2266_v27  ;;  %v400_v49 = vld [vmem:[%s5311_s3 + $0x548] sm:$0xff]  ;;  %v419_v53 = vld [vmem:[%s5311_s3 + $0x5e0] sm:$0xff]  ;;  %2009 = vmatpush1.bf16.msra.mxu1 %v2008_v42 }
  0x38   :  { %v428_v55 = vld [vmem:[%s5311_s3 + $0x628] sm:$0xff]  ;;  %2011 = vmatprep.subr.bf16.mxu1 %v2010_v45  ;;  %v2014_v57 = vpack.c.bf16 %v400_v49, %v392_v48  ;;  %v391_v58 = vld [vmem:[%s5311_s3 + $0x500] sm:$0xff]  ;;  %v2276_v62 = vpack.c.bf16 %v419_v53, %v411_v52 }
  0x39   :  { %v436_v56 = vld [vmem:[%s5311_s3 + $0x668] sm:$0xff]  ;;  %v399_v59 = vld [vmem:[%s5311_s3 + $0x540] sm:$0xff] }
  0x3a   :  { %2269 = vmatpush1.bf16.msra.mxu0 %v2268_v38  ;;  %v408_v60 = vld [vmem:[%s5311_s3 + $0x588] sm:$0xff]  ;;  %v2278_v63 = vpack.c.bf16 %v436_v56, %v428_v55  ;;  %v427_v0 = vld [vmem:[%s5311_s3 + $0x620] sm:$0xff]  ;;  %v2016_v2 = vpack.c.bf16 %v399_v59, %v391_v58  ;;  %v61_v56 = vlaneseq }
  0x3b   :  { %2271 = vmatprep.subr.bf16.mxu0 %v2270_v39  ;;  %v416_v61 = vld [vmem:[%s5311_s3 + $0x5c8] sm:$0xff]  ;;  %v435_v1 = vld [vmem:[%s5311_s3 + $0x660] sm:$0xff]  ;;  %2013 = vmatpush1.bf16.msra.mxu1 %v2012_v54 }
  0x3c   :  { %v444_v3 = vld [vmem:[%s5311_s3 + $0x6a8] sm:$0xff]  ;;  %2015 = vmatprep.subr.bf16.mxu1 %v2014_v57  ;;  %v2018_v5 = vpack.c.bf16 %v416_v61, %v408_v60  ;;  %v407_v6 = vld [vmem:[%s5311_s3 + $0x580] sm:$0xff]  ;;  %v2280_v10 = vpack.c.bf16 %v435_v1, %v427_v0  ;;  %v3313_v57 = vshrl.u32 %v61_v56, 7 }
  0x3d   :  { %v452_v4 = vld [vmem:[%s5311_s3 + $0x6e8] sm:$0xff]  ;;  %v415_v7 = vld [vmem:[%s5311_s3 + $0x5c0] sm:$0xff] }
  0x3e   :  { %2273 = vmatpush1.bf16.msra.mxu0 %v2272_v50  ;;  %v424_v8 = vld [vmem:[%s5311_s3 + $0x608] sm:$0xff]  ;;  %v2282_v11 = vpack.c.bf16 %v452_v4, %v444_v3  ;;  %v443_v12 = vld [vmem:[%s5311_s3 + $0x6a0] sm:$0xff]  ;;  %v2020_v14 = vpack.c.bf16 %v415_v7, %v407_v6  ;;  %v3316_v58 = vsub.s32 0, %v3313_v57  ;;  %v3324_v60 = vsub.s32 1, %v3313_v57 }
  0x3f   :  { %2275 = vmatprep.subr.bf16.mxu0 %v2274_v51  ;;  %v432_v9 = vld [vmem:[%s5311_s3 + $0x648] sm:$0xff]  ;;  %v451_v13 = vld [vmem:[%s5311_s3 + $0x6e0] sm:$0xff]  ;;  %2017 = vmatpush1.bf16.msra.mxu1 %v2016_v2  ;;  %v75_v2 = vsub.s32 3, %v3313_v57 }
  0x40   :  { %v460_v15 = vld [vmem:[%s5311_s3 + $0x728] sm:$0xff]  ;;  %2019 = vmatprep.subr.bf16.mxu1 %v2018_v5  ;;  %v2022_v17 = vpack.c.bf16 %v432_v9, %v424_v8  ;;  %v423_v18 = vld [vmem:[%s5311_s3 + $0x600] sm:$0xff]  ;;  %v2284_v22 = vpack.c.bf16 %v451_v13, %v443_v12 }
  0x41   :  { %v468_v16 = vld [vmem:[%s5311_s3 + $0x768] sm:$0xff]  ;;  %v431_v19 = vld [vmem:[%s5311_s3 + $0x640] sm:$0xff] }
  0x42   :  { %2277 = vmatpush1.bf16.msra.mxu0 %v2276_v62  ;;  %v440_v20 = vld [vmem:[%s5311_s3 + $0x688] sm:$0xff]  ;;  %v2286_v23 = vpack.c.bf16 %v468_v16, %v460_v15  ;;  %v459_v24 = vld [vmem:[%s5311_s3 + $0x720] sm:$0xff]  ;;  %v2024_v26 = vpack.c.bf16 %v431_v19, %v423_v18 }
  0x43   :  { %2279 = vmatprep.subr.bf16.mxu0 %v2278_v63  ;;  %v448_v21 = vld [vmem:[%s5311_s3 + $0x6c8] sm:$0xff]  ;;  %v467_v25 = vld [vmem:[%s5311_s3 + $0x760] sm:$0xff]  ;;  %2021 = vmatpush1.bf16.msra.mxu1 %v2020_v14 }
  0x44   :  { %2023 = vmatprep.subr.bf16.mxu1 %v2022_v17  ;;  %v2026_v27 = vpack.c.bf16 %v448_v21, %v440_v20  ;;  %v439_v28 = vld [vmem:[%s5311_s3 + $0x680] sm:$0xff]  ;;  %v456_v30 = vld [vmem:[%s5311_s3 + $0x708] sm:$0xff]  ;;  %v2288_v32 = vpack.c.bf16 %v467_v25, %v459_v24 }
  0x45   :  { %v447_v29 = vld [vmem:[%s5311_s3 + $0x6c0] sm:$0xff]  ;;  %v464_v31 = vld [vmem:[%s5311_s3 + $0x748] sm:$0xff] }
  0x46   :  { %2281 = vmatpush1.bf16.msra.mxu0 %v2280_v10  ;;  %v2028_v33 = vpack.c.bf16 %v447_v29, %v439_v28  ;;  %v2030_v34 = vpack.c.bf16 %v464_v31, %v456_v30  ;;  %v455_v35 = vld [vmem:[%s5311_s3 + $0x700] sm:$0xff]  ;;  %v472_v38 = vld [vmem:[%s5311_s3 + $0x788] sm:$0xff] }
  0x47   :  { %2283 = vmatprep.subr.bf16.mxu0 %v2282_v11  ;;  %2025 = vmatpush1.bf16.msra.mxu1 %v2024_v26  ;;  %v463_v36 = vld [vmem:[%s5311_s3 + $0x740] sm:$0xff]  ;;  %v480_v39 = vld [vmem:[%s5311_s3 + $0x7c8] sm:$0xff] }
  0x48   :  { %2027 = vmatprep.subr.bf16.mxu1 %v2026_v27  ;;  %v2032_v37 = vpack.c.bf16 %v463_v36, %v455_v35  ;;  %v476_v40 = vld [vmem:[%s5311_s3 + $0x7a8] sm:$0xff]  ;;  %v2034_v41 = vpack.c.bf16 %v480_v39, %v472_v38  ;;  %v471_v43 = vld [vmem:[%s5311_s3 + $0x780] sm:$0xff] }
  0x49   :  { %v484_v42 = vld [vmem:[%s5311_s3 + $0x7e8] sm:$0xff]  ;;  %v479_v44 = vld [vmem:[%s5311_s3 + $0x7c0] sm:$0xff] }
  0x4a   :  { %2285 = vmatpush1.bf16.msra.mxu0 %v2284_v22  ;;  %v2290_v45 = vpack.c.bf16 %v484_v42, %v476_v40  ;;  %v2036_v46 = vpack.c.bf16 %v479_v44, %v471_v43  ;;  %v475_v47 = vld [vmem:[%s5311_s3 + $0x7a0] sm:$0xff]  ;;  %v488_v50 = vld [vmem:[%s5311_s3 + $0x808] sm:$0xff] }
  0x4b   :  { %2287 = vmatprep.subr.bf16.mxu0 %v2286_v23  ;;  %2029 = vmatpush1.bf16.msra.mxu1 %v2028_v33  ;;  %v483_v48 = vld [vmem:[%s5311_s3 + $0x7e0] sm:$0xff]  ;;  %v496_v51 = vld [vmem:[%s5311_s3 + $0x848] sm:$0xff] }
  0x4c   :  { %2031 = vmatprep.subr.bf16.mxu1 %v2030_v34  ;;  %v2292_v49 = vpack.c.bf16 %v483_v48, %v475_v47  ;;  %v492_v52 = vld [vmem:[%s5311_s3 + $0x828] sm:$0xff]  ;;  %v2038_v53 = vpack.c.bf16 %v496_v51, %v488_v50  ;;  %v3321_v59 = vld [vmem:[%s5313_s2] sm:$0xf] }
  0x4d   :  { %v500_v54 = vld [vmem:[%s5311_s3 + $0x868] sm:$0xff]  ;;  %v64_v61 = vrot.slane %v3321_v59, %v3316_v58  ;;  %v68_v62 = vrot.slane %v3321_v59, %v3324_v60  ;;  %v487_v0 = vld [vmem:[%s5311_s3 + $0x800] sm:$0xff]  ;;  %v76_v17 = vrot.slane %v3321_v59, %v75_v2 }
  0x4e   :  { %2289 = vmatpush1.bf16.msra.mxu0 %v2288_v32  ;;  %v2294_v55 = vpack.c.bf16 %v500_v54, %v492_v52  ;;  %v495_v1 = vld [vmem:[%s5311_s3 + $0x840] sm:$0xff]  ;;  %v504_v7 = vld [vmem:[%s5311_s3 + $0x888] sm:$0xff] }
  0x4f   :  { %2033 = vmatpush1.bf16.msra.mxu1 %v2032_v37  ;;  %2291 = vmatprep.subr.bf16.mxu0 %v2290_v45  ;;  %v491_v5 = vld [vmem:[%s5311_s3 + $0x820] sm:$0xff]  ;;  %v512_v9 = vld [vmem:[%s5311_s3 + $0x8c8] sm:$0xff]  ;;  %v2040_v13 = vpack.c.bf16 %v495_v1, %v487_v0 }
  0x50   :  { %2035 = vmatprep.subr.bf16.mxu1 %v2034_v41  ;;  %v499_v6 = vld [vmem:[%s5311_s3 + $0x860] sm:$0xff]  ;;  %v508_v10 = vld [vmem:[%s5311_s3 + $0x8a8] sm:$0xff]  ;;  %v2042_v19 = vpack.c.bf16 %v512_v9, %v504_v7 }
  0x51   :  { %v516_v11 = vld [vmem:[%s5311_s3 + $0x8e8] sm:$0xff]  ;;  %v2296_v14 = vpack.c.bf16 %v499_v6, %v491_v5  ;;  %v503_v15 = vld [vmem:[%s5311_s3 + $0x880] sm:$0xff] }
  0x52   :  { %2293 = vmatpush1.bf16.msra.mxu0 %v2292_v49  ;;  %v511_v16 = vld [vmem:[%s5311_s3 + $0x8c0] sm:$0xff]  ;;  %v2298_v20 = vpack.c.bf16 %v516_v11, %v508_v10  ;;  %v520_v23 = vld [vmem:[%s5311_s3 + $0x908] sm:$0xff] }
  0x53   :  { %2037 = vmatpush1.bf16.msra.mxu1 %v2036_v46  ;;  %2295 = vmatprep.subr.bf16.mxu0 %v2294_v55  ;;  %v507_v21 = vld [vmem:[%s5311_s3 + $0x8a0] sm:$0xff]  ;;  %v528_v24 = vld [vmem:[%s5311_s3 + $0x948] sm:$0xff]  ;;  %v2044_v29 = vpack.c.bf16 %v511_v16, %v503_v15 }
  0x54   :  { %2039 = vmatprep.subr.bf16.mxu1 %v2038_v53  ;;  %v515_v22 = vld [vmem:[%s5311_s3 + $0x8e0] sm:$0xff]  ;;  %v524_v25 = vld [vmem:[%s5311_s3 + $0x928] sm:$0xff]  ;;  %v2046_v34 = vpack.c.bf16 %v528_v24, %v520_v23 }
  0x55   :  { %v532_v26 = vld [vmem:[%s5311_s3 + $0x968] sm:$0xff]  ;;  %v2300_v30 = vpack.c.bf16 %v515_v22, %v507_v21  ;;  %v519_v31 = vld [vmem:[%s5311_s3 + $0x900] sm:$0xff] }
  0x56   :  { %v527_v32 = vld [vmem:[%s5311_s3 + $0x940] sm:$0xff]  ;;  %v2302_v35 = vpack.c.bf16 %v532_v26, %v524_v25  ;;  %v536_v38 = vld [vmem:[%s5311_s3 + $0x988] sm:$0xff] }
  0x57   :  { %v523_v36 = vld [vmem:[%s5311_s3 + $0x920] sm:$0xff]  ;;  %v544_v39 = vld [vmem:[%s5311_s3 + $0x9c8] sm:$0xff]  ;;  %v2048_v43 = vpack.c.bf16 %v527_v32, %v519_v31 }
  0x58   :  { %v531_v37 = vld [vmem:[%s5311_s3 + $0x960] sm:$0xff]  ;;  %v540_v40 = vld [vmem:[%s5311_s3 + $0x9a8] sm:$0xff]  ;;  %v2050_v47 = vpack.c.bf16 %v544_v39, %v536_v38 }
  0x59   :  { %v548_v41 = vld [vmem:[%s5311_s3 + $0x9e8] sm:$0xff]  ;;  %v2304_v44 = vpack.c.bf16 %v531_v37, %v523_v36  ;;  %v535_v45 = vld [vmem:[%s5311_s3 + $0x980] sm:$0xff] }
  0x5a   :  { %v543_v46 = vld [vmem:[%s5311_s3 + $0x9c0] sm:$0xff]  ;;  %v2306_v48 = vpack.c.bf16 %v548_v41, %v540_v40  ;;  %v552_v51 = vld [vmem:[%s5311_s3 + $0xa08] sm:$0xff] }
  0x5b   :  { %v539_v49 = vld [vmem:[%s5311_s3 + $0x9a0] sm:$0xff]  ;;  %v560_v52 = vld [vmem:[%s5311_s3 + $0xa48] sm:$0xff]  ;;  %v2052_v55 = vpack.c.bf16 %v543_v46, %v535_v45 }
  0x5c   :  { %v547_v50 = vld [vmem:[%s5311_s3 + $0x9e0] sm:$0xff]  ;;  %v556_v53 = vld [vmem:[%s5311_s3 + $0xa28] sm:$0xff] }
  0x5d   :  { %v564_v54 = vld [vmem:[%s5311_s3 + $0xa68] sm:$0xff]  ;;  %v2308_v56 = vpack.c.bf16 %v547_v50, %v539_v49  ;;  %v555_v1 = vld [vmem:[%s5311_s3 + $0xa20] sm:$0xff] }
  0x5e   :  { %v2310_v0 = vpack.c.bf16 %v564_v54, %v556_v53  ;;  %v576_v5 = vld [vmem:[%s5311_s3 + $0xac8] sm:$0xff]  ;;  %v567_v10 = vld [vmem:[%s5311_s3 + $0xa80] sm:$0xff] }
  0x5f   :  { %v572_v6 = vld [vmem:[%s5311_s3 + $0xaa8] sm:$0xff]  ;;  %v575_v11 = vld [vmem:[%s5311_s3 + $0xac0] sm:$0xff] }
  0x60   :  { %v580_v7 = vld [vmem:[%s5311_s3 + $0xae8] sm:$0xff]  ;;  %v571_v15 = vld [vmem:[%s5311_s3 + $0xaa0] sm:$0xff]  ;;  %v2060_v22 = vpack.c.bf16 %v575_v11, %v567_v10 }
  0x61   :  { %v579_v16 = vld [vmem:[%s5311_s3 + $0xae0] sm:$0xff]  ;;  %v596_v21 = vld [vmem:[%s5311_s3 + $0xb68] sm:$0xff] }
  0x62   :  { %v2316_v23 = vpack.c.bf16 %v579_v16, %v571_v15  ;;  %v583_v24 = vld [vmem:[%s5311_s3 + $0xb00] sm:$0xff]  ;;  %v600_v31 = vld [vmem:[%s5311_s3 + $0xb88] sm:$0xff] }
  0x63   :  { %v591_v25 = vld [vmem:[%s5311_s3 + $0xb40] sm:$0xff]  ;;  %v608_v32 = vld [vmem:[%s5311_s3 + $0xbc8] sm:$0xff] }
  0x64   :  { %v599_v37 = vld [vmem:[%s5311_s3 + $0xb80] sm:$0xff]  ;;  %v2066_v39 = vpack.c.bf16 %v608_v32, %v600_v31  ;;  %v624_v45 = vld [vmem:[%s5311_s3 + $0xc48] sm:$0xff] }
  0x65   :  { %v607_v38 = vld [vmem:[%s5311_s3 + $0xbc0] sm:$0xff]  ;;  %v620_v46 = vld [vmem:[%s5311_s3 + $0xc28] sm:$0xff] }
  0x66   :  { %v603_v41 = vld [vmem:[%s5311_s3 + $0xba0] sm:$0xff]  ;;  %v656_v10 = vld [vmem:[%s5311_s3 + $0xd48] sm:$0xff] }
  0x67   :  { %v615_v50 = vld [vmem:[%s5311_s3 + $0xc00] sm:$0xff]  ;;  %v652_v11 = vld [vmem:[%s5311_s3 + $0xd28] sm:$0xff] }
  0x68   :  { %v619_v54 = vld [vmem:[%s5311_s3 + $0xc20] sm:$0xff] }
  0x69   :  { %v647_v16 = vld [vmem:[%s5311_s3 + $0xd00] sm:$0xff] }
  0x6a   :  { %v671_v31 = vld [vmem:[%s5311_s3 + $0xdc0] sm:$0xff] }
  0xe8   :  { %v151_v63 = vpop.f32.mrb[0].mxu0 }
  0xe9   :  { %v152_v3 = vadd.f32 %v151_v63, %v64_v61  ;;  %v153_v4 = vpop.f32.mrb[1].mxu0  ;;  %v3388_v27 = vpop.f32.mrb[0].mxu1  ;;  %v551_v61 = vld [vmem:[%s5311_s3 + $0xa00] sm:$0xff]  ;;  %v2054_v63 = vpack.c.bf16 %v560_v52, %v552_v51 }
  0xea   :  { %v154_v8 = vadd.f32 %v153_v4, %v68_v62  ;;  %v224_v28 = vpop.f32.mrb[1].mxu1  ;;  %v559_v62 = vld [vmem:[%s5311_s3 + $0xa40] sm:$0xff]  ;;  %v568_v4 = vld [vmem:[%s5311_s3 + $0xa88] sm:$0xff] }
  0xeb   :  { %v3366_v18 = vmax.f32 %v152_v3, 0.0  ;;  %v225_v33 = vadd.f32 %v224_v28, %v76_v17  ;;  %v563_v3 = vld [vmem:[%s5311_s3 + $0xa60] sm:$0xff]  ;;  %v584_v17 = vld [vmem:[%s5311_s3 + $0xb08] sm:$0xff] }
  0xec   :  { %v3355_v12 = vmax.f32 %v154_v8, 0.0  ;;  %v2056_v8 = vpack.c.bf16 %v559_v62, %v551_v61  ;;  %v2312_v9 = vpack.c.bf16 %v563_v3, %v555_v1  ;;  %v623_v51 = vld [vmem:[%s5311_s3 + $0xc40] sm:$0xff]  ;;  %v640_v61 = vld [vmem:[%s5311_s3 + $0xcc8] sm:$0xff] }
  0xed   :  { %v3416_v42 = vmax.f32 %v225_v33, 0.0  ;;  %v604_v33 = vld [vmem:[%s5311_s3 + $0xba8] sm:$0xff]  ;;  %v631_v3 = vld [vmem:[%s5311_s3 + $0xc80] sm:$0xff] }
  0xee   :  { %849 = vmatprep.mubr.f32.mxu1 %v3355_v12  ;;  %1133 = vmatprep.mubr.f32.mxu0 %v3355_v12  ;;  %v636_v62 = vld [vmem:[%s5311_s3 + $0xca8] sm:$0xff] }
  0xef   :  { %850 = vmatmul.mubr.f32.vlgmr.msra.gmra.mrb[2].mxu1 %v3366_v18  ;;  %1134 = vmatmul.mubr.f32.vlgmr.msra.gmra.mrb[2].mxu0 %v3366_v18 }
  0xf0   :  { %2041 = vmatpush1.bf16.msra.mxu1 %v2040_v13  ;;  %2297 = vmatpush1.bf16.msra.mxu0 %v2296_v14  ;;  %v2058_v13 = vpack.c.bf16 %v576_v5, %v568_v4  ;;  %v2314_v14 = vpack.c.bf16 %v580_v7, %v572_v6  ;;  %v639_v4 = vld [vmem:[%s5311_s3 + $0xcc0] sm:$0xff] }
  0xf1   :  { %2043 = vmatprep.subr.bf16.mxu1 %v2042_v19  ;;  %2299 = vmatprep.subr.bf16.mxu0 %v2298_v20  ;;  %v592_v19 = vld [vmem:[%s5311_s3 + $0xb48] sm:$0xff]  ;;  %v635_v7 = vld [vmem:[%s5311_s3 + $0xca0] sm:$0xff] }
  0xf2   :  { %920 = vmatprep.mubr.f32.mxu1 %v3416_v42  ;;  %1204 = vmatprep.mubr.f32.mxu0 %v3416_v42  ;;  %v588_v20 = vld [vmem:[%s5311_s3 + $0xb28] sm:$0xff]  ;;  %v2062_v26 = vpack.c.bf16 %v592_v19, %v584_v17  ;;  %v655_v17 = vld [vmem:[%s5311_s3 + $0xd40] sm:$0xff] }
  0xf3   :  { %v2318_v28 = vpack.c.bf16 %v596_v21, %v588_v20  ;;  %v651_v21 = vld [vmem:[%s5311_s3 + $0xd20] sm:$0xff] }
  0xf4   :  { %2045 = vmatpush1.bf16.msra.mxu1 %v2044_v29  ;;  %2301 = vmatpush1.bf16.msra.mxu0 %v2300_v30  ;;  %v587_v29 = vld [vmem:[%s5311_s3 + $0xb20] sm:$0xff] }
  0xf5   :  { %2047 = vmatprep.subr.bf16.mxu1 %v2046_v34  ;;  %2303 = vmatprep.subr.bf16.mxu0 %v2302_v35  ;;  %v595_v30 = vld [vmem:[%s5311_s3 + $0xb60] sm:$0xff]  ;;  %v612_v34 = vld [vmem:[%s5311_s3 + $0xbe8] sm:$0xff]  ;;  %v2064_v35 = vpack.c.bf16 %v591_v25, %v583_v24 }
  0xf6   :  { %v2320_v36 = vpack.c.bf16 %v595_v30, %v587_v29  ;;  %v2322_v40 = vpack.c.bf16 %v612_v34, %v604_v33  ;;  %v672_v24 = vld [vmem:[%s5311_s3 + $0xdc8] sm:$0xff]  ;;  %v663_v30 = vld [vmem:[%s5311_s3 + $0xd80] sm:$0xff] }
  0xf7   :  { %v668_v25 = vld [vmem:[%s5311_s3 + $0xda8] sm:$0xff]  ;;  %v667_v34 = vld [vmem:[%s5311_s3 + $0xda0] sm:$0xff] }
  0xf8   :  { %2049 = vmatpush1.bf16.msra.mxu1 %v2048_v43  ;;  %2305 = vmatpush1.bf16.msra.mxu0 %v2304_v44  ;;  %v611_v43 = vld [vmem:[%s5311_s3 + $0xbe0] sm:$0xff]  ;;  %v616_v44 = vld [vmem:[%s5311_s3 + $0xc08] sm:$0xff] }
  0xf9   :  { %2051 = vmatprep.subr.bf16.mxu1 %v2050_v47  ;;  %2307 = vmatprep.subr.bf16.mxu0 %v2306_v48  ;;  %v628_v47 = vld [vmem:[%s5311_s3 + $0xc68] sm:$0xff]  ;;  %v2068_v48 = vpack.c.bf16 %v607_v38, %v599_v37  ;;  %v2324_v49 = vpack.c.bf16 %v611_v43, %v603_v41  ;;  %v2070_v52 = vpack.c.bf16 %v624_v45, %v616_v44  ;;  %v679_v43 = vld [vmem:[%s5311_s3 + $0xe00] sm:$0xff] }
  0xfa   :  { %v2326_v53 = vpack.c.bf16 %v628_v47, %v620_v46  ;;  %v688_v37 = vld [vmem:[%s5311_s3 + $0xe48] sm:$0xff]  ;;  %v687_v44 = vld [vmem:[%s5311_s3 + $0xe40] sm:$0xff] }
  0xfb   :  { %v684_v38 = vld [vmem:[%s5311_s3 + $0xe28] sm:$0xff]  ;;  %v683_v47 = vld [vmem:[%s5311_s3 + $0xe20] sm:$0xff] }
  0xfc   :  { %2053 = vmatpush1.bf16.msra.mxu1 %v2052_v55  ;;  %2309 = vmatpush1.bf16.msra.mxu0 %v2308_v56  ;;  %v627_v55 = vld [vmem:[%s5311_s3 + $0xc60] sm:$0xff]  ;;  %v632_v56 = vld [vmem:[%s5311_s3 + $0xc88] sm:$0xff] }
  0xfd   :  { %2055 = vmatprep.subr.bf16.mxu1 %v2054_v63  ;;  %2311 = vmatprep.subr.bf16.mxu0 %v2310_v0  ;;  %v644_v63 = vld [vmem:[%s5311_s3 + $0xce8] sm:$0xff]  ;;  %v2072_v0 = vpack.c.bf16 %v623_v51, %v615_v50  ;;  %v2328_v1 = vpack.c.bf16 %v627_v55, %v619_v54  ;;  %v2074_v5 = vpack.c.bf16 %v640_v61, %v632_v56  ;;  %v695_v55 = vld [vmem:[%s5311_s3 + $0xe80] sm:$0xff] }
  0xfe   :  { %v2330_v6 = vpack.c.bf16 %v644_v63, %v636_v62  ;;  %v704_v50 = vld [vmem:[%s5311_s3 + $0xec8] sm:$0xff]  ;;  %v703_v56 = vld [vmem:[%s5311_s3 + $0xec0] sm:$0xff] }
  0xff   :  { %v700_v51 = vld [vmem:[%s5311_s3 + $0xea8] sm:$0xff]  ;;  %v699_v63 = vld [vmem:[%s5311_s3 + $0xea0] sm:$0xff] }
 0x100   :  { %2057 = vmatpush1.bf16.msra.mxu1 %v2056_v8  ;;  %2313 = vmatpush1.bf16.msra.mxu0 %v2312_v9  ;;  %v643_v8 = vld [vmem:[%s5311_s3 + $0xce0] sm:$0xff]  ;;  %v648_v9 = vld [vmem:[%s5311_s3 + $0xd08] sm:$0xff] }
 0x101   :  { %2059 = vmatprep.subr.bf16.mxu1 %v2058_v13  ;;  %2315 = vmatprep.subr.bf16.mxu0 %v2314_v14  ;;  %v660_v13 = vld [vmem:[%s5311_s3 + $0xd68] sm:$0xff]  ;;  %v2076_v14 = vpack.c.bf16 %v639_v4, %v631_v3  ;;  %v2332_v15 = vpack.c.bf16 %v643_v8, %v635_v7  ;;  %v2078_v19 = vpack.c.bf16 %v656_v10, %v648_v9  ;;  %v711_v9 = vld [vmem:[%s5311_s3 + $0xf00] sm:$0xff] }
 0x102   :  { %v2334_v20 = vpack.c.bf16 %v660_v13, %v652_v11  ;;  %v720_v3 = vld [vmem:[%s5311_s3 + $0xf48] sm:$0xff]  ;;  %v2092_v7 = vpack.c.bf16 %v703_v56, %v695_v55  ;;  %v719_v10 = vld [vmem:[%s5311_s3 + $0xf40] sm:$0xff]  ;;  %v281_v55 = vld [vmem:[%s5311_s3 + $0x190] sm:$0xff] }
 0x103   :  { %v716_v4 = vld [vmem:[%s5311_s3 + $0xf28] sm:$0xff]  ;;  %v289_v56 = vld [vmem:[%s5311_s3 + $0x1d0] sm:$0xff] }
 0x104   :  { %2061 = vmatpush1.bf16.msra.mxu1 %v2060_v22  ;;  %2317 = vmatpush1.bf16.msra.mxu0 %v2316_v23  ;;  %v659_v22 = vld [vmem:[%s5311_s3 + $0xd60] sm:$0xff]  ;;  %v664_v23 = vld [vmem:[%s5311_s3 + $0xd88] sm:$0xff] }
 0x105   :  { %2063 = vmatprep.subr.bf16.mxu1 %v2062_v26  ;;  %2319 = vmatprep.subr.bf16.mxu0 %v2318_v28  ;;  %v676_v26 = vld [vmem:[%s5311_s3 + $0xde8] sm:$0xff]  ;;  %v2080_v28 = vpack.c.bf16 %v655_v17, %v647_v16  ;;  %v2336_v29 = vpack.c.bf16 %v659_v22, %v651_v21  ;;  %v2082_v32 = vpack.c.bf16 %v672_v24, %v664_v23  ;;  %v727_v24 = vld [vmem:[%s5311_s3 + $0xf80] sm:$0xff] }
 0x106   :  { %v2338_v33 = vpack.c.bf16 %v676_v26, %v668_v25  ;;  %v728_v16 = vld [vmem:[%s5311_s3 + $0xf88] sm:$0xff]  ;;  %v2096_v22 = vpack.c.bf16 %v719_v10, %v711_v9  ;;  %v313_v9 = vld [vmem:[%s5311_s3 + $0x290] sm:$0xff] }
 0x107   :  { %v736_v17 = vld [vmem:[%s5311_s3 + $0xfc8] sm:$0xff]  ;;  %v321_v10 = vld [vmem:[%s5311_s3 + $0x2d0] sm:$0xff] }
 0x108   :  { %2065 = vmatpush1.bf16.msra.mxu1 %v2064_v35  ;;  %2321 = vmatpush1.bf16.msra.mxu0 %v2320_v36  ;;  %v675_v35 = vld [vmem:[%s5311_s3 + $0xde0] sm:$0xff]  ;;  %v680_v36 = vld [vmem:[%s5311_s3 + $0xe08] sm:$0xff]  ;;  %v2098_v25 = vpack.c.bf16 %v736_v17, %v728_v16  ;;  %v329_v16 = vld [vmem:[%s5311_s3 + $0x310] sm:$0xff] }
 0x109   :  { %2067 = vmatprep.subr.bf16.mxu1 %v2066_v39  ;;  %2323 = vmatprep.subr.bf16.mxu0 %v2322_v40  ;;  %v692_v39 = vld [vmem:[%s5311_s3 + $0xe68] sm:$0xff]  ;;  %v2084_v40 = vpack.c.bf16 %v671_v31, %v663_v30  ;;  %v2340_v41 = vpack.c.bf16 %v675_v35, %v667_v34  ;;  %v2086_v45 = vpack.c.bf16 %v688_v37, %v680_v36  ;;  %v234_v30 = vld [vmem:[%s5311_s3 + $0x18] sm:$0xff]  ;;  %v233_v36 = vld [vmem:[%s5311_s3 + $0x10] sm:$0xff] }
 0x10a   :  { %v2342_v46 = vpack.c.bf16 %v692_v39, %v684_v38  ;;  %v242_v31 = vld [vmem:[%s5311_s3 + $0x58] sm:$0xff]  ;;  %v241_v37 = vld [vmem:[%s5311_s3 + $0x50] sm:$0xff] }
 0x10b   :  { %v2102_v35 = vpack.c.bf16 %v242_v31, %v234_v30  ;;  %v250_v38 = vld [vmem:[%s5311_s3 + $0x98] sm:$0xff]  ;;  %v337_v17 = vld [vmem:[%s5311_s3 + $0x350] sm:$0xff]  ;;  %v1361_v30 = vld [vmem:[%s5314_s5] sm:$0xff] }
 0x10c   :  { %2069 = vmatpush1.bf16.msra.mxu1 %v2068_v48  ;;  %2325 = vmatpush1.bf16.msra.mxu0 %v2324_v49  ;;  %v691_v48 = vld [vmem:[%s5311_s3 + $0xe60] sm:$0xff]  ;;  %v696_v49 = vld [vmem:[%s5311_s3 + $0xe88] sm:$0xff]  ;;  %v1363_v31 = vld [vmem:[%s5314_s5 + $0x10] sm:$0xff] }
 0x10d   :  { %2071 = vmatprep.subr.bf16.mxu1 %v2070_v52  ;;  %2327 = vmatprep.subr.bf16.mxu0 %v2326_v53  ;;  %v708_v52 = vld [vmem:[%s5311_s3 + $0xee8] sm:$0xff]  ;;  %v2088_v53 = vpack.c.bf16 %v687_v44, %v679_v43  ;;  %v2344_v54 = vpack.c.bf16 %v691_v48, %v683_v47  ;;  %v2090_v61 = vpack.c.bf16 %v704_v50, %v696_v49  ;;  %v249_v43 = vld [vmem:[%s5311_s3 + $0x90] sm:$0xff] }
 0x10e   :  { %v2346_v62 = vpack.c.bf16 %v708_v52, %v700_v51  ;;  %v257_v44 = vld [vmem:[%s5311_s3 + $0xd0] sm:$0xff]  ;;  %v282_v51 = vld [vmem:[%s5311_s3 + $0x198] sm:$0xff] }
 0x10f   :  { %v2108_v47 = vpack.c.bf16 %v257_v44, %v249_v43  ;;  %v265_v49 = vld [vmem:[%s5311_s3 + $0x110] sm:$0xff]  ;;  %v290_v52 = vld [vmem:[%s5311_s3 + $0x1d8] sm:$0xff]  ;;  %v1365_v43 = vld [vmem:[%s5314_s5 + $0x20] sm:$0xff] }
 0x110   :  { %2073 = vmatpush1.bf16.msra.mxu1 %v2072_v0  ;;  %2329 = vmatpush1.bf16.msra.mxu0 %v2328_v1  ;;  %v707_v0 = vld [vmem:[%s5311_s3 + $0xee0] sm:$0xff]  ;;  %v712_v1 = vld [vmem:[%s5311_s3 + $0xf08] sm:$0xff]  ;;  %v273_v50 = vld [vmem:[%s5311_s3 + $0x150] sm:$0xff] }
 0x111   :  { %2075 = vmatprep.subr.bf16.mxu1 %v2074_v5  ;;  %2331 = vmatprep.subr.bf16.mxu0 %v2330_v6  ;;  %v724_v5 = vld [vmem:[%s5311_s3 + $0xf68] sm:$0xff]  ;;  %v71_v6 = vsub.s32 2, %v3313_v57  ;;  %v2348_v8 = vpack.c.bf16 %v707_v0, %v699_v63  ;;  %v2094_v11 = vpack.c.bf16 %v720_v3, %v712_v1  ;;  %v2116_v63 = vpack.c.bf16 %v289_v56, %v281_v55  ;;  %v297_v1 = vld [vmem:[%s5311_s3 + $0x210] sm:$0xff]  ;;  %v1369_v55 = vld [vmem:[%s5314_s5 + $0x40] sm:$0xff] }
 0x112   :  { %v2350_v13 = vpack.c.bf16 %v724_v5, %v716_v4  ;;  %v305_v3 = vld [vmem:[%s5311_s3 + $0x250] sm:$0xff]  ;;  %v314_v4 = vld [vmem:[%s5311_s3 + $0x298] sm:$0xff] }
 0x113   :  { %v72_v21 = vrot.slane %v3321_v59, %v71_v6  ;;  %v731_v59 = vld [vmem:[%s5311_s3 + $0xfa0] sm:$0xff]  ;;  %v322_v5 = vld [vmem:[%s5311_s3 + $0x2d8] sm:$0xff]  ;;  %v1367_v44 = vld [vmem:[%s5314_s5 + $0x30] sm:$0xff] }
 0x114   :  { %2077 = vmatpush1.bf16.msra.mxu1 %v2076_v14  ;;  %2333 = vmatpush1.bf16.msra.mxu0 %v2332_v15  ;;  %v715_v14 = vld [vmem:[%s5311_s3 + $0xf20] sm:$0xff]  ;;  %v1371_v56 = vld [vmem:[%s5314_s5 + $0x50] sm:$0xff] }
 0x115   :  { %2079 = vmatprep.subr.bf16.mxu1 %v2078_v19  ;;  %2335 = vmatprep.subr.bf16.mxu0 %v2334_v20  ;;  %v723_v15 = vld [vmem:[%s5311_s3 + $0xf60] sm:$0xff]  ;;  %v732_v19 = vld [vmem:[%s5311_s3 + $0xfa8] sm:$0xff] }
 0x116   :  { %v740_v20 = vld [vmem:[%s5311_s3 + $0xfe8] sm:$0xff]  ;;  %v2352_v23 = vpack.c.bf16 %v723_v15, %v715_v14  ;;  %v2124_v14 = vpack.c.bf16 %v321_v10, %v313_v9  ;;  %v1373_v9 = vld [vmem:[%s5314_s5 + $0x60] sm:$0xff]  ;;  %v1375_v10 = vld [vmem:[%s5314_s5 + $0x70] sm:$0xff] }
 0x117   :  { %v2354_v26 = vpack.c.bf16 %v740_v20, %v732_v19  ;;  %v346_v19 = vld [vmem:[%s5311_s3 + $0x398] sm:$0xff] }
 0x118   :  { %2081 = vmatpush1.bf16.msra.mxu1 %v2080_v28  ;;  %2337 = vmatpush1.bf16.msra.mxu0 %v2336_v29  ;;  %v735_v28 = vld [vmem:[%s5311_s3 + $0xfc0] sm:$0xff]  ;;  %v354_v20 = vld [vmem:[%s5311_s3 + $0x3d8] sm:$0xff] }
 0x119   :  { %2083 = vmatprep.subr.bf16.mxu1 %v2082_v32  ;;  %2339 = vmatprep.subr.bf16.mxu0 %v2338_v33  ;;  %v739_v29 = vld [vmem:[%s5311_s3 + $0xfe0] sm:$0xff]  ;;  %v223_v32 = vadd.f32 %v3388_v27, %v72_v21  ;;  %v2100_v33 = vpack.c.bf16 %v735_v28, %v727_v24  ;;  %v258_v27 = vld [vmem:[%s5311_s3 + $0xd8] sm:$0xff]  ;;  %v2128_v21 = vpack.c.bf16 %v337_v17, %v329_v16  ;;  %v353_v24 = vld [vmem:[%s5311_s3 + $0x3d0] sm:$0xff] }
 0x11a   :  { %v2356_v34 = vpack.c.bf16 %v739_v29, %v731_v59  ;;  %v1362_v28 = vld [vmem:[%s5314_s5 + $0x8] sm:$0xff]  ;;  %v1364_v59 = vld [vmem:[%s5314_s5 + $0x18] sm:$0xff]  ;;  %v417_v16 = vld [vmem:[%s5311_s3 + $0x5d0] sm:$0xff] }
 0x11b   :  { %v3743_v39 = vmax.f32 %v223_v32, 0.0  ;;  %v2486_v29 = vpack.c.bf16 %v1364_v59, %v1362_v28  ;;  %v426_v17 = vld [vmem:[%s5311_s3 + $0x618] sm:$0xff]  ;;  %v425_v59 = vld [vmem:[%s5311_s3 + $0x610] sm:$0xff] }
 0x11c   :  { %2085 = vmatpush1.bf16.msra.mxu1 %v2084_v40  ;;  %2341 = vmatpush1.bf16.msra.mxu0 %v2340_v41  ;;  %v2104_v40 = vpack.c.bf16 %v241_v37, %v233_v36  ;;  %v2106_v41 = vpack.c.bf16 %v258_v27, %v250_v38  ;;  %v369_v36 = vld [vmem:[%s5311_s3 + $0x450] sm:$0xff]  ;;  %v378_v37 = vld [vmem:[%s5311_s3 + $0x498] sm:$0xff]  ;;  %v1366_v27 = vld [vmem:[%s5314_s5 + $0x28] sm:$0xff] }
 0x11d   :  { %2087 = vmatprep.subr.bf16.mxu1 %v2086_v45  ;;  %2343 = vmatprep.subr.bf16.mxu0 %v2342_v46  ;;  %v266_v45 = vld [vmem:[%s5311_s3 + $0x118] sm:$0xff] }
 0x11e   :  { %v274_v46 = vld [vmem:[%s5311_s3 + $0x158] sm:$0xff] }
 0x11f   :  { %v2110_v48 = vpack.c.bf16 %v274_v46, %v266_v45  ;;  %v386_v38 = vld [vmem:[%s5311_s3 + $0x4d8] sm:$0xff]  ;;  %v2492_v46 = vpack.c.bf16 %v1367_v44, %v1365_v43 }
 0x120   :  { %2089 = vmatpush1.bf16.msra.mxu1 %v2088_v53  ;;  %2345 = vmatpush1.bf16.msra.mxu0 %v2344_v54  ;;  %v2112_v53 = vpack.c.bf16 %v273_v50, %v265_v49  ;;  %v2114_v54 = vpack.c.bf16 %v290_v52, %v282_v51  ;;  %v385_v49 = vld [vmem:[%s5311_s3 + $0x4d0] sm:$0xff]  ;;  %v394_v50 = vld [vmem:[%s5311_s3 + $0x518] sm:$0xff]  ;;  %v1370_v52 = vld [vmem:[%s5314_s5 + $0x48] sm:$0xff] }
 0x121   :  { %2091 = vmatprep.subr.bf16.mxu1 %v2090_v61  ;;  %2347 = vmatprep.subr.bf16.mxu0 %v2346_v62  ;;  %v298_v61 = vld [vmem:[%s5311_s3 + $0x218] sm:$0xff] }
 0x122   :  { %v306_v62 = vld [vmem:[%s5311_s3 + $0x258] sm:$0xff] }
 0x123   :  { %v2118_v0 = vpack.c.bf16 %v306_v62, %v298_v61  ;;  %v402_v51 = vld [vmem:[%s5311_s3 + $0x558] sm:$0xff]  ;;  %v2496_v62 = vpack.c.bf16 %v1371_v56, %v1369_v55 }
 0x124   :  { %2093 = vmatpush1.bf16.msra.mxu1 %v2092_v7  ;;  %2349 = vmatpush1.bf16.msra.mxu0 %v2348_v8  ;;  %v2120_v7 = vpack.c.bf16 %v305_v3, %v297_v1  ;;  %v2122_v8 = vpack.c.bf16 %v322_v5, %v314_v4  ;;  %v401_v1 = vld [vmem:[%s5311_s3 + $0x550] sm:$0xff]  ;;  %v410_v3 = vld [vmem:[%s5311_s3 + $0x598] sm:$0xff]  ;;  %v1374_v5 = vld [vmem:[%s5314_s5 + $0x68] sm:$0xff] }
 0x125   :  { %2095 = vmatprep.subr.bf16.mxu1 %v2094_v11  ;;  %2351 = vmatprep.subr.bf16.mxu0 %v2350_v13  ;;  %v330_v11 = vld [vmem:[%s5311_s3 + $0x318] sm:$0xff] }
 0x126   :  { %v338_v13 = vld [vmem:[%s5311_s3 + $0x358] sm:$0xff] }
 0x127   :  { %v2126_v15 = vpack.c.bf16 %v338_v13, %v330_v11  ;;  %v418_v4 = vld [vmem:[%s5311_s3 + $0x5d8] sm:$0xff]  ;;  %v2500_v13 = vpack.c.bf16 %v1375_v10, %v1373_v9 }
 0x128   :  { %2097 = vmatpush1.bf16.msra.mxu1 %v2096_v22  ;;  %2353 = vmatpush1.bf16.msra.mxu0 %v2352_v23  ;;  %v2130_v22 = vpack.c.bf16 %v354_v20, %v346_v19  ;;  %v345_v23 = vld [vmem:[%s5311_s3 + $0x390] sm:$0xff]  ;;  %v434_v19 = vld [vmem:[%s5311_s3 + $0x658] sm:$0xff]  ;;  %v1378_v20 = vld [vmem:[%s5314_s5 + $0x88] sm:$0xff] }
 0x129   :  { %2099 = vmatprep.subr.bf16.mxu1 %v2098_v25  ;;  %2355 = vmatprep.subr.bf16.mxu0 %v2354_v26  ;;  %v362_v25 = vld [vmem:[%s5311_s3 + $0x418] sm:$0xff]  ;;  %v2132_v32 = vpack.c.bf16 %v353_v24, %v345_v23  ;;  %v1377_v23 = vld [vmem:[%s5314_s5 + $0x80] sm:$0xff]  ;;  %v1379_v24 = vld [vmem:[%s5314_s5 + $0x90] sm:$0xff]  ;;  %v2150_v28 = vpack.c.bf16 %v434_v19, %v426_v17 }
 0x12a   :  { %v370_v26 = vld [vmem:[%s5311_s3 + $0x458] sm:$0xff] }
 0x12b   :  { %v458_v43 = vld [vmem:[%s5311_s3 + $0x718] sm:$0xff] }
 0x12c   :  { %2101 = vmatpush1.bf16.msra.mxu1 %v2100_v33  ;;  %2357 = vmatpush1.bf16.msra.mxu0 %v2356_v34  ;;  %v2488_v33 = vpack.c.bf16 %v1363_v31, %v1361_v30  ;;  %v2134_v34 = vpack.c.bf16 %v370_v26, %v362_v25  ;;  %v2504_v26 = vpack.c.bf16 %v1379_v24, %v1377_v23  ;;  %v442_v30 = vld [vmem:[%s5311_s3 + $0x698] sm:$0xff] }
 0x12d   :  { %2103 = vmatprep.subr.bf16.mxu1 %v2102_v35  ;;  %v361_v35 = vld [vmem:[%s5311_s3 + $0x410] sm:$0xff]  ;;  %2487 = vmatprep.subr.bf16.mxu0 %v2486_v29  ;;  %v450_v31 = vld [vmem:[%s5311_s3 + $0x6d8] sm:$0xff] }
 0x12e   :  { %v2136_v45 = vpack.c.bf16 %v369_v36, %v361_v35  ;;  %v433_v29 = vld [vmem:[%s5311_s3 + $0x650] sm:$0xff]  ;;  %v1381_v35 = vld [vmem:[%s5314_s5 + $0xa0] sm:$0xff]  ;;  %v466_v44 = vld [vmem:[%s5311_s3 + $0x758] sm:$0xff] }
 0x12f   :  { %921 = vmatmul.mubr.f32.vlgmr.msra.gmra.mrb[2].mxu1 %v3743_v39  ;;  %1205 = vmatmul.mubr.f32.vlgmr.msra.gmra.mrb[2].mxu0 %v3743_v39  ;;  %v1383_v36 = vld [vmem:[%s5314_s5 + $0xb0] sm:$0xff]  ;;  %v474_v55 = vld [vmem:[%s5311_s3 + $0x798] sm:$0xff] }
 0x130   :  { %2105 = vmatpush1.bf16.msra.mxu1 %v2104_v40  ;;  %991 = vmatprep.mubr.f32.mxu1 %v3355_v12  ;;  %v1368_v40 = vld [vmem:[%s5314_s5 + $0x38] sm:$0xff] }
 0x131   :  { %2107 = vmatprep.subr.bf16.mxu1 %v2106_v41  ;;  %2489 = vmatpush1.bf16.msra.mxu0 %v2488_v33  ;;  %v2490_v41 = vpack.c.bf16 %v1368_v40, %v1366_v27  ;;  %v1384_v33 = vld [vmem:[%s5314_s5 + $0xb8] sm:$0xff]  ;;  %v2154_v27 = vpack.c.bf16 %v450_v31, %v442_v30  ;;  %v441_v40 = vld [vmem:[%s5311_s3 + $0x690] sm:$0xff] }
 0x132   :  { %v482_v56 = vld [vmem:[%s5311_s3 + $0x7d8] sm:$0xff] }
 0x133   :  { %2491 = vmatprep.subr.bf16.mxu0 %v2490_v41  ;;  %v449_v41 = vld [vmem:[%s5311_s3 + $0x6d0] sm:$0xff]  ;;  %v490_v9 = vld [vmem:[%s5311_s3 + $0x818] sm:$0xff] }
 0x134   :  { %2109 = vmatpush1.bf16.msra.mxu1 %v2108_v47  ;;  %v2138_v47 = vpack.c.bf16 %v386_v38, %v378_v37  ;;  %v2152_v37 = vpack.c.bf16 %v433_v29, %v425_v59  ;;  %v2508_v38 = vpack.c.bf16 %v1383_v36, %v1381_v35  ;;  %v498_v10 = vld [vmem:[%s5311_s3 + $0x858] sm:$0xff]  ;;  %v1397_v59 = vld [vmem:[%s5314_s5 + $0x120] sm:$0xff]  ;;  %v1399_v29 = vld [vmem:[%s5314_s5 + $0x130] sm:$0xff] }
 0x135   :  { %2111 = vmatprep.subr.bf16.mxu1 %v2110_v48  ;;  %v377_v48 = vld [vmem:[%s5311_s3 + $0x490] sm:$0xff]  ;;  %2493 = vmatpush1.bf16.msra.mxu0 %v2492_v46  ;;  %v1388_v46 = vld [vmem:[%s5314_s5 + $0xd8] sm:$0xff]  ;;  %v2524_v31 = vpack.c.bf16 %v1399_v29, %v1397_v59 }
 0x136   :  { %v2140_v61 = vpack.c.bf16 %v385_v49, %v377_v48  ;;  %v1385_v48 = vld [vmem:[%s5314_s5 + $0xc0] sm:$0xff]  ;;  %v1387_v49 = vld [vmem:[%s5314_s5 + $0xd0] sm:$0xff]  ;;  %v506_v23 = vld [vmem:[%s5311_s3 + $0x898] sm:$0xff] }
 0x137   :  { %v514_v24 = vld [vmem:[%s5311_s3 + $0x8d8] sm:$0xff] }
 0x138   :  { %2113 = vmatpush1.bf16.msra.mxu1 %v2112_v53  ;;  %v1372_v53 = vld [vmem:[%s5314_s5 + $0x58] sm:$0xff] }
 0x139   :  { %2115 = vmatprep.subr.bf16.mxu1 %v2114_v54  ;;  %v2494_v54 = vpack.c.bf16 %v1372_v53, %v1370_v52  ;;  %v2158_v52 = vpack.c.bf16 %v466_v44, %v458_v43  ;;  %v457_v53 = vld [vmem:[%s5311_s3 + $0x710] sm:$0xff]  ;;  %v522_v35 = vld [vmem:[%s5311_s3 + $0x918] sm:$0xff] }
 0x13a   :  { %v530_v36 = vld [vmem:[%s5311_s3 + $0x958] sm:$0xff] }
 0x13b   :  { %2495 = vmatprep.subr.bf16.mxu0 %v2494_v54  ;;  %v465_v54 = vld [vmem:[%s5311_s3 + $0x750] sm:$0xff]  ;;  %v586_v59 = vld [vmem:[%s5311_s3 + $0xb18] sm:$0xff] }
 0x13c   :  { %2117 = vmatpush1.bf16.msra.mxu1 %v2116_v63  ;;  %v2142_v63 = vpack.c.bf16 %v402_v51, %v394_v50  ;;  %2497 = vmatpush1.bf16.msra.mxu0 %v2496_v62  ;;  %v2156_v50 = vpack.c.bf16 %v449_v41, %v441_v40  ;;  %v2512_v51 = vpack.c.bf16 %v1387_v49, %v1385_v48  ;;  %v1392_v62 = vld [vmem:[%s5314_s5 + $0xf8] sm:$0xff]  ;;  %v1401_v40 = vld [vmem:[%s5314_s5 + $0x140] sm:$0xff]  ;;  %v1403_v41 = vld [vmem:[%s5314_s5 + $0x150] sm:$0xff] }
 0x13d   :  { %2119 = vmatprep.subr.bf16.mxu1 %v2118_v0  ;;  %v393_v0 = vld [vmem:[%s5311_s3 + $0x510] sm:$0xff]  ;;  %v2528_v44 = vpack.c.bf16 %v1403_v41, %v1401_v40  ;;  %v538_v48 = vld [vmem:[%s5311_s3 + $0x998] sm:$0xff] }
 0x13e   :  { %v2144_v11 = vpack.c.bf16 %v401_v1, %v393_v0  ;;  %v1389_v0 = vld [vmem:[%s5314_s5 + $0xe0] sm:$0xff]  ;;  %v1391_v1 = vld [vmem:[%s5314_s5 + $0xf0] sm:$0xff]  ;;  %v546_v49 = vld [vmem:[%s5311_s3 + $0x9d8] sm:$0xff] }
 0x13f   :  { %v594_v29 = vld [vmem:[%s5311_s3 + $0xb58] sm:$0xff] }
 0x140   :  { %2121 = vmatpush1.bf16.msra.mxu1 %v2120_v7  ;;  %v1376_v7 = vld [vmem:[%s5314_s5 + $0x78] sm:$0xff] }
 0x141   :  { %2123 = vmatprep.subr.bf16.mxu1 %v2122_v8  ;;  %v2498_v8 = vpack.c.bf16 %v1376_v7, %v1374_v5  ;;  %v2162_v5 = vpack.c.bf16 %v482_v56, %v474_v55  ;;  %v473_v7 = vld [vmem:[%s5311_s3 + $0x790] sm:$0xff]  ;;  %v602_v40 = vld [vmem:[%s5311_s3 + $0xb98] sm:$0xff] }
 0x142   :  { %v610_v41 = vld [vmem:[%s5311_s3 + $0xbd8] sm:$0xff] }
 0x143   :  { %2499 = vmatprep.subr.bf16.mxu0 %v2498_v8  ;;  %v481_v8 = vld [vmem:[%s5311_s3 + $0x7d0] sm:$0xff] }
 0x144   :  { %2125 = vmatpush1.bf16.msra.mxu1 %v2124_v14  ;;  %v2146_v14 = vpack.c.bf16 %v418_v4, %v410_v3  ;;  %2501 = vmatpush1.bf16.msra.mxu0 %v2500_v13  ;;  %v2160_v3 = vpack.c.bf16 %v465_v54, %v457_v53  ;;  %v2516_v4 = vpack.c.bf16 %v1391_v1, %v1389_v0  ;;  %v1396_v13 = vld [vmem:[%s5314_s5 + $0x118] sm:$0xff]  ;;  %v1405_v53 = vld [vmem:[%s5314_s5 + $0x160] sm:$0xff]  ;;  %v1407_v54 = vld [vmem:[%s5314_s5 + $0x170] sm:$0xff] }
 0x145   :  { %2127 = vmatprep.subr.bf16.mxu1 %v2126_v15  ;;  %v409_v15 = vld [vmem:[%s5311_s3 + $0x590] sm:$0xff]  ;;  %v2164_v17 = vpack.c.bf16 %v481_v8, %v473_v7  ;;  %v2532_v56 = vpack.c.bf16 %v1407_v54, %v1405_v53  ;;  %v554_v0 = vld [vmem:[%s5311_s3 + $0xa18] sm:$0xff]  ;;  %v1409_v7 = vld [vmem:[%s5314_s5 + $0x180] sm:$0xff] }
 0x146   :  { %v2148_v25 = vpack.c.bf16 %v417_v16, %v409_v15  ;;  %v1393_v15 = vld [vmem:[%s5314_s5 + $0x100] sm:$0xff]  ;;  %v1395_v16 = vld [vmem:[%s5314_s5 + $0x110] sm:$0xff]  ;;  %v562_v1 = vld [vmem:[%s5311_s3 + $0xa58] sm:$0xff] }
 0x147   :  { %v2520_v19 = vpack.c.bf16 %v1395_v16, %v1393_v15  ;;  %v1411_v8 = vld [vmem:[%s5314_s5 + $0x190] sm:$0xff]  ;;  %v570_v15 = vld [vmem:[%s5311_s3 + $0xa98] sm:$0xff] }
 0x148   :  { %2129 = vmatpush1.bf16.msra.mxu1 %v2128_v21  ;;  %v1380_v21 = vld [vmem:[%s5314_s5 + $0x98] sm:$0xff] }
 0x149   :  { %2131 = vmatprep.subr.bf16.mxu1 %v2130_v22  ;;  %v2502_v22 = vpack.c.bf16 %v1380_v21, %v1378_v20  ;;  %v2166_v20 = vpack.c.bf16 %v498_v10, %v490_v9  ;;  %v489_v21 = vld [vmem:[%s5311_s3 + $0x810] sm:$0xff]  ;;  %v2536_v10 = vpack.c.bf16 %v1411_v8, %v1409_v7  ;;  %v578_v16 = vld [vmem:[%s5311_s3 + $0xad8] sm:$0xff] }
 0x14a   :  { %v618_v53 = vld [vmem:[%s5311_s3 + $0xc18] sm:$0xff] }
 0x14b   :  { %2503 = vmatprep.subr.bf16.mxu0 %v2502_v22  ;;  %v497_v22 = vld [vmem:[%s5311_s3 + $0x850] sm:$0xff]  ;;  %v626_v54 = vld [vmem:[%s5311_s3 + $0xc58] sm:$0xff] }
 0x14c   :  { %2133 = vmatpush1.bf16.msra.mxu1 %v2132_v32  ;;  %2505 = vmatpush1.bf16.msra.mxu0 %v2504_v26  ;;  %v1382_v32 = vld [vmem:[%s5314_s5 + $0xa8] sm:$0xff]  ;;  %v1400_v26 = vld [vmem:[%s5314_s5 + $0x138] sm:$0xff]  ;;  %v2168_v30 = vpack.c.bf16 %v497_v22, %v489_v21  ;;  %v1413_v21 = vld [vmem:[%s5314_s5 + $0x1a0] sm:$0xff] }
 0x14d   :  { %2135 = vmatprep.subr.bf16.mxu1 %v2134_v34  ;;  %v2506_v34 = vpack.c.bf16 %v1384_v33, %v1382_v32  ;;  %v2170_v32 = vpack.c.bf16 %v514_v24, %v506_v23  ;;  %v505_v33 = vld [vmem:[%s5311_s3 + $0x890] sm:$0xff]  ;;  %v650_v7 = vld [vmem:[%s5311_s3 + $0xd18] sm:$0xff] }
 0x14e   :  { %v1415_v22 = vld [vmem:[%s5314_s5 + $0x1b0] sm:$0xff]  ;;  %v658_v8 = vld [vmem:[%s5311_s3 + $0xd58] sm:$0xff] }
 0x14f   :  { %2507 = vmatprep.subr.bf16.mxu0 %v2506_v34  ;;  %v513_v34 = vld [vmem:[%s5311_s3 + $0x8d0] sm:$0xff]  ;;  %v2540_v24 = vpack.c.bf16 %v1415_v22, %v1413_v21  ;;  %v682_v21 = vld [vmem:[%s5311_s3 + $0xe18] sm:$0xff] }
 0x150   :  { %2137 = vmatpush1.bf16.msra.mxu1 %v2136_v45  ;;  %2509 = vmatpush1.bf16.msra.mxu0 %v2508_v38  ;;  %v1386_v45 = vld [vmem:[%s5314_s5 + $0xc8] sm:$0xff]  ;;  %v1404_v38 = vld [vmem:[%s5314_s5 + $0x158] sm:$0xff]  ;;  %v2172_v43 = vpack.c.bf16 %v513_v34, %v505_v33  ;;  %v1417_v33 = vld [vmem:[%s5314_s5 + $0x1c0] sm:$0xff] }
 0x151   :  { %2139 = vmatprep.subr.bf16.mxu1 %v2138_v47  ;;  %v2510_v47 = vpack.c.bf16 %v1388_v46, %v1386_v45  ;;  %v2174_v45 = vpack.c.bf16 %v530_v36, %v522_v35  ;;  %v521_v46 = vld [vmem:[%s5311_s3 + $0x910] sm:$0xff]  ;;  %v690_v22 = vld [vmem:[%s5311_s3 + $0xe58] sm:$0xff] }
 0x152   :  { %v1419_v34 = vld [vmem:[%s5314_s5 + $0x1d0] sm:$0xff] }
 0x153   :  { %2511 = vmatprep.subr.bf16.mxu0 %v2510_v47  ;;  %v529_v47 = vld [vmem:[%s5311_s3 + $0x950] sm:$0xff]  ;;  %v2544_v36 = vpack.c.bf16 %v1419_v34, %v1417_v33  ;;  %v714_v33 = vld [vmem:[%s5311_s3 + $0xf18] sm:$0xff] }
 0x154   :  { %2141 = vmatpush1.bf16.msra.mxu1 %v2140_v61  ;;  %2513 = vmatpush1.bf16.msra.mxu0 %v2512_v51  ;;  %v1390_v61 = vld [vmem:[%s5314_s5 + $0xe8] sm:$0xff]  ;;  %v1408_v51 = vld [vmem:[%s5314_s5 + $0x178] sm:$0xff]  ;;  %v2176_v55 = vpack.c.bf16 %v529_v47, %v521_v46  ;;  %v1421_v46 = vld [vmem:[%s5314_s5 + $0x1e0] sm:$0xff] }
 0x155   :  { %2143 = vmatprep.subr.bf16.mxu1 %v2142_v63  ;;  %v2514_v63 = vpack.c.bf16 %v1392_v62, %v1390_v61  ;;  %v2178_v61 = vpack.c.bf16 %v546_v49, %v538_v48  ;;  %v537_v62 = vld [vmem:[%s5311_s3 + $0x990] sm:$0xff]  ;;  %v722_v34 = vld [vmem:[%s5311_s3 + $0xf58] sm:$0xff] }
 0x156   :  { %v1423_v47 = vld [vmem:[%s5314_s5 + $0x1f0] sm:$0xff] }
 0x157   :  { %2515 = vmatprep.subr.bf16.mxu0 %v2514_v63  ;;  %v545_v63 = vld [vmem:[%s5311_s3 + $0x9d0] sm:$0xff]  ;;  %v2548_v49 = vpack.c.bf16 %v1423_v47, %v1421_v46  ;;  %v238_v46 = vld [vmem:[%s5311_s3 + $0x38] sm:$0xff] }
 0x158   :  { %2145 = vmatpush1.bf16.msra.mxu1 %v2144_v11  ;;  %2517 = vmatpush1.bf16.msra.mxu0 %v2516_v4  ;;  %v1394_v11 = vld [vmem:[%s5314_s5 + $0x108] sm:$0xff]  ;;  %v1412_v4 = vld [vmem:[%s5314_s5 + $0x198] sm:$0xff]  ;;  %v2180_v9 = vpack.c.bf16 %v545_v63, %v537_v62  ;;  %v625_v62 = vld [vmem:[%s5311_s3 + $0xc50] sm:$0xff] }
 0x159   :  { %2147 = vmatprep.subr.bf16.mxu1 %v2146_v14  ;;  %v2518_v14 = vpack.c.bf16 %v1396_v13, %v1394_v11  ;;  %v2182_v11 = vpack.c.bf16 %v562_v1, %v554_v0  ;;  %v553_v13 = vld [vmem:[%s5311_s3 + $0xa10] sm:$0xff]  ;;  %v634_v63 = vld [vmem:[%s5311_s3 + $0xc98] sm:$0xff] }
 0x15a   :  { %v642_v0 = vld [vmem:[%s5311_s3 + $0xcd8] sm:$0xff] }
 0x15b   :  { %2519 = vmatprep.subr.bf16.mxu0 %v2518_v14  ;;  %v561_v14 = vld [vmem:[%s5311_s3 + $0xa50] sm:$0xff]  ;;  %v246_v47 = vld [vmem:[%s5311_s3 + $0x78] sm:$0xff] }
 0x15c   :  { %2149 = vmatpush1.bf16.msra.mxu1 %v2148_v25  ;;  %2521 = vmatpush1.bf16.msra.mxu0 %v2520_v19  ;;  %v1398_v25 = vld [vmem:[%s5314_s5 + $0x128] sm:$0xff]  ;;  %v1416_v19 = vld [vmem:[%s5314_s5 + $0x1b8] sm:$0xff]  ;;  %v2184_v23 = vpack.c.bf16 %v561_v14, %v553_v13  ;;  %v657_v13 = vld [vmem:[%s5311_s3 + $0xd50] sm:$0xff] }
 0x15d   :  { %2151 = vmatprep.subr.bf16.mxu1 %v2150_v28  ;;  %v2522_v28 = vpack.c.bf16 %v1400_v26, %v1398_v25  ;;  %v2186_v25 = vpack.c.bf16 %v578_v16, %v570_v15  ;;  %v569_v26 = vld [vmem:[%s5311_s3 + $0xa90] sm:$0xff]  ;;  %v666_v14 = vld [vmem:[%s5311_s3 + $0xd98] sm:$0xff] }
 0x15e   :  { %v674_v15 = vld [vmem:[%s5311_s3 + $0xdd8] sm:$0xff] }
 0x15f   :  { %2523 = vmatprep.subr.bf16.mxu0 %v2522_v28  ;;  %v577_v28 = vld [vmem:[%s5311_s3 + $0xad0] sm:$0xff] }
 0x160   :  { %2153 = vmatpush1.bf16.msra.mxu1 %v2152_v37  ;;  %2525 = vmatpush1.bf16.msra.mxu0 %v2524_v31  ;;  %v1402_v37 = vld [vmem:[%s5314_s5 + $0x148] sm:$0xff]  ;;  %v1420_v31 = vld [vmem:[%s5314_s5 + $0x1d8] sm:$0xff]  ;;  %v2188_v35 = vpack.c.bf16 %v577_v28, %v569_v26  ;;  %v689_v26 = vld [vmem:[%s5311_s3 + $0xe50] sm:$0xff] }
 0x161   :  { %2155 = vmatprep.subr.bf16.mxu1 %v2154_v27  ;;  %v2526_v27 = vpack.c.bf16 %v1404_v38, %v1402_v37  ;;  %v2190_v37 = vpack.c.bf16 %v594_v29, %v586_v59  ;;  %v585_v38 = vld [vmem:[%s5311_s3 + $0xb10] sm:$0xff]  ;;  %v698_v28 = vld [vmem:[%s5311_s3 + $0xe98] sm:$0xff] }
 0x162   :  { %v706_v59 = vld [vmem:[%s5311_s3 + $0xed8] sm:$0xff] }
 0x163   :  { %2527 = vmatprep.subr.bf16.mxu0 %v2526_v27  ;;  %v593_v27 = vld [vmem:[%s5311_s3 + $0xb50] sm:$0xff] }
 0x164   :  { %2157 = vmatpush1.bf16.msra.mxu1 %v2156_v50  ;;  %2529 = vmatpush1.bf16.msra.mxu0 %v2528_v44  ;;  %v1406_v50 = vld [vmem:[%s5314_s5 + $0x168] sm:$0xff]  ;;  %v1424_v44 = vld [vmem:[%s5314_s5 + $0x1f8] sm:$0xff]  ;;  %v2192_v48 = vpack.c.bf16 %v593_v27, %v585_v38  ;;  %v721_v38 = vld [vmem:[%s5311_s3 + $0xf50] sm:$0xff] }
 0x165   :  { %2159 = vmatprep.subr.bf16.mxu1 %v2158_v52  ;;  %v2530_v52 = vpack.c.bf16 %v1408_v51, %v1406_v50  ;;  %v2194_v50 = vpack.c.bf16 %v610_v41, %v602_v40  ;;  %v601_v51 = vld [vmem:[%s5311_s3 + $0xb90] sm:$0xff]  ;;  %v730_v27 = vld [vmem:[%s5311_s3 + $0xf98] sm:$0xff] }
 0x166   :  { %v738_v40 = vld [vmem:[%s5311_s3 + $0xfd8] sm:$0xff] }
 0x167   :  { %2531 = vmatprep.subr.bf16.mxu0 %v2530_v52  ;;  %v609_v52 = vld [vmem:[%s5311_s3 + $0xbd0] sm:$0xff] }
 0x168   :  { %2161 = vmatpush1.bf16.msra.mxu1 %v2160_v3  ;;  %2533 = vmatpush1.bf16.msra.mxu0 %v2532_v56  ;;  %v1410_v3 = vld [vmem:[%s5314_s5 + $0x188] sm:$0xff]  ;;  %v2198_v56 = vpack.c.bf16 %v626_v54, %v618_v53  ;;  %v262_v53 = vld [vmem:[%s5311_s3 + $0xf8] sm:$0xff] }
 0x169   :  { %2163 = vmatprep.subr.bf16.mxu1 %v2162_v5  ;;  %v2534_v5 = vpack.c.bf16 %v1412_v4, %v1410_v3  ;;  %v2202_v3 = vpack.c.bf16 %v642_v0, %v634_v63  ;;  %v633_v4 = vld [vmem:[%s5311_s3 + $0xc90] sm:$0xff]  ;;  %v278_v63 = vld [vmem:[%s5311_s3 + $0x178] sm:$0xff]  ;;  %v1426_v0 = vld [vmem:[%s5314_s5 + $0x208] sm:$0xff] }
 0x16b   :  { %2535 = vmatprep.subr.bf16.mxu0 %v2534_v5  ;;  %v641_v5 = vld [vmem:[%s5311_s3 + $0xcd0] sm:$0xff] }
 0x16c   :  { %2165 = vmatpush1.bf16.msra.mxu1 %v2164_v17  ;;  %2537 = vmatpush1.bf16.msra.mxu0 %v2536_v10  ;;  %v1414_v17 = vld [vmem:[%s5314_s5 + $0x1a8] sm:$0xff]  ;;  %v2206_v10 = vpack.c.bf16 %v658_v8, %v650_v7  ;;  %v269_v7 = vld [vmem:[%s5311_s3 + $0x130] sm:$0xff] }
 0x16d   :  { %2167 = vmatprep.subr.bf16.mxu1 %v2166_v20  ;;  %v2538_v20 = vpack.c.bf16 %v1416_v19, %v1414_v17  ;;  %v2210_v17 = vpack.c.bf16 %v674_v15, %v666_v14  ;;  %v665_v19 = vld [vmem:[%s5311_s3 + $0xd90] sm:$0xff]  ;;  %v302_v15 = vld [vmem:[%s5311_s3 + $0x238] sm:$0xff] }
 0x16e   :  { %v277_v8 = vld [vmem:[%s5311_s3 + $0x170] sm:$0xff] }
 0x16f   :  { %992 = vmatmul.mubr.f32.vlgmr.msra.gmra.mrb[4].mxu1 %v3366_v18  ;;  %2539 = vmatprep.subr.bf16.mxu0 %v2538_v20  ;;  %v673_v20 = vld [vmem:[%s5311_s3 + $0xdd0] sm:$0xff] }
 0x170   :  { %2169 = vmatpush1.bf16.msra.mxu1 %v2168_v30  ;;  %1062 = vmatprep.mubr.f32.mxu1 %v3416_v42  ;;  %v1418_v30 = vld [vmem:[%s5314_s5 + $0x1c8] sm:$0xff]  ;;  %v293_v14 = vld [vmem:[%s5311_s3 + $0x1f0] sm:$0xff] }
 0x171   :  { %2171 = vmatprep.subr.bf16.mxu1 %v2170_v32  ;;  %2541 = vmatpush1.bf16.msra.mxu0 %v2540_v24  ;;  %v2542_v32 = vpack.c.bf16 %v1420_v31, %v1418_v30  ;;  %v2214_v24 = vpack.c.bf16 %v690_v22, %v682_v21  ;;  %v2218_v30 = vpack.c.bf16 %v706_v59, %v698_v28  ;;  %v697_v31 = vld [vmem:[%s5311_s3 + $0xe90] sm:$0xff]  ;;  %v318_v22 = vld [vmem:[%s5311_s3 + $0x2b8] sm:$0xff] }
 0x172   :  { %v309_v21 = vld [vmem:[%s5311_s3 + $0x270] sm:$0xff]  ;;  %v334_v59 = vld [vmem:[%s5311_s3 + $0x338] sm:$0xff] }
 0x173   :  { %2543 = vmatprep.subr.bf16.mxu0 %v2542_v32  ;;  %v705_v32 = vld [vmem:[%s5311_s3 + $0xed0] sm:$0xff] }
 0x174   :  { %2173 = vmatpush1.bf16.msra.mxu1 %v2172_v43  ;;  %v1422_v43 = vld [vmem:[%s5314_s5 + $0x1e8] sm:$0xff]  ;;  %v325_v28 = vld [vmem:[%s5311_s3 + $0x2f0] sm:$0xff] }
 0x175   :  { %2175 = vmatprep.subr.bf16.mxu1 %v2174_v45  ;;  %2545 = vmatpush1.bf16.msra.mxu0 %v2544_v36  ;;  %v2546_v45 = vpack.c.bf16 %v1424_v44, %v1422_v43  ;;  %v2222_v36 = vpack.c.bf16 %v722_v34, %v714_v33  ;;  %v2226_v43 = vpack.c.bf16 %v738_v40, %v730_v27  ;;  %v729_v44 = vld [vmem:[%s5311_s3 + $0xf90] sm:$0xff]  ;;  %v350_v34 = vld [vmem:[%s5311_s3 + $0x3b8] sm:$0xff] }
 0x176   :  { %v341_v33 = vld [vmem:[%s5311_s3 + $0x370] sm:$0xff]  ;;  %v366_v40 = vld [vmem:[%s5311_s3 + $0x438] sm:$0xff] }
 0x177   :  { %2547 = vmatprep.subr.bf16.mxu0 %v2546_v45  ;;  %v737_v45 = vld [vmem:[%s5311_s3 + $0xfd0] sm:$0xff] }
 0x178   :  { %2177 = vmatpush1.bf16.msra.mxu1 %v2176_v55  ;;  %v2196_v55 = vpack.c.bf16 %v609_v52, %v601_v51  ;;  %v245_v51 = vld [vmem:[%s5311_s3 + $0x70] sm:$0xff]  ;;  %v254_v52 = vld [vmem:[%s5311_s3 + $0xb8] sm:$0xff] }
 0x179   :  { %2179 = vmatprep.subr.bf16.mxu1 %v2178_v61  ;;  %2549 = vmatpush1.bf16.msra.mxu0 %v2548_v49  ;;  %v617_v61 = vld [vmem:[%s5311_s3 + $0xc10] sm:$0xff]  ;;  %v2358_v49 = vpack.c.bf16 %v246_v47, %v238_v46  ;;  %v382_v47 = vld [vmem:[%s5311_s3 + $0x4b8] sm:$0xff] }
 0x17a   :  { %v2200_v1 = vpack.c.bf16 %v625_v62, %v617_v61  ;;  %v261_v61 = vld [vmem:[%s5311_s3 + $0xf0] sm:$0xff]  ;;  %v270_v62 = vld [vmem:[%s5311_s3 + $0x138] sm:$0xff] }
 0x17b   :  { %v357_v27 = vld [vmem:[%s5311_s3 + $0x3f0] sm:$0xff] }
 0x17c   :  { %2181 = vmatpush1.bf16.msra.mxu1 %v2180_v9  ;;  %v2204_v9 = vpack.c.bf16 %v641_v5, %v633_v4  ;;  %v2366_v5 = vpack.c.bf16 %v278_v63, %v270_v62  ;;  %v373_v46 = vld [vmem:[%s5311_s3 + $0x470] sm:$0xff]  ;;  %v414_v63 = vld [vmem:[%s5311_s3 + $0x5b8] sm:$0xff] }
 0x17d   :  { %2183 = vmatprep.subr.bf16.mxu1 %v2182_v11  ;;  %v649_v11 = vld [vmem:[%s5311_s3 + $0xd10] sm:$0xff] }
 0x17e   :  { %v2208_v16 = vpack.c.bf16 %v657_v13, %v649_v11  ;;  %v285_v13 = vld [vmem:[%s5311_s3 + $0x1b0] sm:$0xff] }
 0x17f   :  { %v405_v62 = vld [vmem:[%s5311_s3 + $0x570] sm:$0xff] }
 0x180   :  { %2185 = vmatpush1.bf16.msra.mxu1 %v2184_v23  ;;  %v2212_v23 = vpack.c.bf16 %v673_v20, %v665_v19  ;;  %v301_v20 = vld [vmem:[%s5311_s3 + $0x230] sm:$0xff] }
 0x181   :  { %2187 = vmatprep.subr.bf16.mxu1 %v2186_v25  ;;  %v681_v25 = vld [vmem:[%s5311_s3 + $0xe10] sm:$0xff] }
 0x182   :  { %v2216_v29 = vpack.c.bf16 %v689_v26, %v681_v25  ;;  %v317_v26 = vld [vmem:[%s5311_s3 + $0x2b0] sm:$0xff] }
 0x184   :  { %2189 = vmatpush1.bf16.msra.mxu1 %v2188_v35  ;;  %v2220_v35 = vpack.c.bf16 %v705_v32, %v697_v31  ;;  %v333_v32 = vld [vmem:[%s5311_s3 + $0x330] sm:$0xff] }
 0x185   :  { %2191 = vmatprep.subr.bf16.mxu1 %v2190_v37  ;;  %v713_v37 = vld [vmem:[%s5311_s3 + $0xf10] sm:$0xff] }
 0x186   :  { %v2224_v41 = vpack.c.bf16 %v721_v38, %v713_v37  ;;  %v349_v38 = vld [vmem:[%s5311_s3 + $0x3b0] sm:$0xff] }
 0x188   :  { %2193 = vmatpush1.bf16.msra.mxu1 %v2192_v48  ;;  %v2228_v48 = vpack.c.bf16 %v737_v45, %v729_v44  ;;  %v365_v45 = vld [vmem:[%s5311_s3 + $0x430] sm:$0xff] }
 0x189   :  { %2195 = vmatprep.subr.bf16.mxu1 %v2194_v50  ;;  %v237_v50 = vld [vmem:[%s5311_s3 + $0x30] sm:$0xff] }
 0x18a   :  { %v2360_v54 = vpack.c.bf16 %v245_v51, %v237_v50  ;;  %v381_v51 = vld [vmem:[%s5311_s3 + $0x4b0] sm:$0xff] }
 0x18c   :  { %2197 = vmatpush1.bf16.msra.mxu1 %v2196_v55  ;;  %v2362_v55 = vpack.c.bf16 %v262_v53, %v254_v52  ;;  %v389_v52 = vld [vmem:[%s5311_s3 + $0x4f0] sm:$0xff]  ;;  %v398_v53 = vld [vmem:[%s5311_s3 + $0x538] sm:$0xff] }
 0x18d   :  { %2199 = vmatprep.subr.bf16.mxu1 %v2198_v56  ;;  %v253_v56 = vld [vmem:[%s5311_s3 + $0xb0] sm:$0xff] }
 0x190   :  { %2201 = vmatpush1.bf16.msra.mxu1 %v2200_v1  ;;  %v1428_v1 = vld [vmem:[%s5314_s5 + $0x218] sm:$0xff] }
 0x191   :  { %2203 = vmatprep.subr.bf16.mxu1 %v2202_v3  ;;  %v2364_v3 = vpack.c.bf16 %v261_v61, %v253_v56  ;;  %v2550_v4 = vpack.c.bf16 %v1428_v1, %v1426_v0  ;;  %v397_v61 = vld [vmem:[%s5311_s3 + $0x530] sm:$0xff]  ;;  %v422_v0 = vld [vmem:[%s5311_s3 + $0x5f8] sm:$0xff] }
 0x192   :  { %v2400_v1 = vpack.c.bf16 %v405_v62, %v397_v61 }
 0x193   :  { %2551 = vmatprep.subr.bf16.mxu0 %v2550_v4  ;;  %v413_v4 = vld [vmem:[%s5311_s3 + $0x5b0] sm:$0xff] }
 0x194   :  { %2205 = vmatpush1.bf16.msra.mxu1 %v2204_v9  ;;  %v286_v9 = vld [vmem:[%s5311_s3 + $0x1b8] sm:$0xff] }
 0x195   :  { %2207 = vmatprep.subr.bf16.mxu1 %v2206_v10  ;;  %v2368_v10 = vpack.c.bf16 %v277_v8, %v269_v7  ;;  %v430_v7 = vld [vmem:[%s5311_s3 + $0x638] sm:$0xff] }
 0x196   :  { %v438_v8 = vld [vmem:[%s5311_s3 + $0x678] sm:$0xff] }
 0x198   :  { %2209 = vmatpush1.bf16.msra.mxu1 %v2208_v16  ;;  %v310_v16 = vld [vmem:[%s5311_s3 + $0x278] sm:$0xff] }
 0x199   :  { %2211 = vmatprep.subr.bf16.mxu1 %v2210_v17  ;;  %v2372_v17 = vpack.c.bf16 %v293_v14, %v285_v13  ;;  %v2374_v19 = vpack.c.bf16 %v310_v16, %v302_v15  ;;  %v446_v13 = vld [vmem:[%s5311_s3 + $0x6b8] sm:$0xff] }
 0x19a   :  { %v454_v14 = vld [vmem:[%s5311_s3 + $0x6f8] sm:$0xff] }
 0x19b   :  { %v2410_v16 = vpack.c.bf16 %v454_v14, %v446_v13 }
 0x19c   :  { %2213 = vmatpush1.bf16.msra.mxu1 %v2212_v23  ;;  %v326_v23 = vld [vmem:[%s5311_s3 + $0x2f8] sm:$0xff] }
 0x19d   :  { %2215 = vmatprep.subr.bf16.mxu1 %v2214_v24  ;;  %v2376_v24 = vpack.c.bf16 %v309_v21, %v301_v20  ;;  %v2378_v25 = vpack.c.bf16 %v326_v23, %v318_v22  ;;  %v462_v20 = vld [vmem:[%s5311_s3 + $0x738] sm:$0xff] }
 0x19e   :  { %v470_v21 = vld [vmem:[%s5311_s3 + $0x778] sm:$0xff] }
 0x19f   :  { %v2414_v23 = vpack.c.bf16 %v470_v21, %v462_v20  ;;  %v606_v21 = vld [vmem:[%s5311_s3 + $0xbb8] sm:$0xff] }
 0x1a0   :  { %2217 = vmatpush1.bf16.msra.mxu1 %v2216_v29  ;;  %v342_v29 = vld [vmem:[%s5311_s3 + $0x378] sm:$0xff] }
 0x1a1   :  { %2219 = vmatprep.subr.bf16.mxu1 %v2218_v30  ;;  %v2380_v30 = vpack.c.bf16 %v325_v28, %v317_v26  ;;  %v2382_v31 = vpack.c.bf16 %v342_v29, %v334_v59  ;;  %v478_v26 = vld [vmem:[%s5311_s3 + $0x7b8] sm:$0xff] }
 0x1a2   :  { %v486_v28 = vld [vmem:[%s5311_s3 + $0x7f8] sm:$0xff] }
 0x1a3   :  { %v2418_v29 = vpack.c.bf16 %v486_v28, %v478_v26  ;;  %v1425_v26 = vld [vmem:[%s5314_s5 + $0x200] sm:$0xff]  ;;  %v1427_v28 = vld [vmem:[%s5314_s5 + $0x210] sm:$0xff] }
 0x1a4   :  { %2221 = vmatpush1.bf16.msra.mxu1 %v2220_v35  ;;  %v358_v35 = vld [vmem:[%s5311_s3 + $0x3f8] sm:$0xff] }
 0x1a5   :  { %2223 = vmatprep.subr.bf16.mxu1 %v2222_v36  ;;  %v2384_v36 = vpack.c.bf16 %v341_v33, %v333_v32  ;;  %v2386_v37 = vpack.c.bf16 %v358_v35, %v350_v34  ;;  %v494_v32 = vld [vmem:[%s5311_s3 + $0x838] sm:$0xff] }
 0x1a6   :  { %v502_v33 = vld [vmem:[%s5311_s3 + $0x878] sm:$0xff] }
 0x1a7   :  { %v2422_v35 = vpack.c.bf16 %v502_v33, %v494_v32  ;;  %v605_v33 = vld [vmem:[%s5311_s3 + $0xbb0] sm:$0xff] }
 0x1a8   :  { %2225 = vmatpush1.bf16.msra.mxu1 %v2224_v41  ;;  %v374_v41 = vld [vmem:[%s5311_s3 + $0x478] sm:$0xff] }
 0x1a9   :  { %2227 = vmatprep.subr.bf16.mxu1 %v2226_v43  ;;  %v2388_v43 = vpack.c.bf16 %v357_v27, %v349_v38  ;;  %v2390_v44 = vpack.c.bf16 %v374_v41, %v366_v40  ;;  %v510_v38 = vld [vmem:[%s5311_s3 + $0x8b8] sm:$0xff] }
 0x1aa   :  { %v518_v27 = vld [vmem:[%s5311_s3 + $0x8f8] sm:$0xff] }
 0x1ab   :  { %v2426_v41 = vpack.c.bf16 %v518_v27, %v510_v38  ;;  %v2552_v38 = vpack.c.bf16 %v1427_v28, %v1425_v26  ;;  %v1448_v26 = vld [vmem:[%s5314_s5 + $0x2b8] sm:$0xff] }
 0x1ac   :  { %2229 = vmatpush1.bf16.msra.mxu1 %v2228_v48  ;;  %v390_v48 = vld [vmem:[%s5311_s3 + $0x4f8] sm:$0xff] }
 0x1ad   :  { %2359 = vmatprep.subr.bf16.mxu1 %v2358_v49  ;;  %v2392_v49 = vpack.c.bf16 %v373_v46, %v365_v45  ;;  %v2394_v50 = vpack.c.bf16 %v390_v48, %v382_v47  ;;  %v526_v45 = vld [vmem:[%s5311_s3 + $0x938] sm:$0xff] }
 0x1ae   :  { %v534_v46 = vld [vmem:[%s5311_s3 + $0x978] sm:$0xff] }
 0x1af   :  { %1063 = vmatmul.mubr.f32.vlgmr.msra.gmra.mrb[4].mxu1 %v3743_v39  ;;  %v2430_v48 = vpack.c.bf16 %v534_v46, %v526_v45  ;;  %v1434_v45 = vld [vmem:[%s5314_s5 + $0x248] sm:$0xff]  ;;  %v1436_v46 = vld [vmem:[%s5314_s5 + $0x258] sm:$0xff] }
 0x1b0   :  { %2361 = vmatpush1.bf16.msra.mxu1 %v2360_v54  ;;  %1275 = vmatprep.mubr.f32.mxu1 %v3355_v12  ;;  %v294_v12 = vld [vmem:[%s5311_s3 + $0x1f8] sm:$0xff] }
 0x1b1   :  { %2363 = vmatprep.subr.bf16.mxu1 %v2362_v55  ;;  %v2370_v11 = vpack.c.bf16 %v294_v12, %v286_v9  ;;  %v406_v54 = vld [vmem:[%s5311_s3 + $0x578] sm:$0xff]  ;;  %v2396_v55 = vpack.c.bf16 %v389_v52, %v381_v51  ;;  %v2406_v12 = vpack.c.bf16 %v438_v8, %v430_v7  ;;  %v573_v8 = vld [vmem:[%s5311_s3 + $0xab0] sm:$0xff] }
 0x1b2   :  { %v2398_v56 = vpack.c.bf16 %v406_v54, %v398_v53  ;;  %v542_v51 = vld [vmem:[%s5311_s3 + $0x9b8] sm:$0xff]  ;;  %v541_v53 = vld [vmem:[%s5311_s3 + $0x9b0] sm:$0xff] }
 0x1b3   :  { %v549_v54 = vld [vmem:[%s5311_s3 + $0x9f0] sm:$0xff] }
 0x1b4   :  { %2365 = vmatpush1.bf16.msra.mxu1 %v2364_v3  ;;  %v2402_v3 = vpack.c.bf16 %v422_v0, %v414_v63  ;;  %v2436_v61 = vpack.c.bf16 %v549_v54, %v541_v53  ;;  %v557_v63 = vld [vmem:[%s5311_s3 + $0xa30] sm:$0xff] }
 0x1b5   :  { %2367 = vmatprep.subr.bf16.mxu1 %v2366_v5  ;;  %v421_v5 = vld [vmem:[%s5311_s3 + $0x5f0] sm:$0xff] }
 0x1b6   :  { %v2404_v9 = vpack.c.bf16 %v421_v5, %v413_v4  ;;  %v565_v0 = vld [vmem:[%s5311_s3 + $0xa70] sm:$0xff]  ;;  %v4579_v5 = vld [vmem:[%s5315_s4] sm:$0xff] }
 0x1b7   :  { %v2440_v4 = vpack.c.bf16 %v565_v0, %v557_v63  ;;  %v752_v13 = vrot.slane %v4579_v5, %v3324_v60  ;;  %v1435_v53 = vld [vmem:[%s5314_s5 + $0x250] sm:$0xff]  ;;  %v654_v0 = vld [vmem:[%s5311_s3 + $0xd38] sm:$0xff] }
 0x1b8   :  { %2369 = vmatpush1.bf16.msra.mxu1 %v2368_v10  ;;  %v429_v10 = vld [vmem:[%s5311_s3 + $0x630] sm:$0xff] }
 0x1b9   :  { %2371 = vmatprep.subr.bf16.mxu1 %v2370_v11  ;;  %v437_v11 = vld [vmem:[%s5311_s3 + $0x670] sm:$0xff] }
 0x1ba   :  { %v2408_v15 = vpack.c.bf16 %v437_v11, %v429_v10  ;;  %v598_v10 = vld [vmem:[%s5311_s3 + $0xb78] sm:$0xff]  ;;  %v748_v11 = vrot.slane %v4579_v5, %v3316_v58  ;;  %v645_v63 = vld [vmem:[%s5311_s3 + $0xcf0] sm:$0xff] }
 0x1bc   :  { %2373 = vmatpush1.bf16.msra.mxu1 %v2372_v17  ;;  %v445_v17 = vld [vmem:[%s5311_s3 + $0x6b0] sm:$0xff] }
 0x1bd   :  { %2375 = vmatprep.subr.bf16.mxu1 %v2374_v19  ;;  %v453_v19 = vld [vmem:[%s5311_s3 + $0x6f0] sm:$0xff] }
 0x1be   :  { %v2412_v22 = vpack.c.bf16 %v453_v19, %v445_v17  ;;  %v597_v17 = vld [vmem:[%s5311_s3 + $0xb70] sm:$0xff] }
 0x1c0   :  { %2377 = vmatpush1.bf16.msra.mxu1 %v2376_v24  ;;  %v461_v24 = vld [vmem:[%s5311_s3 + $0x730] sm:$0xff] }
 0x1c1   :  { %2379 = vmatprep.subr.bf16.mxu1 %v2378_v25  ;;  %v469_v25 = vld [vmem:[%s5311_s3 + $0x770] sm:$0xff] }
 0x1c2   :  { %v2416_v59 = vpack.c.bf16 %v469_v25, %v461_v24 }
 0x1c4   :  { %2381 = vmatpush1.bf16.msra.mxu1 %v2380_v30  ;;  %v477_v30 = vld [vmem:[%s5311_s3 + $0x7b0] sm:$0xff] }
 0x1c5   :  { %2383 = vmatprep.subr.bf16.mxu1 %v2382_v31  ;;  %v485_v31 = vld [vmem:[%s5311_s3 + $0x7f0] sm:$0xff] }
 0x1c6   :  { %v2420_v34 = vpack.c.bf16 %v485_v31, %v477_v30  ;;  %v1430_v30 = vld [vmem:[%s5314_s5 + $0x228] sm:$0xff]  ;;  %v1432_v31 = vld [vmem:[%s5314_s5 + $0x238] sm:$0xff] }
 0x1c8   :  { %2385 = vmatpush1.bf16.msra.mxu1 %v2384_v36  ;;  %v493_v36 = vld [vmem:[%s5311_s3 + $0x830] sm:$0xff] }
 0x1c9   :  { %2387 = vmatprep.subr.bf16.mxu1 %v2386_v37  ;;  %v501_v37 = vld [vmem:[%s5311_s3 + $0x870] sm:$0xff] }
 0x1ca   :  { %v2424_v40 = vpack.c.bf16 %v501_v37, %v493_v36  ;;  %v622_v36 = vld [vmem:[%s5311_s3 + $0xc38] sm:$0xff] }
 0x1cb   :  { %v630_v37 = vld [vmem:[%s5311_s3 + $0xc78] sm:$0xff] }
 0x1cc   :  { %2389 = vmatpush1.bf16.msra.mxu1 %v2388_v43  ;;  %v509_v43 = vld [vmem:[%s5311_s3 + $0x8b0] sm:$0xff] }
 0x1cd   :  { %2391 = vmatprep.subr.bf16.mxu1 %v2390_v44  ;;  %v517_v44 = vld [vmem:[%s5311_s3 + $0x8f0] sm:$0xff] }
 0x1ce   :  { %v2428_v47 = vpack.c.bf16 %v517_v44, %v509_v43  ;;  %v1431_v43 = vld [vmem:[%s5314_s5 + $0x230] sm:$0xff] }
 0x1d0   :  { %2393 = vmatpush1.bf16.msra.mxu1 %v2392_v49  ;;  %v525_v49 = vld [vmem:[%s5311_s3 + $0x930] sm:$0xff] }
 0x1d1   :  { %2395 = vmatprep.subr.bf16.mxu1 %v2394_v50  ;;  %v533_v50 = vld [vmem:[%s5311_s3 + $0x970] sm:$0xff] }
 0x1d4   :  { %2397 = vmatpush1.bf16.msra.mxu1 %v2396_v55  ;;  %v558_v55 = vld [vmem:[%s5311_s3 + $0xa38] sm:$0xff] }
 0x1d5   :  { %2399 = vmatprep.subr.bf16.mxu1 %v2398_v56  ;;  %v566_v56 = vld [vmem:[%s5311_s3 + $0xa78] sm:$0xff] }
 0x1d6   :  { %v2438_v62 = vpack.c.bf16 %v566_v56, %v558_v55  ;;  %v1438_v55 = vld [vmem:[%s5314_s5 + $0x268] sm:$0xff]  ;;  %v1440_v56 = vld [vmem:[%s5314_s5 + $0x278] sm:$0xff] }
 0x1d8   :  { %2401 = vmatpush1.bf16.msra.mxu1 %v2400_v1  ;;  %v574_v1 = vld [vmem:[%s5311_s3 + $0xab8] sm:$0xff] }
 0x1d9   :  { %2403 = vmatprep.subr.bf16.mxu1 %v2402_v3  ;;  %v582_v3 = vld [vmem:[%s5311_s3 + $0xaf8] sm:$0xff] }
 0x1da   :  { %v2442_v7 = vpack.c.bf16 %v582_v3, %v574_v1  ;;  %v662_v1 = vld [vmem:[%s5311_s3 + $0xd78] sm:$0xff] }
 0x1dc   :  { %2405 = vmatpush1.bf16.msra.mxu1 %v2404_v9  ;;  %v581_v9 = vld [vmem:[%s5311_s3 + $0xaf0] sm:$0xff] }
 0x1dd   :  { %2407 = vmatprep.subr.bf16.mxu1 %v2406_v12  ;;  %v590_v12 = vld [vmem:[%s5311_s3 + $0xb38] sm:$0xff]  ;;  %v2444_v14 = vpack.c.bf16 %v581_v9, %v573_v8  ;;  %v1439_v8 = vld [vmem:[%s5314_s5 + $0x270] sm:$0xff] }
 0x1e0   :  { %2409 = vmatpush1.bf16.msra.mxu1 %v2408_v15  ;;  %v2446_v15 = vpack.c.bf16 %v598_v10, %v590_v12  ;;  %v1442_v12 = vld [vmem:[%s5314_s5 + $0x288] sm:$0xff]  ;;  %v1444_v10 = vld [vmem:[%s5314_s5 + $0x298] sm:$0xff] }
 0x1e1   :  { %2411 = vmatprep.subr.bf16.mxu1 %v2410_v16  ;;  %v589_v16 = vld [vmem:[%s5311_s3 + $0xb30] sm:$0xff] }
 0x1e4   :  { %2413 = vmatpush1.bf16.msra.mxu1 %v2412_v22  ;;  %v614_v22 = vld [vmem:[%s5311_s3 + $0xbf8] sm:$0xff] }
 0x1e5   :  { %2415 = vmatprep.subr.bf16.mxu1 %v2414_v23  ;;  %v2450_v32 = vpack.c.bf16 %v614_v22, %v606_v21  ;;  %v1441_v21 = vld [vmem:[%s5314_s5 + $0x280] sm:$0xff]  ;;  %v1443_v22 = vld [vmem:[%s5314_s5 + $0x290] sm:$0xff] }
 0x1e8   :  { %2417 = vmatpush1.bf16.msra.mxu1 %v2416_v59 }
 0x1e9   :  { %2419 = vmatprep.subr.bf16.mxu1 %v2418_v29  ;;  %v2448_v29 = vpack.c.bf16 %v597_v17, %v589_v16  ;;  %v678_v16 = vld [vmem:[%s5311_s3 + $0xdf8] sm:$0xff] }
 0x1ec   :  { %2421 = vmatpush1.bf16.msra.mxu1 %v2420_v34  ;;  %v613_v34 = vld [vmem:[%s5311_s3 + $0xbf0] sm:$0xff] }
 0x1ed   :  { %2423 = vmatprep.subr.bf16.mxu1 %v2422_v35  ;;  %v2452_v44 = vpack.c.bf16 %v613_v34, %v605_v33  ;;  %v1445_v34 = vld [vmem:[%s5314_s5 + $0x2a0] sm:$0xff] }
 0x1ef   :  { %1276 = vmatmul.mubr.f32.vlgmr.msra.gmra.mrb[6].mxu1 %v3366_v18  ;;  %v550_v18 = vld [vmem:[%s5311_s3 + $0x9f8] sm:$0xff] }
 0x1f0   :  { %2425 = vmatpush1.bf16.msra.mxu1 %v2424_v40  ;;  %1346 = vmatprep.mubr.f32.mxu1 %v3416_v42  ;;  %v2432_v42 = vpack.c.bf16 %v533_v50, %v525_v49  ;;  %v2434_v52 = vpack.c.bf16 %v550_v18, %v542_v51  ;;  %v2554_v40 = vpack.c.bf16 %v1432_v31, %v1430_v30  ;;  %v629_v49 = vld [vmem:[%s5311_s3 + $0xc70] sm:$0xff]  ;;  %v638_v50 = vld [vmem:[%s5311_s3 + $0xcb8] sm:$0xff] }
 0x1f1   :  { %2427 = vmatprep.subr.bf16.mxu1 %v2426_v41  ;;  %v1429_v41 = vld [vmem:[%s5314_s5 + $0x220] sm:$0xff]  ;;  %v646_v51 = vld [vmem:[%s5311_s3 + $0xcf8] sm:$0xff] }
 0x1f2   :  { %v2556_v18 = vpack.c.bf16 %v1431_v43, %v1429_v41  ;;  %v686_v30 = vld [vmem:[%s5311_s3 + $0xe38] sm:$0xff]  ;;  %v693_v41 = vld [vmem:[%s5311_s3 + $0xe70] sm:$0xff] }
 0x1f3   :  { %v694_v31 = vld [vmem:[%s5311_s3 + $0xe78] sm:$0xff] }
 0x1f4   :  { %2429 = vmatpush1.bf16.msra.mxu1 %v2428_v47  ;;  %v2454_v47 = vpack.c.bf16 %v630_v37, %v622_v36  ;;  %v1450_v37 = vld [vmem:[%s5314_s5 + $0x2c8] sm:$0xff]  ;;  %v702_v43 = vld [vmem:[%s5311_s3 + $0xeb8] sm:$0xff] }
 0x1f5   :  { %2431 = vmatprep.subr.bf16.mxu1 %v2430_v48  ;;  %v621_v48 = vld [vmem:[%s5311_s3 + $0xc30] sm:$0xff] }
 0x1f6   :  { %v2456_v54 = vpack.c.bf16 %v629_v49, %v621_v48  ;;  %v1451_v48 = vld [vmem:[%s5314_s5 + $0x2d0] sm:$0xff] }
 0x1f8   :  { %2433 = vmatpush1.bf16.msra.mxu1 %v2432_v42  ;;  %v2558_v42 = vpack.c.bf16 %v1436_v46, %v1434_v45 }
 0x1f9   :  { %2435 = vmatprep.subr.bf16.mxu1 %v2434_v52  ;;  %v1433_v52 = vld [vmem:[%s5314_s5 + $0x240] sm:$0xff] }
 0x1fa   :  { %v2560_v3 = vpack.c.bf16 %v1435_v53, %v1433_v52  ;;  %v709_v52 = vld [vmem:[%s5311_s3 + $0xef0] sm:$0xff]  ;;  %v718_v53 = vld [vmem:[%s5311_s3 + $0xf38] sm:$0xff] }
 0x1fc   :  { %2437 = vmatpush1.bf16.msra.mxu1 %v2436_v61  ;;  %v2458_v61 = vpack.c.bf16 %v646_v51, %v638_v50  ;;  %v1454_v50 = vld [vmem:[%s5314_s5 + $0x2e8] sm:$0xff]  ;;  %v1456_v51 = vld [vmem:[%s5314_s5 + $0x2f8] sm:$0xff] }
 0x1fd   :  { %2439 = vmatprep.subr.bf16.mxu1 %v2438_v62  ;;  %v637_v62 = vld [vmem:[%s5311_s3 + $0xcb0] sm:$0xff] }
 0x1fe   :  { %v2460_v9 = vpack.c.bf16 %v645_v63, %v637_v62  ;;  %v1455_v62 = vld [vmem:[%s5314_s5 + $0x2f0] sm:$0xff] }
 0x200   :  { %2441 = vmatpush1.bf16.msra.mxu1 %v2440_v4  ;;  %v2562_v4 = vpack.c.bf16 %v1440_v56, %v1438_v55  ;;  %v2578_v56 = vpack.c.bf16 %v1456_v51, %v1454_v50  ;;  %v1477_v50 = vld [vmem:[%s5314_s5 + $0x3a0] sm:$0xff]  ;;  %v1479_v51 = vld [vmem:[%s5314_s5 + $0x3b0] sm:$0xff] }
 0x201   :  { %2443 = vmatprep.subr.bf16.mxu1 %v2442_v7  ;;  %v1437_v7 = vld [vmem:[%s5314_s5 + $0x260] sm:$0xff] }
 0x202   :  { %v922_v19 = vpop.f32.mrb[2].mxu1  ;;  %v4603_v20 = vpop.f32.mrb[2].mxu0  ;;  %v2564_v17 = vpack.c.bf16 %v1439_v8, %v1437_v7  ;;  %v725_v7 = vld [vmem:[%s5311_s3 + $0xf70] sm:$0xff]  ;;  %v734_v8 = vld [vmem:[%s5311_s3 + $0xfb8] sm:$0xff] }
 0x203   :  { %v2742_v23 = vadd.f32 %v922_v19, %v748_v11  ;;  %v924_v24 = vpop.f32.mrb[3].mxu1  ;;  %v4611_v25 = vpop.f32.mrb[3].mxu0  ;;  %v2462_v11 = vpack.c.bf16 %v662_v1, %v654_v0  ;;  %v2566_v19 = vpack.c.bf16 %v1444_v10, %v1442_v12  ;;  %v1458_v0 = vld [vmem:[%s5314_s5 + $0x308] sm:$0xff]  ;;  %v1460_v1 = vld [vmem:[%s5314_s5 + $0x318] sm:$0xff] }
 0x204   :  { %v2743_v59 = vadd.f32 %v924_v24, %v752_v13  ;;  %2445 = vmatpush1.bf16.msra.mxu1 %v2444_v14  ;;  %v653_v13 = vld [vmem:[%s5311_s3 + $0xd30] sm:$0xff]  ;;  %v1446_v24 = vld [vmem:[%s5314_s5 + $0x2a8] sm:$0xff]  ;;  %v2582_v10 = vpack.c.bf16 %v1460_v1, %v1458_v0  ;;  %v1485_v0 = vld [vmem:[%s5314_s5 + $0x3e0] sm:$0xff] }
 0x205   :  { %2447 = vmatprep.subr.bf16.mxu1 %v2446_v15  ;;  %v1353_v27 = vmax.f32 %v2742_v23, 0.0  ;;  %v661_v14 = vld [vmem:[%s5311_s3 + $0xd70] sm:$0xff]  ;;  %v670_v15 = vld [vmem:[%s5311_s3 + $0xdb8] sm:$0xff]  ;;  %v2570_v33 = vpack.c.bf16 %v1448_v26, %v1446_v24  ;;  %v1461_v24 = vld [vmem:[%s5314_s5 + $0x320] sm:$0xff] }
 0x206   :  { %v1354_v35 = vmax.f32 %v2743_v59, 0.0  ;;  %v2464_v23 = vpack.c.bf16 %v661_v14, %v653_v13  ;;  %v2466_v28 = vpack.c.bf16 %v678_v16, %v670_v15  ;;  %v669_v59 = vld [vmem:[%s5311_s3 + $0xdb0] sm:$0xff]  ;;  %v1462_v15 = vld [vmem:[%s5314_s5 + $0x328] sm:$0xff]  ;;  %v1464_v16 = vld [vmem:[%s5314_s5 + $0x338] sm:$0xff] }
 0x207   :  { %v1459_v13 = vld [vmem:[%s5314_s5 + $0x310] sm:$0xff] }
 0x208   :  { %2449 = vmatpush1.bf16.msra.mxu1 %v2448_v29  ;;  %1693 = vmatprep.mubr.f32.mxu0 %v1354_v35  ;;  %v677_v29 = vld [vmem:[%s5311_s3 + $0xdf0] sm:$0xff] }
 0x209   :  { %1694 = vmatmul.mubr.f32.vlgmr.msra.gmra.mrb[4].mxu0 %v1353_v27  ;;  %2451 = vmatprep.subr.bf16.mxu1 %v2450_v32  ;;  %v2568_v32 = vpack.c.bf16 %v1443_v22, %v1441_v21  ;;  %v1447_v35 = vld [vmem:[%s5314_s5 + $0x2b0] sm:$0xff]  ;;  %v2468_v36 = vpack.c.bf16 %v677_v29, %v669_v59  ;;  %v2470_v27 = vpack.c.bf16 %v694_v31, %v686_v30  ;;  %v1466_v59 = vld [vmem:[%s5314_s5 + $0x348] sm:$0xff]  ;;  %v1468_v29 = vld [vmem:[%s5314_s5 + $0x358] sm:$0xff] }
 0x20a   :  { %2553 = vmatpush1.bf16.msra.mxu0 %v2552_v38  ;;  %v1452_v38 = vld [vmem:[%s5314_s5 + $0x2d8] sm:$0xff]  ;;  %v2572_v45 = vpack.c.bf16 %v1447_v35, %v1445_v34  ;;  %v741_v21 = vld [vmem:[%s5311_s3 + $0xff0] sm:$0xff]  ;;  %v2590_v31 = vpack.c.bf16 %v1468_v29, %v1466_v59  ;;  %v1470_v34 = vld [vmem:[%s5314_s5 + $0x368] sm:$0xff] }
 0x20b   :  { %2555 = vmatprep.subr.bf16.mxu0 %v2554_v40  ;;  %v685_v40 = vld [vmem:[%s5311_s3 + $0xe30] sm:$0xff]  ;;  %v2574_v46 = vpack.c.bf16 %v1452_v38, %v1450_v37  ;;  %v1472_v35 = vld [vmem:[%s5314_s5 + $0x378] sm:$0xff]  ;;  %v1469_v38 = vld [vmem:[%s5314_s5 + $0x360] sm:$0xff] }
 0x20c   :  { %2453 = vmatpush1.bf16.msra.mxu1 %v2452_v44  ;;  %v710_v44 = vld [vmem:[%s5311_s3 + $0xef8] sm:$0xff]  ;;  %v2472_v49 = vpack.c.bf16 %v693_v41, %v685_v40  ;;  %v1463_v26 = vld [vmem:[%s5314_s5 + $0x330] sm:$0xff]  ;;  %v2594_v37 = vpack.c.bf16 %v1472_v35, %v1470_v34  ;;  %v1474_v40 = vld [vmem:[%s5314_s5 + $0x388] sm:$0xff] }
 0x20d   :  { %2455 = vmatprep.subr.bf16.mxu1 %v2454_v47  ;;  %v1449_v47 = vld [vmem:[%s5314_s5 + $0x2c0] sm:$0xff]  ;;  %v2588_v30 = vpack.c.bf16 %v1463_v26, %v1461_v24  ;;  %v1476_v41 = vld [vmem:[%s5314_s5 + $0x398] sm:$0xff]  ;;  %v1487_v1 = vld [vmem:[%s5314_s5 + $0x3f0] sm:$0xff] }
 0x20e   :  { %2557 = vmatpush1.bf16.msra.mxu0 %v2556_v18  ;;  %v2474_v18 = vpack.c.bf16 %v710_v44, %v702_v43  ;;  %v2576_v55 = vpack.c.bf16 %v1451_v48, %v1449_v47  ;;  %v2598_v43 = vpack.c.bf16 %v1476_v41, %v1474_v40  ;;  %v1473_v44 = vld [vmem:[%s5314_s5 + $0x380] sm:$0xff]  ;;  %v1480_v47 = vld [vmem:[%s5314_s5 + $0x3b8] sm:$0xff]  ;;  %v1498_v29 = vld [vmem:[%s5314_s5 + $0x448] sm:$0xff] }
 0x20f   :  { %2559 = vmatprep.subr.bf16.mxu0 %v2558_v42  ;;  %v701_v42 = vld [vmem:[%s5311_s3 + $0xeb0] sm:$0xff]  ;;  %v1502_v35 = vld [vmem:[%s5314_s5 + $0x468] sm:$0xff] }
 0x210   :  { %2457 = vmatpush1.bf16.msra.mxu1 %v2456_v54  ;;  %v726_v54 = vld [vmem:[%s5311_s3 + $0xf78] sm:$0xff]  ;;  %v2476_v63 = vpack.c.bf16 %v709_v52, %v701_v42  ;;  %v2604_v52 = vpack.c.bf16 %v1479_v51, %v1477_v50  ;;  %v1499_v34 = vld [vmem:[%s5314_s5 + $0x450] sm:$0xff]  ;;  %v1506_v41 = vld [vmem:[%s5314_s5 + $0x488] sm:$0xff] }
 0x211   :  { %2459 = vmatprep.subr.bf16.mxu1 %v2458_v61  ;;  %v1453_v61 = vld [vmem:[%s5314_s5 + $0x2e0] sm:$0xff]  ;;  %v1484_v42 = vld [vmem:[%s5314_s5 + $0x3d8] sm:$0xff]  ;;  %v1503_v40 = vld [vmem:[%s5314_s5 + $0x470] sm:$0xff] }
 0x212   :  { %2561 = vmatpush1.bf16.msra.mxu0 %v2560_v3  ;;  %v2478_v3 = vpack.c.bf16 %v726_v54, %v718_v53  ;;  %v2580_v12 = vpack.c.bf16 %v1455_v62, %v1453_v61  ;;  %v1481_v54 = vld [vmem:[%s5314_s5 + $0x3c0] sm:$0xff]  ;;  %v1488_v61 = vld [vmem:[%s5314_s5 + $0x3f8] sm:$0xff] }
 0x213   :  { %2563 = vmatprep.subr.bf16.mxu0 %v2562_v4  ;;  %v717_v4 = vld [vmem:[%s5311_s3 + $0xf30] sm:$0xff]  ;;  %v1509_v51 = vld [vmem:[%s5314_s5 + $0x4a0] sm:$0xff] }
 0x214   :  { %2461 = vmatpush1.bf16.msra.mxu1 %v2460_v9  ;;  %v742_v9 = vld [vmem:[%s5311_s3 + $0xff8] sm:$0xff]  ;;  %v2480_v14 = vpack.c.bf16 %v725_v7, %v717_v4  ;;  %v2612_v7 = vpack.c.bf16 %v1487_v1, %v1485_v0  ;;  %v1517_v1 = vld [vmem:[%s5314_s5 + $0x4e0] sm:$0xff] }
 0x215   :  { %2463 = vmatprep.subr.bf16.mxu1 %v2462_v11  ;;  %v1457_v11 = vld [vmem:[%s5314_s5 + $0x300] sm:$0xff]  ;;  %v1492_v4 = vld [vmem:[%s5314_s5 + $0x418] sm:$0xff] }
 0x216   :  { %2565 = vmatpush1.bf16.msra.mxu0 %v2564_v17  ;;  %v2482_v17 = vpack.c.bf16 %v742_v9, %v734_v8  ;;  %v2584_v22 = vpack.c.bf16 %v1459_v13, %v1457_v11  ;;  %v767_v9 = vsub.s32 5, %v3313_v57  ;;  %v760_v11 = vrot.slane %v4579_v5, %v75_v2  ;;  %v1496_v2 = vld [vmem:[%s5314_s5 + $0x438] sm:$0xff] }
 0x217   :  { %2567 = vmatprep.subr.bf16.mxu0 %v2566_v19  ;;  %v733_v19 = vld [vmem:[%s5311_s3 + $0xfb0] sm:$0xff] }
 0x218   :  { %2465 = vmatpush1.bf16.msra.mxu1 %v2464_v23  ;;  %v2586_v23 = vpack.c.bf16 %v1464_v16, %v1462_v15  ;;  %v1489_v16 = vld [vmem:[%s5314_s5 + $0x400] sm:$0xff] }
 0x219   :  { %2467 = vmatprep.subr.bf16.mxu1 %v2466_v28  ;;  %v2484_v28 = vpack.c.bf16 %v741_v21, %v733_v19  ;;  %v1494_v21 = vld [vmem:[%s5314_s5 + $0x428] sm:$0xff] }
 0x21a   :  { %2569 = vmatpush1.bf16.msra.mxu0 %v2568_v32  ;;  %v1465_v32 = vld [vmem:[%s5314_s5 + $0x340] sm:$0xff]  ;;  %v2618_v26 = vpack.c.bf16 %v1496_v2, %v1494_v21 }
 0x21b   :  { %2571 = vmatprep.subr.bf16.mxu0 %v2570_v33  ;;  %v1467_v33 = vld [vmem:[%s5314_s5 + $0x350] sm:$0xff] }
 0x21c   :  { %2469 = vmatpush1.bf16.msra.mxu1 %v2468_v36  ;;  %v2592_v36 = vpack.c.bf16 %v1467_v33, %v1465_v32  ;;  %v1497_v33 = vld [vmem:[%s5314_s5 + $0x440] sm:$0xff] }
 0x21d   :  { %2471 = vmatprep.subr.bf16.mxu1 %v2470_v27  ;;  %v1471_v27 = vld [vmem:[%s5314_s5 + $0x370] sm:$0xff] }
 0x21e   :  { %2573 = vmatpush1.bf16.msra.mxu0 %v2572_v45  ;;  %v1475_v45 = vld [vmem:[%s5314_s5 + $0x390] sm:$0xff] }
 0x21f   :  { %2575 = vmatprep.subr.bf16.mxu0 %v2574_v46  ;;  %v1478_v46 = vld [vmem:[%s5314_s5 + $0x3a8] sm:$0xff]  ;;  %v2600_v48 = vpack.c.bf16 %v1475_v45, %v1473_v44  ;;  %v1505_v45 = vld [vmem:[%s5314_s5 + $0x480] sm:$0xff] }
 0x220   :  { %2473 = vmatpush1.bf16.msra.mxu1 %v2472_v49  ;;  %v2602_v49 = vpack.c.bf16 %v1480_v47, %v1478_v46  ;;  %v1507_v46 = vld [vmem:[%s5314_s5 + $0x490] sm:$0xff]  ;;  %v1510_v47 = vld [vmem:[%s5314_s5 + $0x4a8] sm:$0xff] }
 0x221   :  { %2475 = vmatprep.subr.bf16.mxu1 %v2474_v18  ;;  %v1482_v18 = vld [vmem:[%s5314_s5 + $0x3c8] sm:$0xff] }
 0x222   :  { %2577 = vmatpush1.bf16.msra.mxu0 %v2576_v55  ;;  %v2606_v53 = vpack.c.bf16 %v1484_v42, %v1482_v18  ;;  %v1483_v55 = vld [vmem:[%s5314_s5 + $0x3d0] sm:$0xff]  ;;  %v1514_v42 = vld [vmem:[%s5314_s5 + $0x4c8] sm:$0xff] }
 0x223   :  { %2579 = vmatprep.subr.bf16.mxu0 %v2578_v56  ;;  %v1486_v56 = vld [vmem:[%s5314_s5 + $0x3e8] sm:$0xff]  ;;  %v2608_v62 = vpack.c.bf16 %v1483_v55, %v1481_v54  ;;  %v1511_v18 = vld [vmem:[%s5314_s5 + $0x4b0] sm:$0xff]  ;;  %v1513_v55 = vld [vmem:[%s5314_s5 + $0x4c0] sm:$0xff] }
 0x224   :  { %2477 = vmatpush1.bf16.msra.mxu1 %v2476_v63  ;;  %v2610_v63 = vpack.c.bf16 %v1488_v61, %v1486_v56  ;;  %v1515_v56 = vld [vmem:[%s5314_s5 + $0x4d0] sm:$0xff]  ;;  %v1518_v61 = vld [vmem:[%s5314_s5 + $0x4e8] sm:$0xff] }
 0x225   :  { %2479 = vmatprep.subr.bf16.mxu1 %v2478_v3  ;;  %v1490_v3 = vld [vmem:[%s5314_s5 + $0x408] sm:$0xff] }
 0x226   :  { %2581 = vmatpush1.bf16.msra.mxu0 %v2580_v12  ;;  %v2614_v8 = vpack.c.bf16 %v1492_v4, %v1490_v3  ;;  %v756_v12 = vrot.slane %v4579_v5, %v71_v6  ;;  %v1519_v3 = vld [vmem:[%s5314_s5 + $0x4f0] sm:$0xff]  ;;  %v1522_v4 = vld [vmem:[%s5314_s5 + $0x508] sm:$0xff] }
 0x227   :  { %2583 = vmatprep.subr.bf16.mxu0 %v2582_v10  ;;  %v768_v10 = vrot.slane %v4579_v5, %v767_v9 }
 0x228   :  { %2481 = vmatpush1.bf16.msra.mxu1 %v2480_v14 }
 0x229   :  { %2483 = vmatprep.subr.bf16.mxu1 %v2482_v17  ;;  %v1491_v17 = vld [vmem:[%s5314_s5 + $0x410] sm:$0xff]  ;;  %v2747_v19 = vadd.f32 %v4611_v25, %v768_v10 }
 0x22a   :  { %2585 = vmatpush1.bf16.msra.mxu0 %v2584_v22  ;;  %v1495_v25 = vld [vmem:[%s5314_s5 + $0x430] sm:$0xff] }
 0x22b   :  { %2587 = vmatprep.subr.bf16.mxu0 %v2586_v23  ;;  %v2616_v23 = vpack.c.bf16 %v1491_v17, %v1489_v16  ;;  %v1358_v59 = vmax.f32 %v2747_v19, 0.0  ;;  %v1523_v10 = vld [vmem:[%s5314_s5 + $0x510] sm:$0xff]  ;;  %v1525_v16 = vld [vmem:[%s5314_s5 + $0x520] sm:$0xff]  ;;  %v1530_v19 = vld [vmem:[%s5314_s5 + $0x548] sm:$0xff] }
 0x22c   :  { %2485 = vmatpush1.bf16.msra.mxu1 %v2484_v28  ;;  %v1493_v28 = vld [vmem:[%s5314_s5 + $0x420] sm:$0xff]  ;;  %v1527_v17 = vld [vmem:[%s5314_s5 + $0x530] sm:$0xff] }
 0x22d   :  { %v2652_v21 = vpack.c.bf16 %v1527_v17, %v1525_v16  ;;  %v1566_v16 = vld [vmem:[%s5314_s5 + $0x668] sm:$0xff]  ;;  %v1568_v17 = vld [vmem:[%s5314_s5 + $0x678] sm:$0xff] }
 0x22e   :  { %2589 = vmatpush1.bf16.msra.mxu0 %v2588_v30  ;;  %v1500_v30 = vld [vmem:[%s5314_s5 + $0x458] sm:$0xff] }
 0x22f   :  { %1347 = vmatmul.mubr.f32.vlgmr.msra.gmra.mrb[6].mxu1 %v3743_v39  ;;  %2591 = vmatprep.subr.bf16.mxu0 %v2590_v31  ;;  %v2596_v39 = vpack.c.bf16 %v1471_v27, %v1469_v38  ;;  %v2620_v31 = vpack.c.bf16 %v1495_v25, %v1493_v28  ;;  %v2622_v32 = vpack.c.bf16 %v1500_v30, %v1498_v29  ;;  %v1501_v27 = vld [vmem:[%s5314_s5 + $0x460] sm:$0xff]  ;;  %v1535_v29 = vld [vmem:[%s5314_s5 + $0x570] sm:$0xff]  ;;  %v1538_v30 = vld [vmem:[%s5314_s5 + $0x588] sm:$0xff] }
 0x232   :  { %2593 = vmatpush1.bf16.msra.mxu0 %v2592_v36  ;;  %v1504_v36 = vld [vmem:[%s5314_s5 + $0x478] sm:$0xff] }
 0x233   :  { %2595 = vmatprep.subr.bf16.mxu0 %v2594_v37  ;;  %v2624_v37 = vpack.c.bf16 %v1499_v34, %v1497_v33  ;;  %v2626_v38 = vpack.c.bf16 %v1504_v36, %v1502_v35  ;;  %v1537_v34 = vld [vmem:[%s5314_s5 + $0x580] sm:$0xff]  ;;  %v1539_v35 = vld [vmem:[%s5314_s5 + $0x590] sm:$0xff]  ;;  %v1542_v36 = vld [vmem:[%s5314_s5 + $0x5a8] sm:$0xff] }
 0x236   :  { %2597 = vmatpush1.bf16.msra.mxu0 %v2596_v39  ;;  %v1508_v39 = vld [vmem:[%s5314_s5 + $0x498] sm:$0xff] }
 0x237   :  { %2599 = vmatprep.subr.bf16.mxu0 %v2598_v43  ;;  %v2628_v43 = vpack.c.bf16 %v1503_v40, %v1501_v27  ;;  %v2630_v44 = vpack.c.bf16 %v1508_v39, %v1506_v41  ;;  %v1541_v40 = vld [vmem:[%s5314_s5 + $0x5a0] sm:$0xff]  ;;  %v1543_v41 = vld [vmem:[%s5314_s5 + $0x5b0] sm:$0xff]  ;;  %v1546_v39 = vld [vmem:[%s5314_s5 + $0x5c8] sm:$0xff] }
 0x23a   :  { %2601 = vmatpush1.bf16.msra.mxu0 %v2600_v48  ;;  %v1512_v48 = vld [vmem:[%s5314_s5 + $0x4b8] sm:$0xff] }
 0x23b   :  { %2603 = vmatprep.subr.bf16.mxu0 %v2602_v49  ;;  %v2632_v49 = vpack.c.bf16 %v1507_v46, %v1505_v45  ;;  %v2634_v50 = vpack.c.bf16 %v1512_v48, %v1510_v47  ;;  %v763_v45 = vsub.s32 4, %v3313_v57  ;;  %v1545_v47 = vld [vmem:[%s5314_s5 + $0x5c0] sm:$0xff]  ;;  %v1547_v48 = vld [vmem:[%s5314_s5 + $0x5d0] sm:$0xff] }
 0x23e   :  { %2605 = vmatpush1.bf16.msra.mxu0 %v2604_v52  ;;  %v1516_v52 = vld [vmem:[%s5314_s5 + $0x4d8] sm:$0xff] }
 0x23f   :  { %2607 = vmatprep.subr.bf16.mxu0 %v2606_v53  ;;  %v2636_v53 = vpack.c.bf16 %v1511_v18, %v1509_v51  ;;  %v2638_v54 = vpack.c.bf16 %v1516_v52, %v1514_v42  ;;  %v2672_v51 = vpack.c.bf16 %v1547_v48, %v1545_v47  ;;  %v764_v18 = vrot.slane %v4579_v5, %v763_v45  ;;  %v1549_v52 = vld [vmem:[%s5314_s5 + $0x5e0] sm:$0xff]  ;;  %v1583_v45 = vld [vmem:[%s5314_s5 + $0x6f0] sm:$0xff]  ;;  %v1588_v47 = vld [vmem:[%s5314_s5 + $0x718] sm:$0xff] }
 0x242   :  { %2609 = vmatpush1.bf16.msra.mxu0 %v2608_v62  ;;  %v1520_v62 = vld [vmem:[%s5314_s5 + $0x4f8] sm:$0xff] }
 0x243   :  { %2611 = vmatprep.subr.bf16.mxu0 %v2610_v63  ;;  %v2640_v63 = vpack.c.bf16 %v1515_v56, %v1513_v55  ;;  %v2642_v0 = vpack.c.bf16 %v1520_v62, %v1518_v61  ;;  %v1556_v55 = vld [vmem:[%s5314_s5 + $0x618] sm:$0xff]  ;;  %v2746_v61 = vadd.f32 %v4603_v20, %v764_v18  ;;  %v1590_v18 = vld [vmem:[%s5314_s5 + $0x728] sm:$0xff] }
 0x246   :  { %2613 = vmatpush1.bf16.msra.mxu0 %v2612_v7  ;;  %v1524_v7 = vld [vmem:[%s5314_s5 + $0x518] sm:$0xff] }
 0x247   :  { %2615 = vmatprep.subr.bf16.mxu0 %v2614_v8  ;;  %v2644_v8 = vpack.c.bf16 %v1519_v3, %v1517_v1  ;;  %v2646_v9 = vpack.c.bf16 %v1524_v7, %v1522_v4  ;;  %v1558_v1 = vld [vmem:[%s5314_s5 + $0x628] sm:$0xff]  ;;  %v1560_v3 = vld [vmem:[%s5314_s5 + $0x638] sm:$0xff]  ;;  %v1357_v4 = vmax.f32 %v2746_v61, 0.0 }
 0x248   :  { %v2682_v7 = vpack.c.bf16 %v1560_v3, %v1558_v1  ;;  %v1596_v61 = vld [vmem:[%s5314_s5 + $0x758] sm:$0xff]  ;;  %v1595_v1 = vld [vmem:[%s5314_s5 + $0x750] sm:$0xff]  ;;  %v1598_v3 = vld [vmem:[%s5314_s5 + $0x768] sm:$0xff] }
 0x282   :  { %v1064_v13 = vpop.f32.mrb[4].mxu1 }
 0x283   :  { %v2744_v14 = vadd.f32 %v1064_v13, %v756_v12  ;;  %v1066_v15 = vpop.f32.mrb[5].mxu1  ;;  %v1521_v12 = vld [vmem:[%s5314_s5 + $0x500] sm:$0xff]  ;;  %v1528_v13 = vld [vmem:[%s5314_s5 + $0x538] sm:$0xff] }
 0x284   :  { %v2745_v6 = vadd.f32 %v1066_v15, %v760_v11  ;;  %v1526_v11 = vld [vmem:[%s5314_s5 + $0x528] sm:$0xff] }
 0x285   :  { %v1355_v24 = vmax.f32 %v2744_v14, 0.0  ;;  %v2648_v14 = vpack.c.bf16 %v1523_v10, %v1521_v12  ;;  %v2650_v15 = vpack.c.bf16 %v1528_v13, %v1526_v11  ;;  %v1562_v12 = vld [vmem:[%s5314_s5 + $0x648] sm:$0xff]  ;;  %v1564_v10 = vld [vmem:[%s5314_s5 + $0x658] sm:$0xff] }
 0x286   :  { %v1356_v22 = vmax.f32 %v2745_v6, 0.0  ;;  %v1532_v6 = vld [vmem:[%s5314_s5 + $0x558] sm:$0xff]  ;;  %v2686_v13 = vpack.c.bf16 %v1564_v10, %v1562_v12  ;;  %v1602_v12 = vld [vmem:[%s5314_s5 + $0x788] sm:$0xff] }
 0x287   :  { %v2654_v2 = vpack.c.bf16 %v1532_v6, %v1530_v19  ;;  %v2690_v6 = vpack.c.bf16 %v1568_v17, %v1566_v16  ;;  %v1604_v10 = vld [vmem:[%s5314_s5 + $0x798] sm:$0xff]  ;;  %v1606_v16 = vld [vmem:[%s5314_s5 + $0x7a8] sm:$0xff] }
 0x288   :  { %1764 = vmatprep.mubr.f32.mxu0 %v1356_v22  ;;  %v1529_v22 = vld [vmem:[%s5314_s5 + $0x540] sm:$0xff]  ;;  %v1608_v17 = vld [vmem:[%s5314_s5 + $0x7b8] sm:$0xff] }
 0x289   :  { %1765 = vmatmul.mubr.f32.vlgmr.msra.gmra.mrb[4].mxu0 %v1355_v24  ;;  %v1534_v24 = vld [vmem:[%s5314_s5 + $0x568] sm:$0xff] }
 0x28a   :  { %2617 = vmatpush1.bf16.msra.mxu0 %v2616_v23  ;;  %1835 = vmatprep.mubr.f32.mxu0 %v1358_v59  ;;  %v1531_v23 = vld [vmem:[%s5314_s5 + $0x550] sm:$0xff]  ;;  %v1533_v59 = vld [vmem:[%s5314_s5 + $0x560] sm:$0xff] }
 0x28b   :  { %2619 = vmatprep.subr.bf16.mxu0 %v2618_v26  ;;  %v1536_v26 = vld [vmem:[%s5314_s5 + $0x578] sm:$0xff]  ;;  %v2656_v28 = vpack.c.bf16 %v1531_v23, %v1529_v22  ;;  %v1570_v22 = vld [vmem:[%s5314_s5 + $0x688] sm:$0xff] }
 0x28c   :  { %v2658_v25 = vpack.c.bf16 %v1536_v26, %v1534_v24  ;;  %v1572_v23 = vld [vmem:[%s5314_s5 + $0x698] sm:$0xff] }
 0x28d   :  { %v2694_v26 = vpack.c.bf16 %v1572_v23, %v1570_v22  ;;  %v1610_v22 = vld [vmem:[%s5314_s5 + $0x7c8] sm:$0xff]  ;;  %v1612_v23 = vld [vmem:[%s5314_s5 + $0x7d8] sm:$0xff] }
 0x28e   :  { %2621 = vmatpush1.bf16.msra.mxu0 %v2620_v31  ;;  %v1540_v31 = vld [vmem:[%s5314_s5 + $0x598] sm:$0xff] }
 0x28f   :  { %2623 = vmatprep.subr.bf16.mxu0 %v2622_v32  ;;  %v2660_v32 = vpack.c.bf16 %v1535_v29, %v1533_v59  ;;  %v2662_v33 = vpack.c.bf16 %v1540_v31, %v1538_v30  ;;  %v1574_v59 = vld [vmem:[%s5314_s5 + $0x6a8] sm:$0xff]  ;;  %v1576_v29 = vld [vmem:[%s5314_s5 + $0x6b8] sm:$0xff] }
 0x290   :  { %v2698_v31 = vpack.c.bf16 %v1576_v29, %v1574_v59  ;;  %v1611_v59 = vld [vmem:[%s5314_s5 + $0x7d0] sm:$0xff]  ;;  %v775_v29 = vsub.s32 7, %v3313_v57 }
 0x292   :  { %2625 = vmatpush1.bf16.msra.mxu0 %v2624_v37  ;;  %v1544_v37 = vld [vmem:[%s5314_s5 + $0x5b8] sm:$0xff] }
 0x293   :  { %2627 = vmatprep.subr.bf16.mxu0 %v2626_v38  ;;  %v2664_v38 = vpack.c.bf16 %v1539_v35, %v1537_v34  ;;  %v2666_v27 = vpack.c.bf16 %v1544_v37, %v1542_v36  ;;  %v1578_v34 = vld [vmem:[%s5314_s5 + $0x6c8] sm:$0xff]  ;;  %v1580_v35 = vld [vmem:[%s5314_s5 + $0x6d8] sm:$0xff] }
 0x294   :  { %v2702_v37 = vpack.c.bf16 %v1580_v35, %v1578_v34  ;;  %v1613_v35 = vld [vmem:[%s5314_s5 + $0x7e0] sm:$0xff] }
 0x296   :  { %2629 = vmatpush1.bf16.msra.mxu0 %v2628_v43  ;;  %v1548_v43 = vld [vmem:[%s5314_s5 + $0x5d8] sm:$0xff] }
 0x297   :  { %2631 = vmatprep.subr.bf16.mxu0 %v2630_v44  ;;  %v2668_v44 = vpack.c.bf16 %v1543_v41, %v1541_v40  ;;  %v2670_v46 = vpack.c.bf16 %v1548_v43, %v1546_v39  ;;  %v1582_v40 = vld [vmem:[%s5314_s5 + $0x6e8] sm:$0xff]  ;;  %v1584_v41 = vld [vmem:[%s5314_s5 + $0x6f8] sm:$0xff] }
 0x298   :  { %v2706_v43 = vpack.c.bf16 %v1584_v41, %v1582_v40 }
 0x29a   :  { %2633 = vmatpush1.bf16.msra.mxu0 %v2632_v49  ;;  %v1550_v49 = vld [vmem:[%s5314_s5 + $0x5e8] sm:$0xff] }
 0x29b   :  { %2635 = vmatprep.subr.bf16.mxu0 %v2634_v50  ;;  %v1552_v50 = vld [vmem:[%s5314_s5 + $0x5f8] sm:$0xff] }
 0x29c   :  { %v2674_v42 = vpack.c.bf16 %v1552_v50, %v1550_v49  ;;  %v1585_v50 = vld [vmem:[%s5314_s5 + $0x700] sm:$0xff] }
 0x29e   :  { %2637 = vmatpush1.bf16.msra.mxu0 %v2636_v53  ;;  %v1551_v53 = vld [vmem:[%s5314_s5 + $0x5f0] sm:$0xff] }
 0x29f   :  { %2639 = vmatprep.subr.bf16.mxu0 %v2638_v54  ;;  %v1554_v54 = vld [vmem:[%s5314_s5 + $0x608] sm:$0xff]  ;;  %v2676_v56 = vpack.c.bf16 %v1551_v53, %v1549_v52 }
 0x2a0   :  { %v2678_v62 = vpack.c.bf16 %v1556_v55, %v1554_v54  ;;  %v1589_v54 = vld [vmem:[%s5314_s5 + $0x720] sm:$0xff]  ;;  %v1591_v55 = vld [vmem:[%s5314_s5 + $0x730] sm:$0xff] }
 0x2a2   :  { %2641 = vmatpush1.bf16.msra.mxu0 %v2640_v63  ;;  %v1553_v63 = vld [vmem:[%s5314_s5 + $0x600] sm:$0xff] }
 0x2a3   :  { %2643 = vmatprep.subr.bf16.mxu0 %v2642_v0  ;;  %v1555_v0 = vld [vmem:[%s5314_s5 + $0x610] sm:$0xff] }
 0x2a4   :  { %v2680_v20 = vpack.c.bf16 %v1555_v0, %v1553_v63  ;;  %v1593_v0 = vld [vmem:[%s5314_s5 + $0x740] sm:$0xff] }
 0x2a6   :  { %2645 = vmatpush1.bf16.msra.mxu0 %v2644_v8  ;;  %v1557_v8 = vld [vmem:[%s5314_s5 + $0x620] sm:$0xff] }
 0x2a7   :  { %2647 = vmatprep.subr.bf16.mxu0 %v2646_v9  ;;  %v1559_v9 = vld [vmem:[%s5314_s5 + $0x630] sm:$0xff] }
 0x2a8   :  { %v2684_v11 = vpack.c.bf16 %v1559_v9, %v1557_v8  ;;  %v1597_v8 = vld [vmem:[%s5314_s5 + $0x760] sm:$0xff]  ;;  %v1599_v9 = vld [vmem:[%s5314_s5 + $0x770] sm:$0xff] }
 0x2aa   :  { %2649 = vmatpush1.bf16.msra.mxu0 %v2648_v14  ;;  %v1561_v14 = vld [vmem:[%s5314_s5 + $0x640] sm:$0xff] }
 0x2ab   :  { %2651 = vmatprep.subr.bf16.mxu0 %v2650_v15  ;;  %v1563_v15 = vld [vmem:[%s5314_s5 + $0x650] sm:$0xff] }
 0x2ac   :  { %v2688_v19 = vpack.c.bf16 %v1563_v15, %v1561_v14  ;;  %v1601_v14 = vld [vmem:[%s5314_s5 + $0x780] sm:$0xff]  ;;  %v1603_v15 = vld [vmem:[%s5314_s5 + $0x790] sm:$0xff] }
 0x2ae   :  { %2653 = vmatpush1.bf16.msra.mxu0 %v2652_v21  ;;  %v1565_v21 = vld [vmem:[%s5314_s5 + $0x660] sm:$0xff] }
 0x2af   :  { %2655 = vmatprep.subr.bf16.mxu0 %v2654_v2  ;;  %v1567_v2 = vld [vmem:[%s5314_s5 + $0x670] sm:$0xff] }
 0x2b0   :  { %v2692_v24 = vpack.c.bf16 %v1567_v2, %v1565_v21  ;;  %v1605_v21 = vld [vmem:[%s5314_s5 + $0x7a0] sm:$0xff]  ;;  %v1607_v2 = vld [vmem:[%s5314_s5 + $0x7b0] sm:$0xff] }
 0x2b2   :  { %2657 = vmatpush1.bf16.msra.mxu0 %v2656_v28  ;;  %v1569_v28 = vld [vmem:[%s5314_s5 + $0x680] sm:$0xff] }
 0x2b3   :  { %2659 = vmatprep.subr.bf16.mxu0 %v2658_v25  ;;  %v1571_v25 = vld [vmem:[%s5314_s5 + $0x690] sm:$0xff] }
 0x2b4   :  { %v2696_v30 = vpack.c.bf16 %v1571_v25, %v1569_v28  ;;  %v771_v28 = vsub.s32 6, %v3313_v57  ;;  %v1609_v25 = vld [vmem:[%s5314_s5 + $0x7c0] sm:$0xff]  ;;  %v1615_v57 = vld [vmem:[%s5314_s5 + $0x7f0] sm:$0xff] }
 0x2b6   :  { %2661 = vmatpush1.bf16.msra.mxu0 %v2660_v32  ;;  %v1573_v32 = vld [vmem:[%s5314_s5 + $0x6a0] sm:$0xff] }
 0x2b7   :  { %2663 = vmatprep.subr.bf16.mxu0 %v2662_v33  ;;  %v1575_v33 = vld [vmem:[%s5314_s5 + $0x6b0] sm:$0xff] }
 0x2b8   :  { %v2700_v36 = vpack.c.bf16 %v1575_v33, %v1573_v32  ;;  %v2736_v32 = vpack.c.bf16 %v1611_v59, %v1609_v25  ;;  %v772_v33 = vrot.slane %v4579_v5, %v771_v28 }
 0x2ba   :  { %2665 = vmatpush1.bf16.msra.mxu0 %v2664_v38  ;;  %v1577_v38 = vld [vmem:[%s5314_s5 + $0x6c0] sm:$0xff] }
 0x2bb   :  { %2667 = vmatprep.subr.bf16.mxu0 %v2666_v27  ;;  %v1579_v27 = vld [vmem:[%s5314_s5 + $0x6d0] sm:$0xff] }
 0x2bc   :  { %v2704_v39 = vpack.c.bf16 %v1579_v27, %v1577_v38  ;;  %v2740_v38 = vpack.c.bf16 %v1615_v57, %v1613_v35 }
 0x2be   :  { %2669 = vmatpush1.bf16.msra.mxu0 %v2668_v44  ;;  %v1581_v44 = vld [vmem:[%s5314_s5 + $0x6e0] sm:$0xff] }
 0x2bf   :  { %2671 = vmatprep.subr.bf16.mxu0 %v2670_v46  ;;  %v1586_v46 = vld [vmem:[%s5314_s5 + $0x708] sm:$0xff]  ;;  %v2708_v48 = vpack.c.bf16 %v1583_v45, %v1581_v44  ;;  %v1617_v44 = vld [vmem:[%s5316_s6] sm:$0x3] }
 0x2c0   :  { %v2710_v49 = vpack.c.bf16 %v1588_v47, %v1586_v46  ;;  %v1622_v45 = vrot.slane %v1617_v44, %v3316_v58 }
 0x2c2   :  { %2673 = vmatpush1.bf16.msra.mxu0 %v2672_v51  ;;  %v1587_v51 = vld [vmem:[%s5314_s5 + $0x710] sm:$0xff] }
 0x2c3   :  { %2675 = vmatprep.subr.bf16.mxu0 %v2674_v42  ;;  %v1592_v42 = vld [vmem:[%s5314_s5 + $0x738] sm:$0xff]  ;;  %v2712_v52 = vpack.c.bf16 %v1587_v51, %v1585_v50 }
 0x2c4   :  { %v2714_v53 = vpack.c.bf16 %v1592_v42, %v1590_v18 }
 0x2c6   :  { %2677 = vmatpush1.bf16.msra.mxu0 %v2676_v56  ;;  %v1594_v56 = vld [vmem:[%s5314_s5 + $0x748] sm:$0xff] }
 0x2c7   :  { %2679 = vmatprep.subr.bf16.mxu0 %v2678_v62  ;;  %v2716_v62 = vpack.c.bf16 %v1591_v55, %v1589_v54  ;;  %v2718_v63 = vpack.c.bf16 %v1596_v61, %v1594_v56 }
 0x2c9   :  { %1836 = vmatmul.mubr.f32.vlgmr.msra.gmra.mrb[4].mxu0 %v1357_v4  ;;  %v2720_v4 = vpack.c.bf16 %v1595_v1, %v1593_v0 }
 0x2ca   :  { %2681 = vmatpush1.bf16.msra.mxu0 %v2680_v20  ;;  %v1600_v20 = vld [vmem:[%s5314_s5 + $0x778] sm:$0xff] }
 0x2cb   :  { %2683 = vmatprep.subr.bf16.mxu0 %v2682_v7  ;;  %v2722_v7 = vpack.c.bf16 %v1600_v20, %v1598_v3 }
 0x2ce   :  { %2685 = vmatpush1.bf16.msra.mxu0 %v2684_v11  ;;  %v2724_v11 = vpack.c.bf16 %v1599_v9, %v1597_v8 }
 0x2cf   :  { %2687 = vmatprep.subr.bf16.mxu0 %v2686_v13  ;;  %v2726_v13 = vpack.c.bf16 %v1604_v10, %v1602_v12 }
 0x2d2   :  { %2689 = vmatpush1.bf16.msra.mxu0 %v2688_v19  ;;  %v2728_v19 = vpack.c.bf16 %v1603_v15, %v1601_v14 }
 0x2d3   :  { %2691 = vmatprep.subr.bf16.mxu0 %v2690_v6  ;;  %v2730_v6 = vpack.c.bf16 %v1608_v17, %v1606_v16 }
 0x2d6   :  { %2693 = vmatpush1.bf16.msra.mxu0 %v2692_v24  ;;  %v2732_v24 = vpack.c.bf16 %v1607_v2, %v1605_v21 }
 0x2d7   :  { %2695 = vmatprep.subr.bf16.mxu0 %v2694_v26  ;;  %v2734_v26 = vpack.c.bf16 %v1612_v23, %v1610_v22 }
 0x2da   :  { %2697 = vmatpush1.bf16.msra.mxu0 %v2696_v30  ;;  %v1614_v30 = vld [vmem:[%s5314_s5 + $0x7e8] sm:$0xff] }
 0x2db   :  { %2699 = vmatprep.subr.bf16.mxu0 %v2698_v31  ;;  %v1616_v31 = vld [vmem:[%s5314_s5 + $0x7f8] sm:$0xff] }
 0x2dc   :  { %v2738_v34 = vpack.c.bf16 %v1616_v31, %v1614_v30 }
 0x2de   :  { %2701 = vmatpush1.bf16.msra.mxu0 %v2700_v36  ;;  %v776_v36 = vrot.slane %v4579_v5, %v775_v29  ;;  %v1626_v5 = vrot.slane %v1617_v44, %v3324_v60 }
 0x2df   :  { %2703 = vmatprep.subr.bf16.mxu0 %v2702_v37 }
 0x2e2   :  { %2705 = vmatpush1.bf16.msra.mxu0 %v2704_v39 }
 0x2e3   :  { %2707 = vmatprep.subr.bf16.mxu0 %v2706_v43 }
 0x2e6   :  { %2709 = vmatpush1.bf16.msra.mxu0 %v2708_v48 }
 0x2e7   :  { %2711 = vmatprep.subr.bf16.mxu0 %v2710_v49 }
 0x2ea   :  { %2713 = vmatpush1.bf16.msra.mxu0 %v2712_v52 }
 0x2eb   :  { %2715 = vmatprep.subr.bf16.mxu0 %v2714_v53 }
 0x2ee   :  { %2717 = vmatpush1.bf16.msra.mxu0 %v2716_v62 }
 0x2ef   :  { %2719 = vmatprep.subr.bf16.mxu0 %v2718_v63 }
 0x2f2   :  { %2721 = vmatpush1.bf16.msra.mxu0 %v2720_v4 }
 0x2f3   :  { %2723 = vmatprep.subr.bf16.mxu0 %v2722_v7 }
 0x2f6   :  { %2725 = vmatpush1.bf16.msra.mxu0 %v2724_v11 }
 0x2f7   :  { %2727 = vmatprep.subr.bf16.mxu0 %v2726_v13 }
 0x2fa   :  { %2729 = vmatpush1.bf16.msra.mxu0 %v2728_v19 }
 0x2fb   :  { %2731 = vmatprep.subr.bf16.mxu0 %v2730_v6 }
 0x2fe   :  { %2733 = vmatpush1.bf16.msra.mxu0 %v2732_v24 }
 0x2ff   :  { %2735 = vmatprep.subr.bf16.mxu0 %v2734_v26 }
 0x302   :  { %v1348_v37 = vpop.f32.mrb[6].mxu1  ;;  %2737 = vmatpush1.bf16.msra.mxu0 %v2736_v32 }
 0x303   :  { %v2748_v27 = vadd.f32 %v1348_v37, %v772_v33  ;;  %v1350_v40 = vpop.f32.mrb[7].mxu1  ;;  %2739 = vmatprep.subr.bf16.mxu0 %v2738_v34 }
 0x304   :  { %v2749_v41 = vadd.f32 %v1350_v40, %v776_v36 }
 0x305   :  { %v1359_v43 = vmax.f32 %v2748_v27, 0.0 }
 0x306   :  { %v1360_v39 = vmax.f32 %v2749_v41, 0.0  ;;  %2741 = vmatpush1.bf16.msra.mxu0 %v2740_v38 }
 0x308   :  { %1906 = vmatprep.mubr.f32.mxu0 %v1360_v39 }
 0x309   :  { %1907 = vmatmul.mubr.f32.vlgmr.msra.gmra.mrb[4].mxu0 %v1359_v43 }
 0x3dc   :  { %v1908_v46 = vpop.f32.mrb[4].mxu0 }
 0x3dd   :  { %v2750_v47 = vadd.f32 %v1908_v46, %v1622_v45  ;;  %v1910_v48 = vpop.f32.mrb[5].mxu0 }
 0x3de   :  { %v2751_v49 = vadd.f32 %v1910_v48, %v1626_v5 }
 0x3df   :  { %v1913_v50 = vsub.f32 0.0, %v2750_v47 }
 0x3e0   :  { %v1914_v51 = vsub.f32 0.0, %v2751_v49 }
 0x3e1   :  { %v1915_v18 = vmul.f32 1.442695, %v1913_v50 }
 0x3e2   :  { %v1917_v42 = vmul.f32 1.442695, %v1914_v51 }
 0x3e3   :  { %2767 = vpow2.f32 %v1915_v18 }
 0x3e4   :  { %2769 = vpow2.f32 %v1917_v42 }
 0x3ed   :  { %v2768_v52 = vpop.eup %2767 }
 0x3ee   :  { %v2770_v53 = vpop.eup %2769  ;;  %v1919_v54 = vadd.f32 1.0, %v2768_v52 }
 0x3ef   :  { %v1920_v55 = vadd.f32 1.0, %v2770_v53 }
 0x3f0   :  { %2771 = vrcp.f32 %v1919_v54 }
 0x3f1   :  { %2773 = vrcp.f32 %v1920_v55 }
 0x3fa   :  { %v2772_v56 = vpop.eup %2771 }
 0x3fb   :  { %v2774_v58 = vpop.eup %2773 }
 0x3fc   :  { %v1925_v61 = vcombine.low %v2772_v56, %v2774_v58 }
 0x3fe   :  { %1941 = vst.sshfl [vmem:[%s5317_s7] sm:$0x33 pattern:$0x76325410] %v1925_v61 }

</bundles_post_ra>
